<compile_context>
chip_gen: v5e
topology: v5e:2x2
jax: 0.10.0
libtpu: 0.0.40
codegen_flags: <defaults>
</compile_context>

<pallas_src>
import functools
import math

import jax
import jax.numpy as jnp
from jax.experimental import pallas as pl
from jax.experimental.pallas import tpu as pltpu

# Full-precision fp32 matmuls (MXU multi-pass) so the Pallas kernels and the
# pure-JAX reference agree to fp32 level in the parity check below.
jax.config.update("jax_default_matmul_precision", "highest")


# ----------------------------------------------------------------------------
# In-kernel building blocks (feature-major: tensors are (channels, nodes))
# ----------------------------------------------------------------------------
def _sigmoid(x):
    # Exact sigmoid (kept exact for the parity check).  If the fused kernel ever
    # becomes VALU-bound, pl.reciprocal(1 + jnp.exp(-x), approx=True) moves the
    # divide to the (otherwise idle) EUP slot.
    return 1.0 / (1.0 + jnp.exp(-x))


def _relu(x):
    return jnp.maximum(x, 0.0)


def _resnet_T(theta, wi, bi, wh, bh, wo):
    """ReLU ResNet, feature-major: h=relu(Wi@x+bi); h+=relu(W@h+b); return Wo@h."""
    h = _relu(jnp.dot(wi[...], theta, preferred_element_type=jnp.float32) + bi[...])
    # depth is tiny here -> static unroll; switch to lax.fori_loop(unroll=True)
    # over the stacked weights if depth grows and vregs start spilling.
    for l in range(wh.shape[0]):
        h = h + _relu(jnp.dot(wh[l], h, preferred_element_type=jnp.float32) + bh[l])
    return jnp.dot(wo[...], h, preferred_element_type=jnp.float32)


def _ffnet_hidden_T(theta, wi, bi, wh, bh, act):
    """FFNet hidden stack, feature-major (final width->out projection by caller)."""
    h = act(jnp.dot(wi[...], theta, preferred_element_type=jnp.float32) + bi[...])
    for l in range(wh.shape[0]):
        h = act(jnp.dot(wh[l], h, preferred_element_type=jnp.float32) + bh[l])
    return h


# ----------------------------------------------------------------------------
# Kernels
# ----------------------------------------------------------------------------
def message_kernel(x_ref, wi, bi, wh, bh, wo, o_ref):
    """Node-wise message network M (ReLU ResNet); output cast to the agg dtype."""
    o_ref[...] = _resnet_T(x_ref[...], wi, bi, wh, bh, wo).astype(o_ref.dtype)


def fused_agg_v_kernel(*refs, add_skip, act):
    """K-tiled add-aggregation (agg = msg_T @ B over src tiles, fp32 accumulator)
    fused with the V update: out = S(agg)*(R(agg)+E(agg)*agg) [+ skip][, act]."""
    msg_ref, adj_ref = refs[0], refs[1]
    idx = 2
    skip_ref = None
    if add_skip:
        skip_ref = refs[idx]
        idx += 1
    (s_wi, s_bi, s_wh, s_bh, s_wo,
     r_wi, r_bi, r_wh, r_bh, r_wo,
     e_wi, e_bi, e_wh, e_bh, e_wo) = refs[idx:idx + 15]
    o_ref, acc_ref = refs[idx + 15], refs[idx + 16]

    k = pl.program_id(1)

    @pl.when(k == 0)
    def _init():
        acc_ref[...] = jnp.zeros_like(acc_ref)

    # Partial aggregation for this (dst, src) tile pair: bf16 x bf16 (or f32)
    # operands, fp32 accumulation.
    acc_ref[...] += jnp.dot(msg_ref[...], adj_ref[...],
                            preferred_element_type=jnp.float32)

    @pl.when(k == pl.num_programs(1) - 1)
    def _epilogue():
        theta = acc_ref[...]                                   # (c, tile_n) fp32
        # S: sigmoid FFNet; final width->1 projection as mul + sublane (XLU)
        # reduce instead of an N=1 MXU matmul.
        hs = _ffnet_hidden_T(theta, s_wi, s_bi, s_wh, s_bh, _sigmoid)
        s = jnp.sum(hs * s_wo[...], axis=0, keepdims=True)     # (1, tile_n)
        # R: ReLU ResNet (c -> c).
        r = _resnet_T(theta, r_wi, r_bi, r_wh, r_bh, r_wo)
        # E: ReLU FFNet (c -> c).
        he = _ffnet_hidden_T(theta, e_wi, e_bi, e_wh, e_bh, _relu)
        e = jnp.dot(e_wo[...], he, preferred_element_type=jnp.float32)

        out = s * (r + e * theta)
        if add_skip:                      # fused skip-connection epilogue
            out = out + skip_ref[...]
        if act is not None:               # fused inter-layer activation epilogue
            out = act(out)
        o_ref[...] = out.astype(o_ref.dtype)


# ----------------------------------------------------------------------------
# pallas_call wrappers
# ----------------------------------------------------------------------------
def _const_spec(shape, grid_rank):
    """Full-array block + constant index_map -> fetched once, VMEM-resident."""
    zeros = (0,) * len(shape)
    if grid_rank == 1:
        return pl.BlockSpec(shape, lambda i: zeros)
    return pl.BlockSpec(shape, lambda i, j: zeros)


def _mlp_operands_T(p):
    """Transpose (in, out)-convention weights once into feature-major form."""
    depth, width = p["b_h"].shape
    return [p["w_in"].T,                          # (width, d_in)
            p["b_in"].reshape(width, 1),
            jnp.transpose(p["w_h"], (0, 2, 1)),   # (depth, width, width)
            p["b_h"].reshape(depth, width, 1),
            p["w_out"].T]                         # (d_out, width)


def _nbytes(arrs):
    return sum(int(a.size) * a.dtype.itemsize for a in arrs)


def _compiler_params(semantics, vmem_bytes):
    # Only raise the scoped VMEM limit when the tiling actually needs it, and
    # stay under v7x's 64 MiB physical VMEM (v5e/v6e have 128 MiB).
    limit = None
    if vmem_bytes > 24 * 1024 * 1024:
        limit = int(min(vmem_bytes + (8 << 20), 60 << 20))
    return pltpu.CompilerParams(dimension_semantics=semantics,
                                vmem_limit_bytes=limit)


def message_forward(xT, p, tile_nodes, out_dtype):
    """msg_T = M(x)_T, tiled over nodes (lane axis) with a large node tile."""
    d_in, n_pad = xT.shape
    d_out = p["w_out"].shape[1]
    ops = _mlp_operands_T(p)
    vmem = (2 * (d_in * 4 + d_out * jnp.dtype(out_dtype).itemsize) * tile_nodes
            + _nbytes(ops))
    return pl.pallas_call(
        message_kernel,
        out_shape=jax.ShapeDtypeStruct((d_out, n_pad), out_dtype),
        grid=(n_pad // tile_nodes,),
        in_specs=[pl.BlockSpec((d_in, tile_nodes), lambda i: (0, i))]
        + [_const_spec(o.shape, 1) for o in ops],
        out_specs=pl.BlockSpec((d_out, tile_nodes), lambda i: (0, i)),
        compiler_params=_compiler_params(("parallel",), vmem),
    )(xT, *ops)


def fused_agg_v_forward(msgT, adjB, vp, *, skip, act, tile_n, tile_k):
    """out_T[:, dst] = V(sum_src msg_T[:, src] * B[src, dst]) (+skip)(, act)."""
    c, n_pad = msgT.shape
    s_ops = _mlp_operands_T(vp["S"])
    s_ops[-1] = vp["S"]["w_out"]           # keep (s_width, 1): mul + sublane reduce
    w_ops = s_ops + _mlp_operands_T(vp["R"]) + _mlp_operands_T(vp["E"])

    add_skip = skip is not None
    operands = [msgT, adjB] + ([skip] if add_skip else []) + w_ops

    in_specs = [
        pl.BlockSpec((c, tile_k), lambda j, k: (0, k)),        # messages (src tile)
        pl.BlockSpec((tile_k, tile_n), lambda j, k: (k, j)),   # B[src, dst]
    ]
    if add_skip:
        in_specs.append(pl.BlockSpec((c, tile_n), lambda j, k: (0, j)))
    in_specs += [_const_spec(o.shape, 2) for o in w_ops]

    isz = msgT.dtype.itemsize
    vmem = (2 * (c * tile_k + tile_k * tile_n) * isz          # msg + adj (dbl buf)
            + (2 * c * tile_n * 4 if add_skip else 0)         # skip (dbl buf)
            + 3 * c * tile_n * 4                              # out (dbl buf) + acc
            + _nbytes(w_ops))

    return pl.pallas_call(
        functools.partial(fused_agg_v_kernel, add_skip=add_skip, act=act),
        out_shape=jax.ShapeDtypeStruct((c, n_pad), jnp.float32),
        grid=(n_pad // tile_n, n_pad // tile_k),   # (dst tiles, src tiles)
        in_specs=in_specs,
        out_specs=pl.BlockSpec((c, tile_n), lambda j, k: (0, j)),
        scratch_shapes=[pltpu.VMEM((c, tile_n), jnp.float32)],
        compiler_params=_compiler_params(("parallel", "arbitrary"), vmem),
    )(*operands)


def gcn_conv_forward(xT, conv_params, *, adjB, skip, act, tile_n, tile_k,
                     tile_nodes, agg_dtype):
    msgT = message_forward(xT, conv_params["M"], tile_nodes, agg_dtype)
    return fused_agg_v_forward(msgT, adjB, conv_params["V"], skip=skip, act=act,
                               tile_n=tile_n, tile_k=tile_k)


def _fit_node_tile(n_pad, cap):
    """Largest multiple of 128 that divides n_pad and is <= cap."""
    best, t = 128, 128
    while t <= min(cap, n_pad):
        if n_pad % t == 0:
            best = t
        t += 128
    return best


def mygcn3_forward(x, edge_index, params, *, skip_connection=True, activation=None,
                   tile_n=256, tile_k=1024, tile_nodes=1024,
                   agg_dtype=jnp.bfloat16):
    assert tile_n % 128 == 0 and tile_k % 128 == 0 and tile_nodes % 128 == 0
    n = x.shape[0]
    lcm = tile_n * tile_k // math.gcd(tile_n, tile_k)
    n_pad = -(-n // lcm) * lcm
    tile_nodes = _fit_node_tile(n_pad, tile_nodes)

    # Feature-major activations: (channels, nodes) -> node axis is lane-dense.
    xT = jnp.pad(x.astype(jnp.float32), ((0, n_pad - n), (0, 0))).T

    src, dst = edge_index[0], edge_index[1]
    # Dense B[src, dst] = edge multiplicity, so msg_T @ B == per-edge message +
    # scatter-add (messages depend only on the source node).  bf16 counts <= 256
    # stay exact; this halves the dominant O(N^2) HBM read.  Padded dst columns
    # are zero -> padded outputs are garbage but sliced off at the end.
    # TODO(synk): for large sparse graphs replace this densification with a
    # PrefetchScalarGridSpec CSR gather / segment-sum kernel (O(E) traffic).
    adjB = (jnp.zeros((n_pad, n_pad), jnp.float32).at[src, dst].add(1.0)
            .astype(agg_dtype))

    conv = functools.partial(gcn_conv_forward, adjB=adjB, tile_n=tile_n,
                             tile_k=tile_k, tile_nodes=tile_nodes,
                             agg_dtype=agg_dtype)
    x1 = conv(xT, params["conv1"], skip=None, act=activation)
    x2 = conv(x1, params["conv2"], skip=x1 if skip_connection else None,
              act=activation)
    x3 = conv(x2, params["conv3"], skip=xT if skip_connection else None, act=None)
    return x3[:, :n].T


# ----------------------------------------------------------------------------
# Pure-JAX reference (mirrors the PyTorch module semantics, node-major)
# ----------------------------------------------------------------------------
def _resnet_ref(x, p):
    h = jnp.maximum(x @ p["w_in"] + p["b_in"], 0.0)
    for l in range(p["w_h"].shape[0]):
        h = h + jnp.maximum(h @ p["w_h"][l] + p["b_h"][l], 0.0)
    return h @ p["w_out"]


def _ffnet_ref(x, p, act):
    h = act(x @ p["w_in"] + p["b_in"])
    for l in range(p["w_h"].shape[0]):
        h = act(h @ p["w_h"][l] + p["b_h"][l])
    return h @ p["w_out"]


def _v_ref(theta, vp):
    s = _ffnet_ref(theta, vp["S"], _sigmoid)
    r = _resnet_ref(theta, vp["R"])
    e = _ffnet_ref(theta, vp["E"], lambda z: jnp.maximum(z, 0.0))
    return s * (r + e * theta)


def _conv_ref(x, edge_index, conv_params, quantize_msg=False):
    src, dst = edge_index[0], edge_index[1]
    msg = _resnet_ref(x, conv_params["M"])          # per-node message M(x)
    if quantize_msg:                                # mirror the bf16 fast path
        msg = msg.astype(jnp.bfloat16).astype(jnp.float32)
    agg = (jnp.zeros((x.shape[0], msg.shape[1]), jnp.float32)
           .at[dst].add(msg[src]))                  # aggr='add'
    return _v_ref(agg, conv_params["V"])


def mygcn3_reference(x, edge_index, params, skip_connection=True, activation=None,
                     quantize_msg=False):
    x1 = _conv_ref(x, edge_index, params["conv1"], quantize_msg)
    if activation is not None:
        x1 = activation(x1)
    x2 = _conv_ref(x1, edge_index, params["conv2"], quantize_msg)
    if skip_connection:
        x2 = x2 + x1
    if activation is not None:
        x2 = activation(x2)
    x3 = _conv_ref(x2, edge_index, params["conv3"], quantize_msg)
    if skip_connection:
        x3 = x3 + x
    return x3


# ----------------------------------------------------------------------------
# Parameter construction (weights stored (in, out); x @ W + b convention)
# ----------------------------------------------------------------------------
def _init_mlp(key, d_in, width, depth, d_out):
    ks = jax.random.split(key, 5)
    return {
        "w_in":  jax.random.normal(ks[0], (d_in, width), jnp.float32) / math.sqrt(d_in),
        "b_in":  0.1 * jax.random.normal(ks[1], (width,), jnp.float32),
        "w_h":   jax.random.normal(ks[2], (depth, width, width), jnp.float32) / math.sqrt(width),
        "b_h":   0.1 * jax.random.normal(ks[3], (depth, width), jnp.float32),
        "w_out": jax.random.normal(ks[4], (width, d_out), jnp.float32) / math.sqrt(width),
    }


def _init_conv(key, in_ch, out_ch, v_width, v_depth, m_width, m_depth):
    km, ks, kr, ke = jax.random.split(key, 4)
    return {
        "M": _init_mlp(km, in_ch, m_width, m_depth, out_ch),
        "V": {
            "S": _init_mlp(ks, out_ch, v_width, v_depth, 1),
            "R": _init_mlp(kr, out_ch, v_width, v_depth, out_ch),
            "E": _init_mlp(ke, out_ch, v_width, v_depth, out_ch),
        },
    }


def _check(got, want, rel, name):
    scale = max(float(jnp.max(jnp.abs(want))), 1.0)
    err = float(jnp.max(jnp.abs(got - want)))
    assert err <= rel * scale, (name, err, scale)


if __name__ == "__main__":
    in_channels, hidden_channels = 4, 8
    v_width, v_depth = 16, 2
    m_width, m_depth = 16, 2
    num_nodes, num_edges = 200, 800
    # Small aggregation tiles so the demo exercises a multi-step (dst, src) grid
    # (n_pad=256 -> fused grid (2, 2)); production defaults above are larger.
    tiles = dict(tile_n=128, tile_k=128, tile_nodes=512)

    key = jax.random.PRNGKey(0)
    k1, k2, k3, kx, ke = jax.random.split(key, 5)
    params = {
        "conv1": _init_conv(k1, in_channels, hidden_channels,
                            v_width, v_depth, m_width, m_depth),
        "conv2": _init_conv(k2, hidden_channels, hidden_channels,
                            v_width, v_depth, m_width, m_depth),
        "conv3": _init_conv(k3, hidden_channels, in_channels,
                            v_width, v_depth, m_width, m_depth),
    }
    x = jax.random.normal(kx, (num_nodes, in_channels), jnp.float32)
    edge_index = jax.random.randint(ke, (2, num_edges), 0, num_nodes, dtype=jnp.int32)

    # 1) Exact parity: fp32 aggregation path (module defaults: skip=True, act=None).
    out_f32 = jax.jit(functools.partial(
        mygcn3_forward, agg_dtype=jnp.float32, **tiles))(x, edge_index, params)
    jax.block_until_ready(out_f32)
    assert out_f32.shape == (num_nodes, in_channels)
    ref_f32 = mygcn3_reference(x, edge_index, params)
    _check(out_f32, ref_f32, 2e-3, "fp32")

    # 2) Fast path: bf16 adjacency/messages + fused skip & ReLU activation
    #    epilogue, checked against a bf16-message-matched reference.
    relu = lambda z: jnp.maximum(z, 0.0)
    out_bf16 = jax.jit(functools.partial(
        mygcn3_forward, agg_dtype=jnp.bfloat16, activation=relu, **tiles))(
            x, edge_index, params)
    jax.block_until_ready(out_bf16)
    ref_bf16 = mygcn3_reference(x, edge_index, params, activation=relu,
                                quantize_msg=True)
    _check(out_bf16, ref_bf16, 2e-2, "bf16")

    print("KERNEL_OK")
</pallas_src>

<mosaic_0001>
module attributes {stable_mosaic.version = 11 : i64} {
  func.func @message_kernel(%arg0: i32, %arg1: memref<4x256xf32, #tpu.memory_space<vmem>>, %arg2: memref<16x4xf32, #tpu.memory_space<vmem>>, %arg3: memref<16x1xf32, #tpu.memory_space<vmem>>, %arg4: memref<2x16x16xf32, #tpu.memory_space<vmem>>, %arg5: memref<2x16x1xf32, #tpu.memory_space<vmem>>, %arg6: memref<8x16xf32, #tpu.memory_space<vmem>>, %arg7: memref<8x256xf32, #tpu.memory_space<vmem>>) attributes {dimension_semantics = [#tpu.dimension_semantics<parallel>], iteration_bounds = array<i64: 1>, scalar_prefetch = 0 : i64, scratch_operands = 0 : i64, tpu.core_type = #tpu.core_type<tc>, window_params = [{transform_indices = @transform_0, window_bounds = array<i64: 4, 256>}, {pipeline_mode = #tpu.pipeline_mode<synchronous>, transform_indices = @transform_1, window_bounds = array<i64: 16, 4>}, {pipeline_mode = #tpu.pipeline_mode<synchronous>, transform_indices = @transform_2, window_bounds = array<i64: 16, 1>}, {pipeline_mode = #tpu.pipeline_mode<synchronous>, transform_indices = @transform_3, window_bounds = array<i64: 2, 16, 16>}, {pipeline_mode = #tpu.pipeline_mode<synchronous>, transform_indices = @transform_4, window_bounds = array<i64: 2, 16, 1>}, {pipeline_mode = #tpu.pipeline_mode<synchronous>, transform_indices = @transform_5, window_bounds = array<i64: 8, 16>}, {transform_indices = @transform_6, window_bounds = array<i64: 8, 256>}]} {
    %c0 = arith.constant 0 : index
    %c0_0 = arith.constant 0 : index
    %0 = vector.load %arg1[%c0, %c0_0] : memref<4x256xf32, #tpu.memory_space<vmem>>, vector<4x256xf32>
    %c0_1 = arith.constant 0 : index
    %c0_2 = arith.constant 0 : index
    %1 = vector.load %arg2[%c0_1, %c0_2] : memref<16x4xf32, #tpu.memory_space<vmem>>, vector<16x4xf32>
    %cst = arith.constant dense<0.000000e+00> : vector<16x256xf32>
    %2 = tpu.matmul %1, %0, %cst {dimension_numbers = #tpu.dot_dimension_numbers<[1], [0], [0], [1], [0, 0, 1, 1], [], []>, precision = #tpu.contract_precision<fp32>} : vector<16x4xf32>, vector<4x256xf32>, vector<16x256xf32> -> vector<16x256xf32>
    %c0_3 = arith.constant 0 : index
    %c0_4 = arith.constant 0 : index
    %3 = vector.load %arg3[%c0_3, %c0_4] : memref<16x1xf32, #tpu.memory_space<vmem>>, vector<16x1xf32>
    %4 = vector.broadcast %3 : vector<16x1xf32> to vector<16x256xf32>
    %5 = arith.addf %2, %4 : vector<16x256xf32>
    %cst_5 = arith.constant 0.000000e+00 : f32
    %6 = vector.broadcast %cst_5 : f32 to vector<16x256xf32>
    %7 = arith.maximumf %5, %6 : vector<16x256xf32>
    %c0_6 = arith.constant 0 : index
    %c0_7 = arith.constant 0 : index
    %c0_8 = arith.constant 0 : index
    %8 = vector.load %arg4[%c0_6, %c0_7, %c0_8] : memref<2x16x16xf32, #tpu.memory_space<vmem>>, vector<1x16x16xf32>
    %9 = vector.shape_cast %8 : vector<1x16x16xf32> to vector<16x16xf32>
    %cst_9 = arith.constant dense<0.000000e+00> : vector<16x256xf32>
    %10 = tpu.matmul %9, %7, %cst_9 {dimension_numbers = #tpu.dot_dimension_numbers<[1], [0], [0], [1], [0, 0, 1, 1], [], []>, precision = #tpu.contract_precision<fp32>} : vector<16x16xf32>, vector<16x256xf32>, vector<16x256xf32> -> vector<16x256xf32>
    %c0_10 = arith.constant 0 : index
    %c0_11 = arith.constant 0 : index
    %c0_12 = arith.constant 0 : index
    %11 = vector.load %arg5[%c0_10, %c0_11, %c0_12] : memref<2x16x1xf32, #tpu.memory_space<vmem>>, vector<1x16x1xf32>
    %12 = vector.shape_cast %11 : vector<1x16x1xf32> to vector<16x1xf32>
    %13 = vector.broadcast %12 : vector<16x1xf32> to vector<16x256xf32>
    %14 = arith.addf %10, %13 : vector<16x256xf32>
    %cst_13 = arith.constant 0.000000e+00 : f32
    %15 = vector.broadcast %cst_13 : f32 to vector<16x256xf32>
    %16 = arith.maximumf %14, %15 : vector<16x256xf32>
    %17 = arith.addf %7, %16 : vector<16x256xf32>
    %c1 = arith.constant 1 : index
    %c0_14 = arith.constant 0 : index
    %c0_15 = arith.constant 0 : index
    %18 = vector.load %arg4[%c1, %c0_14, %c0_15] : memref<2x16x16xf32, #tpu.memory_space<vmem>>, vector<1x16x16xf32>
    %19 = vector.shape_cast %18 : vector<1x16x16xf32> to vector<16x16xf32>
    %cst_16 = arith.constant dense<0.000000e+00> : vector<16x256xf32>
    %20 = tpu.matmul %19, %17, %cst_16 {dimension_numbers = #tpu.dot_dimension_numbers<[1], [0], [0], [1], [0, 0, 1, 1], [], []>, precision = #tpu.contract_precision<fp32>} : vector<16x16xf32>, vector<16x256xf32>, vector<16x256xf32> -> vector<16x256xf32>
    %c1_17 = arith.constant 1 : index
    %c0_18 = arith.constant 0 : index
    %c0_19 = arith.constant 0 : index
    %21 = vector.load %arg5[%c1_17, %c0_18, %c0_19] : memref<2x16x1xf32, #tpu.memory_space<vmem>>, vector<1x16x1xf32>
    %22 = vector.shape_cast %21 : vector<1x16x1xf32> to vector<16x1xf32>
    %23 = vector.broadcast %22 : vector<16x1xf32> to vector<16x256xf32>
    %24 = arith.addf %20, %23 : vector<16x256xf32>
    %cst_20 = arith.constant 0.000000e+00 : f32
    %25 = vector.broadcast %cst_20 : f32 to vector<16x256xf32>
    %26 = arith.maximumf %24, %25 : vector<16x256xf32>
    %27 = arith.addf %17, %26 : vector<16x256xf32>
    %c0_21 = arith.constant 0 : index
    %c0_22 = arith.constant 0 : index
    %28 = vector.load %arg6[%c0_21, %c0_22] : memref<8x16xf32, #tpu.memory_space<vmem>>, vector<8x16xf32>
    %cst_23 = arith.constant dense<0.000000e+00> : vector<8x256xf32>
    %29 = tpu.matmul %28, %27, %cst_23 {dimension_numbers = #tpu.dot_dimension_numbers<[1], [0], [0], [1], [0, 0, 1, 1], [], []>, precision = #tpu.contract_precision<fp32>} : vector<8x16xf32>, vector<16x256xf32>, vector<8x256xf32> -> vector<8x256xf32>
    %c0_24 = arith.constant 0 : index
    %c0_25 = arith.constant 0 : index
    %30 = vector.load %arg7[%c0_24, %c0_25] : memref<8x256xf32, #tpu.memory_space<vmem>>, vector<8x256xf32>
    tpu.vector_store %arg7[%c0_24, %c0_25], %29 {strides = array<i32>} : memref<8x256xf32, #tpu.memory_space<vmem>>, vector<8x256xf32>,
    return
  }
  func.func @transform_0(%arg0: i32) -> (i32, i32) {
    %c0_i32 = arith.constant 0 : i32
    %c0_i32_0 = arith.constant 0 : i32
    return %c0_i32, %arg0 : i32, i32
  }
  func.func @transform_1(%arg0: i32) -> (i32, i32) {
    %c0_i32 = arith.constant 0 : i32
    %c0_i32_0 = arith.constant 0 : i32
    %c0_i32_1 = arith.constant 0 : i32
    return %c0_i32, %c0_i32_0 : i32, i32
  }
  func.func @transform_2(%arg0: i32) -> (i32, i32) {
    %c0_i32 = arith.constant 0 : i32
    %c0_i32_0 = arith.constant 0 : i32
    %c0_i32_1 = arith.constant 0 : i32
    return %c0_i32, %c0_i32_0 : i32, i32
  }
  func.func @transform_3(%arg0: i32) -> (i32, i32, i32) {
    %c0_i32 = arith.constant 0 : i32
    %c0_i32_0 = arith.constant 0 : i32
    %c0_i32_1 = arith.constant 0 : i32
    %c0_i32_2 = arith.constant 0 : i32
    return %c0_i32, %c0_i32_0, %c0_i32_1 : i32, i32, i32
  }
  func.func @transform_4(%arg0: i32) -> (i32, i32, i32) {
    %c0_i32 = arith.constant 0 : i32
    %c0_i32_0 = arith.constant 0 : i32
    %c0_i32_1 = arith.constant 0 : i32
    %c0_i32_2 = arith.constant 0 : i32
    return %c0_i32, %c0_i32_0, %c0_i32_1 : i32, i32, i32
  }
  func.func @transform_5(%arg0: i32) -> (i32, i32) {
    %c0_i32 = arith.constant 0 : i32
    %c0_i32_0 = arith.constant 0 : i32
    %c0_i32_1 = arith.constant 0 : i32
    return %c0_i32, %c0_i32_0 : i32, i32
  }
  func.func @transform_6(%arg0: i32) -> (i32, i32) {
    %c0_i32 = arith.constant 0 : i32
    %c0_i32_0 = arith.constant 0 : i32
    return %c0_i32, %arg0 : i32, i32
  }
}

module attributes {stable_mosaic.version = 11 : i64} {
  func.func @message_kernel(%arg0: i32, %arg1: memref<8x256xf32, #tpu.memory_space<vmem>>, %arg2: memref<16x8xf32, #tpu.memory_space<vmem>>, %arg3: memref<16x1xf32, #tpu.memory_space<vmem>>, %arg4: memref<2x16x16xf32, #tpu.memory_space<vmem>>, %arg5: memref<2x16x1xf32, #tpu.memory_space<vmem>>, %arg6: memref<8x16xf32, #tpu.memory_space<vmem>>, %arg7: memref<8x256xf32, #tpu.memory_space<vmem>>) attributes {dimension_semantics = [#tpu.dimension_semantics<parallel>], iteration_bounds = array<i64: 1>, scalar_prefetch = 0 : i64, scratch_operands = 0 : i64, tpu.core_type = #tpu.core_type<tc>, window_params = [{transform_indices = @transform_0, window_bounds = array<i64: 8, 256>}, {pipeline_mode = #tpu.pipeline_mode<synchronous>, transform_indices = @transform_1, window_bounds = array<i64: 16, 8>}, {pipeline_mode = #tpu.pipeline_mode<synchronous>, transform_indices = @transform_2, window_bounds = array<i64: 16, 1>}, {pipeline_mode = #tpu.pipeline_mode<synchronous>, transform_indices = @transform_3, window_bounds = array<i64: 2, 16, 16>}, {pipeline_mode = #tpu.pipeline_mode<synchronous>, transform_indices = @transform_4, window_bounds = array<i64: 2, 16, 1>}, {pipeline_mode = #tpu.pipeline_mode<synchronous>, transform_indices = @transform_5, window_bounds = array<i64: 8, 16>}, {transform_indices = @transform_6, window_bounds = array<i64: 8, 256>}]} {
    %c0 = arith.constant 0 : index
    %c0_0 = arith.constant 0 : index
    %0 = vector.load %arg1[%c0, %c0_0] : memref<8x256xf32, #tpu.memory_space<vmem>>, vector<8x256xf32>
    %c0_1 = arith.constant 0 : index
    %c0_2 = arith.constant 0 : index
    %1 = vector.load %arg2[%c0_1, %c0_2] : memref<16x8xf32, #tpu.memory_space<vmem>>, vector<16x8xf32>
    %cst = arith.constant dense<0.000000e+00> : vector<16x256xf32>
    %2 = tpu.matmul %1, %0, %cst {dimension_numbers = #tpu.dot_dimension_numbers<[1], [0], [0], [1], [0, 0, 1, 1], [], []>, precision = #tpu.contract_precision<fp32>} : vector<16x8xf32>, vector<8x256xf32>, vector<16x256xf32> -> vector<16x256xf32>
    %c0_3 = arith.constant 0 : index
    %c0_4 = arith.constant 0 : index
    %3 = vector.load %arg3[%c0_3, %c0_4] : memref<16x1xf32, #tpu.memory_space<vmem>>, vector<16x1xf32>
    %4 = vector.broadcast %3 : vector<16x1xf32> to vector<16x256xf32>
    %5 = arith.addf %2, %4 : vector<16x256xf32>
    %cst_5 = arith.constant 0.000000e+00 : f32
    %6 = vector.broadcast %cst_5 : f32 to vector<16x256xf32>
    %7 = arith.maximumf %5, %6 : vector<16x256xf32>
    %c0_6 = arith.constant 0 : index
    %c0_7 = arith.constant 0 : index
    %c0_8 = arith.constant 0 : index
    %8 = vector.load %arg4[%c0_6, %c0_7, %c0_8] : memref<2x16x16xf32, #tpu.memory_space<vmem>>, vector<1x16x16xf32>
    %9 = vector.shape_cast %8 : vector<1x16x16xf32> to vector<16x16xf32>
    %cst_9 = arith.constant dense<0.000000e+00> : vector<16x256xf32>
    %10 = tpu.matmul %9, %7, %cst_9 {dimension_numbers = #tpu.dot_dimension_numbers<[1], [0], [0], [1], [0, 0, 1, 1], [], []>, precision = #tpu.contract_precision<fp32>} : vector<16x16xf32>, vector<16x256xf32>, vector<16x256xf32> -> vector<16x256xf32>
    %c0_10 = arith.constant 0 : index
    %c0_11 = arith.constant 0 : index
    %c0_12 = arith.constant 0 : index
    %11 = vector.load %arg5[%c0_10, %c0_11, %c0_12] : memref<2x16x1xf32, #tpu.memory_space<vmem>>, vector<1x16x1xf32>
    %12 = vector.shape_cast %11 : vector<1x16x1xf32> to vector<16x1xf32>
    %13 = vector.broadcast %12 : vector<16x1xf32> to vector<16x256xf32>
    %14 = arith.addf %10, %13 : vector<16x256xf32>
    %cst_13 = arith.constant 0.000000e+00 : f32
    %15 = vector.broadcast %cst_13 : f32 to vector<16x256xf32>
    %16 = arith.maximumf %14, %15 : vector<16x256xf32>
    %17 = arith.addf %7, %16 : vector<16x256xf32>
    %c1 = arith.constant 1 : index
    %c0_14 = arith.constant 0 : index
    %c0_15 = arith.constant 0 : index
    %18 = vector.load %arg4[%c1, %c0_14, %c0_15] : memref<2x16x16xf32, #tpu.memory_space<vmem>>, vector<1x16x16xf32>
    %19 = vector.shape_cast %18 : vector<1x16x16xf32> to vector<16x16xf32>
    %cst_16 = arith.constant dense<0.000000e+00> : vector<16x256xf32>
    %20 = tpu.matmul %19, %17, %cst_16 {dimension_numbers = #tpu.dot_dimension_numbers<[1], [0], [0], [1], [0, 0, 1, 1], [], []>, precision = #tpu.contract_precision<fp32>} : vector<16x16xf32>, vector<16x256xf32>, vector<16x256xf32> -> vector<16x256xf32>
    %c1_17 = arith.constant 1 : index
    %c0_18 = arith.constant 0 : index
    %c0_19 = arith.constant 0 : index
    %21 = vector.load %arg5[%c1_17, %c0_18, %c0_19] : memref<2x16x1xf32, #tpu.memory_space<vmem>>, vector<1x16x1xf32>
    %22 = vector.shape_cast %21 : vector<1x16x1xf32> to vector<16x1xf32>
    %23 = vector.broadcast %22 : vector<16x1xf32> to vector<16x256xf32>
    %24 = arith.addf %20, %23 : vector<16x256xf32>
    %cst_20 = arith.constant 0.000000e+00 : f32
    %25 = vector.broadcast %cst_20 : f32 to vector<16x256xf32>
    %26 = arith.maximumf %24, %25 : vector<16x256xf32>
    %27 = arith.addf %17, %26 : vector<16x256xf32>
    %c0_21 = arith.constant 0 : index
    %c0_22 = arith.constant 0 : index
    %28 = vector.load %arg6[%c0_21, %c0_22] : memref<8x16xf32, #tpu.memory_space<vmem>>, vector<8x16xf32>
    %cst_23 = arith.constant dense<0.000000e+00> : vector<8x256xf32>
    %29 = tpu.matmul %28, %27, %cst_23 {dimension_numbers = #tpu.dot_dimension_numbers<[1], [0], [0], [1], [0, 0, 1, 1], [], []>, precision = #tpu.contract_precision<fp32>} : vector<8x16xf32>, vector<16x256xf32>, vector<8x256xf32> -> vector<8x256xf32>
    %c0_24 = arith.constant 0 : index
    %c0_25 = arith.constant 0 : index
    %30 = vector.load %arg7[%c0_24, %c0_25] : memref<8x256xf32, #tpu.memory_space<vmem>>, vector<8x256xf32>
    tpu.vector_store %arg7[%c0_24, %c0_25], %29 {strides = array<i32>} : memref<8x256xf32, #tpu.memory_space<vmem>>, vector<8x256xf32>,
    return
  }
  func.func @transform_0(%arg0: i32) -> (i32, i32) {
    %c0_i32 = arith.constant 0 : i32
    %c0_i32_0 = arith.constant 0 : i32
    return %c0_i32, %arg0 : i32, i32
  }
  func.func @transform_1(%arg0: i32) -> (i32, i32) {
    %c0_i32 = arith.constant 0 : i32
    %c0_i32_0 = arith.constant 0 : i32
    %c0_i32_1 = arith.constant 0 : i32
    return %c0_i32, %c0_i32_0 : i32, i32
  }
  func.func @transform_2(%arg0: i32) -> (i32, i32) {
    %c0_i32 = arith.constant 0 : i32
    %c0_i32_0 = arith.constant 0 : i32
    %c0_i32_1 = arith.constant 0 : i32
    return %c0_i32, %c0_i32_0 : i32, i32
  }
  func.func @transform_3(%arg0: i32) -> (i32, i32, i32) {
    %c0_i32 = arith.constant 0 : i32
    %c0_i32_0 = arith.constant 0 : i32
    %c0_i32_1 = arith.constant 0 : i32
    %c0_i32_2 = arith.constant 0 : i32
    return %c0_i32, %c0_i32_0, %c0_i32_1 : i32, i32, i32
  }
  func.func @transform_4(%arg0: i32) -> (i32, i32, i32) {
    %c0_i32 = arith.constant 0 : i32
    %c0_i32_0 = arith.constant 0 : i32
    %c0_i32_1 = arith.constant 0 : i32
    %c0_i32_2 = arith.constant 0 : i32
    return %c0_i32, %c0_i32_0, %c0_i32_1 : i32, i32, i32
  }
  func.func @transform_5(%arg0: i32) -> (i32, i32) {
    %c0_i32 = arith.constant 0 : i32
    %c0_i32_0 = arith.constant 0 : i32
    %c0_i32_1 = arith.constant 0 : i32
    return %c0_i32, %c0_i32_0 : i32, i32
  }
  func.func @transform_6(%arg0: i32) -> (i32, i32) {
    %c0_i32 = arith.constant 0 : i32
    %c0_i32_0 = arith.constant 0 : i32
    return %c0_i32, %arg0 : i32, i32
  }
}

module attributes {stable_mosaic.version = 11 : i64} {
  func.func @fused_agg_v_kernel(%arg0: i32, %arg1: i32, %arg2: memref<8x128xf32, #tpu.memory_space<vmem>>, %arg3: memref<128x128xf32, #tpu.memory_space<vmem>>, %arg4: memref<16x8xf32, #tpu.memory_space<vmem>>, %arg5: memref<16x1xf32, #tpu.memory_space<vmem>>, %arg6: memref<2x16x16xf32, #tpu.memory_space<vmem>>, %arg7: memref<2x16x1xf32, #tpu.memory_space<vmem>>, %arg8: memref<16x1xf32, #tpu.memory_space<vmem>>, %arg9: memref<16x8xf32, #tpu.memory_space<vmem>>, %arg10: memref<16x1xf32, #tpu.memory_space<vmem>>, %arg11: memref<2x16x16xf32, #tpu.memory_space<vmem>>, %arg12: memref<2x16x1xf32, #tpu.memory_space<vmem>>, %arg13: memref<8x16xf32, #tpu.memory_space<vmem>>, %arg14: memref<16x8xf32, #tpu.memory_space<vmem>>, %arg15: memref<16x1xf32, #tpu.memory_space<vmem>>, %arg16: memref<2x16x16xf32, #tpu.memory_space<vmem>>, %arg17: memref<2x16x1xf32, #tpu.memory_space<vmem>>, %arg18: memref<8x16xf32, #tpu.memory_space<vmem>>, %arg19: memref<8x128xf32, #tpu.memory_space<vmem>>, %arg20: memref<8x128xf32, #tpu.memory_space<vmem>>) attributes {dimension_semantics = [#tpu.dimension_semantics<parallel>, #tpu.dimension_semantics<arbitrary>], iteration_bounds = array<i64: 2, 2>, scalar_prefetch = 0 : i64, scratch_operands = 1 : i64, tpu.core_type = #tpu.core_type<tc>, window_params = [{transform_indices = @transform_0, window_bounds = array<i64: 8, 128>}, {transform_indices = @transform_1, window_bounds = array<i64: 128, 128>}, {pipeline_mode = #tpu.pipeline_mode<synchronous>, transform_indices = @transform_2, window_bounds = array<i64: 16, 8>}, {pipeline_mode = #tpu.pipeline_mode<synchronous>, transform_indices = @transform_3, window_bounds = array<i64: 16, 1>}, {pipeline_mode = #tpu.pipeline_mode<synchronous>, transform_indices = @transform_4, window_bounds = array<i64: 2, 16, 16>}, {pipeline_mode = #tpu.pipeline_mode<synchronous>, transform_indices = @transform_5, window_bounds = array<i64: 2, 16, 1>}, {pipeline_mode = #tpu.pipeline_mode<synchronous>, transform_indices = @transform_6, window_bounds = array<i64: 16, 1>}, {pipeline_mode = #tpu.pipeline_mode<synchronous>, transform_indices = @transform_7, window_bounds = array<i64: 16, 8>}, {pipeline_mode = #tpu.pipeline_mode<synchronous>, transform_indices = @transform_8, window_bounds = array<i64: 16, 1>}, {pipeline_mode = #tpu.pipeline_mode<synchronous>, transform_indices = @transform_9, window_bounds = array<i64: 2, 16, 16>}, {pipeline_mode = #tpu.pipeline_mode<synchronous>, transform_indices = @transform_10, window_bounds = array<i64: 2, 16, 1>}, {pipeline_mode = #tpu.pipeline_mode<synchronous>, transform_indices = @transform_11, window_bounds = array<i64: 8, 16>}, {pipeline_mode = #tpu.pipeline_mode<synchronous>, transform_indices = @transform_12, window_bounds = array<i64: 16, 8>}, {pipeline_mode = #tpu.pipeline_mode<synchronous>, transform_indices = @transform_13, window_bounds = array<i64: 16, 1>}, {pipeline_mode = #tpu.pipeline_mode<synchronous>, transform_indices = @transform_14, window_bounds = array<i64: 2, 16, 16>}, {pipeline_mode = #tpu.pipeline_mode<synchronous>, transform_indices = @transform_15, window_bounds = array<i64: 2, 16, 1>}, {pipeline_mode = #tpu.pipeline_mode<synchronous>, transform_indices = @transform_16, window_bounds = array<i64: 8, 16>}, {transform_indices = @transform_17, window_bounds = array<i64: 8, 128>}]} {
    %c0_i32 = arith.constant 0 : i32
    %0 = arith.cmpi eq, %arg1, %c0_i32 : i32
    %1 = arith.extui %0 : i1 to i32
    %c0_i32_0 = arith.constant 0 : i32
    %2 = arith.cmpi ne, %1, %c0_i32_0 : i32
    scf.if %2 {
      %cst_9 = arith.constant 0.000000e+00 : f32
      %12 = vector.broadcast %cst_9 : f32 to vector<8x128xf32>
      %c0_10 = arith.constant 0 : index
      %c0_11 = arith.constant 0 : index
      %13 = vector.load %arg20[%c0_10, %c0_11] : memref<8x128xf32, #tpu.memory_space<vmem>>, vector<8x128xf32>
      tpu.vector_store %arg20[%c0_10, %c0_11], %12 {strides = array<i32>} : memref<8x128xf32, #tpu.memory_space<vmem>>, vector<8x128xf32>,
    } else {
    }
    %c0 = arith.constant 0 : index
    %c0_1 = arith.constant 0 : index
    %3 = vector.load %arg20[%c0, %c0_1] : memref<8x128xf32, #tpu.memory_space<vmem>>, vector<8x128xf32>
    %c0_2 = arith.constant 0 : index
    %c0_3 = arith.constant 0 : index
    %4 = vector.load %arg2[%c0_2, %c0_3] : memref<8x128xf32, #tpu.memory_space<vmem>>, vector<8x128xf32>
    %c0_4 = arith.constant 0 : index
    %c0_5 = arith.constant 0 : index
    %5 = vector.load %arg3[%c0_4, %c0_5] : memref<128x128xf32, #tpu.memory_space<vmem>>, vector<128x128xf32>
    %cst = arith.constant dense<0.000000e+00> : vector<8x128xf32>
    %6 = tpu.matmul %4, %5, %cst {dimension_numbers = #tpu.dot_dimension_numbers<[1], [0], [0], [1], [0, 0, 1, 1], [], []>, precision = #tpu.contract_precision<fp32>} : vector<8x128xf32>, vector<128x128xf32>, vector<8x128xf32> -> vector<8x128xf32>
    %7 = arith.addf %3, %6 : vector<8x128xf32>
    %c0_6 = arith.constant 0 : index
    %c0_7 = arith.constant 0 : index
    %8 = vector.load %arg20[%c0_6, %c0_7] : memref<8x128xf32, #tpu.memory_space<vmem>>, vector<8x128xf32>
    tpu.vector_store %arg20[%c0_6, %c0_7], %7 {strides = array<i32>} : memref<8x128xf32, #tpu.memory_space<vmem>>, vector<8x128xf32>,
    %c1_i32 = arith.constant 1 : i32
    %9 = arith.cmpi eq, %arg1, %c1_i32 : i32
    %10 = arith.extui %9 : i1 to i32
    %c0_i32_8 = arith.constant 0 : i32
    %11 = arith.cmpi ne, %10, %c0_i32_8 : i32
    scf.if %11 {
      %c0_9 = arith.constant 0 : index
      %c0_10 = arith.constant 0 : index
      %12 = vector.load %arg20[%c0_9, %c0_10] : memref<8x128xf32, #tpu.memory_space<vmem>>, vector<8x128xf32>
      %c0_11 = arith.constant 0 : index
      %c0_12 = arith.constant 0 : index
      %13 = vector.load %arg4[%c0_11, %c0_12] : memref<16x8xf32, #tpu.memory_space<vmem>>, vector<16x8xf32>
      %cst_13 = arith.constant dense<0.000000e+00> : vector<16x128xf32>
      %14 = tpu.matmul %13, %12, %cst_13 {dimension_numbers = #tpu.dot_dimension_numbers<[1], [0], [0], [1], [0, 0, 1, 1], [], []>, precision = #tpu.contract_precision<fp32>} : vector<16x8xf32>, vector<8x128xf32>, vector<16x128xf32> -> vector<16x128xf32>
      %c0_14 = arith.constant 0 : index
      %c0_15 = arith.constant 0 : index
      %15 = vector.load %arg5[%c0_14, %c0_15] : memref<16x1xf32, #tpu.memory_space<vmem>>, vector<16x1xf32>
      %16 = vector.broadcast %15 : vector<16x1xf32> to vector<16x128xf32>
      %17 = arith.addf %14, %16 : vector<16x128xf32>
      %cst_16 = arith.constant 0.000000e+00 : f32
      %18 = vector.broadcast %cst_16 : f32 to vector<16x128xf32>
      %19 = arith.subf %18, %17 : vector<16x128xf32>
      %20 = math.exp %19 : vector<16x128xf32>
      %cst_17 = arith.constant 1.000000e+00 : f32
      %21 = vector.broadcast %cst_17 : f32 to vector<16x128xf32>
      %22 = arith.addf %21, %20 : vector<16x128xf32>
      %cst_18 = arith.constant 1.000000e+00 : f32
      %23 = vector.broadcast %cst_18 : f32 to vector<16x128xf32>
      %24 = arith.divf %23, %22 : vector<16x128xf32>
      %c0_19 = arith.constant 0 : index
      %c0_20 = arith.constant 0 : index
      %c0_21 = arith.constant 0 : index
      %25 = vector.load %arg6[%c0_19, %c0_20, %c0_21] : memref<2x16x16xf32, #tpu.memory_space<vmem>>, vector<1x16x16xf32>
      %26 = vector.shape_cast %25 : vector<1x16x16xf32> to vector<16x16xf32>
      %cst_22 = arith.constant dense<0.000000e+00> : vector<16x128xf32>
      %27 = tpu.matmul %26, %24, %cst_22 {dimension_numbers = #tpu.dot_dimension_numbers<[1], [0], [0], [1], [0, 0, 1, 1], [], []>, precision = #tpu.contract_precision<fp32>} : vector<16x16xf32>, vector<16x128xf32>, vector<16x128xf32> -> vector<16x128xf32>
      %c0_23 = arith.constant 0 : index
      %c0_24 = arith.constant 0 : index
      %c0_25 = arith.constant 0 : index
      %28 = vector.load %arg7[%c0_23, %c0_24, %c0_25] : memref<2x16x1xf32, #tpu.memory_space<vmem>>, vector<1x16x1xf32>
      %29 = vector.shape_cast %28 : vector<1x16x1xf32> to vector<16x1xf32>
      %30 = vector.broadcast %29 : vector<16x1xf32> to vector<16x128xf32>
      %31 = arith.addf %27, %30 : vector<16x128xf32>
      %cst_26 = arith.constant 0.000000e+00 : f32
      %32 = vector.broadcast %cst_26 : f32 to vector<16x128xf32>
      %33 = arith.subf %32, %31 : vector<16x128xf32>
      %34 = math.exp %33 : vector<16x128xf32>
      %cst_27 = arith.constant 1.000000e+00 : f32
      %35 = vector.broadcast %cst_27 : f32 to vector<16x128xf32>
      %36 = arith.addf %35, %34 : vector<16x128xf32>
      %cst_28 = arith.constant 1.000000e+00 : f32
      %37 = vector.broadcast %cst_28 : f32 to vector<16x128xf32>
      %38 = arith.divf %37, %36 : vector<16x128xf32>
      %c1 = arith.constant 1 : index
      %c0_29 = arith.constant 0 : index
      %c0_30 = arith.constant 0 : index
      %39 = vector.load %arg6[%c1, %c0_29, %c0_30] : memref<2x16x16xf32, #tpu.memory_space<vmem>>, vector<1x16x16xf32>
      %40 = vector.shape_cast %39 : vector<1x16x16xf32> to vector<16x16xf32>
      %cst_31 = arith.constant dense<0.000000e+00> : vector<16x128xf32>
      %41 = tpu.matmul %40, %38, %cst_31 {dimension_numbers = #tpu.dot_dimension_numbers<[1], [0], [0], [1], [0, 0, 1, 1], [], []>, precision = #tpu.contract_precision<fp32>} : vector<16x16xf32>, vector<16x128xf32>, vector<16x128xf32> -> vector<16x128xf32>
      %c1_32 = arith.constant 1 : index
      %c0_33 = arith.constant 0 : index
      %c0_34 = arith.constant 0 : index
      %42 = vector.load %arg7[%c1_32, %c0_33, %c0_34] : memref<2x16x1xf32, #tpu.memory_space<vmem>>, vector<1x16x1xf32>
      %43 = vector.shape_cast %42 : vector<1x16x1xf32> to vector<16x1xf32>
      %44 = vector.broadcast %43 : vector<16x1xf32> to vector<16x128xf32>
      %45 = arith.addf %41, %44 : vector<16x128xf32>
      %cst_35 = arith.constant 0.000000e+00 : f32
      %46 = vector.broadcast %cst_35 : f32 to vector<16x128xf32>
      %47 = arith.subf %46, %45 : vector<16x128xf32>
      %48 = math.exp %47 : vector<16x128xf32>
      %cst_36 = arith.constant 1.000000e+00 : f32
      %49 = vector.broadcast %cst_36 : f32 to vector<16x128xf32>
      %50 = arith.addf %49, %48 : vector<16x128xf32>
      %cst_37 = arith.constant 1.000000e+00 : f32
      %51 = vector.broadcast %cst_37 : f32 to vector<16x128xf32>
      %52 = arith.divf %51, %50 : vector<16x128xf32>
      %c0_38 = arith.constant 0 : index
      %c0_39 = arith.constant 0 : index
      %53 = vector.load %arg8[%c0_38, %c0_39] : memref<16x1xf32, #tpu.memory_space<vmem>>, vector<16x1xf32>
      %54 = vector.broadcast %53 : vector<16x1xf32> to vector<16x128xf32>
      %55 = arith.mulf %52, %54 : vector<16x128xf32>
      %cst_40 = arith.constant dense<0.000000e+00> : vector<128xf32>
      %56 = vector.multi_reduction <add>, %55, %cst_40 [0] : vector<16x128xf32> to vector<128xf32>
      %57 = vector.shape_cast %56 : vector<128xf32> to vector<1x128xf32>
      %c0_41 = arith.constant 0 : index
      %c0_42 = arith.constant 0 : index
      %58 = vector.load %arg9[%c0_41, %c0_42] : memref<16x8xf32, #tpu.memory_space<vmem>>, vector<16x8xf32>
      %cst_43 = arith.constant dense<0.000000e+00> : vector<16x128xf32>
      %59 = tpu.matmul %58, %12, %cst_43 {dimension_numbers = #tpu.dot_dimension_numbers<[1], [0], [0], [1], [0, 0, 1, 1], [], []>, precision = #tpu.contract_precision<fp32>} : vector<16x8xf32>, vector<8x128xf32>, vector<16x128xf32> -> vector<16x128xf32>
      %c0_44 = arith.constant 0 : index
      %c0_45 = arith.constant 0 : index
      %60 = vector.load %arg10[%c0_44, %c0_45] : memref<16x1xf32, #tpu.memory_space<vmem>>, vector<16x1xf32>
      %61 = vector.broadcast %60 : vector<16x1xf32> to vector<16x128xf32>
      %62 = arith.addf %59, %61 : vector<16x128xf32>
      %cst_46 = arith.constant 0.000000e+00 : f32
      %63 = vector.broadcast %cst_46 : f32 to vector<16x128xf32>
      %64 = arith.maximumf %62, %63 : vector<16x128xf32>
      %c0_47 = arith.constant 0 : index
      %c0_48 = arith.constant 0 : index
      %c0_49 = arith.constant 0 : index
      %65 = vector.load %arg11[%c0_47, %c0_48, %c0_49] : memref<2x16x16xf32, #tpu.memory_space<vmem>>, vector<1x16x16xf32>
      %66 = vector.shape_cast %65 : vector<1x16x16xf32> to vector<16x16xf32>
      %cst_50 = arith.constant dense<0.000000e+00> : vector<16x128xf32>
      %67 = tpu.matmul %66, %64, %cst_50 {dimension_numbers = #tpu.dot_dimension_numbers<[1], [0], [0], [1], [0, 0, 1, 1], [], []>, precision = #tpu.contract_precision<fp32>} : vector<16x16xf32>, vector<16x128xf32>, vector<16x128xf32> -> vector<16x128xf32>
      %c0_51 = arith.constant 0 : index
      %c0_52 = arith.constant 0 : index
      %c0_53 = arith.constant 0 : index
      %68 = vector.load %arg12[%c0_51, %c0_52, %c0_53] : memref<2x16x1xf32, #tpu.memory_space<vmem>>, vector<1x16x1xf32>
      %69 = vector.shape_cast %68 : vector<1x16x1xf32> to vector<16x1xf32>
      %70 = vector.broadcast %69 : vector<16x1xf32> to vector<16x128xf32>
      %71 = arith.addf %67, %70 : vector<16x128xf32>
      %cst_54 = arith.constant 0.000000e+00 : f32
      %72 = vector.broadcast %cst_54 : f32 to vector<16x128xf32>
      %73 = arith.maximumf %71, %72 : vector<16x128xf32>
      %74 = arith.addf %64, %73 : vector<16x128xf32>
      %c1_55 = arith.constant 1 : index
      %c0_56 = arith.constant 0 : index
      %c0_57 = arith.constant 0 : index
      %75 = vector.load %arg11[%c1_55, %c0_56, %c0_57] : memref<2x16x16xf32, #tpu.memory_space<vmem>>, vector<1x16x16xf32>
      %76 = vector.shape_cast %75 : vector<1x16x16xf32> to vector<16x16xf32>
      %cst_58 = arith.constant dense<0.000000e+00> : vector<16x128xf32>
      %77 = tpu.matmul %76, %74, %cst_58 {dimension_numbers = #tpu.dot_dimension_numbers<[1], [0], [0], [1], [0, 0, 1, 1], [], []>, precision = #tpu.contract_precision<fp32>} : vector<16x16xf32>, vector<16x128xf32>, vector<16x128xf32> -> vector<16x128xf32>
      %c1_59 = arith.constant 1 : index
      %c0_60 = arith.constant 0 : index
      %c0_61 = arith.constant 0 : index
      %78 = vector.load %arg12[%c1_59, %c0_60, %c0_61] : memref<2x16x1xf32, #tpu.memory_space<vmem>>, vector<1x16x1xf32>
      %79 = vector.shape_cast %78 : vector<1x16x1xf32> to vector<16x1xf32>
      %80 = vector.broadcast %79 : vector<16x1xf32> to vector<16x128xf32>
      %81 = arith.addf %77, %80 : vector<16x128xf32>
      %cst_62 = arith.constant 0.000000e+00 : f32
      %82 = vector.broadcast %cst_62 : f32 to vector<16x128xf32>
      %83 = arith.maximumf %81, %82 : vector<16x128xf32>
      %84 = arith.addf %74, %83 : vector<16x128xf32>
      %c0_63 = arith.constant 0 : index
      %c0_64 = arith.constant 0 : index
      %85 = vector.load %arg13[%c0_63, %c0_64] : memref<8x16xf32, #tpu.memory_space<vmem>>, vector<8x16xf32>
      %cst_65 = arith.constant dense<0.000000e+00> : vector<8x128xf32>
      %86 = tpu.matmul %85, %84, %cst_65 {dimension_numbers = #tpu.dot_dimension_numbers<[1], [0], [0], [1], [0, 0, 1, 1], [], []>, precision = #tpu.contract_precision<fp32>} : vector<8x16xf32>, vector<16x128xf32>, vector<8x128xf32> -> vector<8x128xf32>
      %c0_66 = arith.constant 0 : index
      %c0_67 = arith.constant 0 : index
      %87 = vector.load %arg14[%c0_66, %c0_67] : memref<16x8xf32, #tpu.memory_space<vmem>>, vector<16x8xf32>
      %cst_68 = arith.constant dense<0.000000e+00> : vector<16x128xf32>
      %88 = tpu.matmul %87, %12, %cst_68 {dimension_numbers = #tpu.dot_dimension_numbers<[1], [0], [0], [1], [0, 0, 1, 1], [], []>, precision = #tpu.contract_precision<fp32>} : vector<16x8xf32>, vector<8x128xf32>, vector<16x128xf32> -> vector<16x128xf32>
      %c0_69 = arith.constant 0 : index
      %c0_70 = arith.constant 0 : index
      %89 = vector.load %arg15[%c0_69, %c0_70] : memref<16x1xf32, #tpu.memory_space<vmem>>, vector<16x1xf32>
      %90 = vector.broadcast %89 : vector<16x1xf32> to vector<16x128xf32>
      %91 = arith.addf %88, %90 : vector<16x128xf32>
      %cst_71 = arith.constant 0.000000e+00 : f32
      %92 = vector.broadcast %cst_71 : f32 to vector<16x128xf32>
      %93 = arith.maximumf %91, %92 : vector<16x128xf32>
      %c0_72 = arith.constant 0 : index
      %c0_73 = arith.constant 0 : index
      %c0_74 = arith.constant 0 : index
      %94 = vector.load %arg16[%c0_72, %c0_73, %c0_74] : memref<2x16x16xf32, #tpu.memory_space<vmem>>, vector<1x16x16xf32>
      %95 = vector.shape_cast %94 : vector<1x16x16xf32> to vector<16x16xf32>
      %cst_75 = arith.constant dense<0.000000e+00> : vector<16x128xf32>
      %96 = tpu.matmul %95, %93, %cst_75 {dimension_numbers = #tpu.dot_dimension_numbers<[1], [0], [0], [1], [0, 0, 1, 1], [], []>, precision = #tpu.contract_precision<fp32>} : vector<16x16xf32>, vector<16x128xf32>, vector<16x128xf32> -> vector<16x128xf32>
      %c0_76 = arith.constant 0 : index
      %c0_77 = arith.constant 0 : index
      %c0_78 = arith.constant 0 : index
      %97 = vector.load %arg17[%c0_76, %c0_77, %c0_78] : memref<2x16x1xf32, #tpu.memory_space<vmem>>, vector<1x16x1xf32>
      %98 = vector.shape_cast %97 : vector<1x16x1xf32> to vector<16x1xf32>
      %99 = vector.broadcast %98 : vector<16x1xf32> to vector<16x128xf32>
      %100 = arith.addf %96, %99 : vector<16x128xf32>
      %cst_79 = arith.constant 0.000000e+00 : f32
      %101 = vector.broadcast %cst_79 : f32 to vector<16x128xf32>
      %102 = arith.maximumf %100, %101 : vector<16x128xf32>
      %c1_80 = arith.constant 1 : index
      %c0_81 = arith.constant 0 : index
      %c0_82 = arith.constant 0 : index
      %103 = vector.load %arg16[%c1_80, %c0_81, %c0_82] : memref<2x16x16xf32, #tpu.memory_space<vmem>>, vector<1x16x16xf32>
      %104 = vector.shape_cast %103 : vector<1x16x16xf32> to vector<16x16xf32>
      %cst_83 = arith.constant dense<0.000000e+00> : vector<16x128xf32>
      %105 = tpu.matmul %104, %102, %cst_83 {dimension_numbers = #tpu.dot_dimension_numbers<[1], [0], [0], [1], [0, 0, 1, 1], [], []>, precision = #tpu.contract_precision<fp32>} : vector<16x16xf32>, vector<16x128xf32>, vector<16x128xf32> -> vector<16x128xf32>
      %c1_84 = arith.constant 1 : index
      %c0_85 = arith.constant 0 : index
      %c0_86 = arith.constant 0 : index
      %106 = vector.load %arg17[%c1_84, %c0_85, %c0_86] : memref<2x16x1xf32, #tpu.memory_space<vmem>>, vector<1x16x1xf32>
      %107 = vector.shape_cast %106 : vector<1x16x1xf32> to vector<16x1xf32>
      %108 = vector.broadcast %107 : vector<16x1xf32> to vector<16x128xf32>
      %109 = arith.addf %105, %108 : vector<16x128xf32>
      %cst_87 = arith.constant 0.000000e+00 : f32
      %110 = vector.broadcast %cst_87 : f32 to vector<16x128xf32>
      %111 = arith.maximumf %109, %110 : vector<16x128xf32>
      %c0_88 = arith.constant 0 : index
      %c0_89 = arith.constant 0 : index
      %112 = vector.load %arg18[%c0_88, %c0_89] : memref<8x16xf32, #tpu.memory_space<vmem>>, vector<8x16xf32>
      %cst_90 = arith.constant dense<0.000000e+00> : vector<8x128xf32>
      %113 = tpu.matmul %112, %111, %cst_90 {dimension_numbers = #tpu.dot_dimension_numbers<[1], [0], [0], [1], [0, 0, 1, 1], [], []>, precision = #tpu.contract_precision<fp32>} : vector<8x16xf32>, vector<16x128xf32>, vector<8x128xf32> -> vector<8x128xf32>
      %114 = arith.mulf %113, %12 : vector<8x128xf32>
      %115 = arith.addf %86, %114 : vector<8x128xf32>
      %116 = vector.broadcast %57 : vector<1x128xf32> to vector<8x128xf32>
      %117 = arith.mulf %116, %115 : vector<8x128xf32>
      %c0_91 = arith.constant 0 : index
      %c0_92 = arith.constant 0 : index
      %118 = vector.load %arg19[%c0_91, %c0_92] : memref<8x128xf32, #tpu.memory_space<vmem>>, vector<8x128xf32>
      tpu.vector_store %arg19[%c0_91, %c0_92], %117 {strides = array<i32>} : memref<8x128xf32, #tpu.memory_space<vmem>>, vector<8x128xf32>,
    } else {
    }
    return
  }
  func.func @transform_0(%arg0: i32, %arg1: i32) -> (i32, i32) {
    %c0_i32 = arith.constant 0 : i32
    %c0_i32_0 = arith.constant 0 : i32
    return %c0_i32, %arg1 : i32, i32
  }
  func.func @transform_1(%arg0: i32, %arg1: i32) -> (i32, i32) {
    %c0_i32 = arith.constant 0 : i32
    return %arg1, %arg0 : i32, i32
  }
  func.func @transform_2(%arg0: i32, %arg1: i32) -> (i32, i32) {
    %c0_i32 = arith.constant 0 : i32
    %c0_i32_0 = arith.constant 0 : i32
    %c0_i32_1 = arith.constant 0 : i32
    return %c0_i32, %c0_i32_0 : i32, i32
  }
  func.func @transform_3(%arg0: i32, %arg1: i32) -> (i32, i32) {
    %c0_i32 = arith.constant 0 : i32
    %c0_i32_0 = arith.constant 0 : i32
    %c0_i32_1 = arith.constant 0 : i32
    return %c0_i32, %c0_i32_0 : i32, i32
  }
  func.func @transform_4(%arg0: i32, %arg1: i32) -> (i32, i32, i32) {
    %c0_i32 = arith.constant 0 : i32
    %c0_i32_0 = arith.constant 0 : i32
    %c0_i32_1 = arith.constant 0 : i32
    %c0_i32_2 = arith.constant 0 : i32
    return %c0_i32, %c0_i32_0, %c0_i32_1 : i32, i32, i32
  }
  func.func @transform_5(%arg0: i32, %arg1: i32) -> (i32, i32, i32) {
    %c0_i32 = arith.constant 0 : i32
    %c0_i32_0 = arith.constant 0 : i32
    %c0_i32_1 = arith.constant 0 : i32
    %c0_i32_2 = arith.constant 0 : i32
    return %c0_i32, %c0_i32_0, %c0_i32_1 : i32, i32, i32
  }
  func.func @transform_6(%arg0: i32, %arg1: i32) -> (i32, i32) {
    %c0_i32 = arith.constant 0 : i32
    %c0_i32_0 = arith.constant 0 : i32
    %c0_i32_1 = arith.constant 0 : i32
    return %c0_i32, %c0_i32_0 : i32, i32
  }
  func.func @transform_7(%arg0: i32, %arg1: i32) -> (i32, i32) {
    %c0_i32 = arith.constant 0 : i32
    %c0_i32_0 = arith.constant 0 : i32
    %c0_i32_1 = arith.constant 0 : i32
    return %c0_i32, %c0_i32_0 : i32, i32
  }
  func.func @transform_8(%arg0: i32, %arg1: i32) -> (i32, i32) {
    %c0_i32 = arith.constant 0 : i32
    %c0_i32_0 = arith.constant 0 : i32
    %c0_i32_1 = arith.constant 0 : i32
    return %c0_i32, %c0_i32_0 : i32, i32
  }
  func.func @transform_9(%arg0: i32, %arg1: i32) -> (i32, i32, i32) {
    %c0_i32 = arith.constant 0 : i32
    %c0_i32_0 = arith.constant 0 : i32
    %c0_i32_1 = arith.constant 0 : i32
    %c0_i32_2 = arith.constant 0 : i32
    return %c0_i32, %c0_i32_0, %c0_i32_1 : i32, i32, i32
  }
  func.func @transform_10(%arg0: i32, %arg1: i32) -> (i32, i32, i32) {
    %c0_i32 = arith.constant 0 : i32
    %c0_i32_0 = arith.constant 0 : i32
    %c0_i32_1 = arith.constant 0 : i32
    %c0_i32_2 = arith.constant 0 : i32
    return %c0_i32, %c0_i32_0, %c0_i32_1 : i32, i32, i32
  }
  func.func @transform_11(%arg0: i32, %arg1: i32) -> (i32, i32) {
    %c0_i32 = arith.constant 0 : i32
    %c0_i32_0 = arith.constant 0 : i32
    %c0_i32_1 = arith.constant 0 : i32
    return %c0_i32, %c0_i32_0 : i32, i32
  }
  func.func @transform_12(%arg0: i32, %arg1: i32) -> (i32, i32) {
    %c0_i32 = arith.constant 0 : i32
    %c0_i32_0 = arith.constant 0 : i32
    %c0_i32_1 = arith.constant 0 : i32
    return %c0_i32, %c0_i32_0 : i32, i32
  }
  func.func @transform_13(%arg0: i32, %arg1: i32) -> (i32, i32) {
    %c0_i32 = arith.constant 0 : i32
    %c0_i32_0 = arith.constant 0 : i32
    %c0_i32_1 = arith.constant 0 : i32
    return %c0_i32, %c0_i32_0 : i32, i32
  }
  func.func @transform_14(%arg0: i32, %arg1: i32) -> (i32, i32, i32) {
    %c0_i32 = arith.constant 0 : i32
    %c0_i32_0 = arith.constant 0 : i32
    %c0_i32_1 = arith.constant 0 : i32
    %c0_i32_2 = arith.constant 0 : i32
    return %c0_i32, %c0_i32_0, %c0_i32_1 : i32, i32, i32
  }
  func.func @transform_15(%arg0: i32, %arg1: i32) -> (i32, i32, i32) {
    %c0_i32 = arith.constant 0 : i32
    %c0_i32_0 = arith.constant 0 : i32
    %c0_i32_1 = arith.constant 0 : i32
    %c0_i32_2 = arith.constant 0 : i32
    return %c0_i32, %c0_i32_0, %c0_i32_1 : i32, i32, i32
  }
  func.func @transform_16(%arg0: i32, %arg1: i32) -> (i32, i32) {
    %c0_i32 = arith.constant 0 : i32
    %c0_i32_0 = arith.constant 0 : i32
    %c0_i32_1 = arith.constant 0 : i32
    return %c0_i32, %c0_i32_0 : i32, i32
  }
  func.func @transform_17(%arg0: i32, %arg1: i32) -> (i32, i32) {
    %c0_i32 = arith.constant 0 : i32
    %c0_i32_0 = arith.constant 0 : i32
    return %c0_i32, %arg0 : i32, i32
  }
}

module attributes {stable_mosaic.version = 11 : i64} {
  func.func @fused_agg_v_kernel(%arg0: i32, %arg1: i32, %arg2: memref<8x128xf32, #tpu.memory_space<vmem>>, %arg3: memref<128x128xf32, #tpu.memory_space<vmem>>, %arg4: memref<8x128xf32, #tpu.memory_space<vmem>>, %arg5: memref<16x8xf32, #tpu.memory_space<vmem>>, %arg6: memref<16x1xf32, #tpu.memory_space<vmem>>, %arg7: memref<2x16x16xf32, #tpu.memory_space<vmem>>, %arg8: memref<2x16x1xf32, #tpu.memory_space<vmem>>, %arg9: memref<16x1xf32, #tpu.memory_space<vmem>>, %arg10: memref<16x8xf32, #tpu.memory_space<vmem>>, %arg11: memref<16x1xf32, #tpu.memory_space<vmem>>, %arg12: memref<2x16x16xf32, #tpu.memory_space<vmem>>, %arg13: memref<2x16x1xf32, #tpu.memory_space<vmem>>, %arg14: memref<8x16xf32, #tpu.memory_space<vmem>>, %arg15: memref<16x8xf32, #tpu.memory_space<vmem>>, %arg16: memref<16x1xf32, #tpu.memory_space<vmem>>, %arg17: memref<2x16x16xf32, #tpu.memory_space<vmem>>, %arg18: memref<2x16x1xf32, #tpu.memory_space<vmem>>, %arg19: memref<8x16xf32, #tpu.memory_space<vmem>>, %arg20: memref<8x128xf32, #tpu.memory_space<vmem>>, %arg21: memref<8x128xf32, #tpu.memory_space<vmem>>) attributes {dimension_semantics = [#tpu.dimension_semantics<parallel>, #tpu.dimension_semantics<arbitrary>], iteration_bounds = array<i64: 2, 2>, scalar_prefetch = 0 : i64, scratch_operands = 1 : i64, tpu.core_type = #tpu.core_type<tc>, window_params = [{transform_indices = @transform_0, window_bounds = array<i64: 8, 128>}, {transform_indices = @transform_1, window_bounds = array<i64: 128, 128>}, {transform_indices = @transform_2, window_bounds = array<i64: 8, 128>}, {pipeline_mode = #tpu.pipeline_mode<synchronous>, transform_indices = @transform_3, window_bounds = array<i64: 16, 8>}, {pipeline_mode = #tpu.pipeline_mode<synchronous>, transform_indices = @transform_4, window_bounds = array<i64: 16, 1>}, {pipeline_mode = #tpu.pipeline_mode<synchronous>, transform_indices = @transform_5, window_bounds = array<i64: 2, 16, 16>}, {pipeline_mode = #tpu.pipeline_mode<synchronous>, transform_indices = @transform_6, window_bounds = array<i64: 2, 16, 1>}, {pipeline_mode = #tpu.pipeline_mode<synchronous>, transform_indices = @transform_7, window_bounds = array<i64: 16, 1>}, {pipeline_mode = #tpu.pipeline_mode<synchronous>, transform_indices = @transform_8, window_bounds = array<i64: 16, 8>}, {pipeline_mode = #tpu.pipeline_mode<synchronous>, transform_indices = @transform_9, window_bounds = array<i64: 16, 1>}, {pipeline_mode = #tpu.pipeline_mode<synchronous>, transform_indices = @transform_10, window_bounds = array<i64: 2, 16, 16>}, {pipeline_mode = #tpu.pipeline_mode<synchronous>, transform_indices = @transform_11, window_bounds = array<i64: 2, 16, 1>}, {pipeline_mode = #tpu.pipeline_mode<synchronous>, transform_indices = @transform_12, window_bounds = array<i64: 8, 16>}, {pipeline_mode = #tpu.pipeline_mode<synchronous>, transform_indices = @transform_13, window_bounds = array<i64: 16, 8>}, {pipeline_mode = #tpu.pipeline_mode<synchronous>, transform_indices = @transform_14, window_bounds = array<i64: 16, 1>}, {pipeline_mode = #tpu.pipeline_mode<synchronous>, transform_indices = @transform_15, window_bounds = array<i64: 2, 16, 16>}, {pipeline_mode = #tpu.pipeline_mode<synchronous>, transform_indices = @transform_16, window_bounds = array<i64: 2, 16, 1>}, {pipeline_mode = #tpu.pipeline_mode<synchronous>, transform_indices = @transform_17, window_bounds = array<i64: 8, 16>}, {transform_indices = @transform_18, window_bounds = array<i64: 8, 128>}]} {
    %c0_i32 = arith.constant 0 : i32
    %0 = arith.cmpi eq, %arg1, %c0_i32 : i32
    %1 = arith.extui %0 : i1 to i32
    %c0_i32_0 = arith.constant 0 : i32
    %2 = arith.cmpi ne, %1, %c0_i32_0 : i32
    scf.if %2 {
      %cst_9 = arith.constant 0.000000e+00 : f32
      %12 = vector.broadcast %cst_9 : f32 to vector<8x128xf32>
      %c0_10 = arith.constant 0 : index
      %c0_11 = arith.constant 0 : index
      %13 = vector.load %arg21[%c0_10, %c0_11] : memref<8x128xf32, #tpu.memory_space<vmem>>, vector<8x128xf32>
      tpu.vector_store %arg21[%c0_10, %c0_11], %12 {strides = array<i32>} : memref<8x128xf32, #tpu.memory_space<vmem>>, vector<8x128xf32>,
    } else {
    }
    %c0 = arith.constant 0 : index
    %c0_1 = arith.constant 0 : index
    %3 = vector.load %arg21[%c0, %c0_1] : memref<8x128xf32, #tpu.memory_space<vmem>>, vector<8x128xf32>
    %c0_2 = arith.constant 0 : index
    %c0_3 = arith.constant 0 : index
    %4 = vector.load %arg2[%c0_2, %c0_3] : memref<8x128xf32, #tpu.memory_space<vmem>>, vector<8x128xf32>
    %c0_4 = arith.constant 0 : index
    %c0_5 = arith.constant 0 : index
    %5 = vector.load %arg3[%c0_4, %c0_5] : memref<128x128xf32, #tpu.memory_space<vmem>>, vector<128x128xf32>
    %cst = arith.constant dense<0.000000e+00> : vector<8x128xf32>
    %6 = tpu.matmul %4, %5, %cst {dimension_numbers = #tpu.dot_dimension_numbers<[1], [0], [0], [1], [0, 0, 1, 1], [], []>, precision = #tpu.contract_precision<fp32>} : vector<8x128xf32>, vector<128x128xf32>, vector<8x128xf32> -> vector<8x128xf32>
    %7 = arith.addf %3, %6 : vector<8x128xf32>
    %c0_6 = arith.constant 0 : index
    %c0_7 = arith.constant 0 : index
    %8 = vector.load %arg21[%c0_6, %c0_7] : memref<8x128xf32, #tpu.memory_space<vmem>>, vector<8x128xf32>
    tpu.vector_store %arg21[%c0_6, %c0_7], %7 {strides = array<i32>} : memref<8x128xf32, #tpu.memory_space<vmem>>, vector<8x128xf32>,
    %c1_i32 = arith.constant 1 : i32
    %9 = arith.cmpi eq, %arg1, %c1_i32 : i32
    %10 = arith.extui %9 : i1 to i32
    %c0_i32_8 = arith.constant 0 : i32
    %11 = arith.cmpi ne, %10, %c0_i32_8 : i32
    scf.if %11 {
      %c0_9 = arith.constant 0 : index
      %c0_10 = arith.constant 0 : index
      %12 = vector.load %arg21[%c0_9, %c0_10] : memref<8x128xf32, #tpu.memory_space<vmem>>, vector<8x128xf32>
      %c0_11 = arith.constant 0 : index
      %c0_12 = arith.constant 0 : index
      %13 = vector.load %arg5[%c0_11, %c0_12] : memref<16x8xf32, #tpu.memory_space<vmem>>, vector<16x8xf32>
      %cst_13 = arith.constant dense<0.000000e+00> : vector<16x128xf32>
      %14 = tpu.matmul %13, %12, %cst_13 {dimension_numbers = #tpu.dot_dimension_numbers<[1], [0], [0], [1], [0, 0, 1, 1], [], []>, precision = #tpu.contract_precision<fp32>} : vector<16x8xf32>, vector<8x128xf32>, vector<16x128xf32> -> vector<16x128xf32>
      %c0_14 = arith.constant 0 : index
      %c0_15 = arith.constant 0 : index
      %15 = vector.load %arg6[%c0_14, %c0_15] : memref<16x1xf32, #tpu.memory_space<vmem>>, vector<16x1xf32>
      %16 = vector.broadcast %15 : vector<16x1xf32> to vector<16x128xf32>
      %17 = arith.addf %14, %16 : vector<16x128xf32>
      %cst_16 = arith.constant 0.000000e+00 : f32
      %18 = vector.broadcast %cst_16 : f32 to vector<16x128xf32>
      %19 = arith.subf %18, %17 : vector<16x128xf32>
      %20 = math.exp %19 : vector<16x128xf32>
      %cst_17 = arith.constant 1.000000e+00 : f32
      %21 = vector.broadcast %cst_17 : f32 to vector<16x128xf32>
      %22 = arith.addf %21, %20 : vector<16x128xf32>
      %cst_18 = arith.constant 1.000000e+00 : f32
      %23 = vector.broadcast %cst_18 : f32 to vector<16x128xf32>
      %24 = arith.divf %23, %22 : vector<16x128xf32>
      %c0_19 = arith.constant 0 : index
      %c0_20 = arith.constant 0 : index
      %c0_21 = arith.constant 0 : index
      %25 = vector.load %arg7[%c0_19, %c0_20, %c0_21] : memref<2x16x16xf32, #tpu.memory_space<vmem>>, vector<1x16x16xf32>
      %26 = vector.shape_cast %25 : vector<1x16x16xf32> to vector<16x16xf32>
      %cst_22 = arith.constant dense<0.000000e+00> : vector<16x128xf32>
      %27 = tpu.matmul %26, %24, %cst_22 {dimension_numbers = #tpu.dot_dimension_numbers<[1], [0], [0], [1], [0, 0, 1, 1], [], []>, precision = #tpu.contract_precision<fp32>} : vector<16x16xf32>, vector<16x128xf32>, vector<16x128xf32> -> vector<16x128xf32>
      %c0_23 = arith.constant 0 : index
      %c0_24 = arith.constant 0 : index
      %c0_25 = arith.constant 0 : index
      %28 = vector.load %arg8[%c0_23, %c0_24, %c0_25] : memref<2x16x1xf32, #tpu.memory_space<vmem>>, vector<1x16x1xf32>
      %29 = vector.shape_cast %28 : vector<1x16x1xf32> to vector<16x1xf32>
      %30 = vector.broadcast %29 : vector<16x1xf32> to vector<16x128xf32>
      %31 = arith.addf %27, %30 : vector<16x128xf32>
      %cst_26 = arith.constant 0.000000e+00 : f32
      %32 = vector.broadcast %cst_26 : f32 to vector<16x128xf32>
      %33 = arith.subf %32, %31 : vector<16x128xf32>
      %34 = math.exp %33 : vector<16x128xf32>
      %cst_27 = arith.constant 1.000000e+00 : f32
      %35 = vector.broadcast %cst_27 : f32 to vector<16x128xf32>
      %36 = arith.addf %35, %34 : vector<16x128xf32>
      %cst_28 = arith.constant 1.000000e+00 : f32
      %37 = vector.broadcast %cst_28 : f32 to vector<16x128xf32>
      %38 = arith.divf %37, %36 : vector<16x128xf32>
      %c1 = arith.constant 1 : index
      %c0_29 = arith.constant 0 : index
      %c0_30 = arith.constant 0 : index
      %39 = vector.load %arg7[%c1, %c0_29, %c0_30] : memref<2x16x16xf32, #tpu.memory_space<vmem>>, vector<1x16x16xf32>
      %40 = vector.shape_cast %39 : vector<1x16x16xf32> to vector<16x16xf32>
      %cst_31 = arith.constant dense<0.000000e+00> : vector<16x128xf32>
      %41 = tpu.matmul %40, %38, %cst_31 {dimension_numbers = #tpu.dot_dimension_numbers<[1], [0], [0], [1], [0, 0, 1, 1], [], []>, precision = #tpu.contract_precision<fp32>} : vector<16x16xf32>, vector<16x128xf32>, vector<16x128xf32> -> vector<16x128xf32>
      %c1_32 = arith.constant 1 : index
      %c0_33 = arith.constant 0 : index
      %c0_34 = arith.constant 0 : index
      %42 = vector.load %arg8[%c1_32, %c0_33, %c0_34] : memref<2x16x1xf32, #tpu.memory_space<vmem>>, vector<1x16x1xf32>
      %43 = vector.shape_cast %42 : vector<1x16x1xf32> to vector<16x1xf32>
      %44 = vector.broadcast %43 : vector<16x1xf32> to vector<16x128xf32>
      %45 = arith.addf %41, %44 : vector<16x128xf32>
      %cst_35 = arith.constant 0.000000e+00 : f32
      %46 = vector.broadcast %cst_35 : f32 to vector<16x128xf32>
      %47 = arith.subf %46, %45 : vector<16x128xf32>
      %48 = math.exp %47 : vector<16x128xf32>
      %cst_36 = arith.constant 1.000000e+00 : f32
      %49 = vector.broadcast %cst_36 : f32 to vector<16x128xf32>
      %50 = arith.addf %49, %48 : vector<16x128xf32>
      %cst_37 = arith.constant 1.000000e+00 : f32
      %51 = vector.broadcast %cst_37 : f32 to vector<16x128xf32>
      %52 = arith.divf %51, %50 : vector<16x128xf32>
      %c0_38 = arith.constant 0 : index
      %c0_39 = arith.constant 0 : index
      %53 = vector.load %arg9[%c0_38, %c0_39] : memref<16x1xf32, #tpu.memory_space<vmem>>, vector<16x1xf32>
      %54 = vector.broadcast %53 : vector<16x1xf32> to vector<16x128xf32>
      %55 = arith.mulf %52, %54 : vector<16x128xf32>
      %cst_40 = arith.constant dense<0.000000e+00> : vector<128xf32>
      %56 = vector.multi_reduction <add>, %55, %cst_40 [0] : vector<16x128xf32> to vector<128xf32>
      %57 = vector.shape_cast %56 : vector<128xf32> to vector<1x128xf32>
      %c0_41 = arith.constant 0 : index
      %c0_42 = arith.constant 0 : index
      %58 = vector.load %arg10[%c0_41, %c0_42] : memref<16x8xf32, #tpu.memory_space<vmem>>, vector<16x8xf32>
      %cst_43 = arith.constant dense<0.000000e+00> : vector<16x128xf32>
      %59 = tpu.matmul %58, %12, %cst_43 {dimension_numbers = #tpu.dot_dimension_numbers<[1], [0], [0], [1], [0, 0, 1, 1], [], []>, precision = #tpu.contract_precision<fp32>} : vector<16x8xf32>, vector<8x128xf32>, vector<16x128xf32> -> vector<16x128xf32>
      %c0_44 = arith.constant 0 : index
      %c0_45 = arith.constant 0 : index
      %60 = vector.load %arg11[%c0_44, %c0_45] : memref<16x1xf32, #tpu.memory_space<vmem>>, vector<16x1xf32>
      %61 = vector.broadcast %60 : vector<16x1xf32> to vector<16x128xf32>
      %62 = arith.addf %59, %61 : vector<16x128xf32>
      %cst_46 = arith.constant 0.000000e+00 : f32
      %63 = vector.broadcast %cst_46 : f32 to vector<16x128xf32>
      %64 = arith.maximumf %62, %63 : vector<16x128xf32>
      %c0_47 = arith.constant 0 : index
      %c0_48 = arith.constant 0 : index
      %c0_49 = arith.constant 0 : index
      %65 = vector.load %arg12[%c0_47, %c0_48, %c0_49] : memref<2x16x16xf32, #tpu.memory_space<vmem>>, vector<1x16x16xf32>
      %66 = vector.shape_cast %65 : vector<1x16x16xf32> to vector<16x16xf32>
      %cst_50 = arith.constant dense<0.000000e+00> : vector<16x128xf32>
      %67 = tpu.matmul %66, %64, %cst_50 {dimension_numbers = #tpu.dot_dimension_numbers<[1], [0], [0], [1], [0, 0, 1, 1], [], []>, precision = #tpu.contract_precision<fp32>} : vector<16x16xf32>, vector<16x128xf32>, vector<16x128xf32> -> vector<16x128xf32>
      %c0_51 = arith.constant 0 : index
      %c0_52 = arith.constant 0 : index
      %c0_53 = arith.constant 0 : index
      %68 = vector.load %arg13[%c0_51, %c0_52, %c0_53] : memref<2x16x1xf32, #tpu.memory_space<vmem>>, vector<1x16x1xf32>
      %69 = vector.shape_cast %68 : vector<1x16x1xf32> to vector<16x1xf32>
      %70 = vector.broadcast %69 : vector<16x1xf32> to vector<16x128xf32>
      %71 = arith.addf %67, %70 : vector<16x128xf32>
      %cst_54 = arith.constant 0.000000e+00 : f32
      %72 = vector.broadcast %cst_54 : f32 to vector<16x128xf32>
      %73 = arith.maximumf %71, %72 : vector<16x128xf32>
      %74 = arith.addf %64, %73 : vector<16x128xf32>
      %c1_55 = arith.constant 1 : index
      %c0_56 = arith.constant 0 : index
      %c0_57 = arith.constant 0 : index
      %75 = vector.load %arg12[%c1_55, %c0_56, %c0_57] : memref<2x16x16xf32, #tpu.memory_space<vmem>>, vector<1x16x16xf32>
      %76 = vector.shape_cast %75 : vector<1x16x16xf32> to vector<16x16xf32>
      %cst_58 = arith.constant dense<0.000000e+00> : vector<16x128xf32>
      %77 = tpu.matmul %76, %74, %cst_58 {dimension_numbers = #tpu.dot_dimension_numbers<[1], [0], [0], [1], [0, 0, 1, 1], [], []>, precision = #tpu.contract_precision<fp32>} : vector<16x16xf32>, vector<16x128xf32>, vector<16x128xf32> -> vector<16x128xf32>
      %c1_59 = arith.constant 1 : index
      %c0_60 = arith.constant 0 : index
      %c0_61 = arith.constant 0 : index
      %78 = vector.load %arg13[%c1_59, %c0_60, %c0_61] : memref<2x16x1xf32, #tpu.memory_space<vmem>>, vector<1x16x1xf32>
      %79 = vector.shape_cast %78 : vector<1x16x1xf32> to vector<16x1xf32>
      %80 = vector.broadcast %79 : vector<16x1xf32> to vector<16x128xf32>
      %81 = arith.addf %77, %80 : vector<16x128xf32>
      %cst_62 = arith.constant 0.000000e+00 : f32
      %82 = vector.broadcast %cst_62 : f32 to vector<16x128xf32>
      %83 = arith.maximumf %81, %82 : vector<16x128xf32>
      %84 = arith.addf %74, %83 : vector<16x128xf32>
      %c0_63 = arith.constant 0 : index
      %c0_64 = arith.constant 0 : index
      %85 = vector.load %arg14[%c0_63, %c0_64] : memref<8x16xf32, #tpu.memory_space<vmem>>, vector<8x16xf32>
      %cst_65 = arith.constant dense<0.000000e+00> : vector<8x128xf32>
      %86 = tpu.matmul %85, %84, %cst_65 {dimension_numbers = #tpu.dot_dimension_numbers<[1], [0], [0], [1], [0, 0, 1, 1], [], []>, precision = #tpu.contract_precision<fp32>} : vector<8x16xf32>, vector<16x128xf32>, vector<8x128xf32> -> vector<8x128xf32>
      %c0_66 = arith.constant 0 : index
      %c0_67 = arith.constant 0 : index
      %87 = vector.load %arg15[%c0_66, %c0_67] : memref<16x8xf32, #tpu.memory_space<vmem>>, vector<16x8xf32>
      %cst_68 = arith.constant dense<0.000000e+00> : vector<16x128xf32>
      %88 = tpu.matmul %87, %12, %cst_68 {dimension_numbers = #tpu.dot_dimension_numbers<[1], [0], [0], [1], [0, 0, 1, 1], [], []>, precision = #tpu.contract_precision<fp32>} : vector<16x8xf32>, vector<8x128xf32>, vector<16x128xf32> -> vector<16x128xf32>
      %c0_69 = arith.constant 0 : index
      %c0_70 = arith.constant 0 : index
      %89 = vector.load %arg16[%c0_69, %c0_70] : memref<16x1xf32, #tpu.memory_space<vmem>>, vector<16x1xf32>
      %90 = vector.broadcast %89 : vector<16x1xf32> to vector<16x128xf32>
      %91 = arith.addf %88, %90 : vector<16x128xf32>
      %cst_71 = arith.constant 0.000000e+00 : f32
      %92 = vector.broadcast %cst_71 : f32 to vector<16x128xf32>
      %93 = arith.maximumf %91, %92 : vector<16x128xf32>
      %c0_72 = arith.constant 0 : index
      %c0_73 = arith.constant 0 : index
      %c0_74 = arith.constant 0 : index
      %94 = vector.load %arg17[%c0_72, %c0_73, %c0_74] : memref<2x16x16xf32, #tpu.memory_space<vmem>>, vector<1x16x16xf32>
      %95 = vector.shape_cast %94 : vector<1x16x16xf32> to vector<16x16xf32>
      %cst_75 = arith.constant dense<0.000000e+00> : vector<16x128xf32>
      %96 = tpu.matmul %95, %93, %cst_75 {dimension_numbers = #tpu.dot_dimension_numbers<[1], [0], [0], [1], [0, 0, 1, 1], [], []>, precision = #tpu.contract_precision<fp32>} : vector<16x16xf32>, vector<16x128xf32>, vector<16x128xf32> -> vector<16x128xf32>
      %c0_76 = arith.constant 0 : index
      %c0_77 = arith.constant 0 : index
      %c0_78 = arith.constant 0 : index
      %97 = vector.load %arg18[%c0_76, %c0_77, %c0_78] : memref<2x16x1xf32, #tpu.memory_space<vmem>>, vector<1x16x1xf32>
      %98 = vector.shape_cast %97 : vector<1x16x1xf32> to vector<16x1xf32>
      %99 = vector.broadcast %98 : vector<16x1xf32> to vector<16x128xf32>
      %100 = arith.addf %96, %99 : vector<16x128xf32>
      %cst_79 = arith.constant 0.000000e+00 : f32
      %101 = vector.broadcast %cst_79 : f32 to vector<16x128xf32>
      %102 = arith.maximumf %100, %101 : vector<16x128xf32>
      %c1_80 = arith.constant 1 : index
      %c0_81 = arith.constant 0 : index
      %c0_82 = arith.constant 0 : index
      %103 = vector.load %arg17[%c1_80, %c0_81, %c0_82] : memref<2x16x16xf32, #tpu.memory_space<vmem>>, vector<1x16x16xf32>
      %104 = vector.shape_cast %103 : vector<1x16x16xf32> to vector<16x16xf32>
      %cst_83 = arith.constant dense<0.000000e+00> : vector<16x128xf32>
      %105 = tpu.matmul %104, %102, %cst_83 {dimension_numbers = #tpu.dot_dimension_numbers<[1], [0], [0], [1], [0, 0, 1, 1], [], []>, precision = #tpu.contract_precision<fp32>} : vector<16x16xf32>, vector<16x128xf32>, vector<16x128xf32> -> vector<16x128xf32>
      %c1_84 = arith.constant 1 : index
      %c0_85 = arith.constant 0 : index
      %c0_86 = arith.constant 0 : index
      %106 = vector.load %arg18[%c1_84, %c0_85, %c0_86] : memref<2x16x1xf32, #tpu.memory_space<vmem>>, vector<1x16x1xf32>
      %107 = vector.shape_cast %106 : vector<1x16x1xf32> to vector<16x1xf32>
      %108 = vector.broadcast %107 : vector<16x1xf32> to vector<16x128xf32>
      %109 = arith.addf %105, %108 : vector<16x128xf32>
      %cst_87 = arith.constant 0.000000e+00 : f32
      %110 = vector.broadcast %cst_87 : f32 to vector<16x128xf32>
      %111 = arith.maximumf %109, %110 : vector<16x128xf32>
      %c0_88 = arith.constant 0 : index
      %c0_89 = arith.constant 0 : index
      %112 = vector.load %arg19[%c0_88, %c0_89] : memref<8x16xf32, #tpu.memory_space<vmem>>, vector<8x16xf32>
      %cst_90 = arith.constant dense<0.000000e+00> : vector<8x128xf32>
      %113 = tpu.matmul %112, %111, %cst_90 {dimension_numbers = #tpu.dot_dimension_numbers<[1], [0], [0], [1], [0, 0, 1, 1], [], []>, precision = #tpu.contract_precision<fp32>} : vector<8x16xf32>, vector<16x128xf32>, vector<8x128xf32> -> vector<8x128xf32>
      %114 = arith.mulf %113, %12 : vector<8x128xf32>
      %115 = arith.addf %86, %114 : vector<8x128xf32>
      %116 = vector.broadcast %57 : vector<1x128xf32> to vector<8x128xf32>
      %117 = arith.mulf %116, %115 : vector<8x128xf32>
      %c0_91 = arith.constant 0 : index
      %c0_92 = arith.constant 0 : index
      %118 = vector.load %arg4[%c0_91, %c0_92] : memref<8x128xf32, #tpu.memory_space<vmem>>, vector<8x128xf32>
      %119 = arith.addf %117, %118 : vector<8x128xf32>
      %c0_93 = arith.constant 0 : index
      %c0_94 = arith.constant 0 : index
      %120 = vector.load %arg20[%c0_93, %c0_94] : memref<8x128xf32, #tpu.memory_space<vmem>>, vector<8x128xf32>
      tpu.vector_store %arg20[%c0_93, %c0_94], %119 {strides = array<i32>} : memref<8x128xf32, #tpu.memory_space<vmem>>, vector<8x128xf32>,
    } else {
    }
    return
  }
  func.func @transform_0(%arg0: i32, %arg1: i32) -> (i32, i32) {
    %c0_i32 = arith.constant 0 : i32
    %c0_i32_0 = arith.constant 0 : i32
    return %c0_i32, %arg1 : i32, i32
  }
  func.func @transform_1(%arg0: i32, %arg1: i32) -> (i32, i32) {
    %c0_i32 = arith.constant 0 : i32
    return %arg1, %arg0 : i32, i32
  }
  func.func @transform_2(%arg0: i32, %arg1: i32) -> (i32, i32) {
    %c0_i32 = arith.constant 0 : i32
    %c0_i32_0 = arith.constant 0 : i32
    return %c0_i32, %arg0 : i32, i32
  }
  func.func @transform_3(%arg0: i32, %arg1: i32) -> (i32, i32) {
    %c0_i32 = arith.constant 0 : i32
    %c0_i32_0 = arith.constant 0 : i32
    %c0_i32_1 = arith.constant 0 : i32
    return %c0_i32, %c0_i32_0 : i32, i32
  }
  func.func @transform_4(%arg0: i32, %arg1: i32) -> (i32, i32) {
    %c0_i32 = arith.constant 0 : i32
    %c0_i32_0 = arith.constant 0 : i32
    %c0_i32_1 = arith.constant 0 : i32
    return %c0_i32, %c0_i32_0 : i32, i32
  }
  func.func @transform_5(%arg0: i32, %arg1: i32) -> (i32, i32, i32) {
    %c0_i32 = arith.constant 0 : i32
    %c0_i32_0 = arith.constant 0 : i32
    %c0_i32_1 = arith.constant 0 : i32
    %c0_i32_2 = arith.constant 0 : i32
    return %c0_i32, %c0_i32_0, %c0_i32_1 : i32, i32, i32
  }
  func.func @transform_6(%arg0: i32, %arg1: i32) -> (i32, i32, i32) {
    %c0_i32 = arith.constant 0 : i32
    %c0_i32_0 = arith.constant 0 : i32
    %c0_i32_1 = arith.constant 0 : i32
    %c0_i32_2 = arith.constant 0 : i32
    return %c0_i32, %c0_i32_0, %c0_i32_1 : i32, i32, i32
  }
  func.func @transform_7(%arg0: i32, %arg1: i32) -> (i32, i32) {
    %c0_i32 = arith.constant 0 : i32
    %c0_i32_0 = arith.constant 0 : i32
    %c0_i32_1 = arith.constant 0 : i32
    return %c0_i32, %c0_i32_0 : i32, i32
  }
  func.func @transform_8(%arg0: i32, %arg1: i32) -> (i32, i32) {
    %c0_i32 = arith.constant 0 : i32
    %c0_i32_0 = arith.constant 0 : i32
    %c0_i32_1 = arith.constant 0 : i32
    return %c0_i32, %c0_i32_0 : i32, i32
  }
  func.func @transform_9(%arg0: i32, %arg1: i32) -> (i32, i32) {
    %c0_i32 = arith.constant 0 : i32
    %c0_i32_0 = arith.constant 0 : i32
    %c0_i32_1 = arith.constant 0 : i32
    return %c0_i32, %c0_i32_0 : i32, i32
  }
  func.func @transform_10(%arg0: i32, %arg1: i32) -> (i32, i32, i32) {
    %c0_i32 = arith.constant 0 : i32
    %c0_i32_0 = arith.constant 0 : i32
    %c0_i32_1 = arith.constant 0 : i32
    %c0_i32_2 = arith.constant 0 : i32
    return %c0_i32, %c0_i32_0, %c0_i32_1 : i32, i32, i32
  }
  func.func @transform_11(%arg0: i32, %arg1: i32) -> (i32, i32, i32) {
    %c0_i32 = arith.constant 0 : i32
    %c0_i32_0 = arith.constant 0 : i32
    %c0_i32_1 = arith.constant 0 : i32
    %c0_i32_2 = arith.constant 0 : i32
    return %c0_i32, %c0_i32_0, %c0_i32_1 : i32, i32, i32
  }
  func.func @transform_12(%arg0: i32, %arg1: i32) -> (i32, i32) {
    %c0_i32 = arith.constant 0 : i32
    %c0_i32_0 = arith.constant 0 : i32
    %c0_i32_1 = arith.constant 0 : i32
    return %c0_i32, %c0_i32_0 : i32, i32
  }
  func.func @transform_13(%arg0: i32, %arg1: i32) -> (i32, i32) {
    %c0_i32 = arith.constant 0 : i32
    %c0_i32_0 = arith.constant 0 : i32
    %c0_i32_1 = arith.constant 0 : i32
    return %c0_i32, %c0_i32_0 : i32, i32
  }
  func.func @transform_14(%arg0: i32, %arg1: i32) -> (i32, i32) {
    %c0_i32 = arith.constant 0 : i32
    %c0_i32_0 = arith.constant 0 : i32
    %c0_i32_1 = arith.constant 0 : i32
    return %c0_i32, %c0_i32_0 : i32, i32
  }
  func.func @transform_15(%arg0: i32, %arg1: i32) -> (i32, i32, i32) {
    %c0_i32 = arith.constant 0 : i32
    %c0_i32_0 = arith.constant 0 : i32
    %c0_i32_1 = arith.constant 0 : i32
    %c0_i32_2 = arith.constant 0 : i32
    return %c0_i32, %c0_i32_0, %c0_i32_1 : i32, i32, i32
  }
  func.func @transform_16(%arg0: i32, %arg1: i32) -> (i32, i32, i32) {
    %c0_i32 = arith.constant 0 : i32
    %c0_i32_0 = arith.constant 0 : i32
    %c0_i32_1 = arith.constant 0 : i32
    %c0_i32_2 = arith.constant 0 : i32
    return %c0_i32, %c0_i32_0, %c0_i32_1 : i32, i32, i32
  }
  func.func @transform_17(%arg0: i32, %arg1: i32) -> (i32, i32) {
    %c0_i32 = arith.constant 0 : i32
    %c0_i32_0 = arith.constant 0 : i32
    %c0_i32_1 = arith.constant 0 : i32
    return %c0_i32, %c0_i32_0 : i32, i32
  }
  func.func @transform_18(%arg0: i32, %arg1: i32) -> (i32, i32) {
    %c0_i32 = arith.constant 0 : i32
    %c0_i32_0 = arith.constant 0 : i32
    return %c0_i32, %arg0 : i32, i32
  }
}

module attributes {stable_mosaic.version = 11 : i64} {
  func.func @message_kernel(%arg0: i32, %arg1: memref<8x256xf32, #tpu.memory_space<vmem>>, %arg2: memref<16x8xf32, #tpu.memory_space<vmem>>, %arg3: memref<16x1xf32, #tpu.memory_space<vmem>>, %arg4: memref<2x16x16xf32, #tpu.memory_space<vmem>>, %arg5: memref<2x16x1xf32, #tpu.memory_space<vmem>>, %arg6: memref<4x16xf32, #tpu.memory_space<vmem>>, %arg7: memref<4x256xf32, #tpu.memory_space<vmem>>) attributes {dimension_semantics = [#tpu.dimension_semantics<parallel>], iteration_bounds = array<i64: 1>, scalar_prefetch = 0 : i64, scratch_operands = 0 : i64, tpu.core_type = #tpu.core_type<tc>, window_params = [{transform_indices = @transform_0, window_bounds = array<i64: 8, 256>}, {pipeline_mode = #tpu.pipeline_mode<synchronous>, transform_indices = @transform_1, window_bounds = array<i64: 16, 8>}, {pipeline_mode = #tpu.pipeline_mode<synchronous>, transform_indices = @transform_2, window_bounds = array<i64: 16, 1>}, {pipeline_mode = #tpu.pipeline_mode<synchronous>, transform_indices = @transform_3, window_bounds = array<i64: 2, 16, 16>}, {pipeline_mode = #tpu.pipeline_mode<synchronous>, transform_indices = @transform_4, window_bounds = array<i64: 2, 16, 1>}, {pipeline_mode = #tpu.pipeline_mode<synchronous>, transform_indices = @transform_5, window_bounds = array<i64: 4, 16>}, {transform_indices = @transform_6, window_bounds = array<i64: 4, 256>}]} {
    %c0 = arith.constant 0 : index
    %c0_0 = arith.constant 0 : index
    %0 = vector.load %arg1[%c0, %c0_0] : memref<8x256xf32, #tpu.memory_space<vmem>>, vector<8x256xf32>
    %c0_1 = arith.constant 0 : index
    %c0_2 = arith.constant 0 : index
    %1 = vector.load %arg2[%c0_1, %c0_2] : memref<16x8xf32, #tpu.memory_space<vmem>>, vector<16x8xf32>
    %cst = arith.constant dense<0.000000e+00> : vector<16x256xf32>
    %2 = tpu.matmul %1, %0, %cst {dimension_numbers = #tpu.dot_dimension_numbers<[1], [0], [0], [1], [0, 0, 1, 1], [], []>, precision = #tpu.contract_precision<fp32>} : vector<16x8xf32>, vector<8x256xf32>, vector<16x256xf32> -> vector<16x256xf32>
    %c0_3 = arith.constant 0 : index
    %c0_4 = arith.constant 0 : index
    %3 = vector.load %arg3[%c0_3, %c0_4] : memref<16x1xf32, #tpu.memory_space<vmem>>, vector<16x1xf32>
    %4 = vector.broadcast %3 : vector<16x1xf32> to vector<16x256xf32>
    %5 = arith.addf %2, %4 : vector<16x256xf32>
    %cst_5 = arith.constant 0.000000e+00 : f32
    %6 = vector.broadcast %cst_5 : f32 to vector<16x256xf32>
    %7 = arith.maximumf %5, %6 : vector<16x256xf32>
    %c0_6 = arith.constant 0 : index
    %c0_7 = arith.constant 0 : index
    %c0_8 = arith.constant 0 : index
    %8 = vector.load %arg4[%c0_6, %c0_7, %c0_8] : memref<2x16x16xf32, #tpu.memory_space<vmem>>, vector<1x16x16xf32>
    %9 = vector.shape_cast %8 : vector<1x16x16xf32> to vector<16x16xf32>
    %cst_9 = arith.constant dense<0.000000e+00> : vector<16x256xf32>
    %10 = tpu.matmul %9, %7, %cst_9 {dimension_numbers = #tpu.dot_dimension_numbers<[1], [0], [0], [1], [0, 0, 1, 1], [], []>, precision = #tpu.contract_precision<fp32>} : vector<16x16xf32>, vector<16x256xf32>, vector<16x256xf32> -> vector<16x256xf32>
    %c0_10 = arith.constant 0 : index
    %c0_11 = arith.constant 0 : index
    %c0_12 = arith.constant 0 : index
    %11 = vector.load %arg5[%c0_10, %c0_11, %c0_12] : memref<2x16x1xf32, #tpu.memory_space<vmem>>, vector<1x16x1xf32>
    %12 = vector.shape_cast %11 : vector<1x16x1xf32> to vector<16x1xf32>
    %13 = vector.broadcast %12 : vector<16x1xf32> to vector<16x256xf32>
    %14 = arith.addf %10, %13 : vector<16x256xf32>
    %cst_13 = arith.constant 0.000000e+00 : f32
    %15 = vector.broadcast %cst_13 : f32 to vector<16x256xf32>
    %16 = arith.maximumf %14, %15 : vector<16x256xf32>
    %17 = arith.addf %7, %16 : vector<16x256xf32>
    %c1 = arith.constant 1 : index
    %c0_14 = arith.constant 0 : index
    %c0_15 = arith.constant 0 : index
    %18 = vector.load %arg4[%c1, %c0_14, %c0_15] : memref<2x16x16xf32, #tpu.memory_space<vmem>>, vector<1x16x16xf32>
    %19 = vector.shape_cast %18 : vector<1x16x16xf32> to vector<16x16xf32>
    %cst_16 = arith.constant dense<0.000000e+00> : vector<16x256xf32>
    %20 = tpu.matmul %19, %17, %cst_16 {dimension_numbers = #tpu.dot_dimension_numbers<[1], [0], [0], [1], [0, 0, 1, 1], [], []>, precision = #tpu.contract_precision<fp32>} : vector<16x16xf32>, vector<16x256xf32>, vector<16x256xf32> -> vector<16x256xf32>
    %c1_17 = arith.constant 1 : index
    %c0_18 = arith.constant 0 : index
    %c0_19 = arith.constant 0 : index
    %21 = vector.load %arg5[%c1_17, %c0_18, %c0_19] : memref<2x16x1xf32, #tpu.memory_space<vmem>>, vector<1x16x1xf32>
    %22 = vector.shape_cast %21 : vector<1x16x1xf32> to vector<16x1xf32>
    %23 = vector.broadcast %22 : vector<16x1xf32> to vector<16x256xf32>
    %24 = arith.addf %20, %23 : vector<16x256xf32>
    %cst_20 = arith.constant 0.000000e+00 : f32
    %25 = vector.broadcast %cst_20 : f32 to vector<16x256xf32>
    %26 = arith.maximumf %24, %25 : vector<16x256xf32>
    %27 = arith.addf %17, %26 : vector<16x256xf32>
    %c0_21 = arith.constant 0 : index
    %c0_22 = arith.constant 0 : index
    %28 = vector.load %arg6[%c0_21, %c0_22] : memref<4x16xf32, #tpu.memory_space<vmem>>, vector<4x16xf32>
    %cst_23 = arith.constant dense<0.000000e+00> : vector<4x256xf32>
    %29 = tpu.matmul %28, %27, %cst_23 {dimension_numbers = #tpu.dot_dimension_numbers<[1], [0], [0], [1], [0, 0, 1, 1], [], []>, precision = #tpu.contract_precision<fp32>} : vector<4x16xf32>, vector<16x256xf32>, vector<4x256xf32> -> vector<4x256xf32>
    %c0_24 = arith.constant 0 : index
    %c0_25 = arith.constant 0 : index
    %30 = vector.load %arg7[%c0_24, %c0_25] : memref<4x256xf32, #tpu.memory_space<vmem>>, vector<4x256xf32>
    tpu.vector_store %arg7[%c0_24, %c0_25], %29 {strides = array<i32>} : memref<4x256xf32, #tpu.memory_space<vmem>>, vector<4x256xf32>,
    return
  }
  func.func @transform_0(%arg0: i32) -> (i32, i32) {
    %c0_i32 = arith.constant 0 : i32
    %c0_i32_0 = arith.constant 0 : i32
    return %c0_i32, %arg0 : i32, i32
  }
  func.func @transform_1(%arg0: i32) -> (i32, i32) {
    %c0_i32 = arith.constant 0 : i32
    %c0_i32_0 = arith.constant 0 : i32
    %c0_i32_1 = arith.constant 0 : i32
    return %c0_i32, %c0_i32_0 : i32, i32
  }
  func.func @transform_2(%arg0: i32) -> (i32, i32) {
    %c0_i32 = arith.constant 0 : i32
    %c0_i32_0 = arith.constant 0 : i32
    %c0_i32_1 = arith.constant 0 : i32
    return %c0_i32, %c0_i32_0 : i32, i32
  }
  func.func @transform_3(%arg0: i32) -> (i32, i32, i32) {
    %c0_i32 = arith.constant 0 : i32
    %c0_i32_0 = arith.constant 0 : i32
    %c0_i32_1 = arith.constant 0 : i32
    %c0_i32_2 = arith.constant 0 : i32
    return %c0_i32, %c0_i32_0, %c0_i32_1 : i32, i32, i32
  }
  func.func @transform_4(%arg0: i32) -> (i32, i32, i32) {
    %c0_i32 = arith.constant 0 : i32
    %c0_i32_0 = arith.constant 0 : i32
    %c0_i32_1 = arith.constant 0 : i32
    %c0_i32_2 = arith.constant 0 : i32
    return %c0_i32, %c0_i32_0, %c0_i32_1 : i32, i32, i32
  }
  func.func @transform_5(%arg0: i32) -> (i32, i32) {
    %c0_i32 = arith.constant 0 : i32
    %c0_i32_0 = arith.constant 0 : i32
    %c0_i32_1 = arith.constant 0 : i32
    return %c0_i32, %c0_i32_0 : i32, i32
  }
  func.func @transform_6(%arg0: i32) -> (i32, i32) {
    %c0_i32 = arith.constant 0 : i32
    %c0_i32_0 = arith.constant 0 : i32
    return %c0_i32, %arg0 : i32, i32
  }
}

module attributes {stable_mosaic.version = 11 : i64} {
  func.func @fused_agg_v_kernel(%arg0: i32, %arg1: i32, %arg2: memref<4x128xf32, #tpu.memory_space<vmem>>, %arg3: memref<128x128xf32, #tpu.memory_space<vmem>>, %arg4: memref<4x128xf32, #tpu.memory_space<vmem>>, %arg5: memref<16x4xf32, #tpu.memory_space<vmem>>, %arg6: memref<16x1xf32, #tpu.memory_space<vmem>>, %arg7: memref<2x16x16xf32, #tpu.memory_space<vmem>>, %arg8: memref<2x16x1xf32, #tpu.memory_space<vmem>>, %arg9: memref<16x1xf32, #tpu.memory_space<vmem>>, %arg10: memref<16x4xf32, #tpu.memory_space<vmem>>, %arg11: memref<16x1xf32, #tpu.memory_space<vmem>>, %arg12: memref<2x16x16xf32, #tpu.memory_space<vmem>>, %arg13: memref<2x16x1xf32, #tpu.memory_space<vmem>>, %arg14: memref<4x16xf32, #tpu.memory_space<vmem>>, %arg15: memref<16x4xf32, #tpu.memory_space<vmem>>, %arg16: memref<16x1xf32, #tpu.memory_space<vmem>>, %arg17: memref<2x16x16xf32, #tpu.memory_space<vmem>>, %arg18: memref<2x16x1xf32, #tpu.memory_space<vmem>>, %arg19: memref<4x16xf32, #tpu.memory_space<vmem>>, %arg20: memref<4x128xf32, #tpu.memory_space<vmem>>, %arg21: memref<4x128xf32, #tpu.memory_space<vmem>>) attributes {dimension_semantics = [#tpu.dimension_semantics<parallel>, #tpu.dimension_semantics<arbitrary>], iteration_bounds = array<i64: 2, 2>, scalar_prefetch = 0 : i64, scratch_operands = 1 : i64, tpu.core_type = #tpu.core_type<tc>, window_params = [{transform_indices = @transform_0, window_bounds = array<i64: 4, 128>}, {transform_indices = @transform_1, window_bounds = array<i64: 128, 128>}, {transform_indices = @transform_2, window_bounds = array<i64: 4, 128>}, {pipeline_mode = #tpu.pipeline_mode<synchronous>, transform_indices = @transform_3, window_bounds = array<i64: 16, 4>}, {pipeline_mode = #tpu.pipeline_mode<synchronous>, transform_indices = @transform_4, window_bounds = array<i64: 16, 1>}, {pipeline_mode = #tpu.pipeline_mode<synchronous>, transform_indices = @transform_5, window_bounds = array<i64: 2, 16, 16>}, {pipeline_mode = #tpu.pipeline_mode<synchronous>, transform_indices = @transform_6, window_bounds = array<i64: 2, 16, 1>}, {pipeline_mode = #tpu.pipeline_mode<synchronous>, transform_indices = @transform_7, window_bounds = array<i64: 16, 1>}, {pipeline_mode = #tpu.pipeline_mode<synchronous>, transform_indices = @transform_8, window_bounds = array<i64: 16, 4>}, {pipeline_mode = #tpu.pipeline_mode<synchronous>, transform_indices = @transform_9, window_bounds = array<i64: 16, 1>}, {pipeline_mode = #tpu.pipeline_mode<synchronous>, transform_indices = @transform_10, window_bounds = array<i64: 2, 16, 16>}, {pipeline_mode = #tpu.pipeline_mode<synchronous>, transform_indices = @transform_11, window_bounds = array<i64: 2, 16, 1>}, {pipeline_mode = #tpu.pipeline_mode<synchronous>, transform_indices = @transform_12, window_bounds = array<i64: 4, 16>}, {pipeline_mode = #tpu.pipeline_mode<synchronous>, transform_indices = @transform_13, window_bounds = array<i64: 16, 4>}, {pipeline_mode = #tpu.pipeline_mode<synchronous>, transform_indices = @transform_14, window_bounds = array<i64: 16, 1>}, {pipeline_mode = #tpu.pipeline_mode<synchronous>, transform_indices = @transform_15, window_bounds = array<i64: 2, 16, 16>}, {pipeline_mode = #tpu.pipeline_mode<synchronous>, transform_indices = @transform_16, window_bounds = array<i64: 2, 16, 1>}, {pipeline_mode = #tpu.pipeline_mode<synchronous>, transform_indices = @transform_17, window_bounds = array<i64: 4, 16>}, {transform_indices = @transform_18, window_bounds = array<i64: 4, 128>}]} {
    %c0_i32 = arith.constant 0 : i32
    %0 = arith.cmpi eq, %arg1, %c0_i32 : i32
    %1 = arith.extui %0 : i1 to i32
    %c0_i32_0 = arith.constant 0 : i32
    %2 = arith.cmpi ne, %1, %c0_i32_0 : i32
    scf.if %2 {
      %cst_9 = arith.constant 0.000000e+00 : f32
      %12 = vector.broadcast %cst_9 : f32 to vector<4x128xf32>
      %c0_10 = arith.constant 0 : index
      %c0_11 = arith.constant 0 : index
      %13 = vector.load %arg21[%c0_10, %c0_11] : memref<4x128xf32, #tpu.memory_space<vmem>>, vector<4x128xf32>
      tpu.vector_store %arg21[%c0_10, %c0_11], %12 {strides = array<i32>} : memref<4x128xf32, #tpu.memory_space<vmem>>, vector<4x128xf32>,
    } else {
    }
    %c0 = arith.constant 0 : index
    %c0_1 = arith.constant 0 : index
    %3 = vector.load %arg21[%c0, %c0_1] : memref<4x128xf32, #tpu.memory_space<vmem>>, vector<4x128xf32>
    %c0_2 = arith.constant 0 : index
    %c0_3 = arith.constant 0 : index
    %4 = vector.load %arg2[%c0_2, %c0_3] : memref<4x128xf32, #tpu.memory_space<vmem>>, vector<4x128xf32>
    %c0_4 = arith.constant 0 : index
    %c0_5 = arith.constant 0 : index
    %5 = vector.load %arg3[%c0_4, %c0_5] : memref<128x128xf32, #tpu.memory_space<vmem>>, vector<128x128xf32>
    %cst = arith.constant dense<0.000000e+00> : vector<4x128xf32>
    %6 = tpu.matmul %4, %5, %cst {dimension_numbers = #tpu.dot_dimension_numbers<[1], [0], [0], [1], [0, 0, 1, 1], [], []>, precision = #tpu.contract_precision<fp32>} : vector<4x128xf32>, vector<128x128xf32>, vector<4x128xf32> -> vector<4x128xf32>
    %7 = arith.addf %3, %6 : vector<4x128xf32>
    %c0_6 = arith.constant 0 : index
    %c0_7 = arith.constant 0 : index
    %8 = vector.load %arg21[%c0_6, %c0_7] : memref<4x128xf32, #tpu.memory_space<vmem>>, vector<4x128xf32>
    tpu.vector_store %arg21[%c0_6, %c0_7], %7 {strides = array<i32>} : memref<4x128xf32, #tpu.memory_space<vmem>>, vector<4x128xf32>,
    %c1_i32 = arith.constant 1 : i32
    %9 = arith.cmpi eq, %arg1, %c1_i32 : i32
    %10 = arith.extui %9 : i1 to i32
    %c0_i32_8 = arith.constant 0 : i32
    %11 = arith.cmpi ne, %10, %c0_i32_8 : i32
    scf.if %11 {
      %c0_9 = arith.constant 0 : index
      %c0_10 = arith.constant 0 : index
      %12 = vector.load %arg21[%c0_9, %c0_10] : memref<4x128xf32, #tpu.memory_space<vmem>>, vector<4x128xf32>
      %c0_11 = arith.constant 0 : index
      %c0_12 = arith.constant 0 : index
      %13 = vector.load %arg5[%c0_11, %c0_12] : memref<16x4xf32, #tpu.memory_space<vmem>>, vector<16x4xf32>
      %cst_13 = arith.constant dense<0.000000e+00> : vector<16x128xf32>
      %14 = tpu.matmul %13, %12, %cst_13 {dimension_numbers = #tpu.dot_dimension_numbers<[1], [0], [0], [1], [0, 0, 1, 1], [], []>, precision = #tpu.contract_precision<fp32>} : vector<16x4xf32>, vector<4x128xf32>, vector<16x128xf32> -> vector<16x128xf32>
      %c0_14 = arith.constant 0 : index
      %c0_15 = arith.constant 0 : index
      %15 = vector.load %arg6[%c0_14, %c0_15] : memref<16x1xf32, #tpu.memory_space<vmem>>, vector<16x1xf32>
      %16 = vector.broadcast %15 : vector<16x1xf32> to vector<16x128xf32>
      %17 = arith.addf %14, %16 : vector<16x128xf32>
      %cst_16 = arith.constant 0.000000e+00 : f32
      %18 = vector.broadcast %cst_16 : f32 to vector<16x128xf32>
      %19 = arith.subf %18, %17 : vector<16x128xf32>
      %20 = math.exp %19 : vector<16x128xf32>
      %cst_17 = arith.constant 1.000000e+00 : f32
      %21 = vector.broadcast %cst_17 : f32 to vector<16x128xf32>
      %22 = arith.addf %21, %20 : vector<16x128xf32>
      %cst_18 = arith.constant 1.000000e+00 : f32
      %23 = vector.broadcast %cst_18 : f32 to vector<16x128xf32>
      %24 = arith.divf %23, %22 : vector<16x128xf32>
      %c0_19 = arith.constant 0 : index
      %c0_20 = arith.constant 0 : index
      %c0_21 = arith.constant 0 : index
      %25 = vector.load %arg7[%c0_19, %c0_20, %c0_21] : memref<2x16x16xf32, #tpu.memory_space<vmem>>, vector<1x16x16xf32>
      %26 = vector.shape_cast %25 : vector<1x16x16xf32> to vector<16x16xf32>
      %cst_22 = arith.constant dense<0.000000e+00> : vector<16x128xf32>
      %27 = tpu.matmul %26, %24, %cst_22 {dimension_numbers = #tpu.dot_dimension_numbers<[1], [0], [0], [1], [0, 0, 1, 1], [], []>, precision = #tpu.contract_precision<fp32>} : vector<16x16xf32>, vector<16x128xf32>, vector<16x128xf32> -> vector<16x128xf32>
      %c0_23 = arith.constant 0 : index
      %c0_24 = arith.constant 0 : index
      %c0_25 = arith.constant 0 : index
      %28 = vector.load %arg8[%c0_23, %c0_24, %c0_25] : memref<2x16x1xf32, #tpu.memory_space<vmem>>, vector<1x16x1xf32>
      %29 = vector.shape_cast %28 : vector<1x16x1xf32> to vector<16x1xf32>
      %30 = vector.broadcast %29 : vector<16x1xf32> to vector<16x128xf32>
      %31 = arith.addf %27, %30 : vector<16x128xf32>
      %cst_26 = arith.constant 0.000000e+00 : f32
      %32 = vector.broadcast %cst_26 : f32 to vector<16x128xf32>
      %33 = arith.subf %32, %31 : vector<16x128xf32>
      %34 = math.exp %33 : vector<16x128xf32>
      %cst_27 = arith.constant 1.000000e+00 : f32
      %35 = vector.broadcast %cst_27 : f32 to vector<16x128xf32>
      %36 = arith.addf %35, %34 : vector<16x128xf32>
      %cst_28 = arith.constant 1.000000e+00 : f32
      %37 = vector.broadcast %cst_28 : f32 to vector<16x128xf32>
      %38 = arith.divf %37, %36 : vector<16x128xf32>
      %c1 = arith.constant 1 : index
      %c0_29 = arith.constant 0 : index
      %c0_30 = arith.constant 0 : index
      %39 = vector.load %arg7[%c1, %c0_29, %c0_30] : memref<2x16x16xf32, #tpu.memory_space<vmem>>, vector<1x16x16xf32>
      %40 = vector.shape_cast %39 : vector<1x16x16xf32> to vector<16x16xf32>
      %cst_31 = arith.constant dense<0.000000e+00> : vector<16x128xf32>
      %41 = tpu.matmul %40, %38, %cst_31 {dimension_numbers = #tpu.dot_dimension_numbers<[1], [0], [0], [1], [0, 0, 1, 1], [], []>, precision = #tpu.contract_precision<fp32>} : vector<16x16xf32>, vector<16x128xf32>, vector<16x128xf32> -> vector<16x128xf32>
      %c1_32 = arith.constant 1 : index
      %c0_33 = arith.constant 0 : index
      %c0_34 = arith.constant 0 : index
      %42 = vector.load %arg8[%c1_32, %c0_33, %c0_34] : memref<2x16x1xf32, #tpu.memory_space<vmem>>, vector<1x16x1xf32>
      %43 = vector.shape_cast %42 : vector<1x16x1xf32> to vector<16x1xf32>
      %44 = vector.broadcast %43 : vector<16x1xf32> to vector<16x128xf32>
      %45 = arith.addf %41, %44 : vector<16x128xf32>
      %cst_35 = arith.constant 0.000000e+00 : f32
      %46 = vector.broadcast %cst_35 : f32 to vector<16x128xf32>
      %47 = arith.subf %46, %45 : vector<16x128xf32>
      %48 = math.exp %47 : vector<16x128xf32>
      %cst_36 = arith.constant 1.000000e+00 : f32
      %49 = vector.broadcast %cst_36 : f32 to vector<16x128xf32>
      %50 = arith.addf %49, %48 : vector<16x128xf32>
      %cst_37 = arith.constant 1.000000e+00 : f32
      %51 = vector.broadcast %cst_37 : f32 to vector<16x128xf32>
      %52 = arith.divf %51, %50 : vector<16x128xf32>
      %c0_38 = arith.constant 0 : index
      %c0_39 = arith.constant 0 : index
      %53 = vector.load %arg9[%c0_38, %c0_39] : memref<16x1xf32, #tpu.memory_space<vmem>>, vector<16x1xf32>
      %54 = vector.broadcast %53 : vector<16x1xf32> to vector<16x128xf32>
      %55 = arith.mulf %52, %54 : vector<16x128xf32>
      %cst_40 = arith.constant dense<0.000000e+00> : vector<128xf32>
      %56 = vector.multi_reduction <add>, %55, %cst_40 [0] : vector<16x128xf32> to vector<128xf32>
      %57 = vector.shape_cast %56 : vector<128xf32> to vector<1x128xf32>
      %c0_41 = arith.constant 0 : index
      %c0_42 = arith.constant 0 : index
      %58 = vector.load %arg10[%c0_41, %c0_42] : memref<16x4xf32, #tpu.memory_space<vmem>>, vector<16x4xf32>
      %cst_43 = arith.constant dense<0.000000e+00> : vector<16x128xf32>
      %59 = tpu.matmul %58, %12, %cst_43 {dimension_numbers = #tpu.dot_dimension_numbers<[1], [0], [0], [1], [0, 0, 1, 1], [], []>, precision = #tpu.contract_precision<fp32>} : vector<16x4xf32>, vector<4x128xf32>, vector<16x128xf32> -> vector<16x128xf32>
      %c0_44 = arith.constant 0 : index
      %c0_45 = arith.constant 0 : index
      %60 = vector.load %arg11[%c0_44, %c0_45] : memref<16x1xf32, #tpu.memory_space<vmem>>, vector<16x1xf32>
      %61 = vector.broadcast %60 : vector<16x1xf32> to vector<16x128xf32>
      %62 = arith.addf %59, %61 : vector<16x128xf32>
      %cst_46 = arith.constant 0.000000e+00 : f32
      %63 = vector.broadcast %cst_46 : f32 to vector<16x128xf32>
      %64 = arith.maximumf %62, %63 : vector<16x128xf32>
      %c0_47 = arith.constant 0 : index
      %c0_48 = arith.constant 0 : index
      %c0_49 = arith.constant 0 : index
      %65 = vector.load %arg12[%c0_47, %c0_48, %c0_49] : memref<2x16x16xf32, #tpu.memory_space<vmem>>, vector<1x16x16xf32>
      %66 = vector.shape_cast %65 : vector<1x16x16xf32> to vector<16x16xf32>
      %cst_50 = arith.constant dense<0.000000e+00> : vector<16x128xf32>
      %67 = tpu.matmul %66, %64, %cst_50 {dimension_numbers = #tpu.dot_dimension_numbers<[1], [0], [0], [1], [0, 0, 1, 1], [], []>, precision = #tpu.contract_precision<fp32>} : vector<16x16xf32>, vector<16x128xf32>, vector<16x128xf32> -> vector<16x128xf32>
      %c0_51 = arith.constant 0 : index
      %c0_52 = arith.constant 0 : index
      %c0_53 = arith.constant 0 : index
      %68 = vector.load %arg13[%c0_51, %c0_52, %c0_53] : memref<2x16x1xf32, #tpu.memory_space<vmem>>, vector<1x16x1xf32>
      %69 = vector.shape_cast %68 : vector<1x16x1xf32> to vector<16x1xf32>
      %70 = vector.broadcast %69 : vector<16x1xf32> to vector<16x128xf32>
      %71 = arith.addf %67, %70 : vector<16x128xf32>
      %cst_54 = arith.constant 0.000000e+00 : f32
      %72 = vector.broadcast %cst_54 : f32 to vector<16x128xf32>
      %73 = arith.maximumf %71, %72 : vector<16x128xf32>
      %74 = arith.addf %64, %73 : vector<16x128xf32>
      %c1_55 = arith.constant 1 : index
      %c0_56 = arith.constant 0 : index
      %c0_57 = arith.constant 0 : index
      %75 = vector.load %arg12[%c1_55, %c0_56, %c0_57] : memref<2x16x16xf32, #tpu.memory_space<vmem>>, vector<1x16x16xf32>
      %76 = vector.shape_cast %75 : vector<1x16x16xf32> to vector<16x16xf32>
      %cst_58 = arith.constant dense<0.000000e+00> : vector<16x128xf32>
      %77 = tpu.matmul %76, %74, %cst_58 {dimension_numbers = #tpu.dot_dimension_numbers<[1], [0], [0], [1], [0, 0, 1, 1], [], []>, precision = #tpu.contract_precision<fp32>} : vector<16x16xf32>, vector<16x128xf32>, vector<16x128xf32> -> vector<16x128xf32>
      %c1_59 = arith.constant 1 : index
      %c0_60 = arith.constant 0 : index
      %c0_61 = arith.constant 0 : index
      %78 = vector.load %arg13[%c1_59, %c0_60, %c0_61] : memref<2x16x1xf32, #tpu.memory_space<vmem>>, vector<1x16x1xf32>
      %79 = vector.shape_cast %78 : vector<1x16x1xf32> to vector<16x1xf32>
      %80 = vector.broadcast %79 : vector<16x1xf32> to vector<16x128xf32>
      %81 = arith.addf %77, %80 : vector<16x128xf32>
      %cst_62 = arith.constant 0.000000e+00 : f32
      %82 = vector.broadcast %cst_62 : f32 to vector<16x128xf32>
      %83 = arith.maximumf %81, %82 : vector<16x128xf32>
      %84 = arith.addf %74, %83 : vector<16x128xf32>
      %c0_63 = arith.constant 0 : index
      %c0_64 = arith.constant 0 : index
      %85 = vector.load %arg14[%c0_63, %c0_64] : memref<4x16xf32, #tpu.memory_space<vmem>>, vector<4x16xf32>
      %cst_65 = arith.constant dense<0.000000e+00> : vector<4x128xf32>
      %86 = tpu.matmul %85, %84, %cst_65 {dimension_numbers = #tpu.dot_dimension_numbers<[1], [0], [0], [1], [0, 0, 1, 1], [], []>, precision = #tpu.contract_precision<fp32>} : vector<4x16xf32>, vector<16x128xf32>, vector<4x128xf32> -> vector<4x128xf32>
      %c0_66 = arith.constant 0 : index
      %c0_67 = arith.constant 0 : index
      %87 = vector.load %arg15[%c0_66, %c0_67] : memref<16x4xf32, #tpu.memory_space<vmem>>, vector<16x4xf32>
      %cst_68 = arith.constant dense<0.000000e+00> : vector<16x128xf32>
      %88 = tpu.matmul %87, %12, %cst_68 {dimension_numbers = #tpu.dot_dimension_numbers<[1], [0], [0], [1], [0, 0, 1, 1], [], []>, precision = #tpu.contract_precision<fp32>} : vector<16x4xf32>, vector<4x128xf32>, vector<16x128xf32> -> vector<16x128xf32>
      %c0_69 = arith.constant 0 : index
      %c0_70 = arith.constant 0 : index
      %89 = vector.load %arg16[%c0_69, %c0_70] : memref<16x1xf32, #tpu.memory_space<vmem>>, vector<16x1xf32>
      %90 = vector.broadcast %89 : vector<16x1xf32> to vector<16x128xf32>
      %91 = arith.addf %88, %90 : vector<16x128xf32>
      %cst_71 = arith.constant 0.000000e+00 : f32
      %92 = vector.broadcast %cst_71 : f32 to vector<16x128xf32>
      %93 = arith.maximumf %91, %92 : vector<16x128xf32>
      %c0_72 = arith.constant 0 : index
      %c0_73 = arith.constant 0 : index
      %c0_74 = arith.constant 0 : index
      %94 = vector.load %arg17[%c0_72, %c0_73, %c0_74] : memref<2x16x16xf32, #tpu.memory_space<vmem>>, vector<1x16x16xf32>
      %95 = vector.shape_cast %94 : vector<1x16x16xf32> to vector<16x16xf32>
      %cst_75 = arith.constant dense<0.000000e+00> : vector<16x128xf32>
      %96 = tpu.matmul %95, %93, %cst_75 {dimension_numbers = #tpu.dot_dimension_numbers<[1], [0], [0], [1], [0, 0, 1, 1], [], []>, precision = #tpu.contract_precision<fp32>} : vector<16x16xf32>, vector<16x128xf32>, vector<16x128xf32> -> vector<16x128xf32>
      %c0_76 = arith.constant 0 : index
      %c0_77 = arith.constant 0 : index
      %c0_78 = arith.constant 0 : index
      %97 = vector.load %arg18[%c0_76, %c0_77, %c0_78] : memref<2x16x1xf32, #tpu.memory_space<vmem>>, vector<1x16x1xf32>
      %98 = vector.shape_cast %97 : vector<1x16x1xf32> to vector<16x1xf32>
      %99 = vector.broadcast %98 : vector<16x1xf32> to vector<16x128xf32>
      %100 = arith.addf %96, %99 : vector<16x128xf32>
      %cst_79 = arith.constant 0.000000e+00 : f32
      %101 = vector.broadcast %cst_79 : f32 to vector<16x128xf32>
      %102 = arith.maximumf %100, %101 : vector<16x128xf32>
      %c1_80 = arith.constant 1 : index
      %c0_81 = arith.constant 0 : index
      %c0_82 = arith.constant 0 : index
      %103 = vector.load %arg17[%c1_80, %c0_81, %c0_82] : memref<2x16x16xf32, #tpu.memory_space<vmem>>, vector<1x16x16xf32>
      %104 = vector.shape_cast %103 : vector<1x16x16xf32> to vector<16x16xf32>
      %cst_83 = arith.constant dense<0.000000e+00> : vector<16x128xf32>
      %105 = tpu.matmul %104, %102, %cst_83 {dimension_numbers = #tpu.dot_dimension_numbers<[1], [0], [0], [1], [0, 0, 1, 1], [], []>, precision = #tpu.contract_precision<fp32>} : vector<16x16xf32>, vector<16x128xf32>, vector<16x128xf32> -> vector<16x128xf32>
      %c1_84 = arith.constant 1 : index
      %c0_85 = arith.constant 0 : index
      %c0_86 = arith.constant 0 : index
      %106 = vector.load %arg18[%c1_84, %c0_85, %c0_86] : memref<2x16x1xf32, #tpu.memory_space<vmem>>, vector<1x16x1xf32>
      %107 = vector.shape_cast %106 : vector<1x16x1xf32> to vector<16x1xf32>
      %108 = vector.broadcast %107 : vector<16x1xf32> to vector<16x128xf32>
      %109 = arith.addf %105, %108 : vector<16x128xf32>
      %cst_87 = arith.constant 0.000000e+00 : f32
      %110 = vector.broadcast %cst_87 : f32 to vector<16x128xf32>
      %111 = arith.maximumf %109, %110 : vector<16x128xf32>
      %c0_88 = arith.constant 0 : index
      %c0_89 = arith.constant 0 : index
      %112 = vector.load %arg19[%c0_88, %c0_89] : memref<4x16xf32, #tpu.memory_space<vmem>>, vector<4x16xf32>
      %cst_90 = arith.constant dense<0.000000e+00> : vector<4x128xf32>
      %113 = tpu.matmul %112, %111, %cst_90 {dimension_numbers = #tpu.dot_dimension_numbers<[1], [0], [0], [1], [0, 0, 1, 1], [], []>, precision = #tpu.contract_precision<fp32>} : vector<4x16xf32>, vector<16x128xf32>, vector<4x128xf32> -> vector<4x128xf32>
      %114 = arith.mulf %113, %12 : vector<4x128xf32>
      %115 = arith.addf %86, %114 : vector<4x128xf32>
      %116 = vector.broadcast %57 : vector<1x128xf32> to vector<4x128xf32>
      %117 = arith.mulf %116, %115 : vector<4x128xf32>
      %c0_91 = arith.constant 0 : index
      %c0_92 = arith.constant 0 : index
      %118 = vector.load %arg4[%c0_91, %c0_92] : memref<4x128xf32, #tpu.memory_space<vmem>>, vector<4x128xf32>
      %119 = arith.addf %117, %118 : vector<4x128xf32>
      %c0_93 = arith.constant 0 : index
      %c0_94 = arith.constant 0 : index
      %120 = vector.load %arg20[%c0_93, %c0_94] : memref<4x128xf32, #tpu.memory_space<vmem>>, vector<4x128xf32>
      tpu.vector_store %arg20[%c0_93, %c0_94], %119 {strides = array<i32>} : memref<4x128xf32, #tpu.memory_space<vmem>>, vector<4x128xf32>,
    } else {
    }
    return
  }
  func.func @transform_0(%arg0: i32, %arg1: i32) -> (i32, i32) {
    %c0_i32 = arith.constant 0 : i32
    %c0_i32_0 = arith.constant 0 : i32
    return %c0_i32, %arg1 : i32, i32
  }
  func.func @transform_1(%arg0: i32, %arg1: i32) -> (i32, i32) {
    %c0_i32 = arith.constant 0 : i32
    return %arg1, %arg0 : i32, i32
  }
  func.func @transform_2(%arg0: i32, %arg1: i32) -> (i32, i32) {
    %c0_i32 = arith.constant 0 : i32
    %c0_i32_0 = arith.constant 0 : i32
    return %c0_i32, %arg0 : i32, i32
  }
  func.func @transform_3(%arg0: i32, %arg1: i32) -> (i32, i32) {
    %c0_i32 = arith.constant 0 : i32
    %c0_i32_0 = arith.constant 0 : i32
    %c0_i32_1 = arith.constant 0 : i32
    return %c0_i32, %c0_i32_0 : i32, i32
  }
  func.func @transform_4(%arg0: i32, %arg1: i32) -> (i32, i32) {
    %c0_i32 = arith.constant 0 : i32
    %c0_i32_0 = arith.constant 0 : i32
    %c0_i32_1 = arith.constant 0 : i32
    return %c0_i32, %c0_i32_0 : i32, i32
  }
  func.func @transform_5(%arg0: i32, %arg1: i32) -> (i32, i32, i32) {
    %c0_i32 = arith.constant 0 : i32
    %c0_i32_0 = arith.constant 0 : i32
    %c0_i32_1 = arith.constant 0 : i32
    %c0_i32_2 = arith.constant 0 : i32
    return %c0_i32, %c0_i32_0, %c0_i32_1 : i32, i32, i32
  }
  func.func @transform_6(%arg0: i32, %arg1: i32) -> (i32, i32, i32) {
    %c0_i32 = arith.constant 0 : i32
    %c0_i32_0 = arith.constant 0 : i32
    %c0_i32_1 = arith.constant 0 : i32
    %c0_i32_2 = arith.constant 0 : i32
    return %c0_i32, %c0_i32_0, %c0_i32_1 : i32, i32, i32
  }
  func.func @transform_7(%arg0: i32, %arg1: i32) -> (i32, i32) {
    %c0_i32 = arith.constant 0 : i32
    %c0_i32_0 = arith.constant 0 : i32
    %c0_i32_1 = arith.constant 0 : i32
    return %c0_i32, %c0_i32_0 : i32, i32
  }
  func.func @transform_8(%arg0: i32, %arg1: i32) -> (i32, i32) {
    %c0_i32 = arith.constant 0 : i32
    %c0_i32_0 = arith.constant 0 : i32
    %c0_i32_1 = arith.constant 0 : i32
    return %c0_i32, %c0_i32_0 : i32, i32
  }
  func.func @transform_9(%arg0: i32, %arg1: i32) -> (i32, i32) {
    %c0_i32 = arith.constant 0 : i32
    %c0_i32_0 = arith.constant 0 : i32
    %c0_i32_1 = arith.constant 0 : i32
    return %c0_i32, %c0_i32_0 : i32, i32
  }
  func.func @transform_10(%arg0: i32, %arg1: i32) -> (i32, i32, i32) {
    %c0_i32 = arith.constant 0 : i32
    %c0_i32_0 = arith.constant 0 : i32
    %c0_i32_1 = arith.constant 0 : i32
    %c0_i32_2 = arith.constant 0 : i32
    return %c0_i32, %c0_i32_0, %c0_i32_1 : i32, i32, i32
  }
  func.func @transform_11(%arg0: i32, %arg1: i32) -> (i32, i32, i32) {
    %c0_i32 = arith.constant 0 : i32
    %c0_i32_0 = arith.constant 0 : i32
    %c0_i32_1 = arith.constant 0 : i32
    %c0_i32_2 = arith.constant 0 : i32
    return %c0_i32, %c0_i32_0, %c0_i32_1 : i32, i32, i32
  }
  func.func @transform_12(%arg0: i32, %arg1: i32) -> (i32, i32) {
    %c0_i32 = arith.constant 0 : i32
    %c0_i32_0 = arith.constant 0 : i32
    %c0_i32_1 = arith.constant 0 : i32
    return %c0_i32, %c0_i32_0 : i32, i32
  }
  func.func @transform_13(%arg0: i32, %arg1: i32) -> (i32, i32) {
    %c0_i32 = arith.constant 0 : i32
    %c0_i32_0 = arith.constant 0 : i32
    %c0_i32_1 = arith.constant 0 : i32
    return %c0_i32, %c0_i32_0 : i32, i32
  }
  func.func @transform_14(%arg0: i32, %arg1: i32) -> (i32, i32) {
    %c0_i32 = arith.constant 0 : i32
    %c0_i32_0 = arith.constant 0 : i32
    %c0_i32_1 = arith.constant 0 : i32
    return %c0_i32, %c0_i32_0 : i32, i32
  }
  func.func @transform_15(%arg0: i32, %arg1: i32) -> (i32, i32, i32) {
    %c0_i32 = arith.constant 0 : i32
    %c0_i32_0 = arith.constant 0 : i32
    %c0_i32_1 = arith.constant 0 : i32
    %c0_i32_2 = arith.constant 0 : i32
    return %c0_i32, %c0_i32_0, %c0_i32_1 : i32, i32, i32
  }
  func.func @transform_16(%arg0: i32, %arg1: i32) -> (i32, i32, i32) {
    %c0_i32 = arith.constant 0 : i32
    %c0_i32_0 = arith.constant 0 : i32
    %c0_i32_1 = arith.constant 0 : i32
    %c0_i32_2 = arith.constant 0 : i32
    return %c0_i32, %c0_i32_0, %c0_i32_1 : i32, i32, i32
  }
  func.func @transform_17(%arg0: i32, %arg1: i32) -> (i32, i32) {
    %c0_i32 = arith.constant 0 : i32
    %c0_i32_0 = arith.constant 0 : i32
    %c0_i32_1 = arith.constant 0 : i32
    return %c0_i32, %c0_i32_0 : i32, i32
  }
  func.func @transform_18(%arg0: i32, %arg1: i32) -> (i32, i32) {
    %c0_i32 = arith.constant 0 : i32
    %c0_i32_0 = arith.constant 0 : i32
    return %c0_i32, %arg0 : i32, i32
  }
}

</mosaic_0001>

<bundles_post_ra>
// kernel: mygcn3_forward.6
= control target key start
LH: loop header
LB: loop body
LE: loop exit
PB: predicated region body
PF: predicated region fallthrough
CT: control target
= control target key end

     0   :  { %vm42_vm0 = vcmask 31744   ;;  %v1567_v2 = vmov 0   ;;  %vm49_vm1 = vcmask 1043456   ;;  %vm426_vm2 = vcmask 130048   ;;  %s1814_s0 = inlined_call_operand.vmem [shape: f32[4,256], index: 0, kind: input, shape index: {}]   ;;  %s1815_s1 = inlined_call_operand.vmem [shape: f32[16,4], index: 1, kind: input, shape index: {}]   ;;  %s1816_s2 = inlined_call_operand.vmem [shape: f32[16,1], index: 2, kind: input, shape index: {}]   ;;  %s1817_s3 = inlined_call_operand.vmem [shape: f32[2,16,16], index: 3, kind: input, shape index: {}]   ;;  %s1818_s4 = inlined_call_operand.vmem [shape: f32[2,16,1], index: 4, kind: input, shape index: {}]   ;;  %s1819_s5 = inlined_call_operand.vmem [shape: f32[8,16], index: 5, kind: input, shape index: {}]   ;;  %s1820_s6 = inlined_call_operand.vmem [shape: f32[8,256], index: 6, kind: output, shape index: {}]  }
   0x1   :  { %v23_v0 = vld [vmem:[%s1814_s0] sm:$0xff]  ;;  %1564 = vset.pattern.permute.xlu0 %v1567_v2  ;;  %v25_v3 = vld [vmem:[%s1815_s1 + $0x8] sm:$0xff]  ;;  %1565 = vset.pattern.permute.xlu1 %v1567_v2 }
   0x2   :  { %v24_v1 = vld [vmem:[%s1815_s1] sm:$0xff]  ;;  %39 = vst [vmem:[#allocation1] ss:$2 sm:$0xff] %v23_v0  ;;  %v47_v5 = vsel %vm42_vm0, %v25_v3, 0  ;;  %v27_v6 = vld [vmem:[%s1816_s2 + $0x8] sm:$0xff]  ;;  %1566 = vset.pattern.permute.xlu2 %v1567_v2 }
   0x3   :  { %v44_v4 = vsel %vm42_vm0, %v24_v1, 0  ;;  %v79_v8 = vand.u32 4294901760, %v47_v5  ;;  %35 = vperm.xlu0 %1564, %v27_v6   ;;  %v26_v12 = vld [vmem:[%s1816_s2] sm:$0xff]  ;;  %v413_v56 = vld [vmem:[%s1817_s3 + $0x8] sm:$0xff] }
   0x4   :  { %v71_v7 = vand.u32 4294901760, %v44_v4  ;;  %v412_v44 = vld [vmem:[%s1817_s3] sm:$0xff]  ;;  %v415_v60 = vld [vmem:[%s1818_s4 + $0x8] sm:$0xff]  ;;  %v431_v63 = vsel %vm426_vm2, %v413_v56, 0 }
   0x5   :  { %v80_v10 = vsub.f32 %v47_v5, %v79_v8  ;;  %v428_v48 = vsel %vm426_vm2, %v412_v44, 0  ;;  %423 = vperm.xlu1 %1565, %v415_v60   ;;  %v1642_v2 = vand.u32 4294901760, %v431_v63  ;;  %v414_v5 = vld [vmem:[%s1818_s4] sm:$0xff] }
   0x6   :  { %v72_v9 = vsub.f32 %v44_v4, %v71_v7  ;;  %v1625_v51 = vand.u32 4294901760, %v428_v48 }
   0x7   :  { %v81_v17 = vand.u32 4294901760, %v80_v10 }
   0x8   :  { %v73_v11 = vand.u32 4294901760, %v72_v9  ;;  %v1634_v61 = vsub.f32 %v428_v48, %v1625_v51 }
   0x9   :  { %v40_v13 = vld.sshfl [vmem:[#allocation1] sm:$0xff pattern:$0x75316420]  ;;  %v41_v15 = vld.sshfl [vmem:[#allocation1 + $0x8] sm:$0xff pattern:$0x75316420]  ;;  %v82_v24 = vsub.f32 %v80_v10, %v81_v17 }
   0xa   :  { %v74_v14 = vsub.f32 %v72_v9, %v73_v11  ;;  %v50_v16 = vsel %vm49_vm1, %v40_v13, 0  ;;  %v52_v18 = vsel %vm49_vm1, %v41_v15, 0  ;;  %v1640_v1 = vand.u32 4294901760, %v1634_v61 }
   0xb   :  { %v69_v19 = vand.u32 4294901760, %v50_v16  ;;  %30 = vperm.xlu0 %1564, %v26_v12   ;;  %v246_v21 = vand.u32 4294901760, %v52_v18  ;;  %v83_v29 = vand.u32 4294901760, %v82_v24  ;;  %v1653_v13 = vsub.f32 %v431_v63, %v1642_v2 }
   0xc   :  { %v75_v20 = vand.u32 4294901760, %v74_v14  ;;  %v454_v12 = vsub.f32 %v1634_v61, %v1640_v1 }
   0xd   :  { %70 = vmatpush.msra.mxu0 %v69_v19  ;;  %v104_v22 = vsub.f32 %v50_v16, %v69_v19  ;;  %163 = vmatpush.msra.mxu3 %v69_v19  ;;  %v281_v23 = vsub.f32 %v52_v18, %v246_v21 }
   0xe   :  { %76 = vmatmul.f32.vlgmr.msra.gmra.mxu0 %v75_v20  ;;  %167 = vmatmul.f32.vlgmr.msra.gmra.mxu3 %v73_v11  ;;  %v455_v18 = vand.u32 4294901760, %v454_v12 }
   0xf   :  { %135 = vmatpush.msra.mxu2 %v104_v22  ;;  %v105_v25 = vand.u32 4294901760, %v104_v22  ;;  %v282_v26 = vand.u32 4294901760, %v281_v23  ;;  %418 = vperm.xlu1 %1565, %v414_v5  }
  0x10   :  { %138 = vmatmul.f32.vlgmr.msra.gmra.mxu2 %v72_v9 }
  0x11   :  { %v106_v27 = vsub.f32 %v104_v22, %v105_v25  ;;  %195 = vmatpush.msrb.mxu0 %v105_v25  ;;  %247 = vmatpush.msrb.mxu2 %v246_v21  ;;  %v283_v28 = vsub.f32 %v281_v23, %v282_v26 }
  0x13   :  { %312 = vmatpush.msra.mxu0 %v281_v23  ;;  %372 = vmatpush.msra.mxu2 %v282_v26  ;;  %v107_v30 = vand.u32 4294901760, %v106_v27  ;;  %v284_v31 = vand.u32 4294901760, %v283_v28 }
  0x15   :  { %108 = vmatpush.msra.mxu1 %v107_v30  ;;  %285 = vmatpush.msrb.mxu3 %v284_v31 }
  0x16   :  { %84 = vmatmul.f32.gmra.mxu0 %v83_v29  ;;  %110 = vmatmul.f32.vlgmr.msra.gmra.mxu1 %v71_v7 }
  0x17   :  { %173 = vmatmul.f32.gmra.mxu3 %v81_v17  ;;  %221 = vmatpush.msrb.mxu1 %v69_v19  ;;  %v1661_v19 = vand.u32 4294901760, %v1653_v13 }
  0x18   :  { %143 = vmatmul.f32.gmra.mxu2 %v80_v10  ;;  %398 = vmatpush.msra.mxu3 %v246_v21 }
  0x19   :  { %340 = vmatpush.msra.mxu1 %v246_v21 }
  0x1e   :  { %114 = vmatmul.f32.gmra.mxu1 %v79_v8  ;;  %197 = vmatmul.f32.vlgmr.msrb.gmra.mxu0 %v71_v7 }
  0x1f   :  { %287 = vmatmul.f32.vlgmr.msrb.gmra.mxu3 %v71_v7 }
  0x20   :  { %253 = vmatmul.f32.vlgmr.msrb.gmra.mxu2 %v75_v20 }
  0x26   :  { %201 = vmatmul.f32.gmra.mxu0 %v79_v8  ;;  %223 = vmatmul.f32.vlgmr.msrb.gmra.mxu1 %v71_v7 }
  0x27   :  { %291 = vmatmul.f32.gmra.mxu3 %v79_v8 }
  0x28   :  { %261 = vmatmul.f32.gmra.mxu2 %v83_v29  ;;  %v462_v29 = vsub.f32 %v1653_v13, %v1661_v19 }
  0x2e   :  { %227 = vmatmul.f32.gmra.mxu1 %v79_v8  ;;  %315 = vmatmul.f32.vlgmr.msra.gmra.mxu0 %v72_v9 }
  0x2f   :  { %400 = vmatmul.f32.vlgmr.msra.gmra.mxu3 %v71_v7 }
  0x30   :  { %374 = vmatmul.f32.vlgmr.msra.gmra.mxu2 %v71_v7 }
  0x36   :  { %320 = vmatmul.f32.gmra.mxu0 %v80_v10  ;;  %344 = vmatmul.f32.vlgmr.msra.gmra.mxu1 %v73_v11 }
  0x37   :  { %404 = vmatmul.f32.gmra.mxu3 %v79_v8 }
  0x38   :  { %378 = vmatmul.f32.gmra.mxu2 %v79_v8 }
  0x3e   :  { %350 = vmatmul.f32.gmra.mxu1 %v81_v17 }
  0x75   :  { %v1618_v32 = vpop.permute.xlu0 %35 }
  0x7d   :  { %v31_v34 = vpop.permute.xlu0 %30 }
  0x8b   :  { %v77_v33 = vpop.f32.mrf.mxu0 }
  0x8c   :  { %v78_v38 = vadd.f32 %v77_v33, %v31_v34 }
  0x91   :  { %v168_v35 = vpop.f32.mrf.mxu3 }
  0x93   :  { %v85_v36 = vpop.f32.mrf.mxu0  ;;  %v111_v37 = vpop.f32.mrf.mxu1 }
  0x94   :  { %v139_v39 = vpop.f32.mrf.mxu2  ;;  %v112_v40 = vadd.f32 %v111_v37, %v78_v38  ;;  %v86_v45 = vadd.f32 %v85_v36, %v1618_v32  ;;  %v463_v37 = vand.u32 4294901760, %v462_v29 }
  0x96   :  { %v140_v46 = vadd.f32 %v139_v39, %v112_v40 }
  0x98   :  { %v169_v49 = vadd.f32 %v168_v35, %v140_v46 }
  0x9a   :  { %v174_v41 = vpop.f32.mrf.mxu3 }
  0x9b   :  { %v115_v42 = vpop.f32.mrf.mxu1  ;;  %v198_v43 = vpop.f32.mrf.mxu0 }
  0x9c   :  { %v144_v47 = vpop.f32.mrf.mxu2  ;;  %v116_v50 = vadd.f32 %v115_v42, %v86_v45  ;;  %v199_v52 = vadd.f32 %v198_v43, %v169_v49 }
  0x9e   :  { %v145_v57 = vadd.f32 %v144_v47, %v116_v50 }
  0xa0   :  { %v175_v0 = vadd.f32 %v174_v41, %v145_v57 }
  0xa2   :  { %v288_v53 = vpop.f32.mrf.mxu3 }
  0xa3   :  { %v202_v54 = vpop.f32.mrf.mxu0  ;;  %v224_v55 = vpop.f32.mrf.mxu1 }
  0xa4   :  { %v225_v58 = vadd.f32 %v224_v55, %v199_v52  ;;  %v254_v59 = vpop.f32.mrf.mxu2  ;;  %v203_v3 = vadd.f32 %v202_v54, %v175_v0 }
  0xa5   :  { %v255_v8 = vadd.f32 %v254_v59, %v31_v34  ;;  %v424_v59 = vpop.permute.xlu1 %423 }
  0xa6   :  { %v1636_v62 = vmax.f32 %v225_v58, 0.0 }
  0xa7   :  { %v289_v16 = vadd.f32 %v288_v53, %v255_v8 }
  0xa8   :  { %v1645_v4 = vand.u32 4294901760, %v1636_v62 }
  0xaa   :  { %v292_v7 = vpop.f32.mrf.mxu3  ;;  %v489_v15 = vsub.f32 %v1636_v62, %v1645_v4 }
  0xab   :  { %v228_v6 = vpop.f32.mrf.mxu1  ;;  %v316_v11 = vpop.f32.mrf.mxu0 }
  0xac   :  { %v229_v9 = vadd.f32 %v228_v6, %v203_v3  ;;  %v262_v10 = vpop.f32.mrf.mxu2  ;;  %v317_v21 = vadd.f32 %v316_v11, %v289_v16  ;;  %v490_v22 = vand.u32 4294901760, %v489_v15 }
  0xad   :  { %v263_v25 = vadd.f32 %v262_v10, %v1618_v32  ;;  %v419_v63 = vpop.permute.xlu1 %418 }
  0xae   :  { %v1655_v14 = vmax.f32 %v229_v9, 0.0  ;;  %v491_v33 = vsub.f32 %v489_v15, %v490_v22 }
  0xaf   :  { %v293_v32 = vadd.f32 %v292_v7, %v263_v25 }
  0xb0   :  { %v447_v17 = vand.u32 4294901760, %v1655_v14  ;;  %v492_v40 = vand.u32 4294901760, %v491_v33 }
  0xb2   :  { %v483_v20 = vsub.f32 %v1655_v14, %v447_v17  ;;  %448 = vmatpush.msrb.mxu0 %v447_v17  ;;  %549 = vmatpush.msrb.mxu3 %v447_v17  ;;  %v401_v24 = vpop.f32.mrf.mxu3 }
  0xb3   :  { %v345_v23 = vpop.f32.mrf.mxu1  ;;  %v321_v34 = vpop.f32.mrf.mxu0 }
  0xb4   :  { %v346_v26 = vadd.f32 %v345_v23, %v317_v21  ;;  %450 = vmatpush.msrb.mxu0 %v1645_v4  ;;  %519 = vmatpush.msrb.mxu2 %v483_v20  ;;  %v375_v27 = vpop.f32.mrf.mxu2  ;;  %v484_v28 = vand.u32 4294901760, %v483_v20  ;;  %v322_v38 = vadd.f32 %v321_v34, %v293_v32  ;;  %v1560_v21 = vld [vmem:[%s1817_s3 + $0x18] sm:$0xff] }
  0xb5   :  { %551 = vmatpush.msrb.mxu3 %v1645_v4  ;;  %456 = vmatmul.f32.vlgmr.msrb.gmra.mxu0 %v455_v18 }
  0xb6   :  { %v376_v30 = vadd.f32 %v375_v27, %v346_v26  ;;  %522 = vmatpush.msrb.mxu2 %v489_v15  ;;  %582 = vmatpush.msra.mxu0 %v484_v28  ;;  %v485_v31 = vsub.f32 %v483_v20, %v484_v28  ;;  %v841_v27 = vsel %vm426_vm2, %v1560_v21, 0 }
  0xb7   :  { %525 = vmatmul.f32.vlgmr.msrb.gmra.mxu2 %v1634_v61  ;;  %555 = vmatmul.f32.vlgmr.msrb.gmra.mxu3 %v1640_v1 }
  0xb8   :  { %v402_v35 = vadd.f32 %v401_v24, %v376_v30  ;;  %586 = vmatpush.msra.mxu0 %v490_v22  ;;  %v486_v36 = vand.u32 4294901760, %v485_v31  ;;  %v1717_v31 = vand.u32 4294901760, %v841_v27 }
  0xba   :  { %v1671_v39 = vmax.f32 %v402_v35, 0.0  ;;  %487 = vmatpush.msrb.mxu1 %v486_v36  ;;  %v405_v44 = vpop.f32.mrf.mxu3 }
  0xbb   :  { %v351_v41 = vpop.f32.mrf.mxu1 }
  0xbc   :  { %v352_v42 = vadd.f32 %v351_v41, %v322_v38  ;;  %493 = vmatpush.msrb.mxu1 %v492_v40  ;;  %v379_v43 = vpop.f32.mrf.mxu2  ;;  %v639_v45 = vand.u32 4294901760, %v1671_v39 }
  0xbd   :  { %495 = vmatmul.f32.vlgmr.msrb.gmra.mxu1 %v1625_v51  ;;  %464 = vmatmul.f32.gmra.mxu0 %v463_v37 }
  0xbe   :  { %v380_v46 = vadd.f32 %v379_v43, %v352_v42  ;;  %611 = vmatpush.msra.mxu1 %v447_v17  ;;  %v679_v49 = vsub.f32 %v1671_v39, %v639_v45 }
  0xbf   :  { %530 = vmatmul.f32.gmra.mxu2 %v1653_v13  ;;  %561 = vmatmul.f32.gmra.mxu3 %v1661_v19 }
  0xc0   :  { %v406_v47 = vadd.f32 %v405_v44, %v380_v46  ;;  %613 = vmatpush.msra.mxu1 %v1645_v4  ;;  %v680_v53 = vand.u32 4294901760, %v679_v49 }
  0xc2   :  { %v1678_v48 = vmax.f32 %v406_v47, 0.0  ;;  %v681_v56 = vsub.f32 %v679_v49, %v680_v53 }
  0xc4   :  { %v637_v50 = vand.u32 4294901760, %v1678_v48  ;;  %v682_v58 = vand.u32 4294901760, %v681_v56 }
  0xc5   :  { %499 = vmatmul.f32.gmra.mxu1 %v1642_v2  ;;  %588 = vmatmul.f32.vlgmr.msra.gmra.mxu0 %v1625_v51 }
  0xc6   :  { %v673_v52 = vsub.f32 %v1678_v48, %v637_v50  ;;  %638 = vmatpush.msra.mxu2 %v637_v50  ;;  %739 = vmatpush.msrb.mxu1 %v637_v50 }
  0xc8   :  { %640 = vmatpush.msra.mxu2 %v639_v45  ;;  %709 = vmatpush.msrb.mxu0 %v673_v52  ;;  %v674_v54 = vand.u32 4294901760, %v673_v52 }
  0xc9   :  { %741 = vmatpush.msrb.mxu1 %v639_v45  ;;  %646 = vmatmul.f32.vlgmr.msra.gmra.mxu2 %v455_v18 }
  0xca   :  { %712 = vmatpush.msrb.mxu0 %v679_v49  ;;  %772 = vmatpush.msrb.mxu2 %v674_v54  ;;  %v675_v55 = vsub.f32 %v673_v52, %v674_v54 }
  0xcc   :  { %776 = vmatpush.msrb.mxu2 %v680_v53  ;;  %v676_v57 = vand.u32 4294901760, %v675_v55 }
  0xcd   :  { %615 = vmatmul.f32.vlgmr.msra.gmra.mxu1 %v1625_v51  ;;  %592 = vmatmul.f32.gmra.mxu0 %v1642_v2 }
  0xce   :  { %677 = vmatpush.msra.mxu3 %v676_v57 }
  0xd0   :  { %683 = vmatpush.msra.mxu3 %v682_v58 }
  0xd1   :  { %654 = vmatmul.f32.gmra.mxu2 %v463_v37  ;;  %685 = vmatmul.f32.vlgmr.msra.gmra.mxu3 %v1625_v51 }
  0xd2   :  { %801 = vmatpush.msrb.mxu3 %v637_v50 }
  0xd4   :  { %803 = vmatpush.msrb.mxu3 %v639_v45 }
  0xd5   :  { %619 = vmatmul.f32.gmra.mxu1 %v1642_v2  ;;  %715 = vmatmul.f32.vlgmr.msrb.gmra.mxu0 %v1634_v61 }
  0xd9   :  { %689 = vmatmul.f32.gmra.mxu3 %v1642_v2  ;;  %778 = vmatmul.f32.vlgmr.msrb.gmra.mxu2 %v1625_v51 }
  0xdd   :  { %745 = vmatmul.f32.vlgmr.msrb.gmra.mxu1 %v1640_v1  ;;  %720 = vmatmul.f32.gmra.mxu0 %v1653_v13 }
  0xe1   :  { %782 = vmatmul.f32.gmra.mxu2 %v1642_v2  ;;  %805 = vmatmul.f32.vlgmr.msrb.gmra.mxu3 %v1625_v51  ;;  %v1559_v51 = vld [vmem:[%s1817_s3 + $0x10] sm:$0xff] }
  0xe2   :  { %v838_v12 = vsel %vm426_vm2, %v1559_v51, 0 }
  0xe3   :  { %v1702_v18 = vand.u32 4294901760, %v838_v12 }
  0xe5   :  { %751 = vmatmul.f32.gmra.mxu1 %v1661_v19  ;;  %v1708_v25 = vsub.f32 %v838_v12, %v1702_v18 }
  0xe7   :  { %v1715_v30 = vand.u32 4294901760, %v1708_v25 }
  0xe9   :  { %809 = vmatmul.f32.gmra.mxu3 %v1642_v2  ;;  %v864_v37 = vsub.f32 %v1708_v25, %v1715_v30 }
  0xeb   :  { %v1730_v46 = vand.u32 4294901760, %v864_v37 }
 0x132   :  { %v457_v60 = vpop.f32.mrf.mxu0 }
 0x133   :  { %v458_v61 = vadd.f32 %v457_v60, %v419_v63 }
 0x13a   :  { %v496_v0 = vpop.f32.mrf.mxu1  ;;  %v526_v3 = vpop.f32.mrf.mxu2 }
 0x13b   :  { %v465_v4 = vpop.f32.mrf.mxu0  ;;  %v497_v5 = vadd.f32 %v496_v0, %v458_v61  ;;  %v556_v6 = vpop.f32.mrf.mxu3 }
 0x13c   :  { %v466_v1 = vadd.f32 %v465_v4, %v424_v59 }
 0x13d   :  { %v527_v7 = vadd.f32 %v526_v3, %v497_v5  ;;  %v1562_v5 = vld [vmem:[%s1818_s4 + $0x18] sm:$0xff] }
 0x13e   :  { %834 = vperm.xlu2 %1566, %v1562_v5  }
 0x13f   :  { %v557_v2 = vadd.f32 %v556_v6, %v527_v7 }
 0x142   :  { %v500_v8 = vpop.f32.mrf.mxu1  ;;  %v531_v9 = vpop.f32.mrf.mxu2 }
 0x143   :  { %v589_v10 = vpop.f32.mrf.mxu0  ;;  %v501_v11 = vadd.f32 %v500_v8, %v466_v1  ;;  %v562_v17 = vpop.f32.mrf.mxu3 }
 0x144   :  { %v590_v15 = vadd.f32 %v589_v10, %v557_v2  ;;  %v1561_v2 = vld [vmem:[%s1818_s4 + $0x10] sm:$0xff] }
 0x145   :  { %v532_v13 = vadd.f32 %v531_v9, %v501_v11 }
 0x146   :  { %829 = vperm.xlu2 %1566, %v1561_v2  }
 0x147   :  { %v563_v23 = vadd.f32 %v562_v17, %v532_v13 }
 0x14a   :  { %v616_v16 = vpop.f32.mrf.mxu1 }
 0x14b   :  { %v617_v19 = vadd.f32 %v616_v16, %v590_v15  ;;  %v593_v24 = vpop.f32.mrf.mxu0 }
 0x14c   :  { %v647_v20 = vpop.f32.mrf.mxu2  ;;  %v594_v28 = vadd.f32 %v593_v24, %v563_v23 }
 0x14d   :  { %v813_v22 = vmax.f32 %v617_v19, 0.0  ;;  %v648_v38 = vadd.f32 %v647_v20, %v419_v63 }
 0x14f   :  { %v1711_v26 = vadd.f32 %v813_v22, %v1636_v62  ;;  %v1723_v62 = vsub.f32 %v841_v27, %v1717_v31 }
 0x151   :  { %v859_v34 = vand.u32 4294901760, %v1711_v26  ;;  %v1733_v47 = vand.u32 4294901760, %v1723_v62 }
 0x152   :  { %v620_v29 = vpop.f32.mrf.mxu1 }
 0x153   :  { %v621_v33 = vadd.f32 %v620_v29, %v594_v28  ;;  %v899_v41 = vsub.f32 %v1711_v26, %v859_v34  ;;  %v716_v42 = vpop.f32.mrf.mxu0  ;;  %v872_v56 = vsub.f32 %v1723_v62, %v1733_v47 }
 0x154   :  { %v655_v32 = vpop.f32.mrf.mxu2  ;;  %v686_v35 = vpop.f32.mrf.mxu3 }
 0x155   :  { %v815_v36 = vmax.f32 %v621_v33, 0.0  ;;  %v687_v43 = vadd.f32 %v686_v35, %v648_v38  ;;  %v900_v50 = vand.u32 4294901760, %v899_v41  ;;  %v656_v54 = vadd.f32 %v655_v32, %v424_v59 }
 0x156   :  { %v873_v0 = vand.u32 4294901760, %v872_v56 }
 0x157   :  { %v1726_v40 = vadd.f32 %v815_v36, %v1655_v14  ;;  %v717_v14 = vadd.f32 %v716_v42, %v687_v43  ;;  %v901_v60 = vsub.f32 %v899_v41, %v900_v50 }
 0x159   :  { %v857_v44 = vand.u32 4294901760, %v1726_v40  ;;  %v902_v4 = vand.u32 4294901760, %v901_v60 }
 0x15a   :  { %v746_v45 = vpop.f32.mrf.mxu1 }
 0x15b   :  { %858 = vmatpush.msra.mxu0 %v857_v44  ;;  %959 = vmatpush.msra.mxu3 %v857_v44  ;;  %v893_v49 = vsub.f32 %v1726_v40, %v857_v44  ;;  %v747_v57 = vadd.f32 %v746_v45, %v717_v14  ;;  %v721_v59 = vpop.f32.mrf.mxu0 }
 0x15c   :  { %v690_v52 = vpop.f32.mrf.mxu3  ;;  %v779_v55 = vpop.f32.mrf.mxu2 }
 0x15d   :  { %860 = vmatpush.msra.mxu0 %v859_v34  ;;  %929 = vmatpush.msra.mxu2 %v893_v49  ;;  %v894_v53 = vand.u32 4294901760, %v893_v49  ;;  %v691_v63 = vadd.f32 %v690_v52, %v656_v54  ;;  %v780_v3 = vadd.f32 %v779_v55, %v747_v57  ;;  %v1231_v55 = vld [vmem:[%s1819_s5] sm:$0xff] }
 0x15e   :  { %961 = vmatpush.msra.mxu3 %v859_v34  ;;  %866 = vmatmul.f32.vlgmr.msra.gmra.mxu0 %v1730_v46 }
 0x15f   :  { %932 = vmatpush.msra.mxu2 %v899_v41  ;;  %992 = vmatpush.msrb.mxu0 %v894_v53  ;;  %v895_v58 = vsub.f32 %v893_v49, %v894_v53  ;;  %v722_v7 = vadd.f32 %v721_v59, %v691_v63 }
 0x160   :  { %935 = vmatmul.f32.vlgmr.msra.gmra.mxu2 %v1708_v25  ;;  %965 = vmatmul.f32.vlgmr.msra.gmra.mxu3 %v1715_v30 }
 0x161   :  { %996 = vmatpush.msrb.mxu0 %v900_v50  ;;  %v896_v61 = vand.u32 4294901760, %v895_v58  ;;  %v1233_v58 = vsel %vm426_vm2, %v1231_v55, 0 }
 0x162   :  { %v752_v6 = vpop.f32.mrf.mxu1 }
 0x163   :  { %897 = vmatpush.msra.mxu1 %v896_v61  ;;  %v753_v9 = vadd.f32 %v752_v6, %v722_v7  ;;  %v1784_v61 = vand.u32 4294901760, %v1233_v58 }
 0x164   :  { %v806_v1 = vpop.f32.mrf.mxu3  ;;  %v783_v51 = vpop.f32.mrf.mxu2 }
 0x165   :  { %v807_v8 = vadd.f32 %v806_v1, %v780_v3  ;;  %903 = vmatpush.msra.mxu1 %v902_v4  ;;  %v784_v12 = vadd.f32 %v783_v51, %v753_v9 }
 0x166   :  { %905 = vmatmul.f32.vlgmr.msra.gmra.mxu1 %v1702_v18  ;;  %874 = vmatmul.f32.gmra.mxu0 %v873_v0 }
 0x167   :  { %v814_v10 = vmax.f32 %v807_v8, 0.0  ;;  %1021 = vmatpush.msrb.mxu1 %v857_v44 }
 0x168   :  { %940 = vmatmul.f32.gmra.mxu2 %v1723_v62  ;;  %971 = vmatmul.f32.gmra.mxu3 %v1733_v47 }
 0x169   :  { %v1748_v11 = vadd.f32 %v814_v10, %v1671_v39  ;;  %1023 = vmatpush.msrb.mxu1 %v859_v34 }
 0x16b   :  { %v1049_v16 = vand.u32 4294901760, %v1748_v11 }
 0x16c   :  { %v810_v13 = vpop.f32.mrf.mxu3 }
 0x16d   :  { %v811_v15 = vadd.f32 %v810_v13, %v784_v12  ;;  %v1089_v39 = vsub.f32 %v1748_v11, %v1049_v16 }
 0x16e   :  { %909 = vmatmul.f32.gmra.mxu1 %v1717_v31  ;;  %998 = vmatmul.f32.vlgmr.msrb.gmra.mxu0 %v1702_v18 }
 0x16f   :  { %v816_v17 = vmax.f32 %v811_v15, 0.0  ;;  %v1090_v22 = vand.u32 4294901760, %v1089_v39 }
 0x171   :  { %v1757_v19 = vadd.f32 %v816_v17, %v1678_v48  ;;  %v1091_v24 = vsub.f32 %v1089_v39, %v1090_v22 }
 0x173   :  { %v1047_v20 = vand.u32 4294901760, %v1757_v19  ;;  %v1092_v28 = vand.u32 4294901760, %v1091_v24 }
 0x175   :  { %1048 = vmatpush.msrb.mxu2 %v1047_v20  ;;  %1149 = vmatpush.msra.mxu1 %v1047_v20  ;;  %v1083_v21 = vsub.f32 %v1757_v19, %v1047_v20 }
 0x176   :  { %1025 = vmatmul.f32.vlgmr.msrb.gmra.mxu1 %v1702_v18  ;;  %1002 = vmatmul.f32.gmra.mxu0 %v1717_v31 }
 0x177   :  { %1050 = vmatpush.msrb.mxu2 %v1049_v16  ;;  %1119 = vmatpush.msra.mxu0 %v1083_v21  ;;  %v1084_v23 = vand.u32 4294901760, %v1083_v21 }
 0x178   :  { %1151 = vmatpush.msra.mxu1 %v1049_v16  ;;  %1056 = vmatmul.f32.vlgmr.msrb.gmra.mxu2 %v1730_v46 }
 0x179   :  { %1122 = vmatpush.msra.mxu0 %v1089_v39  ;;  %1182 = vmatpush.msra.mxu2 %v1084_v23  ;;  %v1085_v48 = vsub.f32 %v1083_v21, %v1084_v23 }
 0x17b   :  { %1186 = vmatpush.msra.mxu2 %v1090_v22  ;;  %v1086_v27 = vand.u32 4294901760, %v1085_v48 }
 0x17d   :  { %1087 = vmatpush.msrb.mxu3 %v1086_v27 }
 0x17e   :  { %1029 = vmatmul.f32.gmra.mxu1 %v1717_v31  ;;  %1125 = vmatmul.f32.vlgmr.msra.gmra.mxu0 %v1708_v25 }
 0x17f   :  { %1093 = vmatpush.msrb.mxu3 %v1092_v28 }
 0x180   :  { %1064 = vmatmul.f32.gmra.mxu2 %v873_v0  ;;  %1095 = vmatmul.f32.vlgmr.msrb.gmra.mxu3 %v1702_v18  ;;  %v1787_v0 = vsub.f32 %v1233_v58, %v1784_v61 }
 0x181   :  { %1211 = vmatpush.msra.mxu3 %v1047_v20 }
 0x182   :  { %v1791_v4 = vand.u32 4294901760, %v1787_v0 }
 0x183   :  { %1213 = vmatpush.msra.mxu3 %v1049_v16 }
 0x184   :  { %v1256_v6 = vsub.f32 %v1787_v0, %v1791_v4 }
 0x186   :  { %1155 = vmatmul.f32.vlgmr.msra.gmra.mxu1 %v1715_v30  ;;  %1130 = vmatmul.f32.gmra.mxu0 %v1723_v62  ;;  %v1257_v51 = vand.u32 4294901760, %v1256_v6 }
 0x188   :  { %1099 = vmatmul.f32.gmra.mxu3 %v1717_v31  ;;  %1188 = vmatmul.f32.vlgmr.msra.gmra.mxu2 %v1702_v18 }
 0x18e   :  { %1161 = vmatmul.f32.gmra.mxu1 %v1733_v47 }
 0x190   :  { %1192 = vmatmul.f32.gmra.mxu2 %v1717_v31  ;;  %1215 = vmatmul.f32.vlgmr.msra.gmra.mxu3 %v1702_v18 }
 0x198   :  { %1219 = vmatmul.f32.gmra.mxu3 %v1717_v31  ;;  %v1776_v25 = vpop.permute.xlu2 %834 }
 0x1a0   :  { %v830_v33 = vpop.permute.xlu2 %829 }
 0x1db   :  { %v867_v29 = vpop.f32.mrf.mxu0 }
 0x1dc   :  { %v868_v34 = vadd.f32 %v867_v29, %v830_v33 }
 0x1e3   :  { %v906_v30 = vpop.f32.mrf.mxu1  ;;  %v875_v32 = vpop.f32.mrf.mxu0 }
 0x1e4   :  { %v907_v35 = vadd.f32 %v906_v30, %v868_v34  ;;  %v936_v36 = vpop.f32.mrf.mxu2  ;;  %v966_v37 = vpop.f32.mrf.mxu3  ;;  %v876_v62 = vadd.f32 %v875_v32, %v1776_v25 }
 0x1e6   :  { %v937_v38 = vadd.f32 %v936_v36, %v907_v35 }
 0x1e8   :  { %v967_v44 = vadd.f32 %v966_v37, %v937_v38 }
 0x1eb   :  { %v910_v41 = vpop.f32.mrf.mxu1  ;;  %v999_v42 = vpop.f32.mrf.mxu0 }
 0x1ec   :  { %v911_v43 = vadd.f32 %v910_v41, %v876_v62  ;;  %v941_v18 = vpop.f32.mrf.mxu2  ;;  %v1000_v45 = vadd.f32 %v999_v42, %v967_v44  ;;  %v972_v46 = vpop.f32.mrf.mxu3 }
 0x1ee   :  { %v942_v31 = vadd.f32 %v941_v18, %v911_v43 }
 0x1f0   :  { %v973_v50 = vadd.f32 %v972_v46, %v942_v31 }
 0x1f3   :  { %v1026_v47 = vpop.f32.mrf.mxu1  ;;  %v1003_v52 = vpop.f32.mrf.mxu0 }
 0x1f4   :  { %v1027_v49 = vadd.f32 %v1026_v47, %v1000_v45  ;;  %v1004_v54 = vadd.f32 %v1003_v52, %v973_v50 }
 0x1f6   :  { %v1223_v14 = vmax.f32 %v1027_v49, 0.0 }
 0x1f8   :  { %v1227_v53 = vadd.f32 %v1223_v14, %v1711_v26 }
 0x1fa   :  { %v1251_v60 = vand.u32 4294901760, %v1227_v53 }
 0x1fb   :  { %v1030_v56 = vpop.f32.mrf.mxu1  ;;  %v1057_v57 = vpop.f32.mrf.mxu2 }
 0x1fc   :  { %v1031_v63 = vadd.f32 %v1030_v56, %v1004_v54  ;;  %v1283_v26 = vsub.f32 %v1227_v53, %v1251_v60  ;;  %v1058_v9 = vadd.f32 %v1057_v57, %v830_v33 }
 0x1fe   :  { %v1225_v59 = vmax.f32 %v1031_v63, 0.0  ;;  %v1284_v10 = vand.u32 4294901760, %v1283_v26 }
 0x200   :  { %v1229_v3 = vadd.f32 %v1225_v59, %v1726_v40  ;;  %v1126_v40 = vpop.f32.mrf.mxu0  ;;  %v1285_v15 = vsub.f32 %v1283_v26, %v1284_v10 }
 0x202   :  { %v1249_v5 = vand.u32 4294901760, %v1229_v3  ;;  %v1286_v21 = vand.u32 4294901760, %v1285_v15 }
 0x203   :  { %v1065_v1 = vpop.f32.mrf.mxu2  ;;  %v1096_v7 = vpop.f32.mrf.mxu3 }
 0x204   :  { %v1277_v8 = vsub.f32 %v1229_v3, %v1249_v5  ;;  %1250 = vmatpush.msrb.mxu0 %v1249_v5  ;;  %1334 = vmatpush.msrb.mxu3 %v1249_v5  ;;  %v1097_v12 = vadd.f32 %v1096_v7, %v1058_v9  ;;  %v1156_v17 = vpop.f32.mrf.mxu1  ;;  %v1066_v23 = vadd.f32 %v1065_v1, %v1776_v25 }
 0x206   :  { %1252 = vmatpush.msrb.mxu0 %v1251_v60  ;;  %1309 = vmatpush.msrb.mxu2 %v1277_v8  ;;  %v1278_v2 = vand.u32 4294901760, %v1277_v8  ;;  %v1127_v20 = vadd.f32 %v1126_v40, %v1097_v12 }
 0x207   :  { %1336 = vmatpush.msrb.mxu3 %v1251_v60  ;;  %1258 = vmatmul.f32.vlgmr.msrb.gmra.mxu0 %v1257_v51 }
 0x208   :  { %1312 = vmatpush.msrb.mxu2 %v1283_v26  ;;  %1361 = vmatpush.msra.mxu0 %v1278_v2  ;;  %v1279_v13 = vsub.f32 %v1277_v8, %v1278_v2  ;;  %v1157_v48 = vadd.f32 %v1156_v17, %v1127_v20  ;;  %v1131_v27 = vpop.f32.mrf.mxu0 }
 0x209   :  { %1315 = vmatmul.f32.vlgmr.msrb.gmra.mxu2 %v1787_v0  ;;  %1340 = vmatmul.f32.vlgmr.msrb.gmra.mxu3 %v1791_v4 }
 0x20a   :  { %1365 = vmatpush.msra.mxu0 %v1284_v10  ;;  %v1280_v16 = vand.u32 4294901760, %v1279_v13 }
 0x20b   :  { %v1100_v39 = vpop.f32.mrf.mxu3  ;;  %v1189_v22 = vpop.f32.mrf.mxu2 }
 0x20c   :  { %1281 = vmatpush.msrb.mxu1 %v1280_v16  ;;  %v1101_v24 = vadd.f32 %v1100_v39, %v1066_v23  ;;  %v1190_v28 = vadd.f32 %v1189_v22, %v1157_v48  ;;  %v1162_v30 = vpop.f32.mrf.mxu1 }
 0x20e   :  { %1287 = vmatpush.msrb.mxu1 %v1286_v21  ;;  %v1132_v33 = vadd.f32 %v1131_v27, %v1101_v24 }
 0x20f   :  { %1367 = vmatmul.f32.vlgmr.msra.gmra.mxu0 %v1784_v61  ;;  %1289 = vmatmul.f32.vlgmr.msrb.gmra.mxu1 %v1784_v61 }
 0x210   :  { %1386 = vmatpush.msra.mxu1 %v1249_v5  ;;  %v1163_v36 = vadd.f32 %v1162_v30, %v1132_v33 }
 0x212   :  { %1388 = vmatpush.msra.mxu1 %v1251_v60 }
 0x213   :  { %v1216_v29 = vpop.f32.mrf.mxu3  ;;  %v1193_v35 = vpop.f32.mrf.mxu2 }
 0x214   :  { %v1217_v34 = vadd.f32 %v1216_v29, %v1190_v28  ;;  %v1194_v37 = vadd.f32 %v1193_v35, %v1163_v36 }
 0x216   :  { %v1224_v32 = vmax.f32 %v1217_v34, 0.0 }
 0x217   :  { %1390 = vmatmul.f32.vlgmr.msra.gmra.mxu1 %v1784_v61 }
 0x218   :  { %v1228_v25 = vadd.f32 %v1224_v32, %v1748_v11 }
 0x21a   :  { %v1410_v38 = vand.u32 4294901760, %v1228_v25 }
 0x21b   :  { %v1220_v62 = vpop.f32.mrf.mxu3 }
 0x21c   :  { %v1221_v41 = vadd.f32 %v1220_v62, %v1194_v37  ;;  %v1442_v44 = vsub.f32 %v1228_v25, %v1410_v38 }
 0x21e   :  { %v1226_v42 = vmax.f32 %v1221_v41, 0.0  ;;  %v1443_v31 = vand.u32 4294901760, %v1442_v44 }
 0x220   :  { %v1230_v43 = vadd.f32 %v1226_v42, %v1757_v19  ;;  %v1444_v47 = vsub.f32 %v1442_v44, %v1443_v31 }
 0x222   :  { %v1408_v18 = vand.u32 4294901760, %v1230_v43  ;;  %v1445_v49 = vand.u32 4294901760, %v1444_v47 }
 0x224   :  { %v1436_v45 = vsub.f32 %v1230_v43, %v1408_v18  ;;  %1409 = vmatpush.msra.mxu2 %v1408_v18  ;;  %1493 = vmatpush.msrb.mxu1 %v1408_v18 }
 0x226   :  { %1411 = vmatpush.msra.mxu2 %v1410_v38  ;;  %1468 = vmatpush.msrb.mxu0 %v1436_v45  ;;  %v1437_v46 = vand.u32 4294901760, %v1436_v45 }
 0x227   :  { %1495 = vmatpush.msrb.mxu1 %v1410_v38  ;;  %1417 = vmatmul.f32.vlgmr.msra.gmra.mxu2 %v1257_v51 }
 0x228   :  { %1471 = vmatpush.msrb.mxu0 %v1442_v44  ;;  %1520 = vmatpush.msrb.mxu2 %v1437_v46  ;;  %v1438_v11 = vsub.f32 %v1436_v45, %v1437_v46 }
 0x229   :  { %1474 = vmatmul.f32.vlgmr.msrb.gmra.mxu0 %v1787_v0  ;;  %1499 = vmatmul.f32.vlgmr.msrb.gmra.mxu1 %v1791_v4 }
 0x22a   :  { %1524 = vmatpush.msrb.mxu2 %v1443_v31  ;;  %v1439_v19 = vand.u32 4294901760, %v1438_v11 }
 0x22c   :  { %1440 = vmatpush.msra.mxu3 %v1439_v19 }
 0x22e   :  { %1446 = vmatpush.msra.mxu3 %v1445_v49 }
 0x22f   :  { %1526 = vmatmul.f32.vlgmr.msrb.gmra.mxu2 %v1784_v61  ;;  %1448 = vmatmul.f32.vlgmr.msra.gmra.mxu3 %v1784_v61 }
 0x230   :  { %1545 = vmatpush.msrb.mxu3 %v1408_v18 }
 0x232   :  { %1547 = vmatpush.msrb.mxu3 %v1410_v38 }
 0x237   :  { %1549 = vmatmul.f32.vlgmr.msrb.gmra.mxu3 %v1784_v61 }
 0x284   :  { %v1259_v50 = vpop.f32.mrf.mxu0 }
 0x28c   :  { %v1290_v52 = vpop.f32.mrf.mxu1  ;;  %v1316_v14 = vpop.f32.mrf.mxu2 }
 0x28d   :  { %v1291_v53 = vadd.f32 %v1290_v52, %v1259_v50  ;;  %v1341_v54 = vpop.f32.mrf.mxu3  ;;  %v1368_v56 = vpop.f32.mrf.mxu0 }
 0x28f   :  { %v1317_v55 = vadd.f32 %v1316_v14, %v1291_v53 }
 0x291   :  { %v1342_v57 = vadd.f32 %v1341_v54, %v1317_v55 }
 0x293   :  { %v1369_v58 = vadd.f32 %v1368_v56, %v1342_v57 }
 0x294   :  { %v1391_v60 = vpop.f32.mrf.mxu1 }
 0x295   :  { %v1392_v63 = vadd.f32 %v1391_v60, %v1369_v58 }
 0x297   :  { %1553 = vst [vmem:[%s1820_s6] sm:$0xff] %v1392_v63 }
 0x2a6   :  { %v1475_v3 = vpop.f32.mrf.mxu0  ;;  %v1500_v61 = vpop.f32.mrf.mxu1 }
 0x2aa   :  { %v1418_v59 = vpop.f32.mrf.mxu2 }
 0x2b2   :  { %v1449_v0 = vpop.f32.mrf.mxu3  ;;  %v1527_v5 = vpop.f32.mrf.mxu2 }
 0x2b3   :  { %v1450_v26 = vadd.f32 %v1449_v0, %v1418_v59 }
 0x2b5   :  { %v1476_v4 = vadd.f32 %v1475_v3, %v1450_v26 }
 0x2b7   :  { %v1501_v6 = vadd.f32 %v1500_v61, %v1476_v4 }
 0x2b9   :  { %v1528_v1 = vadd.f32 %v1527_v5, %v1501_v6 }
 0x2ba   :  { %v1550_v7 = vpop.f32.mrf.mxu3 }
 0x2bb   :  { %v1551_v8 = vadd.f32 %v1550_v7, %v1528_v1 }
 0x2bd   :  { %1554 = vst [vmem:[%s1820_s6 + $0x8] sm:$0xff] %v1551_v8 }

// kernel: mygcn3_forward.8
= control target key start
LH: loop header
LB: loop body
LE: loop exit
PB: predicated region body
PF: predicated region fallthrough
CT: control target
= control target key end

     0   :  { %vm39_vm0 = vcmask 64512   ;;  %v1559_v3 = vmov 0   ;;  %vm418_vm1 = vcmask 130048   ;;  %s1809_s0 = inlined_call_operand.vmem [shape: f32[8,256], index: 0, kind: input, shape index: {}]   ;;  %s1810_s1 = inlined_call_operand.vmem [shape: f32[16,8], index: 1, kind: input, shape index: {}]   ;;  %s1811_s2 = inlined_call_operand.vmem [shape: f32[16,1], index: 2, kind: input, shape index: {}]   ;;  %s1812_s3 = inlined_call_operand.vmem [shape: f32[2,16,16], index: 3, kind: input, shape index: {}]   ;;  %s1813_s4 = inlined_call_operand.vmem [shape: f32[2,16,1], index: 4, kind: input, shape index: {}]   ;;  %s1814_s5 = inlined_call_operand.vmem [shape: f32[8,16], index: 5, kind: input, shape index: {}]   ;;  %s1815_s6 = inlined_call_operand.vmem [shape: f32[8,256], index: 6, kind: output, shape index: {}]  }
   0x1   :  { %v23_v0 = vld [vmem:[%s1809_s0] sm:$0xff]  ;;  %v24_v1 = vld [vmem:[%s1809_s0 + $0x8] sm:$0xff]  ;;  %1556 = vset.pattern.permute.xlu0 %v1559_v3  ;;  %1557 = vset.pattern.permute.xlu1 %v1559_v3 }
   0x2   :  { %v25_v2 = vld [vmem:[%s1810_s1] sm:$0xff]  ;;  %v61_v4 = vand.u32 4294901760, %v23_v0  ;;  %v26_v6 = vld [vmem:[%s1810_s1 + $0x8] sm:$0xff]  ;;  %v238_v8 = vand.u32 4294901760, %v24_v1  ;;  %1558 = vset.pattern.permute.xlu2 %v1559_v3 }
   0x3   :  { %v41_v5 = vsel %vm39_vm0, %v25_v2, 0  ;;  %v28_v7 = vld [vmem:[%s1811_s2 + $0x8] sm:$0xff]  ;;  %v44_v10 = vsel %vm39_vm0, %v26_v6, 0  ;;  %v27_v20 = vld [vmem:[%s1811_s2] sm:$0xff] }
   0x4   :  { %v63_v9 = vand.u32 4294901760, %v41_v5  ;;  %36 = vperm.xlu0 %1556, %v28_v7   ;;  %v96_v11 = vsub.f32 %v23_v0, %v61_v4  ;;  %155 = vmatpush.msra.mxu3 %v61_v4  ;;  %v71_v12 = vand.u32 4294901760, %v44_v10  ;;  %v273_v13 = vsub.f32 %v24_v1, %v238_v8  ;;  %v404_v41 = vld [vmem:[%s1812_s3] sm:$0xff]  ;;  %v405_v53 = vld [vmem:[%s1812_s3 + $0x8] sm:$0xff] }
   0x5   :  { %62 = vmatpush.msra.mxu0 %v61_v4  ;;  %v420_v44 = vsel %vm418_vm1, %v404_v41, 0  ;;  %v407_v56 = vld [vmem:[%s1813_s4 + $0x8] sm:$0xff]  ;;  %v423_v59 = vsel %vm418_vm1, %v405_v53, 0 }
   0x6   :  { %v64_v14 = vsub.f32 %v41_v5, %v63_v9  ;;  %127 = vmatpush.msra.mxu2 %v96_v11  ;;  %v97_v15 = vand.u32 4294901760, %v96_v11  ;;  %v72_v16 = vsub.f32 %v44_v10, %v71_v12  ;;  %v274_v17 = vand.u32 4294901760, %v273_v13  ;;  %415 = vperm.xlu1 %1557, %v407_v56  }
   0x7   :  { %v1620_v49 = vand.u32 4294901760, %v420_v44  ;;  %v1637_v0 = vand.u32 4294901760, %v423_v59 }
   0x8   :  { %130 = vmatmul.f32.vlgmr.msra.gmra.mxu2 %v64_v14  ;;  %v65_v18 = vand.u32 4294901760, %v64_v14  ;;  %v98_v19 = vsub.f32 %v96_v11, %v97_v15  ;;  %v275_v21 = vsub.f32 %v273_v13, %v274_v17  ;;  %187 = vmatpush.msrb.mxu0 %v97_v15  ;;  %v73_v23 = vand.u32 4294901760, %v72_v16 }
   0x9   :  { %239 = vmatpush.msrb.mxu2 %v238_v8  ;;  %v1629_v57 = vsub.f32 %v420_v44, %v1620_v49 }
   0xa   :  { %159 = vmatmul.f32.vlgmr.msra.gmra.mxu3 %v65_v18  ;;  %v66_v22 = vsub.f32 %v64_v14, %v65_v18  ;;  %v99_v24 = vand.u32 4294901760, %v98_v19  ;;  %v276_v25 = vand.u32 4294901760, %v275_v21  ;;  %v74_v27 = vsub.f32 %v72_v16, %v73_v23 }
   0xb   :  { %364 = vmatpush.msra.mxu2 %v274_v17  ;;  %v1635_v63 = vand.u32 4294901760, %v1629_v57 }
   0xc   :  { %v67_v26 = vand.u32 4294901760, %v66_v22  ;;  %31 = vperm.xlu0 %1556, %v27_v20   ;;  %100 = vmatpush.msra.mxu1 %v99_v24  ;;  %v75_v28 = vand.u32 4294901760, %v74_v27 }
   0xd   :  { %277 = vmatpush.msrb.mxu3 %v276_v25  ;;  %102 = vmatmul.f32.vlgmr.msra.gmra.mxu1 %v63_v9 }
   0xe   :  { %68 = vmatmul.f32.vlgmr.msra.gmra.mxu0 %v67_v26  ;;  %213 = vmatpush.msrb.mxu1 %v61_v4  ;;  %v406_v4 = vld [vmem:[%s1813_s4] sm:$0xff] }
   0xf   :  { %304 = vmatpush.msra.mxu0 %v273_v13  ;;  %390 = vmatpush.msra.mxu3 %v238_v8 }
  0x10   :  { %135 = vmatmul.f32.gmra.mxu2 %v72_v16  ;;  %332 = vmatpush.msra.mxu1 %v238_v8  ;;  %v446_v8 = vsub.f32 %v1629_v57, %v1635_v63 }
  0x11   :  { %410 = vperm.xlu1 %1557, %v406_v4  }
  0x12   :  { %165 = vmatmul.f32.gmra.mxu3 %v73_v23 }
  0x15   :  { %106 = vmatmul.f32.gmra.mxu1 %v71_v12 }
  0x16   :  { %76 = vmatmul.f32.gmra.mxu0 %v75_v28 }
  0x18   :  { %245 = vmatmul.f32.vlgmr.msrb.gmra.mxu2 %v67_v26 }
  0x1a   :  { %279 = vmatmul.f32.vlgmr.msrb.gmra.mxu3 %v63_v9 }
  0x1d   :  { %215 = vmatmul.f32.vlgmr.msrb.gmra.mxu1 %v63_v9 }
  0x1e   :  { %189 = vmatmul.f32.vlgmr.msrb.gmra.mxu0 %v63_v9 }
  0x20   :  { %253 = vmatmul.f32.gmra.mxu2 %v75_v28 }
  0x22   :  { %283 = vmatmul.f32.gmra.mxu3 %v71_v12 }
  0x25   :  { %219 = vmatmul.f32.gmra.mxu1 %v71_v12 }
  0x26   :  { %193 = vmatmul.f32.gmra.mxu0 %v71_v12 }
  0x28   :  { %366 = vmatmul.f32.vlgmr.msra.gmra.mxu2 %v63_v9 }
  0x2a   :  { %392 = vmatmul.f32.vlgmr.msra.gmra.mxu3 %v63_v9  ;;  %v1648_v9 = vsub.f32 %v423_v59, %v1637_v0 }
  0x2c   :  { %v1656_v17 = vand.u32 4294901760, %v1648_v9 }
  0x2d   :  { %336 = vmatmul.f32.vlgmr.msra.gmra.mxu1 %v65_v18 }
  0x2e   :  { %307 = vmatmul.f32.vlgmr.msra.gmra.mxu0 %v64_v14  ;;  %v454_v26 = vsub.f32 %v1648_v9, %v1656_v17 }
  0x30   :  { %370 = vmatmul.f32.gmra.mxu2 %v71_v12 }
  0x32   :  { %396 = vmatmul.f32.gmra.mxu3 %v71_v12 }
  0x35   :  { %342 = vmatmul.f32.gmra.mxu1 %v73_v23 }
  0x36   :  { %312 = vmatmul.f32.gmra.mxu0 %v72_v16  ;;  %v447_v16 = vand.u32 4294901760, %v446_v8 }
  0x76   :  { %v1613_v29 = vpop.permute.xlu0 %36 }
  0x78   :  { %v416_v56 = vpop.permute.xlu1 %415 }
  0x7e   :  { %v32_v30 = vpop.permute.xlu0 %31 }
  0x8a   :  { %v103_v33 = vpop.f32.mrf.mxu1 }
  0x8b   :  { %v69_v31 = vpop.f32.mrf.mxu0  ;;  %v131_v32 = vpop.f32.mrf.mxu2 }
  0x8c   :  { %v70_v35 = vadd.f32 %v69_v31, %v32_v30 }
  0x8d   :  { %v160_v34 = vpop.f32.mrf.mxu3 }
  0x8e   :  { %v104_v36 = vadd.f32 %v103_v33, %v70_v35 }
  0x90   :  { %v132_v42 = vadd.f32 %v131_v32, %v104_v36 }
  0x92   :  { %v107_v39 = vpop.f32.mrf.mxu1  ;;  %v161_v45 = vadd.f32 %v160_v34, %v132_v42  ;;  %v455_v34 = vand.u32 4294901760, %v454_v26 }
  0x93   :  { %v77_v37 = vpop.f32.mrf.mxu0  ;;  %v136_v38 = vpop.f32.mrf.mxu2 }
  0x94   :  { %v78_v43 = vadd.f32 %v77_v37, %v1613_v29 }
  0x95   :  { %v166_v40 = vpop.f32.mrf.mxu3 }
  0x96   :  { %v108_v46 = vadd.f32 %v107_v39, %v78_v43 }
  0x98   :  { %v137_v54 = vadd.f32 %v136_v38, %v108_v46 }
  0x9a   :  { %v216_v51 = vpop.f32.mrf.mxu1  ;;  %v167_v60 = vadd.f32 %v166_v40, %v137_v54 }
  0x9b   :  { %v190_v47 = vpop.f32.mrf.mxu0  ;;  %v246_v48 = vpop.f32.mrf.mxu2 }
  0x9c   :  { %v191_v50 = vadd.f32 %v190_v47, %v161_v45  ;;  %v247_v6 = vadd.f32 %v246_v48, %v32_v30 }
  0x9d   :  { %v280_v52 = vpop.f32.mrf.mxu3 }
  0x9e   :  { %v217_v55 = vadd.f32 %v216_v51, %v191_v50  ;;  %v281_v12 = vadd.f32 %v280_v52, %v247_v6 }
  0xa0   :  { %v1631_v58 = vmax.f32 %v217_v55, 0.0 }
  0xa2   :  { %v1640_v1 = vand.u32 4294901760, %v1631_v58  ;;  %v220_v3 = vpop.f32.mrf.mxu1 }
  0xa3   :  { %v194_v61 = vpop.f32.mrf.mxu0  ;;  %v254_v62 = vpop.f32.mrf.mxu2 }
  0xa4   :  { %v195_v2 = vadd.f32 %v194_v61, %v167_v60  ;;  %v481_v11 = vsub.f32 %v1631_v58, %v1640_v1  ;;  %v255_v23 = vadd.f32 %v254_v62, %v1613_v29  ;;  %v411_v60 = vpop.permute.xlu1 %410 }
  0xa5   :  { %v284_v5 = vpop.f32.mrf.mxu3 }
  0xa6   :  { %v221_v7 = vadd.f32 %v220_v3, %v195_v2  ;;  %v482_v21 = vand.u32 4294901760, %v481_v11  ;;  %v285_v29 = vadd.f32 %v284_v5, %v255_v23 }
  0xa8   :  { %v1650_v10 = vmax.f32 %v221_v7, 0.0  ;;  %v483_v30 = vsub.f32 %v481_v11, %v482_v21 }
  0xaa   :  { %v439_v13 = vand.u32 4294901760, %v1650_v10  ;;  %v337_v20 = vpop.f32.mrf.mxu1  ;;  %v484_v38 = vand.u32 4294901760, %v483_v30 }
  0xab   :  { %v308_v14 = vpop.f32.mrf.mxu0  ;;  %v367_v15 = vpop.f32.mrf.mxu2 }
  0xac   :  { %v475_v18 = vsub.f32 %v1650_v10, %v439_v13  ;;  %v309_v19 = vadd.f32 %v308_v14, %v281_v12  ;;  %440 = vmatpush.msrb.mxu0 %v439_v13  ;;  %541 = vmatpush.msrb.mxu3 %v439_v13 }
  0xad   :  { %v393_v22 = vpop.f32.mrf.mxu3 }
  0xae   :  { %v338_v24 = vadd.f32 %v337_v20, %v309_v19  ;;  %442 = vmatpush.msrb.mxu0 %v1640_v1  ;;  %511 = vmatpush.msrb.mxu2 %v475_v18  ;;  %v476_v25 = vand.u32 4294901760, %v475_v18 }
  0xaf   :  { %543 = vmatpush.msrb.mxu3 %v1640_v1  ;;  %448 = vmatmul.f32.vlgmr.msrb.gmra.mxu0 %v447_v16 }
  0xb0   :  { %v368_v27 = vadd.f32 %v367_v15, %v338_v24  ;;  %514 = vmatpush.msrb.mxu2 %v481_v11  ;;  %574 = vmatpush.msra.mxu0 %v476_v25  ;;  %v477_v28 = vsub.f32 %v475_v18, %v476_v25  ;;  %v1552_v18 = vld [vmem:[%s1812_s3 + $0x18] sm:$0xff] }
  0xb1   :  { %517 = vmatmul.f32.vlgmr.msrb.gmra.mxu2 %v1629_v57  ;;  %547 = vmatmul.f32.vlgmr.msrb.gmra.mxu3 %v1635_v63  ;;  %v833_v24 = vsel %vm418_vm1, %v1552_v18, 0 }
  0xb2   :  { %v394_v31 = vadd.f32 %v393_v22, %v368_v27  ;;  %578 = vmatpush.msra.mxu0 %v482_v21  ;;  %v478_v32 = vand.u32 4294901760, %v477_v28  ;;  %v343_v37 = vpop.f32.mrf.mxu1  ;;  %v1712_v28 = vand.u32 4294901760, %v833_v24 }
  0xb3   :  { %v313_v33 = vpop.f32.mrf.mxu0  ;;  %v371_v39 = vpop.f32.mrf.mxu2 }
  0xb4   :  { %v1666_v35 = vmax.f32 %v394_v31, 0.0  ;;  %v314_v36 = vadd.f32 %v313_v33, %v285_v29  ;;  %479 = vmatpush.msrb.mxu1 %v478_v32 }
  0xb5   :  { %v397_v41 = vpop.f32.mrf.mxu3 }
  0xb6   :  { %v344_v40 = vadd.f32 %v343_v37, %v314_v36  ;;  %485 = vmatpush.msrb.mxu1 %v484_v38  ;;  %v631_v42 = vand.u32 4294901760, %v1666_v35 }
  0xb7   :  { %487 = vmatmul.f32.vlgmr.msrb.gmra.mxu1 %v1620_v49  ;;  %456 = vmatmul.f32.gmra.mxu0 %v455_v34 }
  0xb8   :  { %v372_v43 = vadd.f32 %v371_v39, %v344_v40  ;;  %603 = vmatpush.msra.mxu1 %v439_v13  ;;  %v671_v46 = vsub.f32 %v1666_v35, %v631_v42 }
  0xb9   :  { %522 = vmatmul.f32.gmra.mxu2 %v1648_v9  ;;  %553 = vmatmul.f32.gmra.mxu3 %v1656_v17 }
  0xba   :  { %v398_v44 = vadd.f32 %v397_v41, %v372_v43  ;;  %605 = vmatpush.msra.mxu1 %v1640_v1  ;;  %v672_v50 = vand.u32 4294901760, %v671_v46 }
  0xbc   :  { %v1673_v45 = vmax.f32 %v398_v44, 0.0  ;;  %v673_v53 = vsub.f32 %v671_v46, %v672_v50 }
  0xbe   :  { %v629_v47 = vand.u32 4294901760, %v1673_v45  ;;  %v674_v55 = vand.u32 4294901760, %v673_v53 }
  0xbf   :  { %491 = vmatmul.f32.gmra.mxu1 %v1637_v0  ;;  %580 = vmatmul.f32.vlgmr.msra.gmra.mxu0 %v1620_v49 }
  0xc0   :  { %v665_v48 = vsub.f32 %v1673_v45, %v629_v47  ;;  %630 = vmatpush.msra.mxu2 %v629_v47  ;;  %731 = vmatpush.msrb.mxu1 %v629_v47 }
  0xc2   :  { %632 = vmatpush.msra.mxu2 %v631_v42  ;;  %701 = vmatpush.msrb.mxu0 %v665_v48  ;;  %v666_v51 = vand.u32 4294901760, %v665_v48 }
  0xc3   :  { %733 = vmatpush.msrb.mxu1 %v631_v42  ;;  %638 = vmatmul.f32.vlgmr.msra.gmra.mxu2 %v447_v16 }
  0xc4   :  { %704 = vmatpush.msrb.mxu0 %v671_v46  ;;  %764 = vmatpush.msrb.mxu2 %v666_v51  ;;  %v667_v52 = vsub.f32 %v665_v48, %v666_v51 }
  0xc6   :  { %768 = vmatpush.msrb.mxu2 %v672_v50  ;;  %v668_v54 = vand.u32 4294901760, %v667_v52 }
  0xc7   :  { %607 = vmatmul.f32.vlgmr.msra.gmra.mxu1 %v1620_v49  ;;  %584 = vmatmul.f32.gmra.mxu0 %v1637_v0 }
  0xc8   :  { %669 = vmatpush.msra.mxu3 %v668_v54 }
  0xca   :  { %675 = vmatpush.msra.mxu3 %v674_v55 }
  0xcb   :  { %646 = vmatmul.f32.gmra.mxu2 %v455_v34  ;;  %677 = vmatmul.f32.vlgmr.msra.gmra.mxu3 %v1620_v49 }
  0xcc   :  { %793 = vmatpush.msrb.mxu3 %v629_v47 }
  0xce   :  { %795 = vmatpush.msrb.mxu3 %v631_v42 }
  0xcf   :  { %611 = vmatmul.f32.gmra.mxu1 %v1637_v0  ;;  %707 = vmatmul.f32.vlgmr.msrb.gmra.mxu0 %v1629_v57 }
  0xd3   :  { %681 = vmatmul.f32.gmra.mxu3 %v1637_v0  ;;  %770 = vmatmul.f32.vlgmr.msrb.gmra.mxu2 %v1620_v49 }
  0xd7   :  { %737 = vmatmul.f32.vlgmr.msrb.gmra.mxu1 %v1635_v63  ;;  %712 = vmatmul.f32.gmra.mxu0 %v1648_v9 }
  0xdb   :  { %774 = vmatmul.f32.gmra.mxu2 %v1637_v0  ;;  %797 = vmatmul.f32.vlgmr.msrb.gmra.mxu3 %v1620_v49  ;;  %v1551_v49 = vld [vmem:[%s1812_s3 + $0x10] sm:$0xff] }
  0xdc   :  { %v830_v9 = vsel %vm418_vm1, %v1551_v49, 0 }
  0xdd   :  { %v1697_v15 = vand.u32 4294901760, %v830_v9 }
  0xdf   :  { %743 = vmatmul.f32.gmra.mxu1 %v1656_v17  ;;  %v1703_v22 = vsub.f32 %v830_v9, %v1697_v15 }
  0xe1   :  { %v1710_v27 = vand.u32 4294901760, %v1703_v22 }
  0xe3   :  { %801 = vmatmul.f32.gmra.mxu3 %v1637_v0  ;;  %v856_v34 = vsub.f32 %v1703_v22, %v1710_v27 }
  0xe5   :  { %v1725_v43 = vand.u32 4294901760, %v856_v34 }
 0x12c   :  { %v449_v59 = vpop.f32.mrf.mxu0 }
 0x12d   :  { %v450_v57 = vadd.f32 %v449_v59, %v411_v60 }
 0x134   :  { %v488_v61 = vpop.f32.mrf.mxu1  ;;  %v518_v62 = vpop.f32.mrf.mxu2 }
 0x135   :  { %v457_v1 = vpop.f32.mrf.mxu0  ;;  %v489_v2 = vadd.f32 %v488_v61, %v450_v57  ;;  %v548_v3 = vpop.f32.mrf.mxu3 }
 0x136   :  { %v458_v63 = vadd.f32 %v457_v1, %v416_v56 }
 0x137   :  { %v519_v4 = vadd.f32 %v518_v62, %v489_v2  ;;  %v1554_v2 = vld [vmem:[%s1813_s4 + $0x18] sm:$0xff] }
 0x138   :  { %826 = vperm.xlu2 %1558, %v1554_v2  }
 0x139   :  { %v549_v0 = vadd.f32 %v548_v3, %v519_v4 }
 0x13c   :  { %v492_v5 = vpop.f32.mrf.mxu1  ;;  %v523_v6 = vpop.f32.mrf.mxu2 }
 0x13d   :  { %v581_v7 = vpop.f32.mrf.mxu0  ;;  %v493_v8 = vadd.f32 %v492_v5, %v458_v63  ;;  %v554_v14 = vpop.f32.mrf.mxu3 }
 0x13e   :  { %v582_v12 = vadd.f32 %v581_v7, %v549_v0  ;;  %v1553_v0 = vld [vmem:[%s1813_s4 + $0x10] sm:$0xff] }
 0x13f   :  { %v524_v11 = vadd.f32 %v523_v6, %v493_v8 }
 0x140   :  { %821 = vperm.xlu2 %1558, %v1553_v0  }
 0x141   :  { %v555_v20 = vadd.f32 %v554_v14, %v524_v11 }
 0x144   :  { %v608_v13 = vpop.f32.mrf.mxu1 }
 0x145   :  { %v609_v16 = vadd.f32 %v608_v13, %v582_v12  ;;  %v585_v21 = vpop.f32.mrf.mxu0 }
 0x146   :  { %v639_v17 = vpop.f32.mrf.mxu2  ;;  %v586_v25 = vadd.f32 %v585_v21, %v555_v20 }
 0x147   :  { %v805_v19 = vmax.f32 %v609_v16, 0.0  ;;  %v640_v36 = vadd.f32 %v639_v17, %v411_v60 }
 0x149   :  { %v1706_v23 = vadd.f32 %v805_v19, %v1631_v58  ;;  %v1718_v58 = vsub.f32 %v833_v24, %v1712_v28 }
 0x14b   :  { %v851_v29 = vand.u32 4294901760, %v1706_v23  ;;  %v1728_v44 = vand.u32 4294901760, %v1718_v58 }
 0x14c   :  { %v612_v26 = vpop.f32.mrf.mxu1 }
 0x14d   :  { %v613_v30 = vadd.f32 %v612_v26, %v586_v25  ;;  %v891_v38 = vsub.f32 %v1706_v23, %v851_v29  ;;  %v708_v39 = vpop.f32.mrf.mxu0  ;;  %v864_v53 = vsub.f32 %v1718_v58, %v1728_v44 }
 0x14e   :  { %v647_v31 = vpop.f32.mrf.mxu2  ;;  %v678_v32 = vpop.f32.mrf.mxu3 }
 0x14f   :  { %v807_v33 = vmax.f32 %v613_v30, 0.0  ;;  %v679_v40 = vadd.f32 %v678_v32, %v640_v36  ;;  %v892_v47 = vand.u32 4294901760, %v891_v38  ;;  %v648_v51 = vadd.f32 %v647_v31, %v416_v56 }
 0x150   :  { %v865_v61 = vand.u32 4294901760, %v864_v53 }
 0x151   :  { %v1721_v37 = vadd.f32 %v807_v33, %v1650_v10  ;;  %v709_v10 = vadd.f32 %v708_v39, %v679_v40  ;;  %v893_v59 = vsub.f32 %v891_v38, %v892_v47 }
 0x153   :  { %v849_v41 = vand.u32 4294901760, %v1721_v37  ;;  %v894_v1 = vand.u32 4294901760, %v893_v59 }
 0x154   :  { %v738_v42 = vpop.f32.mrf.mxu1 }
 0x155   :  { %850 = vmatpush.msra.mxu0 %v849_v41  ;;  %951 = vmatpush.msra.mxu3 %v849_v41  ;;  %v885_v46 = vsub.f32 %v1721_v37, %v849_v41  ;;  %v739_v54 = vadd.f32 %v738_v42, %v709_v10  ;;  %v713_v56 = vpop.f32.mrf.mxu0 }
 0x156   :  { %v682_v48 = vpop.f32.mrf.mxu3  ;;  %v771_v52 = vpop.f32.mrf.mxu2 }
 0x157   :  { %852 = vmatpush.msra.mxu0 %v851_v29  ;;  %921 = vmatpush.msra.mxu2 %v885_v46  ;;  %v886_v50 = vand.u32 4294901760, %v885_v46  ;;  %v683_v60 = vadd.f32 %v682_v48, %v648_v51  ;;  %v772_v62 = vadd.f32 %v771_v52, %v739_v54  ;;  %v1223_v52 = vld [vmem:[%s1814_s5] sm:$0xff] }
 0x158   :  { %953 = vmatpush.msra.mxu3 %v851_v29  ;;  %858 = vmatmul.f32.vlgmr.msra.gmra.mxu0 %v1725_v43 }
 0x159   :  { %924 = vmatpush.msra.mxu2 %v891_v38  ;;  %984 = vmatpush.msrb.mxu0 %v886_v50  ;;  %v887_v55 = vsub.f32 %v885_v46, %v886_v50  ;;  %v714_v4 = vadd.f32 %v713_v56, %v683_v60 }
 0x15a   :  { %927 = vmatmul.f32.vlgmr.msra.gmra.mxu2 %v1703_v22  ;;  %957 = vmatmul.f32.vlgmr.msra.gmra.mxu3 %v1710_v27 }
 0x15b   :  { %988 = vmatpush.msrb.mxu0 %v892_v47  ;;  %v888_v57 = vand.u32 4294901760, %v887_v55  ;;  %v1225_v55 = vsel %vm418_vm1, %v1223_v52, 0 }
 0x15c   :  { %v744_v3 = vpop.f32.mrf.mxu1 }
 0x15d   :  { %889 = vmatpush.msra.mxu1 %v888_v57  ;;  %v745_v6 = vadd.f32 %v744_v3, %v714_v4  ;;  %v1779_v57 = vand.u32 4294901760, %v1225_v55 }
 0x15e   :  { %v798_v63 = vpop.f32.mrf.mxu3  ;;  %v775_v49 = vpop.f32.mrf.mxu2 }
 0x15f   :  { %v799_v5 = vadd.f32 %v798_v63, %v772_v62  ;;  %895 = vmatpush.msra.mxu1 %v894_v1  ;;  %v776_v9 = vadd.f32 %v775_v49, %v745_v6 }
 0x160   :  { %897 = vmatmul.f32.vlgmr.msra.gmra.mxu1 %v1697_v15  ;;  %866 = vmatmul.f32.gmra.mxu0 %v865_v61 }
 0x161   :  { %v806_v7 = vmax.f32 %v799_v5, 0.0  ;;  %1013 = vmatpush.msrb.mxu1 %v849_v41 }
 0x162   :  { %932 = vmatmul.f32.gmra.mxu2 %v1718_v58  ;;  %963 = vmatmul.f32.gmra.mxu3 %v1728_v44 }
 0x163   :  { %v1743_v8 = vadd.f32 %v806_v7, %v1666_v35  ;;  %1015 = vmatpush.msrb.mxu1 %v851_v29 }
 0x165   :  { %v1041_v13 = vand.u32 4294901760, %v1743_v8 }
 0x166   :  { %v802_v11 = vpop.f32.mrf.mxu3 }
 0x167   :  { %v803_v12 = vadd.f32 %v802_v11, %v776_v9  ;;  %v1081_v35 = vsub.f32 %v1743_v8, %v1041_v13 }
 0x168   :  { %901 = vmatmul.f32.gmra.mxu1 %v1712_v28  ;;  %990 = vmatmul.f32.vlgmr.msrb.gmra.mxu0 %v1697_v15 }
 0x169   :  { %v808_v14 = vmax.f32 %v803_v12, 0.0  ;;  %v1082_v19 = vand.u32 4294901760, %v1081_v35 }
 0x16b   :  { %v1752_v16 = vadd.f32 %v808_v14, %v1673_v45  ;;  %v1083_v21 = vsub.f32 %v1081_v35, %v1082_v19 }
 0x16d   :  { %v1039_v17 = vand.u32 4294901760, %v1752_v16  ;;  %v1084_v25 = vand.u32 4294901760, %v1083_v21 }
 0x16f   :  { %1040 = vmatpush.msrb.mxu2 %v1039_v17  ;;  %1141 = vmatpush.msra.mxu1 %v1039_v17  ;;  %v1075_v18 = vsub.f32 %v1752_v16, %v1039_v17 }
 0x170   :  { %1017 = vmatmul.f32.vlgmr.msrb.gmra.mxu1 %v1697_v15  ;;  %994 = vmatmul.f32.gmra.mxu0 %v1712_v28 }
 0x171   :  { %1042 = vmatpush.msrb.mxu2 %v1041_v13  ;;  %1111 = vmatpush.msra.mxu0 %v1075_v18  ;;  %v1076_v20 = vand.u32 4294901760, %v1075_v18 }
 0x172   :  { %1143 = vmatpush.msra.mxu1 %v1041_v13  ;;  %1048 = vmatmul.f32.vlgmr.msrb.gmra.mxu2 %v1725_v43 }
 0x173   :  { %1114 = vmatpush.msra.mxu0 %v1081_v35  ;;  %1174 = vmatpush.msra.mxu2 %v1076_v20  ;;  %v1077_v45 = vsub.f32 %v1075_v18, %v1076_v20 }
 0x175   :  { %1178 = vmatpush.msra.mxu2 %v1082_v19  ;;  %v1078_v24 = vand.u32 4294901760, %v1077_v45 }
 0x177   :  { %1079 = vmatpush.msrb.mxu3 %v1078_v24 }
 0x178   :  { %1021 = vmatmul.f32.gmra.mxu1 %v1712_v28  ;;  %1117 = vmatmul.f32.vlgmr.msra.gmra.mxu0 %v1703_v22 }
 0x179   :  { %1085 = vmatpush.msrb.mxu3 %v1084_v25 }
 0x17a   :  { %1056 = vmatmul.f32.gmra.mxu2 %v865_v61  ;;  %1087 = vmatmul.f32.vlgmr.msrb.gmra.mxu3 %v1697_v15  ;;  %v1782_v61 = vsub.f32 %v1225_v55, %v1779_v57 }
 0x17b   :  { %1203 = vmatpush.msra.mxu3 %v1039_v17 }
 0x17c   :  { %v1786_v1 = vand.u32 4294901760, %v1782_v61 }
 0x17d   :  { %1205 = vmatpush.msra.mxu3 %v1041_v13 }
 0x17e   :  { %v1248_v3 = vsub.f32 %v1782_v61, %v1786_v1 }
 0x180   :  { %1147 = vmatmul.f32.vlgmr.msra.gmra.mxu1 %v1710_v27  ;;  %1122 = vmatmul.f32.gmra.mxu0 %v1718_v58  ;;  %v1249_v49 = vand.u32 4294901760, %v1248_v3 }
 0x182   :  { %1091 = vmatmul.f32.gmra.mxu3 %v1712_v28  ;;  %1180 = vmatmul.f32.vlgmr.msra.gmra.mxu2 %v1697_v15 }
 0x188   :  { %1153 = vmatmul.f32.gmra.mxu1 %v1728_v44 }
 0x18a   :  { %1184 = vmatmul.f32.gmra.mxu2 %v1712_v28  ;;  %1207 = vmatmul.f32.vlgmr.msra.gmra.mxu3 %v1697_v15 }
 0x192   :  { %1211 = vmatmul.f32.gmra.mxu3 %v1712_v28  ;;  %v1771_v22 = vpop.permute.xlu2 %826 }
 0x19a   :  { %v822_v30 = vpop.permute.xlu2 %821 }
 0x1d5   :  { %v859_v26 = vpop.f32.mrf.mxu0 }
 0x1d6   :  { %v860_v29 = vadd.f32 %v859_v26, %v822_v30 }
 0x1dd   :  { %v898_v27 = vpop.f32.mrf.mxu1  ;;  %v867_v31 = vpop.f32.mrf.mxu0 }
 0x1de   :  { %v899_v32 = vadd.f32 %v898_v27, %v860_v29  ;;  %v928_v33 = vpop.f32.mrf.mxu2  ;;  %v958_v34 = vpop.f32.mrf.mxu3  ;;  %v868_v58 = vadd.f32 %v867_v31, %v1771_v22 }
 0x1e0   :  { %v929_v36 = vadd.f32 %v928_v33, %v899_v32 }
 0x1e2   :  { %v959_v41 = vadd.f32 %v958_v34, %v929_v36 }
 0x1e5   :  { %v902_v38 = vpop.f32.mrf.mxu1  ;;  %v991_v39 = vpop.f32.mrf.mxu0 }
 0x1e6   :  { %v903_v40 = vadd.f32 %v902_v38, %v868_v58  ;;  %v933_v15 = vpop.f32.mrf.mxu2  ;;  %v992_v42 = vadd.f32 %v991_v39, %v959_v41  ;;  %v964_v43 = vpop.f32.mrf.mxu3 }
 0x1e8   :  { %v934_v28 = vadd.f32 %v933_v15, %v903_v40 }
 0x1ea   :  { %v965_v47 = vadd.f32 %v964_v43, %v934_v28 }
 0x1ed   :  { %v1018_v44 = vpop.f32.mrf.mxu1  ;;  %v995_v48 = vpop.f32.mrf.mxu0 }
 0x1ee   :  { %v1019_v46 = vadd.f32 %v1018_v44, %v992_v42  ;;  %v996_v51 = vadd.f32 %v995_v48, %v965_v47 }
 0x1f0   :  { %v1215_v10 = vmax.f32 %v1019_v46, 0.0 }
 0x1f2   :  { %v1219_v50 = vadd.f32 %v1215_v10, %v1706_v23 }
 0x1f4   :  { %v1243_v59 = vand.u32 4294901760, %v1219_v50 }
 0x1f5   :  { %v1022_v53 = vpop.f32.mrf.mxu1  ;;  %v1049_v54 = vpop.f32.mrf.mxu2 }
 0x1f6   :  { %v1023_v60 = vadd.f32 %v1022_v53, %v996_v51  ;;  %v1275_v23 = vsub.f32 %v1219_v50, %v1243_v59  ;;  %v1050_v6 = vadd.f32 %v1049_v54, %v822_v30 }
 0x1f8   :  { %v1217_v56 = vmax.f32 %v1023_v60, 0.0  ;;  %v1276_v7 = vand.u32 4294901760, %v1275_v23 }
 0x1fa   :  { %v1221_v62 = vadd.f32 %v1217_v56, %v1721_v37  ;;  %v1118_v37 = vpop.f32.mrf.mxu0  ;;  %v1277_v12 = vsub.f32 %v1275_v23, %v1276_v7 }
 0x1fc   :  { %v1241_v2 = vand.u32 4294901760, %v1221_v62  ;;  %v1278_v18 = vand.u32 4294901760, %v1277_v12 }
 0x1fd   :  { %v1057_v63 = vpop.f32.mrf.mxu2  ;;  %v1088_v4 = vpop.f32.mrf.mxu3 }
 0x1fe   :  { %v1269_v5 = vsub.f32 %v1221_v62, %v1241_v2  ;;  %1242 = vmatpush.msrb.mxu0 %v1241_v2  ;;  %1326 = vmatpush.msrb.mxu3 %v1241_v2  ;;  %v1089_v9 = vadd.f32 %v1088_v4, %v1050_v6  ;;  %v1148_v14 = vpop.f32.mrf.mxu1  ;;  %v1058_v20 = vadd.f32 %v1057_v63, %v1771_v22 }
 0x200   :  { %1244 = vmatpush.msrb.mxu0 %v1243_v59  ;;  %1301 = vmatpush.msrb.mxu2 %v1269_v5  ;;  %v1270_v0 = vand.u32 4294901760, %v1269_v5  ;;  %v1119_v17 = vadd.f32 %v1118_v37, %v1089_v9 }
 0x201   :  { %1328 = vmatpush.msrb.mxu3 %v1243_v59  ;;  %1250 = vmatmul.f32.vlgmr.msrb.gmra.mxu0 %v1249_v49 }
 0x202   :  { %1304 = vmatpush.msrb.mxu2 %v1275_v23  ;;  %1353 = vmatpush.msra.mxu0 %v1270_v0  ;;  %v1271_v11 = vsub.f32 %v1269_v5, %v1270_v0  ;;  %v1149_v45 = vadd.f32 %v1148_v14, %v1119_v17  ;;  %v1123_v24 = vpop.f32.mrf.mxu0 }
 0x203   :  { %1307 = vmatmul.f32.vlgmr.msrb.gmra.mxu2 %v1782_v61  ;;  %1332 = vmatmul.f32.vlgmr.msrb.gmra.mxu3 %v1786_v1 }
 0x204   :  { %1357 = vmatpush.msra.mxu0 %v1276_v7  ;;  %v1272_v13 = vand.u32 4294901760, %v1271_v11 }
 0x205   :  { %v1092_v35 = vpop.f32.mrf.mxu3  ;;  %v1181_v19 = vpop.f32.mrf.mxu2 }
 0x206   :  { %1273 = vmatpush.msrb.mxu1 %v1272_v13  ;;  %v1093_v21 = vadd.f32 %v1092_v35, %v1058_v20  ;;  %v1182_v25 = vadd.f32 %v1181_v19, %v1149_v45  ;;  %v1154_v27 = vpop.f32.mrf.mxu1 }
 0x208   :  { %1279 = vmatpush.msrb.mxu1 %v1278_v18  ;;  %v1124_v30 = vadd.f32 %v1123_v24, %v1093_v21 }
 0x209   :  { %1359 = vmatmul.f32.vlgmr.msra.gmra.mxu0 %v1779_v57  ;;  %1281 = vmatmul.f32.vlgmr.msrb.gmra.mxu1 %v1779_v57 }
 0x20a   :  { %1378 = vmatpush.msra.mxu1 %v1241_v2  ;;  %v1155_v33 = vadd.f32 %v1154_v27, %v1124_v30 }
 0x20c   :  { %1380 = vmatpush.msra.mxu1 %v1243_v59 }
 0x20d   :  { %v1208_v26 = vpop.f32.mrf.mxu3  ;;  %v1185_v32 = vpop.f32.mrf.mxu2 }
 0x20e   :  { %v1209_v29 = vadd.f32 %v1208_v26, %v1182_v25  ;;  %v1186_v34 = vadd.f32 %v1185_v32, %v1155_v33 }
 0x210   :  { %v1216_v31 = vmax.f32 %v1209_v29, 0.0 }
 0x211   :  { %1382 = vmatmul.f32.vlgmr.msra.gmra.mxu1 %v1779_v57 }
 0x212   :  { %v1220_v22 = vadd.f32 %v1216_v31, %v1743_v8 }
 0x214   :  { %v1402_v36 = vand.u32 4294901760, %v1220_v22 }
 0x215   :  { %v1212_v58 = vpop.f32.mrf.mxu3 }
 0x216   :  { %v1213_v38 = vadd.f32 %v1212_v58, %v1186_v34  ;;  %v1434_v41 = vsub.f32 %v1220_v22, %v1402_v36 }
 0x218   :  { %v1218_v39 = vmax.f32 %v1213_v38, 0.0  ;;  %v1435_v28 = vand.u32 4294901760, %v1434_v41 }
 0x21a   :  { %v1222_v40 = vadd.f32 %v1218_v39, %v1752_v16  ;;  %v1436_v44 = vsub.f32 %v1434_v41, %v1435_v28 }
 0x21c   :  { %v1400_v15 = vand.u32 4294901760, %v1222_v40  ;;  %v1437_v46 = vand.u32 4294901760, %v1436_v44 }
 0x21e   :  { %v1428_v42 = vsub.f32 %v1222_v40, %v1400_v15  ;;  %1401 = vmatpush.msra.mxu2 %v1400_v15  ;;  %1485 = vmatpush.msrb.mxu1 %v1400_v15 }
 0x220   :  { %1403 = vmatpush.msra.mxu2 %v1402_v36  ;;  %1460 = vmatpush.msrb.mxu0 %v1428_v42  ;;  %v1429_v43 = vand.u32 4294901760, %v1428_v42 }
 0x221   :  { %1487 = vmatpush.msrb.mxu1 %v1402_v36  ;;  %1409 = vmatmul.f32.vlgmr.msra.gmra.mxu2 %v1249_v49 }
 0x222   :  { %1463 = vmatpush.msrb.mxu0 %v1434_v41  ;;  %1512 = vmatpush.msrb.mxu2 %v1429_v43  ;;  %v1430_v8 = vsub.f32 %v1428_v42, %v1429_v43 }
 0x223   :  { %1466 = vmatmul.f32.vlgmr.msrb.gmra.mxu0 %v1782_v61  ;;  %1491 = vmatmul.f32.vlgmr.msrb.gmra.mxu1 %v1786_v1 }
 0x224   :  { %1516 = vmatpush.msrb.mxu2 %v1435_v28  ;;  %v1431_v16 = vand.u32 4294901760, %v1430_v8 }
 0x226   :  { %1432 = vmatpush.msra.mxu3 %v1431_v16 }
 0x228   :  { %1438 = vmatpush.msra.mxu3 %v1437_v46 }
 0x229   :  { %1518 = vmatmul.f32.vlgmr.msrb.gmra.mxu2 %v1779_v57  ;;  %1440 = vmatmul.f32.vlgmr.msra.gmra.mxu3 %v1779_v57 }
 0x22a   :  { %1537 = vmatpush.msrb.mxu3 %v1400_v15 }
 0x22c   :  { %1539 = vmatpush.msrb.mxu3 %v1402_v36 }
 0x231   :  { %1541 = vmatmul.f32.vlgmr.msrb.gmra.mxu3 %v1779_v57 }
 0x27e   :  { %v1251_v47 = vpop.f32.mrf.mxu0 }
 0x286   :  { %v1282_v48 = vpop.f32.mrf.mxu1  ;;  %v1308_v10 = vpop.f32.mrf.mxu2 }
 0x287   :  { %v1283_v50 = vadd.f32 %v1282_v48, %v1251_v47  ;;  %v1333_v51 = vpop.f32.mrf.mxu3  ;;  %v1360_v53 = vpop.f32.mrf.mxu0 }
 0x289   :  { %v1309_v52 = vadd.f32 %v1308_v10, %v1283_v50 }
 0x28b   :  { %v1334_v54 = vadd.f32 %v1333_v51, %v1309_v52 }
 0x28d   :  { %v1361_v55 = vadd.f32 %v1360_v53, %v1334_v54 }
 0x28e   :  { %v1383_v59 = vpop.f32.mrf.mxu1 }
 0x28f   :  { %v1384_v60 = vadd.f32 %v1383_v59, %v1361_v55 }
 0x291   :  { %1545 = vst [vmem:[%s1815_s6] sm:$0xff] %v1384_v60 }
 0x2a0   :  { %v1467_v62 = vpop.f32.mrf.mxu0  ;;  %v1492_v57 = vpop.f32.mrf.mxu1 }
 0x2a4   :  { %v1410_v56 = vpop.f32.mrf.mxu2 }
 0x2ac   :  { %v1441_v61 = vpop.f32.mrf.mxu3  ;;  %v1519_v2 = vpop.f32.mrf.mxu2 }
 0x2ad   :  { %v1442_v23 = vadd.f32 %v1441_v61, %v1410_v56 }
 0x2af   :  { %v1468_v1 = vadd.f32 %v1467_v62, %v1442_v23 }
 0x2b1   :  { %v1493_v3 = vadd.f32 %v1492_v57, %v1468_v1 }
 0x2b3   :  { %v1520_v63 = vadd.f32 %v1519_v2, %v1493_v3 }
 0x2b4   :  { %v1542_v4 = vpop.f32.mrf.mxu3 }
 0x2b5   :  { %v1543_v5 = vadd.f32 %v1542_v4, %v1520_v63 }
 0x2b7   :  { %1546 = vst [vmem:[%s1815_s6 + $0x8] sm:$0xff] %v1543_v5 }

// kernel: mygcn3_forward.7
= control target key start
LH: loop header
LB: loop body
LE: loop exit
PB: predicated region body
PF: predicated region fallthrough
CT: control target
= control target key end

     0   :  { %s4421_s0 = inlined_call_operand.vmem [shape: f32[8,256], index: 0, kind: input, shape index: {}]   ;;  %s4422_s1 = inlined_call_operand.vmem [shape: f32[256,256], index: 1, kind: input, shape index: {}]   ;;  %s4423_s2 = inlined_call_operand.vmem [shape: f32[16,8], index: 2, kind: input, shape index: {}]   ;;  %s4424_s3 = inlined_call_operand.vmem [shape: f32[16,1], index: 3, kind: input, shape index: {}]   ;;  %s4425_s4 = inlined_call_operand.vmem [shape: f32[2,16,16], index: 4, kind: input, shape index: {}]   ;;  %s4426_s5 = inlined_call_operand.vmem [shape: f32[2,16,1], index: 5, kind: input, shape index: {}]   ;;  %s4427_s6 = inlined_call_operand.vmem [shape: f32[16,1], index: 6, kind: input, shape index: {}]   ;;  %s4428_s7 = inlined_call_operand.vmem [shape: f32[16,8], index: 7, kind: input, shape index: {}]   ;;  %s4429_s8 = inlined_call_operand.vmem [shape: f32[16,1], index: 8, kind: input, shape index: {}]   ;;  %s4430_s9 = inlined_call_operand.vmem [shape: f32[2,16,16], index: 9, kind: input, shape index: {}]   ;;  %s4431_s10 = inlined_call_operand.vmem [shape: f32[2,16,1], index: 10, kind: input, shape index: {}]   ;;  %s4432_s11 = inlined_call_operand.vmem [shape: f32[8,16], index: 11, kind: input, shape index: {}]   ;;  %s4433_s12 = inlined_call_operand.vmem [shape: f32[16,8], index: 12, kind: input, shape index: {}]   ;;  %s4434_s13 = inlined_call_operand.vmem [shape: f32[16,1], index: 13, kind: input, shape index: {}]   ;;  %s4435_s14 = inlined_call_operand.vmem [shape: f32[2,16,16], index: 14, kind: input, shape index: {}]   ;;  %s4436_s15 = inlined_call_operand.vmem [shape: f32[2,16,1], index: 15, kind: input, shape index: {}]   ;;  %s4437_s16 = inlined_call_operand.vmem [shape: f32[8,16], index: 16, kind: input, shape index: {}]   ;;  %s4438_s17 = inlined_call_operand.vmem [shape: f32[8,256], index: 17, kind: output, shape index: {}]  }
   0x1   :  { %4445 = sst [smem:[#allocation7_spill]] %s4421_s0 }
   0x2   :  { %4446 = sst [smem:[#allocation8_spill]] %s4422_s1 }
   0x3   :  { %4447 = sst [smem:[#allocation9_spill]] %s4430_s9 }
   0x4   :  { %4448 = sst [smem:[#allocation10_spill]] %s4432_s11 }
   0x5   :  { %4449 = sst [smem:[#allocation11_spill]] %s4433_s12 }
   0x6   :  { %4450 = sst [smem:[#allocation12_spill]] %s4435_s14 }
   0x7   :  { %4451 = sst [smem:[#allocation13_spill]] %s4437_s16 }
   0x8   :  { %s3734_s24 = smov 0   ;;  %s3736_s25 = smov 0  }
   0x9   :  { %s3738_s26 = smov 0   ;;  %s3740_s27 = smov 0  }
   0xa   :  { %s3742_s28 = smov 0   ;;  %s3744_s29 = smov 0  }
   0xb   :  { %s3746_s0 = smov 0  }
   0xc LB: > { %4452 = sst [smem:[#allocation4_spill]] %s3636_s29  ;;  %s36_s30 = sadd.s32 1, %s3632_s28  ;;  %s3640_s0 = sphi %s3746_s0, %s27_s0   ;;  %s3636_s29 = sphi %s3744_s29, %s4468_s29   ;;  %s3632_s28 = sphi %s3742_s28, %s4472_s28   ;;  %s3628_s27 = sphi %s3740_s27, %s4466_s27   ;;  %s3624_s26 = sphi %s3738_s26, %s4471_s26   ;;  %s3620_s25 = sphi %s3736_s25, %s4470_s25   ;;  %s3616_s24 = sphi %s3734_s24, %s4469_s24  }
   0xd   : > { %p37_p0 = scmp.ge.s32.totalorder %s36_s30, 2  ;;  %s39_s18 = sadd.s32 1, %s3636_s29 }
   0xe   : > { %p81_p1 = scmp.ne.s32.totalorder %s3620_s25, %s3616_s24  ;;  %p82_p2 = scmp.eq.s32.totalorder %s3640_s0, 0 }
   0xf   : > { %s4474_s30 = smov (%p37_p0, %s36_s30), 0  ;;  %s4476_s18 = smov (!%p37_p0, %s39_s18), %s3636_s29 }
  0x10   : > { %4453 = sst [smem:[#allocation5_spill]] %s4474_s30  ;;  %p83_p3 = por %p82_p2, %p81_p1 }
  0x11   : > { %p41_p4 = scmp.ge.s32.totalorder %s4476_s18, 2  ;;  %s69_s19 = ssub.s32 %s3632_s28, %s4474_s30 }
  0x12   : > { %s74_s21 = sadd.s32 1, %s3620_s25  ;;  %p3474_p6 = scmp.ge.s32.totalorder %s3640_s0, 4 }
  0x13   : > { %s4478_s18 = smov (%p41_p4, %s4476_s18), 0 }
  0x14   : > { %4454 = sst [smem:[#allocation6_spill]] %s4478_s18  ;;  %s70_s1 = ssub.s32 %s3636_s29, %s4478_s18 }
  0x15   : > { %s71_s20 = sor.u32 %s70_s1, %s69_s19  ;;  %493 = sbr.rel (%p3474_p6) target bundleno = 52 (0x34), region = 76 }
  0x16   : > { %p72_p5 = scmp.eq.s32.totalorder %s71_s20, 0 }
  0x18   : > { %s3785_s22 = scalar_select %p72_p5, %s3620_s25, %s74_s21  }
  0x1a   : > { %503 = sbr.rel (!%p83_p3) target bundleno = 52 (0x34), region = 84  ;;  %s505_s23 = sand.u32 (%p83_p3), 1, %s3620_s25  }
  0x1b   : > { %s3499_s11 = sshll.u32 (%p83_p3), %s3632_s28, 5  ;;  %s3475_s16 = sshll.u32 (%p83_p3), %s505_s23, 7 }
  0x1c   : > { %s510_s30 = sadd.s32 (%p83_p3), %s3636_s29, %s3499_s11  ;;  %s4455_s18 = sld [smem:[#allocation8_spill]] (%p83_p3) }
  0x1d   : > { %s3478_s14 = sshll.u32 (%p83_p3), %s510_s30, 3  ;;  %s507_s11 = scalar_lea.vmem (%p83_p3), [#allocation3], %s3475_s16 }
  0x22   : > { %s3794_s19 = scalar_lea.vmem %s4455_s18, %s3478_s14 }
  0x23   : > { %v571_v0 = vld [vmem:[%s3794_s19] sm:$0xff]  ;;  %v573_v1 = vld [vmem:[%s3794_s19 + $0x10] sm:$0xff] }
  0x24   : > { %v575_v2 = vld [vmem:[%s3794_s19 + $0x20] sm:$0xff]  ;;  %572 = vst [vmem:[%s507_s11] sm:$0xff] %v571_v0  ;;  %v577_v3 = vld [vmem:[%s3794_s19 + $0x30] sm:$0xff] }
  0x25   : > { %574 = vst [vmem:[%s507_s11 + $0x8] sm:$0xff] %v573_v1  ;;  %v579_v4 = vld [vmem:[%s3794_s19 + $0x40] sm:$0xff]  ;;  %v581_v5 = vld [vmem:[%s3794_s19 + $0x50] sm:$0xff] }
  0x26   : > { %576 = vst [vmem:[%s507_s11 + $0x10] sm:$0xff] %v575_v2  ;;  %v583_v6 = vld [vmem:[%s3794_s19 + $0x60] sm:$0xff]  ;;  %v585_v7 = vld [vmem:[%s3794_s19 + $0x70] sm:$0xff] }
  0x27   : > { %578 = vst [vmem:[%s507_s11 + $0x18] sm:$0xff] %v577_v3  ;;  %v587_v8 = vld [vmem:[%s3794_s19 + $0x80] sm:$0xff]  ;;  %v589_v9 = vld [vmem:[%s3794_s19 + $0x90] sm:$0xff] }
  0x28   : > { %580 = vst [vmem:[%s507_s11 + $0x20] sm:$0xff] %v579_v4  ;;  %v591_v10 = vld [vmem:[%s3794_s19 + $0xa0] sm:$0xff]  ;;  %v593_v11 = vld [vmem:[%s3794_s19 + $0xb0] sm:$0xff] }
  0x29   : > { %582 = vst [vmem:[%s507_s11 + $0x28] sm:$0xff] %v581_v5  ;;  %v595_v12 = vld [vmem:[%s3794_s19 + $0xc0] sm:$0xff]  ;;  %v597_v13 = vld [vmem:[%s3794_s19 + $0xd0] sm:$0xff] }
  0x2a   : > { %584 = vst [vmem:[%s507_s11 + $0x30] sm:$0xff] %v583_v6  ;;  %v599_v14 = vld [vmem:[%s3794_s19 + $0xe0] sm:$0xff]  ;;  %v601_v15 = vld [vmem:[%s3794_s19 + $0xf0] sm:$0xff] }
  0x2b   : > { %586 = vst [vmem:[%s507_s11 + $0x38] sm:$0xff] %v585_v7 }
  0x2c   : > { %588 = vst [vmem:[%s507_s11 + $0x40] sm:$0xff] %v587_v8 }
  0x2d   : > { %590 = vst [vmem:[%s507_s11 + $0x48] sm:$0xff] %v589_v9 }
  0x2e   : > { %592 = vst [vmem:[%s507_s11 + $0x50] sm:$0xff] %v591_v10 }
  0x2f   : > { %594 = vst [vmem:[%s507_s11 + $0x58] sm:$0xff] %v593_v11 }
  0x30   : > { %596 = vst [vmem:[%s507_s11 + $0x60] sm:$0xff] %v595_v12 }
  0x31   : > { %598 = vst [vmem:[%s507_s11 + $0x68] sm:$0xff] %v597_v13 }
  0x32   : > { %600 = vst [vmem:[%s507_s11 + $0x70] sm:$0xff] %v599_v14 }
  0x33   : > { %602 = vst [vmem:[%s507_s11 + $0x78] sm:$0xff] %v601_v15 }
  0x34 PF: > { %p3479_p7 = scmp.ge.s32.totalorder %s3640_s0, 1  ;;  %p607_p8 = scmp.lt.s32.totalorder %s3640_s0, 5 }
  0x36   : > { %p608_p9 = pnand %p3479_p7, %p607_p8 }
  0x37   : > { %s614_s9 = sand.u32 (!%p608_p9), 1, %s3616_s24   ;;  %p668_p10 = scmp.lt.s32.totalorder (!%p608_p9), %s3624_s26, 1 }
  0x38   : > { %611 = sbr.rel (%p608_p9) target bundleno = 1741 (0x6cd), region = 122  ;;  %s3480_s12 = sshll.u32 (!%p608_p9), %s614_s9, 7 }
  0x39   : > { %p673_p11 = scmp.lt.s32.totalorder (!%p608_p9), %s3628_s27, 1  ;;  %s4456_s1 = sld [smem:[#allocation7_spill]] (!%p608_p9) }
  0x3a   : > { %s3829_s29 = scalar_lea.vmem (!%p608_p9), [#allocation3], %s3480_s12  ;;  %p3483_p12 = scmp.ne.s32.totalorder (!%p608_p9), %s3624_s26, 0 }
  0x3d   : > { %s669_s14 = scalar_select %p668_p10, %s3624_s26, 1 }
  0x3e   : > { %s4480_s27 = smov (!%p673_p11, %s3628_s27), 1  ;;  %680 = sbr.rel (%p3483_p12) target bundleno = 69 (0x45), region = 130 }
  0x3f   : > { %s3481_s16 = sshll.u32 %s669_s14, 3  ;;  %s3482_s21 = sshll.u32 %s4480_s27, 3 }
  0x40   : > { %s3822_s20 = scalar_lea.vmem %s4456_s1, %s3481_s16  ;;  %s3827_s11 = scalar_lea.vmem %s4438_s17, %s3482_s21 }
  0x43   : > { %v3642_v16 = vmov 0.0  }
  0x44   : > { %681 = vst [vmem:[#allocation2] sm:$0xff] %v3642_v16 }
  0x45 PF: > { %v699_v17 = vld [vmem:[%s3829_s29 + $0x78] sm:$0xff]  ;;  %v698_v18 = vld [vmem:[%s3829_s29 + $0x70] sm:$0xff]  ;;  %v697_v19 = vld [vmem:[%s3829_s29 + $0x68] sm:$0xff]  ;;  %p3484_p13 = scmp.ne.s32.totalorder %s3624_s26, 1 }
  0x46   : > { %v3835_v20 = vand.u32 4294901760, %v699_v17  ;;  %v3837_v21 = vand.u32 4294901760, %v698_v18  ;;  %v3839_v22 = vand.u32 4294901760, %v697_v19  ;;  %v696_v23 = vld [vmem:[%s3829_s29 + $0x60] sm:$0xff]  ;;  %v695_v24 = vld [vmem:[%s3829_s29 + $0x58] sm:$0xff]  ;;  %v694_v25 = vld [vmem:[%s3829_s29 + $0x50] sm:$0xff] }
  0x47   : > { %v3844_v26 = vand.u32 4294901760, %v696_v23  ;;  %v3846_v27 = vand.u32 4294901760, %v695_v24  ;;  %v3848_v28 = vand.u32 4294901760, %v694_v25  ;;  %v693_v29 = vld [vmem:[%s3829_s29 + $0x48] sm:$0xff]  ;;  %v692_v30 = vld [vmem:[%s3829_s29 + $0x40] sm:$0xff]  ;;  %v691_v35 = vld [vmem:[%s3829_s29 + $0x38] sm:$0xff] }
  0x48   : > { %701 = vmatpush.msra.mxu0 %v3835_v20  ;;  %v3854_v31 = vsub.f32 %v699_v17, %v3835_v20  ;;  %v3857_v32 = vsub.f32 %v698_v18, %v3837_v21  ;;  %v3860_v33 = vsub.f32 %v697_v19, %v3839_v22  ;;  %v3862_v34 = vand.u32 4294901760, %v693_v29  ;;  %897 = vmatpush.msra.mxu3 %v3835_v20  ;;  %v690_v43 = vld [vmem:[%s3829_s29 + $0x30] sm:$0xff]  ;;  %v689_v53 = vld [vmem:[%s3829_s29 + $0x28] sm:$0xff]  ;;  %v688_v59 = vld [vmem:[%s3829_s29 + $0x20] sm:$0xff]  ;;  %s4457_s23 = sld [smem:[#allocation9_spill]] (!%p3484_p13) }
  0x49   : > { %v3867_v36 = vsub.f32 %v696_v23, %v3844_v26  ;;  %v3870_v37 = vsub.f32 %v695_v24, %v3846_v27  ;;  %v3873_v38 = vsub.f32 %v694_v25, %v3848_v28  ;;  %v3879_v42 = vand.u32 4294901760, %v692_v30  ;;  %v687_v0 = vld [vmem:[%s3829_s29 + $0x18] sm:$0xff]  ;;  %v686_v8 = vld [vmem:[%s3829_s29 + $0x10] sm:$0xff]  ;;  %v685_v13 = vld [vmem:[%s3829_s29 + $0x8] sm:$0xff]  ;;  %s4462_s16 = sld [smem:[#allocation11_spill]] (!%p3484_p13) }
  0x4a   : > { %703 = vmatpush.msra.mxu0 %v3837_v21  ;;  %v743_v39 = vand.u32 4294901760, %v3854_v31  ;;  %v749_v40 = vand.u32 4294901760, %v3857_v32  ;;  %v755_v41 = vand.u32 4294901760, %v3860_v33  ;;  %844 = vmatpush.msra.mxu2 %v3854_v31  ;;  %v3884_v45 = vand.u32 4294901760, %v691_v35  ;;  %v684_v18 = vld [vmem:[%s3829_s29] sm:$0xff]  ;;  %v683_v24 = vld [vmem:[%s3822_s20] sm:$0xff] }
  0x4b   : > { %v761_v44 = vand.u32 4294901760, %v3867_v36  ;;  %v3887_v46 = vsub.f32 %v693_v29, %v3862_v34  ;;  %899 = vmatpush.msra.mxu3 %v3837_v21  ;;  %v767_v50 = vand.u32 4294901760, %v3870_v37  ;;  %v773_v51 = vand.u32 4294901760, %v3873_v38  ;;  %s4463_s21 = sld [smem:[#allocation12_spill]] (!%p3484_p13) }
  0x4c   : > { %705 = vmatpush.msra.mxu0 %v3839_v22  ;;  %v744_v47 = vsub.f32 %v3854_v31, %v743_v39  ;;  %v750_v48 = vsub.f32 %v3857_v32, %v749_v40  ;;  %v756_v49 = vsub.f32 %v3860_v33, %v755_v41  ;;  %847 = vmatpush.msra.mxu2 %v3857_v32  ;;  %v3903_v52 = vand.u32 4294901760, %v690_v43  ;;  %s4464_s30 = sld [smem:[#allocation13_spill]] (!%p3484_p13) }
  0x4d   : > { %901 = vmatpush.msra.mxu3 %v3839_v22  ;;  %v762_v56 = vsub.f32 %v3867_v36, %v761_v44  ;;  %v3912_v57 = vsub.f32 %v692_v30, %v3879_v42  ;;  %v779_v58 = vand.u32 4294901760, %v3887_v46  ;;  %v768_v61 = vsub.f32 %v3870_v37, %v767_v50  ;;  %s4465_s20 = sld [smem:[#allocation10_spill]] (!%p3484_p13) }
  0x4e   : > { %v745_v54 = vand.u32 4294901760, %v744_v47  ;;  %707 = vmatpush.msra.mxu0 %v3844_v26  ;;  %v751_v55 = vand.u32 4294901760, %v750_v48  ;;  %850 = vmatpush.msra.mxu2 %v3860_v33  ;;  %v757_v60 = vand.u32 4294901760, %v756_v49  ;;  %v3922_v62 = vand.u32 4294901760, %v689_v53 }
  0x4f   : > { %903 = vmatpush.msra.mxu3 %v3844_v26  ;;  %v3925_v63 = vsub.f32 %v691_v35, %v3884_v45  ;;  %v774_v1 = vsub.f32 %v3873_v38, %v773_v51  ;;  %v763_v2 = vand.u32 4294901760, %v762_v56  ;;  %v785_v3 = vand.u32 4294901760, %v3912_v57 }
  0x50   : > { %746 = vmatpush.msra.mxu1 %v745_v54  ;;  %709 = vmatpush.msra.mxu0 %v3846_v27  ;;  %v3935_v4 = vand.u32 4294901760, %v688_v59  ;;  %v3938_v5 = vsub.f32 %v690_v43, %v3903_v52  ;;  %v780_v6 = vsub.f32 %v3887_v46, %v779_v58  ;;  %v3943_v7 = vand.u32 4294901760, %v687_v0 }
  0x51   : > { %853 = vmatpush.msra.mxu2 %v3867_v36  ;;  %905 = vmatpush.msra.mxu3 %v3846_v27  ;;  %v769_v9 = vand.u32 4294901760, %v768_v61  ;;  %v791_v10 = vand.u32 4294901760, %v3925_v63  ;;  %v3951_v11 = vsub.f32 %v689_v53, %v3922_v62  ;;  %v775_v12 = vand.u32 4294901760, %v774_v1 }
  0x52   : > { %752 = vmatpush.msra.mxu1 %v751_v55  ;;  %711 = vmatpush.msra.mxu0 %v3848_v28  ;;  %v786_v14 = vsub.f32 %v3912_v57, %v785_v3  ;;  %v797_v15 = vand.u32 4294901760, %v3938_v5  ;;  %v3961_v16 = vand.u32 4294901760, %v686_v8  ;;  %v3964_v17 = vsub.f32 %v688_v59, %v3935_v4 }
  0x53   : > { %856 = vmatpush.msra.mxu2 %v3870_v37  ;;  %907 = vmatpush.msra.mxu3 %v3848_v28  ;;  %v781_v19 = vand.u32 4294901760, %v780_v6  ;;  %v3968_v23 = vsub.f32 %v687_v0, %v3943_v7  ;;  %v792_v25 = vsub.f32 %v3925_v63, %v791_v10  ;;  %v803_v29 = vand.u32 4294901760, %v3951_v11 }
  0x54   : > { %758 = vmatpush.msra.mxu1 %v757_v60  ;;  %713 = vmatpush.msra.mxu0 %v3862_v34  ;;  %v3978_v30 = vand.u32 4294901760, %v685_v13  ;;  %v3980_v35 = vand.u32 4294901760, %v683_v24  ;;  %v3982_v43 = vand.u32 4294901760, %v684_v18  ;;  %v787_v47 = vand.u32 4294901760, %v786_v14 }
  0x55   : > { %859 = vmatpush.msra.mxu2 %v3873_v38  ;;  %909 = vmatpush.msra.mxu3 %v3862_v34  ;;  %v798_v48 = vsub.f32 %v3938_v5, %v797_v15  ;;  %v809_v49 = vand.u32 4294901760, %v3964_v17  ;;  %v3992_v53 = vsub.f32 %v686_v8, %v3961_v16  ;;  %v815_v54 = vand.u32 4294901760, %v3968_v23 }
  0x56   : > { %764 = vmatpush.msra.mxu1 %v763_v2  ;;  %715 = vmatpush.msra.mxu0 %v3879_v42  ;;  %v793_v55 = vand.u32 4294901760, %v792_v25  ;;  %v804_v56 = vsub.f32 %v3951_v11, %v803_v29  ;;  %v4002_v59 = vsub.f32 %v685_v13, %v3978_v30  ;;  %v733_v60 = vsub.f32 %v683_v24, %v3980_v35 }
  0x57   : > { %862 = vmatpush.msra.mxu2 %v3887_v46  ;;  %911 = vmatpush.msra.mxu3 %v3879_v42  ;;  %v799_v61 = vand.u32 4294901760, %v798_v48  ;;  %v810_v0 = vsub.f32 %v3964_v17, %v809_v49  ;;  %v821_v1 = vand.u32 4294901760, %v3992_v53  ;;  %v4013_v2 = vsub.f32 %v684_v18, %v3982_v43 }
  0x58   : > { %770 = vmatpush.msra.mxu1 %v769_v9  ;;  %717 = vmatpush.msra.mxu0 %v3884_v45  ;;  %v805_v6 = vand.u32 4294901760, %v804_v56  ;;  %v816_v8 = vsub.f32 %v3968_v23, %v815_v54  ;;  %v827_v9 = vand.u32 4294901760, %v4002_v59 }
  0x59   : > { %865 = vmatpush.msra.mxu2 %v3912_v57  ;;  %913 = vmatpush.msra.mxu3 %v3884_v45  ;;  %v811_v13 = vand.u32 4294901760, %v810_v0  ;;  %v822_v14 = vsub.f32 %v3992_v53, %v821_v1  ;;  %v833_v18 = vand.u32 4294901760, %v4013_v2 }
  0x5a   : > { %776 = vmatpush.msra.mxu1 %v775_v12  ;;  %719 = vmatpush.msra.mxu0 %v3903_v52  ;;  %v734_v12 = vand.u32 4294901760, %v733_v60  ;;  %v828_v24 = vsub.f32 %v4002_v59, %v827_v9 }
  0x5b   : > { %868 = vmatpush.msra.mxu2 %v3925_v63  ;;  %915 = vmatpush.msra.mxu3 %v3903_v52  ;;  %v834_v48 = vsub.f32 %v4013_v2, %v833_v18 }
  0x5c   : > { %782 = vmatpush.msra.mxu1 %v781_v19  ;;  %721 = vmatpush.msra.mxu0 %v3922_v62  ;;  %v817_v19 = vand.u32 4294901760, %v816_v8  ;;  %v735_v25 = vsub.f32 %v733_v60, %v734_v12 }
  0x5d   : > { %871 = vmatpush.msra.mxu2 %v3938_v5  ;;  %917 = vmatpush.msra.mxu3 %v3922_v62 }
  0x5e   : > { %788 = vmatpush.msra.mxu1 %v787_v47  ;;  %723 = vmatpush.msra.mxu0 %v3935_v4  ;;  %v823_v47 = vand.u32 4294901760, %v822_v14  ;;  %v736_v56 = vand.u32 4294901760, %v735_v25 }
  0x5f   : > { %874 = vmatpush.msra.mxu2 %v3951_v11  ;;  %919 = vmatpush.msra.mxu3 %v3935_v4 }
  0x60   : > { %794 = vmatpush.msra.mxu1 %v793_v55  ;;  %725 = vmatpush.msra.mxu0 %v3943_v7  ;;  %v829_v55 = vand.u32 4294901760, %v828_v24 }
  0x61   : > { %877 = vmatpush.msra.mxu2 %v3964_v17  ;;  %921 = vmatpush.msra.mxu3 %v3943_v7 }
  0x62   : > { %800 = vmatpush.msra.mxu1 %v799_v61  ;;  %727 = vmatpush.msra.mxu0 %v3961_v16  ;;  %v835_v61 = vand.u32 4294901760, %v834_v48 }
  0x63   : > { %880 = vmatpush.msra.mxu2 %v3968_v23  ;;  %923 = vmatpush.msra.mxu3 %v3961_v16 }
  0x64   : > { %806 = vmatpush.msra.mxu1 %v805_v6  ;;  %729 = vmatpush.msra.mxu0 %v3978_v30 }
  0x65   : > { %883 = vmatpush.msra.mxu2 %v3992_v53  ;;  %925 = vmatpush.msra.mxu3 %v3978_v30 }
  0x66   : > { %812 = vmatpush.msra.mxu1 %v811_v13  ;;  %731 = vmatpush.msra.mxu0 %v3982_v43 }
  0x67   : > { %886 = vmatpush.msra.mxu2 %v4002_v59  ;;  %927 = vmatpush.msra.mxu3 %v3982_v43 }
  0x68   : > { %938 = vmatpush.msrb.mxu0 %v743_v39  ;;  %818 = vmatpush.msra.mxu1 %v817_v19 }
  0x69   : > { %889 = vmatpush.msra.mxu2 %v4013_v2  ;;  %931 = vmatmul.f32.vlgmr.msra.gmra.mxu3 %v734_v12 }
  0x6a   : > { %942 = vmatpush.msrb.mxu0 %v749_v40  ;;  %824 = vmatpush.msra.mxu1 %v823_v47 }
  0x6b   : > { %892 = vmatmul.f32.vlgmr.msra.gmra.mxu2 %v733_v60  ;;  %737 = vmatmul.f32.vlgmr.msra.gmra.mxu0 %v736_v56 }
  0x6c   : > { %946 = vmatpush.msrb.mxu0 %v755_v41  ;;  %830 = vmatpush.msra.mxu1 %v829_v55 }
  0x6e   : > { %950 = vmatpush.msrb.mxu0 %v761_v44  ;;  %836 = vmatpush.msra.mxu1 %v835_v61 }
  0x6f   : > { %838 = vmatmul.f32.vlgmr.msra.gmra.mxu1 %v3980_v35 }
  0x70   : > { %1005 = vmatpush.msrb.mxu1 %v3835_v20  ;;  %954 = vmatpush.msrb.mxu0 %v767_v50 }
  0x72   : > { %1007 = vmatpush.msrb.mxu1 %v3837_v21  ;;  %958 = vmatpush.msrb.mxu0 %v773_v51 }
  0x74   : > { %1009 = vmatpush.msrb.mxu1 %v3839_v22  ;;  %962 = vmatpush.msrb.mxu0 %v779_v58 }
  0x76   : > { %1011 = vmatpush.msrb.mxu1 %v3844_v26  ;;  %966 = vmatpush.msrb.mxu0 %v785_v3 }
  0x78   : > { %1013 = vmatpush.msrb.mxu1 %v3846_v27  ;;  %970 = vmatpush.msrb.mxu0 %v791_v10 }
  0x7a   : > { %1015 = vmatpush.msrb.mxu1 %v3848_v28  ;;  %974 = vmatpush.msrb.mxu0 %v797_v15 }
  0x7c   : > { %1017 = vmatpush.msrb.mxu1 %v3862_v34  ;;  %978 = vmatpush.msrb.mxu0 %v803_v29  ;;  %v682_v34 = vld [vmem:[#allocation2] sm:$0xff] }
  0x7e   : > { %1019 = vmatpush.msrb.mxu1 %v3879_v42  ;;  %982 = vmatpush.msrb.mxu0 %v809_v49 }
  0x80   : > { %1021 = vmatpush.msrb.mxu1 %v3884_v45  ;;  %986 = vmatpush.msrb.mxu0 %v815_v54 }
  0x82   : > { %1023 = vmatpush.msrb.mxu1 %v3903_v52  ;;  %990 = vmatpush.msrb.mxu0 %v821_v1 }
  0x84   : > { %1025 = vmatpush.msrb.mxu1 %v3922_v62  ;;  %994 = vmatpush.msrb.mxu0 %v827_v9 }
  0x86   : > { %1027 = vmatpush.msrb.mxu1 %v3935_v4  ;;  %998 = vmatpush.msrb.mxu0 %v833_v18 }
  0x87   : > { %1000 = vmatmul.f32.vlgmr.msrb.gmra.mxu0 %v3980_v35 }
  0x88   : > { %1029 = vmatpush.msrb.mxu1 %v3943_v7 }
  0x8a   : > { %1031 = vmatpush.msrb.mxu1 %v3961_v16 }
  0x8c   : > { %1033 = vmatpush.msrb.mxu1 %v3978_v30 }
  0x8e   : > { %1035 = vmatpush.msrb.mxu1 %v3982_v43 }
  0x8f   : > { %1037 = vmatmul.f32.vlgmr.msrb.gmra.mxu1 %v3980_v35 }
  0xe8   : > { %v738_v21 = vpop.f32.mrf.mxu0 }
  0xec   : > { %v839_v20 = vpop.f32.mrf.mxu1  ;;  %v932_v28 = vpop.f32.mrf.mxu3 }
  0xed   : > { %v840_v22 = vadd.f32 %v839_v20, %v738_v21 }
  0xee   : > { %v893_v26 = vpop.f32.mrf.mxu2 }
  0xef   : > { %v894_v27 = vadd.f32 %v893_v26, %v840_v22 }
  0xf1   : > { %v933_v31 = vadd.f32 %v932_v28, %v894_v27 }
 0x104   : > { %v1001_v32 = vpop.f32.mrf.mxu0 }
 0x105   : > { %v1002_v33 = vadd.f32 %v1001_v32, %v933_v31 }
 0x10c   : > { %v1038_v36 = vpop.f32.mrf.mxu1 }
 0x10d   : > { %v1039_v37 = vadd.f32 %v1038_v36, %v1002_v33  ;;  %1046 = sbr.rel (%p3484_p13) target bundleno = 1741 (0x6cd), region = 134 }
 0x10f   : > { %v1041_v38 = vadd.f32 %v1039_v37, %v682_v34 }
 0x111   : > { %1042 = vst [vmem:[#allocation2] sm:$0xff] %v1041_v38 }
 0x112   : > { %v1051_v39 = vld [vmem:[%s4424_s3 + $0x8] sm:$0xff]  ;;  %vm1062_vm0 = vcmask 64512   ;;  %v3643_v41 = vmov 0   ;;  %v1048_v44 = vld [vmem:[%s4423_s2] sm:$0xff]  ;;  %v3496_v30 = vld [vmem:[%s4436_s15 + $0x18] sm:$0xff]  ;;  %vm1298_vm1 = vcmask 130048  }
 0x113   : > { %3558 = vset.pattern.permute.xlu0 %v3643_v41  ;;  %v1049_v45 = vld [vmem:[%s4423_s2 + $0x8] sm:$0xff]  ;;  %3559 = vset.pattern.permute.xlu1 %v3643_v41  ;;  %v1064_v46 = vsel %vm1062_vm0, %v1048_v44, 0  ;;  %v1050_v3 = vld [vmem:[%s4424_s3] sm:$0xff]  ;;  %v3491_v35 = vld [vmem:[%s4431_s10 + $0x10] sm:$0xff] }
 0x114   : > { %1059 = vperm.xlu0 %3558, %v1051_v39   ;;  %v1067_v50 = vsel %vm1062_vm0, %v1049_v45, 0  ;;  %3560 = vset.pattern.permute.xlu2 %v3643_v41  ;;  %v1086_v52 = vand.u32 4294901760, %v1064_v46  ;;  %v2006_v17 = vld [vmem:[%s4431_s10 + $0x8] sm:$0xff]  ;;  %v2436_v29 = vld [vmem:[%s4434_s13] sm:$0xff] }
 0x115   : > { %v1094_v57 = vand.u32 4294901760, %v1067_v50  ;;  %v1783_v43 = vld [vmem:[%s4427_s6] sm:$0xff]  ;;  %v1287_v25 = vld [vmem:[%s4426_s5 + $0x8] sm:$0xff] }
 0x116   : > { %v1087_v58 = vsub.f32 %v1064_v46, %v1086_v52  ;;  %1295 = vperm.xlu1 %3559, %v1287_v25   ;;  %v1286_v20 = vld [vmem:[%s4426_s5] sm:$0xff]  ;;  %v2636_v46 = vld [vmem:[%s4436_s15 + $0x8] sm:$0xff] }
 0x117   : > { %v1095_v63 = vsub.f32 %v1067_v50, %v1094_v57  ;;  %v2005_v37 = vld [vmem:[%s4431_s10] sm:$0xff] }
 0x118   : > { %v1047_v40 = vld [vmem:[#allocation2] sm:$0xff]  ;;  %v1088_v4 = vand.u32 4294901760, %v1087_v58 }
 0x119   : > { %v4091_v42 = vand.u32 4294901760, %v1047_v40  ;;  %v1096_v11 = vand.u32 4294901760, %v1095_v63  ;;  %v1284_v38 = vld [vmem:[%s4425_s4] sm:$0xff] }
 0x11a   : > { %v1089_v7 = vsub.f32 %v1087_v58, %v1088_v4  ;;  %v1300_v45 = vsel %vm1298_vm1, %v1284_v38, 0 }
 0x11b   : > { %v4102_v51 = vsub.f32 %v1047_v40, %v4091_v42  ;;  %1085 = vmatpush.msra.mxu0 %v4091_v42  ;;  %1178 = vmatpush.msra.mxu3 %v4091_v42  ;;  %v1097_v16 = vsub.f32 %v1095_v63, %v1096_v11 }
 0x11c   : > { %1182 = vmatmul.f32.vlgmr.msra.gmra.mxu3 %v1088_v4  ;;  %1054 = vperm.xlu0 %3558, %v1050_v3   ;;  %v1090_v15 = vand.u32 4294901760, %v1089_v7  ;;  %v1285_v3 = vld [vmem:[%s4425_s4 + $0x8] sm:$0xff] }
 0x11d   : > { %1150 = vmatpush.msra.mxu2 %v4102_v51  ;;  %v4108_v62 = vand.u32 4294901760, %v4102_v51  ;;  %v1098_v23 = vand.u32 4294901760, %v1097_v16 }
 0x11e   : > { %1153 = vmatmul.f32.vlgmr.msra.gmra.mxu2 %v1087_v58  ;;  %1091 = vmatmul.f32.vlgmr.msra.gmra.mxu0 %v1090_v15  ;;  %v3495_v15 = vld [vmem:[%s4436_s15 + $0x10] sm:$0xff] }
 0x11f   : > { %v1121_v5 = vsub.f32 %v4102_v51, %v4108_v62  ;;  %1210 = vmatpush.msrb.mxu0 %v4108_v62  ;;  %1290 = vperm.xlu1 %3559, %v1286_v20  }
 0x121   : > { %v4116_v10 = vand.u32 4294901760, %v1121_v5 }
 0x123   : > { %1123 = vmatpush.msra.mxu1 %v4116_v10 }
 0x124   : > { %1125 = vmatmul.f32.vlgmr.msra.gmra.mxu1 %v1086_v52  ;;  %1188 = vmatmul.f32.gmra.mxu3 %v1096_v11 }
 0x125   : > { %1236 = vmatpush.msrb.mxu1 %v4091_v42  ;;  %2014 = vperm.xlu0 %3558, %v2006_v17  }
 0x126   : > { %1158 = vmatmul.f32.gmra.mxu2 %v1095_v63  ;;  %1099 = vmatmul.f32.gmra.mxu0 %v1098_v23  ;;  %v1303_v23 = vsel %vm1298_vm1, %v1285_v3, 0 }
 0x127   : > { %2009 = vperm.xlu1 %3559, %v2005_v37  }
 0x12c   : > { %1129 = vmatmul.f32.gmra.mxu1 %v1094_v57 }
 0x12d   : > { %2440 = vperm.xlu0 %3558, %v2436_v29  }
 0x12e   : > { %1212 = vmatmul.f32.vlgmr.msrb.gmra.mxu0 %v1086_v52 }
 0x12f   : > { %2644 = vperm.xlu1 %3559, %v2636_v46  }
 0x134   : > { %1238 = vmatmul.f32.vlgmr.msrb.gmra.mxu1 %v1086_v52 }
 0x135   : > { %2858 = vperm.xlu0 %3558, %v3496_v30  }
 0x136   : > { %1216 = vmatmul.f32.gmra.mxu0 %v1094_v57 }
 0x137   : > { %2853 = vperm.xlu1 %3559, %v3495_v15  }
 0x13c   : > { %1242 = vmatmul.f32.gmra.mxu1 %v1094_v57  ;;  %v4151_v57 = vand.u32 4294901760, %v1300_v45 }
 0x13d   : > { %2225 = vperm.xlu0 %3558, %v3491_v35  }
 0x13e   : > { %v1324_v11 = vsub.f32 %v1300_v45, %v4151_v57 }
 0x145   : > { %1787 = vperm.xlu0 %3558, %v1783_v43   ;;  %v1325_v43 = vand.u32 4294901760, %v1324_v11 }
 0x186   : > { %v1060_v49 = vpop.permute.xlu0 %1059 }
 0x18e   : > { %v1055_v59 = vpop.permute.xlu0 %1054 }
 0x19b   : > { %v1092_v54 = vpop.f32.mrf.mxu0 }
 0x19c   : > { %v1093_v60 = vadd.f32 %v1092_v54, %v1055_v59 }
 0x19f   : > { %v1183_v8 = vpop.f32.mrf.mxu3 }
 0x1a1   : > { %v1126_v53 = vpop.f32.mrf.mxu1  ;;  %v1154_v0 = vpop.f32.mrf.mxu2 }
 0x1a2   : > { %v1127_v1 = vadd.f32 %v1126_v53, %v1093_v60 }
 0x1a3   : > { %v1100_v6 = vpop.f32.mrf.mxu0 }
 0x1a4   : > { %v1155_v9 = vadd.f32 %v1154_v0, %v1127_v1  ;;  %v1101_v12 = vadd.f32 %v1100_v6, %v1060_v49  ;;  %v1331_v49 = vand.u32 4294901760, %v1303_v23  ;;  %v1326_v1 = vsub.f32 %v1324_v11, %v1325_v43  ;;  %v3487_v6 = vld [vmem:[%s4426_s5 + $0x10] sm:$0xff] }
 0x1a5   : > { %1541 = vperm.xlu1 %3559, %v3487_v6  }
 0x1a6   : > { %v1184_v13 = vadd.f32 %v1183_v8, %v1155_v9 }
 0x1a7   : > { %v1189_v56 = vpop.f32.mrf.mxu3 }
 0x1a9   : > { %v1130_v2 = vpop.f32.mrf.mxu1  ;;  %v1159_v19 = vpop.f32.mrf.mxu2 }
 0x1aa   : > { %v1131_v14 = vadd.f32 %v1130_v2, %v1101_v12  ;;  %v1332_v2 = vsub.f32 %v1303_v23, %v1331_v49 }
 0x1ab   : > { %v1213_v24 = vpop.f32.mrf.mxu0 }
 0x1ac   : > { %v1214_v47 = vadd.f32 %v1213_v24, %v1184_v13  ;;  %v1160_v48 = vadd.f32 %v1159_v19, %v1131_v14  ;;  %v1327_v14 = vand.u32 4294901760, %v1326_v1 }
 0x1ae   : > { %v1190_v21 = vadd.f32 %v1189_v56, %v1160_v48  ;;  %v1784_v48 = vld [vmem:[%s4427_s6 + $0x8] sm:$0xff] }
 0x1af   : > { %1792 = vperm.xlu1 %3559, %v1784_v48  }
 0x1b1   : > { %v1239_v18 = vpop.f32.mrf.mxu1 }
 0x1b2   : > { %v1240_v55 = vadd.f32 %v1239_v18, %v1214_v47  ;;  %v1333_v18 = vand.u32 4294901760, %v1332_v2 }
 0x1b3   : > { %v1217_v26 = vpop.f32.mrf.mxu0 }
 0x1b4   : > { %v1246_v61 = vsub.f32 0.0, %v1240_v55  ;;  %v1218_v28 = vadd.f32 %v1217_v26, %v1190_v21  ;;  %v1334_v47 = vsub.f32 %v1332_v2, %v1333_v18 }
 0x1b6   : > { %v1248_v22 = vmul.f32 1.442695, %v1246_v61  ;;  %v1335_v20 = vand.u32 4294901760, %v1334_v47 }
 0x1b8   : > { %3561 = vpow2.f32 %v1248_v22  ;;  %v1296_v22 = vpop.permute.xlu1 %1295 }
 0x1b9   : > { %v1243_v27 = vpop.f32.mrf.mxu1 }
 0x1ba   : > { %v1244_v31 = vadd.f32 %v1243_v27, %v1218_v28 }
 0x1bc   : > { %v1247_v32 = vsub.f32 0.0, %v1244_v31 }
 0x1be   : > { %v3562_v33 = vpop.eup %3561  ;;  %v1250_v34 = vmul.f32 1.442695, %v1247_v32 }
 0x1bf   : > { %v1252_v36 = vadd.f32 1.0, %v3562_v33 }
 0x1c0   : > { %3563 = vpow2.f32 %v1250_v34  ;;  %v1291_v27 = vpop.permute.xlu1 %1290 }
 0x1c1   : > { %3565 = vrcp.f32 %v1252_v36  ;;  %v1265_v52 = vand.u32 2147483648, %v1252_v36  ;;  %v1263_v63 = vand.u32 2147483647, %v1252_v36  ;;  %vm1259_vm3 = vweird.f32 %v1252_v36 }
 0x1c3   : > { %v1266_v7 = vor.u32 1.1754944e-38, %v1265_v52  ;;  %vm1264_vm5 = vcmp.eq.f32.partialorder %v1263_v63, 8.507059e+37 }
 0x1c6   : > { %v3564_v39 = vpop.eup %3563 }
 0x1c7   : > { %v3566_v40 = vpop.eup %3565  ;;  %v1253_v41 = vadd.f32 1.0, %v3564_v39 }
 0x1c8   : > { %v1255_v44 = vmul.f32 %v3566_v40, %v1252_v36  ;;  %vm1260_vm2 = vweird.f32 %v3566_v40 }
 0x1c9   : > { %3567 = vrcp.f32 %v1253_v41  ;;  %vm1261_vm4 = vmor %vm1259_vm3, %vm1260_vm2  ;;  %v1280_v35 = vand.u32 2147483648, %v1253_v41  ;;  %v1278_v54 = vand.u32 2147483647, %v1253_v41  ;;  %vm1274_vm7 = vweird.f32 %v1253_v41 }
 0x1ca   : > { %v1256_v50 = vsub.f32 1.0, %v1255_v44 }
 0x1cb   : > { %v1281_v0 = vor.u32 1.1754944e-38, %v1280_v35  ;;  %vm1279_vm9 = vcmp.eq.f32.partialorder %v1278_v54, 8.507059e+37 }
 0x1cc   : > { %v1257_v58 = vmul.f32 %v3566_v40, %v1256_v50 }
 0x1ce   : > { %v1258_v4 = vadd.f32 %v3566_v40, %v1257_v58 }
 0x1cf   : > { %v3568_v5 = vpop.eup %3567 }
 0x1d0   : > { %v1270_v16 = vmul.f32 %v3568_v5, %v1253_v41  ;;  %v1262_v17 = vsel %vm1261_vm4, %v3566_v40, %v1258_v4  ;;  %vm1275_vm6 = vweird.f32 %v3568_v5 }
 0x1d1   : > { %v1267_v29 = vsel %vm1264_vm5, %v1266_v7, %v1262_v17  ;;  %vm1276_vm8 = vmor %vm1274_vm7, %vm1275_vm6 }
 0x1d2   : > { %v1271_v30 = vsub.f32 1.0, %v1270_v16  ;;  %v1321_v59 = vand.u32 4294901760, %v1267_v29 }
 0x1d4   : > { %v1272_v53 = vmul.f32 %v3568_v5, %v1271_v30  ;;  %v1361_v9 = vsub.f32 %v1267_v29, %v1321_v59  ;;  %v3485_v30 = vld [vmem:[%s4425_s4 + $0x10] sm:$0xff] }
 0x1d5   : > { %v1550_v54 = vsel %vm1298_vm1, %v3485_v30, 0  ;;  %v3492_v30 = vld [vmem:[%s4431_s10 + $0x18] sm:$0xff] }
 0x1d6   : > { %v1273_v60 = vadd.f32 %v3568_v5, %v1272_v53  ;;  %v1362_v24 = vand.u32 4294901760, %v1361_v9  ;;  %v4177_v1 = vand.u32 4294901760, %v1550_v54 }
 0x1d8   : > { %v1277_v8 = vsel %vm1276_vm8, %v3568_v5, %v1273_v60  ;;  %v1363_v56 = vsub.f32 %v1361_v9, %v1362_v24 }
 0x1d9   : > { %v1282_v12 = vsel %vm1279_vm9, %v1281_v0, %v1277_v8  ;;  %v3486_v8 = vld [vmem:[%s4425_s4 + $0x18] sm:$0xff] }
 0x1da   : > { %v1319_v13 = vand.u32 4294901760, %v1282_v12  ;;  %v1364_v21 = vand.u32 4294901760, %v1363_v56 }
 0x1dc   : > { %1320 = vmatpush.msrb.mxu2 %v1319_v13  ;;  %1421 = vmatpush.msra.mxu1 %v1319_v13  ;;  %v1355_v19 = vsub.f32 %v1282_v12, %v1319_v13 }
 0x1de   : > { %1322 = vmatpush.msrb.mxu2 %v1321_v59  ;;  %1391 = vmatpush.msra.mxu0 %v1355_v19  ;;  %v1356_v25 = vand.u32 4294901760, %v1355_v19 }
 0x1df   : > { %1423 = vmatpush.msra.mxu1 %v1321_v59  ;;  %1328 = vmatmul.f32.vlgmr.msrb.gmra.mxu2 %v1327_v14  ;;  %v1574_v14 = vsub.f32 %v1550_v54, %v4177_v1 }
 0x1e0   : > { %1394 = vmatpush.msra.mxu0 %v1361_v9  ;;  %1454 = vmatpush.msra.mxu2 %v1356_v25  ;;  %v1357_v55 = vsub.f32 %v1355_v19, %v1356_v25  ;;  %v1553_v25 = vsel %vm1298_vm1, %v3486_v8, 0 }
 0x1e1   : > { %1397 = vmatmul.f32.vlgmr.msra.gmra.mxu0 %v1324_v11  ;;  %1427 = vmatmul.f32.vlgmr.msra.gmra.mxu1 %v1325_v43  ;;  %v1575_v56 = vand.u32 4294901760, %v1574_v14 }
 0x1e2   : > { %1458 = vmatpush.msra.mxu2 %v1362_v24  ;;  %v1358_v61 = vand.u32 4294901760, %v1357_v55 }
 0x1e4   : > { %1359 = vmatpush.msrb.mxu3 %v1358_v61  ;;  %v4187_v61 = vand.u32 4294901760, %v1553_v25 }
 0x1e6   : > { %1365 = vmatpush.msrb.mxu3 %v1364_v21 }
 0x1e7   : > { %1336 = vmatmul.f32.gmra.mxu2 %v1335_v20  ;;  %1367 = vmatmul.f32.vlgmr.msrb.gmra.mxu3 %v4151_v57 }
 0x1e8   : > { %1483 = vmatpush.msra.mxu3 %v1319_v13 }
 0x1e9   : > { %1402 = vmatmul.f32.gmra.mxu0 %v1332_v2  ;;  %1433 = vmatmul.f32.gmra.mxu1 %v1333_v18  ;;  %v1806_v18 = vld [vmem:[%s4429_s8] sm:$0xff] }
 0x1ea   : > { %1485 = vmatpush.msra.mxu3 %v1321_v59  ;;  %v1807_v59 = vld [vmem:[%s4429_s8 + $0x8] sm:$0xff] }
 0x1eb   : > { %1815 = vperm.xlu2 %3560, %v1807_v59  }
 0x1ef   : > { %1371 = vmatmul.f32.gmra.mxu3 %v1331_v49  ;;  %1460 = vmatmul.f32.vlgmr.msra.gmra.mxu2 %v4151_v57 }
 0x1f3   : > { %1810 = vperm.xlu2 %3560, %v1806_v18  }
 0x1f7   : > { %1464 = vmatmul.f32.gmra.mxu2 %v1331_v49  ;;  %1487 = vmatmul.f32.vlgmr.msra.gmra.mxu3 %v4151_v57 }
 0x1ff   : > { %1491 = vmatmul.f32.gmra.mxu3 %v1331_v49 }
 0x245   : > { %v1816_v59 = vpop.permute.xlu2 %1815 }
 0x25e   : > { %v1398_v33 = vpop.f32.mrf.mxu0  ;;  %v1428_v36 = vpop.f32.mrf.mxu1 }
 0x262   : > { %v1329_v26 = vpop.f32.mrf.mxu2 }
 0x263   : > { %v1330_v32 = vadd.f32 %v1329_v26, %v1291_v27 }
 0x266   : > { %v1403_v45 = vpop.f32.mrf.mxu0  ;;  %v1434_v58 = vpop.f32.mrf.mxu1 }
 0x26a   : > { %v1337_v28 = vpop.f32.mrf.mxu2  ;;  %v1368_v31 = vpop.f32.mrf.mxu3 }
 0x26b   : > { %v1369_v34 = vadd.f32 %v1368_v31, %v1330_v32  ;;  %v1338_v38 = vadd.f32 %v1337_v28, %v1296_v22  ;;  %v1576_v28 = vsub.f32 %v1574_v14, %v1575_v56  ;;  %v1582_v31 = vsub.f32 %v1553_v25, %v4187_v61  ;;  %v1804_v32 = vld [vmem:[%s4428_s7] sm:$0xff] }
 0x26d   : > { %v1399_v39 = vadd.f32 %v1398_v33, %v1369_v34  ;;  %v2437_v33 = vld [vmem:[%s4434_s13 + $0x8] sm:$0xff] }
 0x26e   : > { %2445 = vperm.xlu2 %3560, %v2437_v33   ;;  %v4234_v33 = vpop.permute.xlu0 %2014 }
 0x26f   : > { %v1429_v41 = vadd.f32 %v1428_v36, %v1399_v39  ;;  %v1819_v39 = vsel %vm1062_vm0, %v1804_v32, 0 }
 0x272   : > { %v1372_v37 = vpop.f32.mrf.mxu3  ;;  %v1461_v40 = vpop.f32.mrf.mxu2 }
 0x273   : > { %v1373_v44 = vadd.f32 %v1372_v37, %v1338_v38  ;;  %v1462_v46 = vadd.f32 %v1461_v40, %v1429_v41  ;;  %v1577_v40 = vand.u32 4294901760, %v1576_v28  ;;  %v1583_v41 = vand.u32 4294901760, %v1582_v31 }
 0x275   : > { %v1404_v52 = vadd.f32 %v1403_v45, %v1373_v44 }
 0x277   : > { %v1435_v4 = vadd.f32 %v1434_v58, %v1404_v52  ;;  %v1584_v52 = vsub.f32 %v1582_v31, %v1583_v41 }
 0x27a   : > { %v1488_v50 = vpop.f32.mrf.mxu3  ;;  %v1465_v3 = vpop.f32.mrf.mxu2 }
 0x27b   : > { %v1489_v57 = vadd.f32 %v1488_v50, %v1462_v46  ;;  %v1466_v7 = vadd.f32 %v1465_v3, %v1435_v4  ;;  %v1841_v46 = vand.u32 4294901760, %v1819_v39  ;;  %v2635_v4 = vld [vmem:[%s4436_s15] sm:$0xff] }
 0x27c   : > { %2639 = vperm.xlu2 %3560, %v2635_v4  }
 0x27d   : > { %v1495_v63 = vsub.f32 0.0, %v1489_v57  ;;  %v1805_v57 = vld [vmem:[%s4428_s7 + $0x8] sm:$0xff]  ;;  %v1842_v3 = vsub.f32 %v1819_v39, %v1841_v46 }
 0x27f   : > { %v1497_v5 = vmul.f32 1.442695, %v1495_v63 }
 0x281   : > { %3569 = vpow2.f32 %v1497_v5 }
 0x282   : > { %v1492_v11 = vpop.f32.mrf.mxu3 }
 0x283   : > { %v1493_v15 = vadd.f32 %v1492_v11, %v1466_v7  ;;  %v1822_v7 = vsel %vm1062_vm0, %v1805_v57, 0  ;;  %v1585_v11 = vand.u32 4294901760, %v1584_v52 }
 0x284   : > { %2230 = vperm.xlu2 %3560, %v3492_v30  }
 0x285   : > { %v1496_v16 = vsub.f32 0.0, %v1493_v15 }
 0x287   : > { %v3570_v17 = vpop.eup %3569  ;;  %v1499_v23 = vmul.f32 1.442695, %v1496_v16  ;;  %v1843_v16 = vand.u32 4294901760, %v1842_v3 }
 0x288   : > { %v1501_v29 = vadd.f32 1.0, %v3570_v17  ;;  %v1849_v17 = vand.u32 4294901760, %v1822_v7 }
 0x289   : > { %3571 = vpow2.f32 %v1499_v23  ;;  %v1844_v23 = vsub.f32 %v1842_v3, %v1843_v16 }
 0x28a   : > { %3573 = vrcp.f32 %v1501_v29  ;;  %v1514_v0 = vand.u32 2147483648, %v1501_v29  ;;  %v1512_v6 = vand.u32 2147483647, %v1501_v29  ;;  %vm1508_vm11 = vweird.f32 %v1501_v29 }
 0x28c   : > { %v1515_v13 = vor.u32 1.1754944e-38, %v1514_v0  ;;  %vm1513_vm13 = vcmp.eq.f32.partialorder %v1512_v6, 8.507059e+37  ;;  %v4222_v0 = vpop.permute.xlu1 %2009 }
 0x28f   : > { %v3572_v35 = vpop.eup %3571 }
 0x290   : > { %v3574_v43 = vpop.eup %3573  ;;  %v1502_v49 = vadd.f32 1.0, %v3572_v35  ;;  %v1845_v35 = vand.u32 4294901760, %v1844_v23 }
 0x291   : > { %v1504_v53 = vmul.f32 %v3574_v43, %v1501_v29  ;;  %vm1509_vm10 = vweird.f32 %v3574_v43  ;;  %v1850_v29 = vsub.f32 %v1822_v7, %v1849_v17 }
 0x292   : > { %3575 = vrcp.f32 %v1502_v49  ;;  %vm1510_vm12 = vmor %vm1508_vm11, %vm1509_vm10  ;;  %v1529_v55 = vand.u32 2147483648, %v1502_v49  ;;  %v1527_v21 = vand.u32 2147483647, %v1502_v49  ;;  %vm1523_vm15 = vweird.f32 %v1502_v49 }
 0x293   : > { %v1505_v60 = vsub.f32 1.0, %v1504_v53  ;;  %v3488_v53 = vld [vmem:[%s4426_s5 + $0x18] sm:$0xff] }
 0x294   : > { %v1530_v27 = vor.u32 1.1754944e-38, %v1529_v55  ;;  %vm1528_vm3 = vcmp.eq.f32.partialorder %v1527_v21, 8.507059e+37  ;;  %1546 = vperm.xlu2 %3560, %v3488_v53   ;;  %v4226_v6 = vpop.permute.xlu1 %2644 }
 0x295   : > { %v1506_v2 = vmul.f32 %v3574_v43, %v1505_v60  ;;  %v1811_v60 = vpop.permute.xlu2 %1810 }
 0x297   : > { %v1507_v9 = vadd.f32 %v3574_v43, %v1506_v2 }
 0x298   : > { %v3576_v12 = vpop.eup %3575 }
 0x299   : > { %v1519_v19 = vmul.f32 %v3576_v12, %v1502_v49  ;;  %v1511_v24 = vsel %vm1510_vm12, %v3574_v43, %v1507_v9  ;;  %vm1524_vm14 = vweird.f32 %v3576_v12  ;;  %v1851_v43 = vand.u32 4294901760, %v1850_v29 }
 0x29a   : > { %v1516_v47 = vsel %vm1513_vm13, %v1515_v13, %v1511_v24  ;;  %vm1525_vm2 = vmor %vm1523_vm15, %vm1524_vm14 }
 0x29b   : > { %v1520_v48 = vsub.f32 1.0, %v1519_v19  ;;  %v1571_v22 = vand.u32 4294901760, %v1516_v47  ;;  %v1852_v49 = vsub.f32 %v1850_v29, %v1851_v43 }
 0x29c   : > { %v4230_v8 = vpop.permute.xlu1 %2853 }
 0x29d   : > { %v1521_v20 = vmul.f32 %v3576_v12, %v1520_v48  ;;  %v1611_v36 = vsub.f32 %v1516_v47, %v1571_v22  ;;  %v1853_v54 = vand.u32 4294901760, %v1852_v49 }
 0x29f   : > { %v1522_v26 = vadd.f32 %v3576_v12, %v1521_v20  ;;  %v1612_v45 = vand.u32 4294901760, %v1611_v36 }
 0x2a1   : > { %v1526_v34 = vsel %vm1525_vm2, %v3576_v12, %v1522_v26  ;;  %v1613_v63 = vsub.f32 %v1611_v36, %v1612_v45 }
 0x2a2   : > { %v1531_v37 = vsel %vm1528_vm3, %v1530_v27, %v1526_v34 }
 0x2a3   : > { %v1569_v38 = vand.u32 4294901760, %v1531_v37  ;;  %v1614_v15 = vand.u32 4294901760, %v1613_v63 }
 0x2a4   : > { %v1542_v13 = vpop.permute.xlu1 %1541 }
 0x2a5   : > { %1570 = vmatpush.msrb.mxu0 %v1569_v38  ;;  %1671 = vmatpush.msrb.mxu3 %v1569_v38  ;;  %v1605_v44 = vsub.f32 %v1531_v37, %v1569_v38 }
 0x2a7   : > { %1572 = vmatpush.msrb.mxu0 %v1571_v22  ;;  %1641 = vmatpush.msrb.mxu2 %v1605_v44  ;;  %v1606_v50 = vand.u32 4294901760, %v1605_v44 }
 0x2a8   : > { %1673 = vmatpush.msrb.mxu3 %v1571_v22  ;;  %1578 = vmatmul.f32.vlgmr.msrb.gmra.mxu0 %v1577_v40 }
 0x2a9   : > { %1644 = vmatpush.msrb.mxu2 %v1611_v36  ;;  %1704 = vmatpush.msra.mxu0 %v1606_v50  ;;  %v1607_v58 = vsub.f32 %v1605_v44, %v1606_v50 }
 0x2aa   : > { %1647 = vmatmul.f32.vlgmr.msrb.gmra.mxu2 %v1574_v14  ;;  %1677 = vmatmul.f32.vlgmr.msrb.gmra.mxu3 %v1575_v56 }
 0x2ab   : > { %1708 = vmatpush.msra.mxu0 %v1612_v45  ;;  %v1608_v5 = vand.u32 4294901760, %v1607_v58  ;;  %1840 = vmatpush.msra.mxu2 %v4091_v42  ;;  %v4236_v58 = vpop.permute.xlu0 %2440 }
 0x2ac   : > { %1878 = vmatpush.msra.mxu3 %v4116_v10 }
 0x2ad   : > { %1905 = vmatpush.msrb.mxu0 %v4102_v51  ;;  %1609 = vmatpush.msrb.mxu1 %v1608_v5 }
 0x2ae   : > { %1965 = vmatpush.msrb.mxu2 %v4108_v62  ;;  %1991 = vmatpush.msrb.mxu3 %v4091_v42 }
 0x2af   : > { %1615 = vmatpush.msrb.mxu1 %v1614_v15 }
 0x2b0   : > { %1586 = vmatmul.f32.gmra.mxu0 %v1585_v11  ;;  %1617 = vmatmul.f32.vlgmr.msrb.gmra.mxu1 %v4177_v1 }
 0x2b1   : > { %1733 = vmatpush.msra.mxu1 %v1569_v38 }
 0x2b2   : > { %1652 = vmatmul.f32.gmra.mxu2 %v1582_v31  ;;  %1683 = vmatmul.f32.gmra.mxu3 %v1583_v41 }
 0x2b3   : > { %1735 = vmatpush.msra.mxu1 %v1571_v22 }
 0x2b5   : > { %1933 = vmatpush.msrb.mxu1 %v4091_v42 }
 0x2b8   : > { %1621 = vmatmul.f32.gmra.mxu1 %v4187_v61  ;;  %1710 = vmatmul.f32.vlgmr.msra.gmra.mxu0 %v4177_v1 }
 0x2ba   : > { %1846 = vmatmul.f32.vlgmr.msra.gmra.mxu2 %v1845_v35  ;;  %1880 = vmatmul.f32.vlgmr.msra.gmra.mxu3 %v1841_v46 }
 0x2c0   : > { %1714 = vmatmul.f32.gmra.mxu0 %v4187_v61  ;;  %1737 = vmatmul.f32.vlgmr.msra.gmra.mxu1 %v4177_v1 }
 0x2c2   : > { %1854 = vmatmul.f32.gmra.mxu2 %v1853_v54  ;;  %1884 = vmatmul.f32.gmra.mxu3 %v1849_v17  ;;  %v4247_v54 = vpop.permute.xlu0 %2858 }
 0x2c8   : > { %1741 = vmatmul.f32.gmra.mxu1 %v4187_v61  ;;  %1908 = vmatmul.f32.vlgmr.msrb.gmra.mxu0 %v1842_v3  ;;  %v4224_v2 = vpop.permute.xlu2 %2445  ;;  %v2003_v3 = vld [vmem:[%s4457_s23] sm:$0xff] }
 0x2c9   : > { %v2018_v15 = vsel %vm1298_vm1, %v2003_v3, 0  ;;  %v3490_v3 = vld [vmem:[%s4457_s23 + $0x18] sm:$0xff] }
 0x2ca   : > { %1967 = vmatmul.f32.vlgmr.msrb.gmra.mxu2 %v1841_v46  ;;  %1993 = vmatmul.f32.vlgmr.msrb.gmra.mxu3 %v1841_v46 }
 0x2d0   : > { %1913 = vmatmul.f32.gmra.mxu0 %v1850_v29  ;;  %1937 = vmatmul.f32.vlgmr.msrb.gmra.mxu1 %v1843_v16  ;;  %v4245_v29 = vand.u32 4294901760, %v2018_v15 }
 0x2d2   : > { %1971 = vmatmul.f32.gmra.mxu2 %v1849_v17  ;;  %1997 = vmatmul.f32.gmra.mxu3 %v1849_v17 }
 0x2d6   : > { %v4228_v1 = vpop.permute.xlu2 %2639 }
 0x2d8   : > { %1943 = vmatmul.f32.gmra.mxu1 %v1851_v43 }
 0x2de   : > { %v4232_v12 = vpop.permute.xlu2 %2230 }
 0x2ee   : > { %v1547_v48 = vpop.permute.xlu2 %1546 }
 0x325   : > { %v1579_v9 = vpop.f32.mrf.mxu0 }
 0x326   : > { %v1580_v14 = vadd.f32 %v1579_v9, %v1542_v13  ;;  %v4250_v9 = vsub.f32 %v2018_v15, %v4245_v29  ;;  %v2004_v13 = vld [vmem:[%s4457_s23 + $0x8] sm:$0xff] }
 0x32d   : > { %v1587_v18 = vpop.f32.mrf.mxu0  ;;  %v1618_v19 = vpop.f32.mrf.mxu1 }
 0x32e   : > { %v1619_v24 = vadd.f32 %v1618_v19, %v1580_v14  ;;  %v1648_v25 = vpop.f32.mrf.mxu2  ;;  %v1678_v47 = vpop.f32.mrf.mxu3  ;;  %v1588_v61 = vadd.f32 %v1587_v18, %v1547_v48 }
 0x330   : > { %v1649_v55 = vadd.f32 %v1648_v25, %v1619_v24 }
 0x332   : > { %v1679_v56 = vadd.f32 %v1678_v47, %v1649_v55  ;;  %v2021_v55 = vsel %vm1298_vm1, %v2004_v13, 0 }
 0x335   : > { %v1622_v20 = vpop.f32.mrf.mxu1  ;;  %v1711_v21 = vpop.f32.mrf.mxu0 }
 0x336   : > { %v1623_v22 = vadd.f32 %v1622_v20, %v1588_v61  ;;  %v1712_v26 = vadd.f32 %v1711_v21, %v1679_v56  ;;  %v1653_v27 = vpop.f32.mrf.mxu2  ;;  %v1684_v28 = vpop.f32.mrf.mxu3  ;;  %v2043_v61 = vand.u32 4294901760, %v4250_v9 }
 0x338   : > { %v1654_v31 = vadd.f32 %v1653_v27, %v1623_v22 }
 0x33a   : > { %v1685_v32 = vadd.f32 %v1684_v28, %v1654_v31  ;;  %v4263_v28 = vand.u32 4294901760, %v2021_v55 }
 0x33d   : > { %v1715_v34 = vpop.f32.mrf.mxu0  ;;  %v1738_v36 = vpop.f32.mrf.mxu1 }
 0x33e   : > { %v1716_v37 = vadd.f32 %v1715_v34, %v1685_v32  ;;  %v1739_v38 = vadd.f32 %v1738_v36, %v1712_v26  ;;  %v1847_v39 = vpop.f32.mrf.mxu2  ;;  %v1881_v40 = vpop.f32.mrf.mxu3  ;;  %v2044_v34 = vsub.f32 %v4250_v9, %v2043_v61 }
 0x33f   : > { %v1848_v46 = vadd.f32 %v1847_v39, %v1811_v60 }
 0x340   : > { %v1745_v41 = vsub.f32 0.0, %v1739_v38  ;;  %v4266_v38 = vpop.permute.xlu0 %2225 }
 0x341   : > { %v1882_v7 = vadd.f32 %v1881_v40, %v1848_v46  ;;  %v2050_v40 = vsub.f32 %v2021_v55, %v4263_v28 }
 0x342   : > { %v1747_v44 = vmul.f32 1.442695, %v1745_v41 }
 0x344   : > { %3577 = vpow2.f32 %v1747_v44 }
 0x345   : > { %v1742_v45 = vpop.f32.mrf.mxu1  ;;  %v1909_v63 = vpop.f32.mrf.mxu0 }
 0x346   : > { %v1743_v50 = vadd.f32 %v1742_v45, %v1716_v37  ;;  %v1855_v52 = vpop.f32.mrf.mxu2  ;;  %v1885_v57 = vpop.f32.mrf.mxu3  ;;  %v1910_v17 = vadd.f32 %v1909_v63, %v1882_v7  ;;  %v2051_v7 = vand.u32 4294901760, %v2050_v40 }
 0x347   : > { %v1856_v30 = vadd.f32 %v1855_v52, %v1816_v59 }
 0x348   : > { %v1746_v4 = vsub.f32 0.0, %v1743_v50  ;;  %v2045_v50 = vand.u32 4294901760, %v2044_v34 }
 0x349   : > { %v1886_v18 = vadd.f32 %v1885_v57, %v1856_v30 }
 0x34a   : > { %v3578_v5 = vpop.eup %3577  ;;  %v1749_v11 = vmul.f32 1.442695, %v1746_v4 }
 0x34b   : > { %v4242_v16 = vadd.f32 1.0, %v3578_v5 }
 0x34c   : > { %3579 = vpow2.f32 %v1749_v11 }
 0x34d   : > { %3581 = vrcp.f32 %v4242_v16  ;;  %v1938_v23 = vpop.f32.mrf.mxu1  ;;  %v1914_v60 = vpop.f32.mrf.mxu0  ;;  %v1764_v46 = vand.u32 2147483648, %v4242_v16  ;;  %vm1758_vm5 = vweird.f32 %v4242_v16  ;;  %v1762_v63 = vand.u32 2147483647, %v4242_v16 }
 0x34e   : > { %v1939_v35 = vadd.f32 %v1938_v23, %v1910_v17  ;;  %v1968_v43 = vpop.f32.mrf.mxu2  ;;  %v1994_v49 = vpop.f32.mrf.mxu3  ;;  %v1915_v47 = vadd.f32 %v1914_v60, %v1886_v18 }
 0x34f   : > { %v1765_v30 = vor.u32 1.1754944e-38, %v1764_v46  ;;  %vm1763_vm9 = vcmp.eq.f32.partialorder %v1762_v63, 8.507059e+37 }
 0x350   : > { %v1969_v53 = vadd.f32 %v1968_v43, %v1939_v35 }
 0x352   : > { %v3580_v14 = vpop.eup %3579  ;;  %v1995_v19 = vadd.f32 %v1994_v49, %v1969_v53  ;;  %v2052_v53 = vsub.f32 %v2050_v40, %v2051_v7 }
 0x353   : > { %v3582_v24 = vpop.eup %3581  ;;  %v1752_v25 = vadd.f32 1.0, %v3580_v14 }
 0x354   : > { %v1754_v59 = vmul.f32 %v3582_v24, %v4242_v16  ;;  %v4256_v48 = vmax.f32 %v1995_v19, 0.0  ;;  %vm1759_vm4 = vweird.f32 %v3582_v24  ;;  %v1788_v19 = vpop.permute.xlu0 %1787 }
 0x355   : > { %3583 = vrcp.f32 %v1752_v25  ;;  %v1944_v56 = vpop.f32.mrf.mxu1  ;;  %vm4277_vm6 = vmor %vm1758_vm5, %vm1759_vm4  ;;  %v1779_v4 = vand.u32 2147483648, %v1752_v25  ;;  %v1777_v11 = vand.u32 2147483647, %v1752_v25  ;;  %vm1773_vm8 = vweird.f32 %v1752_v25 }
 0x356   : > { %v1755_v20 = vsub.f32 1.0, %v1754_v59  ;;  %v1945_v21 = vadd.f32 %v1944_v56, %v1915_v47  ;;  %v1972_v22 = vpop.f32.mrf.mxu2  ;;  %v4261_v26 = vand.u32 4294901760, %v4256_v48  ;;  %v1998_v27 = vpop.f32.mrf.mxu3  ;;  %v2053_v56 = vand.u32 4294901760, %v2052_v53 }
 0x357   : > { %v1780_v49 = vor.u32 1.1754944e-38, %v1779_v4  ;;  %vm1778_vm11 = vcmp.eq.f32.partialorder %v1777_v11, 8.507059e+37 }
 0x358   : > { %v1756_v31 = vmul.f32 %v3582_v24, %v1755_v20  ;;  %v1973_v32 = vadd.f32 %v1972_v22, %v1945_v21  ;;  %v2079_v39 = vsub.f32 %v4256_v48, %v4261_v26 }
 0x35a   : > { %v1999_v36 = vadd.f32 %v1998_v27, %v1973_v32  ;;  %v1757_v45 = vadd.f32 %v3582_v24, %v1756_v31  ;;  %v2080_v5 = vand.u32 4294901760, %v2079_v39 }
 0x35b   : > { %v3584_v37 = vpop.eup %3583 }
 0x35c   : > { %v1769_v41 = vmul.f32 %v3584_v37, %v1752_v25  ;;  %v4271_v44 = vmax.f32 %v1999_v36, 0.0  ;;  %vm1774_vm7 = vweird.f32 %v3584_v37  ;;  %v1761_v23 = vsel %vm4277_vm6, %v3582_v24, %v1757_v45  ;;  %v1793_v24 = vpop.permute.xlu1 %1792 }
 0x35d   : > { %vm4285_vm10 = vmor %vm1773_vm8, %vm1774_vm7  ;;  %v1766_v60 = vsel %vm1763_vm9, %v1765_v30, %v1761_v23  ;;  %v2081_v14 = vsub.f32 %v2079_v39, %v2080_v5 }
 0x35e   : > { %v1770_v52 = vsub.f32 1.0, %v1769_v41  ;;  %v2037_v57 = vand.u32 4294901760, %v4271_v44  ;;  %v1795_v47 = vmul.f32 %v1788_v19, %v1766_v60 }
 0x35f   : > { %v2082_v20 = vand.u32 4294901760, %v2081_v14 }
 0x360   : > { %v1771_v15 = vmul.f32 %v3584_v37, %v1770_v52  ;;  %v2073_v17 = vsub.f32 %v4271_v44, %v2037_v57  ;;  %2038 = vmatpush.msra.mxu0 %v2037_v57  ;;  %2139 = vmatpush.msra.mxu3 %v2037_v57 }
 0x362   : > { %2040 = vmatpush.msra.mxu0 %v4261_v26  ;;  %2109 = vmatpush.msra.mxu2 %v2073_v17  ;;  %v2074_v16 = vand.u32 4294901760, %v2073_v17  ;;  %v1772_v35 = vadd.f32 %v3584_v37, %v1771_v15  ;;  %v2237_v15 = vsel %vm1298_vm1, %v3490_v3, 0 }
 0x363   : > { %2141 = vmatpush.msra.mxu3 %v4261_v26  ;;  %2046 = vmatmul.f32.vlgmr.msra.gmra.mxu0 %v2045_v50 }
 0x364   : > { %2112 = vmatpush.msra.mxu2 %v2079_v39  ;;  %2172 = vmatpush.msrb.mxu0 %v2074_v16  ;;  %v2075_v13 = vsub.f32 %v2073_v17, %v2074_v16  ;;  %v1776_v18 = vsel %vm4285_vm10, %v3584_v37, %v1772_v35  ;;  %v3489_v39 = vld [vmem:[%s4457_s23 + $0x10] sm:$0xff]  ;;  %v4318_v16 = vand.u32 4294901760, %v2237_v15 }
 0x365   : > { %2115 = vmatmul.f32.vlgmr.msra.gmra.mxu2 %v4250_v9  ;;  %2145 = vmatmul.f32.vlgmr.msra.gmra.mxu3 %v2043_v61  ;;  %v1781_v25 = vsel %vm1778_vm11, %v1780_v49, %v1776_v18 }
 0x366   : > { %2176 = vmatpush.msrb.mxu0 %v2080_v5  ;;  %v2076_v59 = vand.u32 4294901760, %v2075_v13  ;;  %v1796_v55 = vmul.f32 %v1793_v24, %v1781_v25  ;;  %v2266_v60 = vsub.f32 %v2237_v15, %v4318_v16  ;;  %v2434_v13 = vld [vmem:[%s4462_s16] sm:$0xff] }
 0x367   : > { %v2449_v19 = vsel %vm1062_vm0, %v2434_v13, 0 }
 0x368   : > { %2077 = vmatpush.msra.mxu1 %v2076_v59  ;;  %v4293_v21 = vadd.f32 %v1796_v55, %v1795_v47  ;;  %v2267_v25 = vand.u32 4294901760, %v2266_v60  ;;  %v2471_v55 = vand.u32 4294901760, %v2449_v19 }
 0x36a   : > { %2083 = vmatpush.msra.mxu1 %v2082_v20  ;;  %v2435_v20 = vld [vmem:[%s4462_s16 + $0x8] sm:$0xff] }
 0x36b   : > { %2054 = vmatmul.f32.gmra.mxu0 %v2053_v56  ;;  %2085 = vmatmul.f32.vlgmr.msra.gmra.mxu1 %v4245_v29 }
 0x36c   : > { %2201 = vmatpush.msrb.mxu1 %v2037_v57 }
 0x36d   : > { %2120 = vmatmul.f32.gmra.mxu2 %v2050_v40  ;;  %2151 = vmatmul.f32.gmra.mxu3 %v2051_v7 }
 0x36e   : > { %2203 = vmatpush.msrb.mxu1 %v4261_v26 }
 0x373   : > { %2089 = vmatmul.f32.gmra.mxu1 %v4263_v28  ;;  %2178 = vmatmul.f32.vlgmr.msrb.gmra.mxu0 %v4245_v29 }
 0x37b   : > { %2182 = vmatmul.f32.gmra.mxu0 %v4263_v28  ;;  %2205 = vmatmul.f32.vlgmr.msrb.gmra.mxu1 %v4245_v29 }
 0x383   : > { %2209 = vmatmul.f32.gmra.mxu1 %v4263_v28  ;;  %v2234_v28 = vsel %vm1298_vm1, %v3489_v39, 0 }
 0x3e0   : > { %v2047_v9 = vpop.f32.mrf.mxu0 }
 0x3e1   : > { %v2048_v27 = vadd.f32 %v2047_v9, %v4222_v0  ;;  %v4308_v0 = vand.u32 4294901760, %v2234_v28 }
 0x3e8   : > { %v2055_v61 = vpop.f32.mrf.mxu0  ;;  %v2086_v22 = vpop.f32.mrf.mxu1 }
 0x3e9   : > { %v2116_v31 = vpop.f32.mrf.mxu2  ;;  %v2087_v32 = vadd.f32 %v2086_v22, %v2048_v27  ;;  %v2146_v34 = vpop.f32.mrf.mxu3  ;;  %v2056_v40 = vadd.f32 %v2055_v61, %v4234_v33  ;;  %v2258_v33 = vsub.f32 %v2234_v28, %v4308_v0  ;;  %v2472_v22 = vsub.f32 %v2449_v19, %v2471_v55 }
 0x3eb   : > { %v2117_v26 = vadd.f32 %v2116_v31, %v2087_v32  ;;  %v2259_v30 = vand.u32 4294901760, %v2258_v33  ;;  %v2452_v31 = vsel %vm1062_vm0, %v2435_v20, 0 }
 0x3ed   : > { %v2147_v29 = vadd.f32 %v2146_v34, %v2117_v26  ;;  %v2260_v53 = vsub.f32 %v2258_v33, %v2259_v30  ;;  %v2479_v26 = vand.u32 4294901760, %v2452_v31 }
 0x3ef   : > { %v2261_v24 = vand.u32 4294901760, %v2260_v53  ;;  %v2480_v39 = vsub.f32 %v2452_v31, %v2479_v26 }
 0x3f0   : > { %v2090_v36 = vpop.f32.mrf.mxu1  ;;  %v2179_v37 = vpop.f32.mrf.mxu0 }
 0x3f1   : > { %v2091_v41 = vadd.f32 %v2090_v36, %v2056_v40  ;;  %v2121_v45 = vpop.f32.mrf.mxu2  ;;  %v2180_v46 = vadd.f32 %v2179_v37, %v2147_v29  ;;  %v2152_v63 = vpop.f32.mrf.mxu3  ;;  %v2473_v36 = vand.u32 4294901760, %v2472_v22 }
 0x3f3   : > { %v2122_v52 = vadd.f32 %v2121_v45, %v2091_v41  ;;  %v2474_v37 = vsub.f32 %v2472_v22, %v2473_v36 }
 0x3f5   : > { %v2153_v7 = vadd.f32 %v2152_v63, %v2122_v52 }
 0x3f8   : > { %v2206_v50 = vpop.f32.mrf.mxu1  ;;  %v2183_v5 = vpop.f32.mrf.mxu0 }
 0x3f9   : > { %v2207_v57 = vadd.f32 %v2206_v50, %v2180_v46  ;;  %v2184_v17 = vadd.f32 %v2183_v5, %v2153_v7 }
 0x3fb   : > { %v2213_v4 = vmax.f32 %v2207_v57, 0.0 }
 0x3fd   : > { %v4315_v11 = vadd.f32 %v2213_v4, %v4256_v48 }
 0x3ff   : > { %v2255_v43 = vand.u32 4294901760, %v4315_v11 }
 0x400   : > { %v2210_v23 = vpop.f32.mrf.mxu1 }
 0x401   : > { %v2211_v35 = vadd.f32 %v2210_v23, %v2184_v17  ;;  %v2295_v14 = vsub.f32 %v4315_v11, %v2255_v43 }
 0x403   : > { %v2214_v49 = vmax.f32 %v2211_v35, 0.0  ;;  %v2296_v47 = vand.u32 4294901760, %v2295_v14 }
 0x405   : > { %v4326_v48 = vadd.f32 %v2214_v49, %v4271_v44  ;;  %v2268_v44 = vsub.f32 %v2266_v60, %v2267_v25  ;;  %v2297_v61 = vsub.f32 %v2295_v14, %v2296_v47 }
 0x407   : > { %v2253_v18 = vand.u32 4294901760, %v4326_v48  ;;  %v2269_v32 = vand.u32 4294901760, %v2268_v44  ;;  %v2298_v34 = vand.u32 4294901760, %v2297_v61  ;;  %v2634_v61 = vld [vmem:[%s4463_s21 + $0x8] sm:$0xff] }
 0x409   : > { %2254 = vmatpush.msrb.mxu2 %v2253_v18  ;;  %2355 = vmatpush.msra.mxu1 %v2253_v18  ;;  %v2289_v59 = vsub.f32 %v4326_v48, %v2253_v18 }
 0x40b   : > { %2256 = vmatpush.msrb.mxu2 %v2255_v43  ;;  %2325 = vmatpush.msra.mxu0 %v2289_v59  ;;  %v2290_v56 = vand.u32 4294901760, %v2289_v59 }
 0x40c   : > { %2357 = vmatpush.msra.mxu1 %v2255_v43  ;;  %2262 = vmatmul.f32.vlgmr.msrb.gmra.mxu2 %v2261_v24 }
 0x40d   : > { %2328 = vmatpush.msra.mxu0 %v2295_v14  ;;  %2388 = vmatpush.msra.mxu2 %v2290_v56  ;;  %v2291_v9 = vsub.f32 %v2289_v59, %v2290_v56 }
 0x40e   : > { %2331 = vmatmul.f32.vlgmr.msra.gmra.mxu0 %v2258_v33  ;;  %2361 = vmatmul.f32.vlgmr.msra.gmra.mxu1 %v2259_v30 }
 0x40f   : > { %2392 = vmatpush.msra.mxu2 %v2296_v47  ;;  %v2292_v27 = vand.u32 4294901760, %v2291_v9  ;;  %2470 = vmatpush.msrb.mxu0 %v4091_v42 }
 0x410   : > { %2508 = vmatpush.msrb.mxu1 %v4116_v10  ;;  %v2481_v10 = vand.u32 4294901760, %v2480_v39 }
 0x411   : > { %2535 = vmatpush.msrb.mxu2 %v4102_v51  ;;  %2293 = vmatpush.msrb.mxu3 %v2292_v27  ;;  %v2475_v51 = vand.u32 4294901760, %v2474_v37 }
 0x412   : > { %2595 = vmatpush.msra.mxu0 %v4108_v62  ;;  %2621 = vmatpush.msra.mxu1 %v4091_v42  ;;  %v2482_v62 = vsub.f32 %v2480_v39, %v2481_v10 }
 0x413   : > { %2299 = vmatpush.msrb.mxu3 %v2298_v34 }
 0x414   : > { %2270 = vmatmul.f32.gmra.mxu2 %v2269_v32  ;;  %2301 = vmatmul.f32.vlgmr.msrb.gmra.mxu3 %v4308_v0  ;;  %v2483_v40 = vand.u32 4294901760, %v2482_v62 }
 0x415   : > { %2417 = vmatpush.msra.mxu3 %v2253_v18  ;;  %v2633_v18 = vld [vmem:[%s4463_s21] sm:$0xff] }
 0x416   : > { %2336 = vmatmul.f32.gmra.mxu0 %v2266_v60  ;;  %2367 = vmatmul.f32.gmra.mxu1 %v2267_v25  ;;  %v2648_v59 = vsel %vm1298_vm1, %v2633_v18, 0 }
 0x417   : > { %2419 = vmatpush.msra.mxu3 %v2255_v43  ;;  %v2671_v20 = vand.u32 4294901760, %v2648_v59 }
 0x419   : > { %2563 = vmatpush.msrb.mxu3 %v4091_v42  ;;  %v2672_v31 = vsub.f32 %v2648_v59, %v2671_v20 }
 0x41c   : > { %2305 = vmatmul.f32.gmra.mxu3 %v4318_v16  ;;  %2394 = vmatmul.f32.vlgmr.msra.gmra.mxu2 %v4308_v0 }
 0x41e   : > { %2476 = vmatmul.f32.vlgmr.msrb.gmra.mxu0 %v2475_v51  ;;  %2510 = vmatmul.f32.vlgmr.msrb.gmra.mxu1 %v2471_v55 }
 0x424   : > { %2398 = vmatmul.f32.gmra.mxu2 %v4318_v16  ;;  %2421 = vmatmul.f32.vlgmr.msra.gmra.mxu3 %v4308_v0 }
 0x426   : > { %2484 = vmatmul.f32.gmra.mxu0 %v2483_v40  ;;  %2514 = vmatmul.f32.gmra.mxu1 %v2479_v26 }
 0x42c   : > { %2425 = vmatmul.f32.gmra.mxu3 %v4318_v16  ;;  %2538 = vmatmul.f32.vlgmr.msrb.gmra.mxu2 %v2472_v22 }
 0x42e   : > { %2597 = vmatmul.f32.vlgmr.msra.gmra.mxu0 %v2471_v55  ;;  %2623 = vmatmul.f32.vlgmr.msra.gmra.mxu1 %v2471_v55 }
 0x434   : > { %2543 = vmatmul.f32.gmra.mxu2 %v2480_v39  ;;  %2567 = vmatmul.f32.vlgmr.msrb.gmra.mxu3 %v2473_v36  ;;  %v2651_v36 = vsel %vm1298_vm1, %v2634_v61, 0 }
 0x436   : > { %2601 = vmatmul.f32.gmra.mxu0 %v2479_v26  ;;  %2627 = vmatmul.f32.gmra.mxu1 %v2479_v26 }
 0x43c   : > { %2573 = vmatmul.f32.gmra.mxu3 %v2481_v10  ;;  %v2679_v10 = vand.u32 4294901760, %v2651_v36 }
 0x48b   : > { %v2332_v42 = vpop.f32.mrf.mxu0  ;;  %v2362_v41 = vpop.f32.mrf.mxu1 }
 0x48f   : > { %v2263_v29 = vpop.f32.mrf.mxu2 }
 0x490   : > { %v2264_v28 = vadd.f32 %v2263_v29, %v4266_v38 }
 0x493   : > { %v2337_v0 = vpop.f32.mrf.mxu0  ;;  %v2368_v57 = vpop.f32.mrf.mxu1 }
 0x497   : > { %v2271_v45 = vpop.f32.mrf.mxu2  ;;  %v2302_v46 = vpop.f32.mrf.mxu3 }
 0x498   : > { %v2303_v50 = vadd.f32 %v2302_v46, %v2264_v28  ;;  %v2272_v3 = vadd.f32 %v2271_v45, %v4232_v12 }
 0x49a   : > { %v2333_v52 = vadd.f32 %v2332_v42, %v2303_v50 }
 0x49b   : > { %v2477_v17 = vpop.f32.mrf.mxu0  ;;  %v2511_v30 = vpop.f32.mrf.mxu1 }
 0x49c   : > { %v2363_v63 = vadd.f32 %v2362_v41, %v2333_v52  ;;  %v2478_v13 = vadd.f32 %v2477_v17, %v4236_v58  ;;  %v2680_v41 = vsub.f32 %v2651_v36, %v2679_v10 }
 0x49e   : > { %v2512_v19 = vadd.f32 %v2511_v30, %v2478_v13 }
 0x49f   : > { %v2306_v4 = vpop.f32.mrf.mxu3  ;;  %v2395_v5 = vpop.f32.mrf.mxu2 }
 0x4a0   : > { %v2307_v33 = vadd.f32 %v2306_v4, %v2272_v3  ;;  %v2396_v7 = vadd.f32 %v2395_v5, %v2363_v63 }
 0x4a2   : > { %v2338_v15 = vadd.f32 %v2337_v0, %v2307_v33  ;;  %v2681_v0 = vand.u32 4294901760, %v2680_v41 }
 0x4a3   : > { %v2485_v49 = vpop.f32.mrf.mxu0  ;;  %v2515_v53 = vpop.f32.mrf.mxu1 }
 0x4a4   : > { %v2369_v23 = vadd.f32 %v2368_v57, %v2338_v15  ;;  %v2486_v56 = vadd.f32 %v2485_v49, %v4224_v2  ;;  %v2673_v2 = vand.u32 4294901760, %v2672_v31  ;;  %v2682_v3 = vsub.f32 %v2680_v41, %v2681_v0 }
 0x4a6   : > { %v2516_v22 = vadd.f32 %v2515_v53, %v2486_v56  ;;  %v2674_v29 = vsub.f32 %v2672_v31, %v2673_v2  ;;  %v3494_v56 = vld [vmem:[%s4463_s21 + $0x18] sm:$0xff] }
 0x4a7   : > { %v2399_v16 = vpop.f32.mrf.mxu2  ;;  %v2422_v35 = vpop.f32.mrf.mxu3 }
 0x4a8   : > { %v2400_v38 = vadd.f32 %v2399_v16, %v2369_v23  ;;  %v4350_v43 = vadd.f32 %v2422_v35, %v2396_v7  ;;  %v2675_v50 = vand.u32 4294901760, %v2674_v29  ;;  %v2683_v7 = vand.u32 4294901760, %v2682_v3 }
 0x4ab   : > { %v2598_v24 = vpop.f32.mrf.mxu0  ;;  %v2624_v55 = vpop.f32.mrf.mxu1 }
 0x4af   : > { %v2426_v60 = vpop.f32.mrf.mxu3  ;;  %v2539_v12 = vpop.f32.mrf.mxu2 }
 0x4b0   : > { %v4353_v14 = vadd.f32 %v2426_v60, %v2400_v38  ;;  %v2540_v25 = vadd.f32 %v2539_v12, %v2512_v19  ;;  %v3493_v60 = vld [vmem:[%s4463_s21 + $0x10] sm:$0xff] }
 0x4b1   : > { %v2862_v19 = vsel %vm1298_vm1, %v3493_v60, 0 }
 0x4b3   : > { %v2602_v37 = vpop.f32.mrf.mxu0  ;;  %v2628_v51 = vpop.f32.mrf.mxu1 }
 0x4b7   : > { %v2568_v47 = vpop.f32.mrf.mxu3  ;;  %v2544_v58 = vpop.f32.mrf.mxu2 }
 0x4b8   : > { %v2569_v44 = vadd.f32 %v2568_v47, %v2540_v25  ;;  %v2545_v32 = vadd.f32 %v2544_v58, %v2516_v22  ;;  %v2885_v47 = vand.u32 4294901760, %v2862_v19  ;;  %v2865_v22 = vsel %vm1298_vm1, %v3494_v56, 0 }
 0x4ba   : > { %v2599_v9 = vadd.f32 %v2598_v24, %v2569_v44  ;;  %v2886_v58 = vsub.f32 %v2862_v19, %v2885_v47 }
 0x4bc   : > { %v2625_v27 = vadd.f32 %v2624_v55, %v2599_v9 }
 0x4be   : > { %v2631_v34 = vmax.f32 %v2625_v27, 0.0 }
 0x4bf   : > { %v2574_v26 = vpop.f32.mrf.mxu3 }
 0x4c0   : > { %v2575_v39 = vadd.f32 %v2574_v26, %v2545_v32  ;;  %v2669_v62 = vand.u32 4294901760, %v2631_v34  ;;  %v2893_v32 = vand.u32 4294901760, %v2865_v22 }
 0x4c2   : > { %v2603_v40 = vadd.f32 %v2602_v37, %v2575_v39  ;;  %v2709_v28 = vsub.f32 %v2631_v34, %v2669_v62 }
 0x4c4   : > { %v2629_v42 = vadd.f32 %v2628_v51, %v2603_v40  ;;  %v2710_v57 = vand.u32 4294901760, %v2709_v28  ;;  %v2894_v51 = vsub.f32 %v2865_v22, %v2893_v32 }
 0x4c6   : > { %v2632_v45 = vmax.f32 %v2629_v42, 0.0  ;;  %v2711_v5 = vsub.f32 %v2709_v28, %v2710_v57  ;;  %v2895_v42 = vand.u32 4294901760, %v2894_v51 }
 0x4c8   : > { %v2667_v46 = vand.u32 4294901760, %v2632_v45  ;;  %v2712_v15 = vand.u32 4294901760, %v2711_v5 }
 0x4ca   : > { %v2703_v52 = vsub.f32 %v2632_v45, %v2667_v46  ;;  %2668 = vmatpush.msra.mxu2 %v2667_v46  ;;  %2769 = vmatpush.msrb.mxu1 %v2667_v46  ;;  %v2896_v45 = vsub.f32 %v2894_v51, %v2895_v42 }
 0x4cc   : > { %v2704_v63 = vand.u32 4294901760, %v2703_v52  ;;  %2670 = vmatpush.msra.mxu2 %v2669_v62  ;;  %2739 = vmatpush.msrb.mxu0 %v2703_v52 }
 0x4cd   : > { %2771 = vmatpush.msrb.mxu1 %v2669_v62  ;;  %2676 = vmatmul.f32.vlgmr.msra.gmra.mxu2 %v2675_v50 }
 0x4ce   : > { %v2705_v4 = vsub.f32 %v2703_v52, %v2704_v63  ;;  %2742 = vmatpush.msrb.mxu0 %v2709_v28  ;;  %2802 = vmatpush.msrb.mxu2 %v2704_v63  ;;  %v2897_v52 = vand.u32 4294901760, %v2896_v45 }
 0x4cf   : > { %2745 = vmatmul.f32.vlgmr.msrb.gmra.mxu0 %v2672_v31  ;;  %2775 = vmatmul.f32.vlgmr.msrb.gmra.mxu1 %v2673_v2  ;;  %v2887_v31 = vand.u32 4294901760, %v2886_v58 }
 0x4d0   : > { %2806 = vmatpush.msrb.mxu2 %v2710_v57  ;;  %v2706_v33 = vand.u32 4294901760, %v2705_v4 }
 0x4d1   : > { %v2888_v39 = vsub.f32 %v2886_v58, %v2887_v31 }
 0x4d2   : > { %2707 = vmatpush.msra.mxu3 %v2706_v33 }
 0x4d3   : > { %v2889_v40 = vand.u32 4294901760, %v2888_v39 }
 0x4d4   : > { %2713 = vmatpush.msra.mxu3 %v2712_v15 }
 0x4d5   : > { %2684 = vmatmul.f32.gmra.mxu2 %v2683_v7  ;;  %2715 = vmatmul.f32.vlgmr.msra.gmra.mxu3 %v2671_v20 }
 0x4d6   : > { %2831 = vmatpush.msrb.mxu3 %v2667_v46 }
 0x4d7   : > { %2750 = vmatmul.f32.gmra.mxu0 %v2680_v41  ;;  %2781 = vmatmul.f32.gmra.mxu1 %v2681_v0 }
 0x4d8   : > { %2833 = vmatpush.msrb.mxu3 %v2669_v62 }
 0x4dd   : > { %2719 = vmatmul.f32.gmra.mxu3 %v2679_v10  ;;  %2808 = vmatmul.f32.vlgmr.msrb.gmra.mxu2 %v2671_v20 }
 0x4e5   : > { %2812 = vmatmul.f32.gmra.mxu2 %v2679_v10  ;;  %2835 = vmatmul.f32.vlgmr.msrb.gmra.mxu3 %v2671_v20 }
 0x4ed   : > { %2839 = vmatmul.f32.gmra.mxu3 %v2679_v10 }
 0x54c   : > { %v2746_v35 = vpop.f32.mrf.mxu0  ;;  %v2776_v49 = vpop.f32.mrf.mxu1 }
 0x550   : > { %v2677_v17 = vpop.f32.mrf.mxu2 }
 0x551   : > { %v2678_v16 = vadd.f32 %v2677_v17, %v4228_v1 }
 0x554   : > { %v2751_v59 = vpop.f32.mrf.mxu0  ;;  %v2782_v9 = vpop.f32.mrf.mxu1 }
 0x558   : > { %v2685_v23 = vpop.f32.mrf.mxu2  ;;  %v2716_v30 = vpop.f32.mrf.mxu3 }
 0x559   : > { %v2717_v38 = vadd.f32 %v2716_v30, %v2678_v16  ;;  %v2686_v18 = vadd.f32 %v2685_v23, %v4226_v6  ;;  %v3059_v23 = vld [vmem:[%s4464_s30] sm:$0xff] }
 0x55b   : > { %v2747_v13 = vadd.f32 %v2746_v35, %v2717_v38  ;;  %v3061_v38 = vsel %vm1298_vm1, %v3059_v23, 0 }
 0x55d   : > { %v2777_v24 = vadd.f32 %v2776_v49, %v2747_v13  ;;  %v3081_v13 = vand.u32 4294901760, %v3061_v38 }
 0x560   : > { %v2720_v53 = vpop.f32.mrf.mxu3  ;;  %v2809_v12 = vpop.f32.mrf.mxu2 }
 0x561   : > { %v2721_v25 = vadd.f32 %v2720_v53, %v2686_v18  ;;  %v2810_v55 = vadd.f32 %v2809_v12, %v2777_v24 }
 0x563   : > { %v2752_v44 = vadd.f32 %v2751_v59, %v2721_v25  ;;  %v4380_v25 = vsub.f32 %v3061_v38, %v3081_v13 }
 0x565   : > { %v2783_v27 = vadd.f32 %v2782_v9, %v2752_v44  ;;  %v3083_v56 = vand.u32 4294901760, %v4380_v25 }
 0x568   : > { %v2836_v1 = vpop.f32.mrf.mxu3  ;;  %v2813_v6 = vpop.f32.mrf.mxu2 }
 0x569   : > { %v2837_v20 = vadd.f32 %v2836_v1, %v2810_v55  ;;  %v2814_v34 = vadd.f32 %v2813_v6, %v2783_v27 }
 0x56b   : > { %v2843_v61 = vmax.f32 %v2837_v20, 0.0 }
 0x56d   : > { %v2883_v36 = vand.u32 4294901760, %v2843_v61 }
 0x56f   : > { %v2923_v2 = vsub.f32 %v2843_v61, %v2883_v36  ;;  %v2433_v61 = vld [vmem:[%s4465_s20] sm:$0xff] }
 0x570   : > { %v2840_v26 = vpop.f32.mrf.mxu3 }
 0x571   : > { %v2841_v37 = vadd.f32 %v2840_v26, %v2814_v34  ;;  %v2924_v41 = vand.u32 4294901760, %v2923_v2 }
 0x573   : > { %v2844_v10 = vmax.f32 %v2841_v37, 0.0  ;;  %v2925_v50 = vsub.f32 %v2923_v2, %v2924_v41 }
 0x575   : > { %v2881_v62 = vand.u32 4294901760, %v2844_v10  ;;  %v2926_v57 = vand.u32 4294901760, %v2925_v50 }
 0x577   : > { %v2917_v29 = vsub.f32 %v2844_v10, %v2881_v62  ;;  %2882 = vmatpush.msra.mxu0 %v2881_v62  ;;  %2983 = vmatpush.msra.mxu3 %v2881_v62 }
 0x579   : > { %v2918_v28 = vand.u32 4294901760, %v2917_v29  ;;  %2884 = vmatpush.msra.mxu0 %v2883_v36  ;;  %2953 = vmatpush.msra.mxu2 %v2917_v29 }
 0x57a   : > { %2985 = vmatpush.msra.mxu3 %v2883_v36  ;;  %2890 = vmatmul.f32.vlgmr.msra.gmra.mxu0 %v2889_v40 }
 0x57b   : > { %v2919_v46 = vsub.f32 %v2917_v29, %v2918_v28  ;;  %2956 = vmatpush.msra.mxu2 %v2923_v2  ;;  %3016 = vmatpush.msrb.mxu0 %v2918_v28 }
 0x57c   : > { %2959 = vmatmul.f32.vlgmr.msra.gmra.mxu2 %v2886_v58  ;;  %2989 = vmatmul.f32.vlgmr.msra.gmra.mxu3 %v2887_v31  ;;  %v3224_v31 = vsel %vm1298_vm1, %v2433_v61, 0 }
 0x57d   : > { %3020 = vmatpush.msrb.mxu0 %v2924_v41  ;;  %v2920_v0 = vand.u32 4294901760, %v2919_v46  ;;  %v3244_v26 = vand.u32 4294901760, %v3224_v31 }
 0x57f   : > { %2921 = vmatpush.msra.mxu1 %v2920_v0  ;;  %v3245_v10 = vsub.f32 %v3224_v31, %v3244_v26 }
 0x581   : > { %2927 = vmatpush.msra.mxu1 %v2926_v57  ;;  %v3246_v28 = vand.u32 4294901760, %v3245_v10 }
 0x582   : > { %2898 = vmatmul.f32.gmra.mxu0 %v2897_v52  ;;  %2929 = vmatmul.f32.vlgmr.msra.gmra.mxu1 %v2885_v47 }
 0x583   : > { %3045 = vmatpush.msrb.mxu1 %v2881_v62  ;;  %v3247_v0 = vsub.f32 %v3245_v10, %v3246_v28 }
 0x584   : > { %2964 = vmatmul.f32.gmra.mxu2 %v2894_v51  ;;  %2995 = vmatmul.f32.gmra.mxu3 %v2895_v42 }
 0x585   : > { %3047 = vmatpush.msrb.mxu1 %v2883_v36 }
 0x58a   : > { %2933 = vmatmul.f32.gmra.mxu1 %v2893_v32  ;;  %3022 = vmatmul.f32.vlgmr.msrb.gmra.mxu0 %v2885_v47 }
 0x592   : > { %3026 = vmatmul.f32.gmra.mxu0 %v2893_v32  ;;  %3049 = vmatmul.f32.vlgmr.msrb.gmra.mxu1 %v2885_v47  ;;  %v2430_v47 = vmax.f32 %v4353_v14, 0.0  ;;  %v3084_v14 = vsub.f32 %v4380_v25, %v3083_v56 }
 0x594   : > { %v2432_v9 = vadd.f32 %v2430_v47, %v4326_v48  ;;  %v3085_v48 = vand.u32 4294901760, %v3084_v14 }
 0x59a   : > { %3053 = vmatmul.f32.gmra.mxu1 %v2893_v32  ;;  %v3240_v32 = vand.u32 4294901760, %v2432_v9 }
 0x59c   : > { %v3268_v51 = vsub.f32 %v2432_v9, %v3240_v32 }
 0x59e   : > { %v3269_v42 = vand.u32 4294901760, %v3268_v51 }
 0x5a0   : > { %v3270_v46 = vsub.f32 %v3268_v51, %v3269_v42 }
 0x5a2   : > { %v3271_v52 = vand.u32 4294901760, %v3270_v46 }
 0x5f7   : > { %v2891_v63 = vpop.f32.mrf.mxu0 }
 0x5f8   : > { %v2892_v5 = vadd.f32 %v2891_v63, %v4230_v8  ;;  %v3248_v63 = vand.u32 4294901760, %v3247_v0 }
 0x5ff   : > { %v2899_v3 = vpop.f32.mrf.mxu0  ;;  %v2930_v4 = vpop.f32.mrf.mxu1 }
 0x600   : > { %v2960_v33 = vpop.f32.mrf.mxu2  ;;  %v2931_v7 = vadd.f32 %v2930_v4, %v2892_v5  ;;  %v2990_v15 = vpop.f32.mrf.mxu3  ;;  %v2900_v35 = vadd.f32 %v2899_v3, %v4247_v54  ;;  %v2429_v54 = vmax.f32 %v4350_v43, 0.0 }
 0x602   : > { %v2961_v30 = vadd.f32 %v2960_v33, %v2931_v7  ;;  %v2431_v6 = vadd.f32 %v2429_v54, %v4315_v11 }
 0x604   : > { %v2991_v49 = vadd.f32 %v2990_v15, %v2961_v30  ;;  %v3242_v36 = vand.u32 4294901760, %v2431_v6  ;;  %v1798_v15 = vrot.slane %v4293_v21, 4 }
 0x606   : > { %v3274_v11 = vsub.f32 %v2431_v6, %v3242_v36  ;;  %v1799_v38 = vadd.f32 %v1798_v15, %v4293_v21 }
 0x607   : > { %v2934_v17 = vpop.f32.mrf.mxu1  ;;  %v3023_v16 = vpop.f32.mrf.mxu0 }
 0x608   : > { %v2935_v53 = vadd.f32 %v2934_v17, %v2900_v35  ;;  %v2965_v60 = vpop.f32.mrf.mxu2  ;;  %v3024_v12 = vadd.f32 %v3023_v16, %v2991_v49  ;;  %v2996_v24 = vpop.f32.mrf.mxu3  ;;  %v3275_v41 = vand.u32 4294901760, %v3274_v11 }
 0x60a   : > { %v2966_v18 = vadd.f32 %v2965_v60, %v2935_v53  ;;  %v3276_v50 = vsub.f32 %v3274_v11, %v3275_v41  ;;  %v3585_v60 = vld [vmem:[#allocation2] sm:$0xff] }
 0x60c   : > { %v2997_v1 = vadd.f32 %v2996_v24, %v2966_v18  ;;  %v3277_v57 = vand.u32 4294901760, %v3276_v50 }
 0x60f   : > { %v3050_v8 = vpop.f32.mrf.mxu1  ;;  %v3027_v55 = vpop.f32.mrf.mxu0 }
 0x610   : > { %v3051_v19 = vadd.f32 %v3050_v8, %v3024_v12  ;;  %v3028_v44 = vadd.f32 %v3027_v55, %v2997_v1  ;;  %v1800_v12 = vrot.slane %v1799_v38, 2 }
 0x612   : > { %v3057_v59 = vmax.f32 %v3051_v19, 0.0 }
 0x614   : > { %v3079_v20 = vand.u32 4294901760, %v3057_v59 }
 0x616   : > { %v3111_v27 = vsub.f32 %v3057_v59, %v3079_v20 }
 0x617   : > { %v3054_v58 = vpop.f32.mrf.mxu1 }
 0x618   : > { %v3055_v22 = vadd.f32 %v3054_v58, %v3028_v44  ;;  %v3112_v39 = vand.u32 4294901760, %v3111_v27 }
 0x61a   : > { %v3058_v43 = vmax.f32 %v3055_v22, 0.0  ;;  %v3113_v40 = vsub.f32 %v3111_v27, %v3112_v39 }
 0x61c   : > { %v3077_v34 = vand.u32 4294901760, %v3058_v43  ;;  %v3114_v45 = vand.u32 4294901760, %v3113_v40 }
 0x61e   : > { %v3105_v37 = vsub.f32 %v3058_v43, %v3077_v34  ;;  %3078 = vmatpush.msrb.mxu2 %v3077_v34  ;;  %3214 = vmatpush.msra.mxu1 %v3077_v34 }
 0x620   : > { %v3106_v2 = vand.u32 4294901760, %v3105_v37  ;;  %3080 = vmatpush.msrb.mxu2 %v3079_v20  ;;  %3216 = vmatpush.msra.mxu1 %v3079_v20 }
 0x621   : > { %3086 = vmatmul.f32.vlgmr.msrb.gmra.mxu2 %v3085_v48  ;;  %3218 = vmatmul.f32.vlgmr.msra.gmra.mxu1 %v3081_v13 }
 0x622   : > { %3325 = vmatpush.msrb.mxu1 %v3240_v32  ;;  %v3107_v62 = vsub.f32 %v3105_v37, %v3106_v2  ;;  %3137 = vmatpush.msra.mxu2 %v3105_v37 }
 0x623   : > { %3189 = vmatpush.msra.mxu0 %v3106_v2 }
 0x624   : > { %3327 = vmatpush.msrb.mxu1 %v3242_v36  ;;  %3140 = vmatpush.msra.mxu2 %v3111_v27  ;;  %v3108_v29 = vand.u32 4294901760, %v3107_v62 }
 0x625   : > { %3193 = vmatpush.msra.mxu0 %v3112_v39 }
 0x626   : > { %3241 = vmatpush.msrb.mxu2 %v3240_v32  ;;  %3109 = vmatpush.msrb.mxu3 %v3108_v29 }
 0x627   : > { %3300 = vmatpush.msrb.mxu0 %v3268_v51 }
 0x628   : > { %3195 = vmatmul.f32.vlgmr.msra.gmra.mxu0 %v3081_v13  ;;  %3243 = vmatpush.msrb.mxu2 %v3242_v36 }
 0x629   : > { %3303 = vmatpush.msrb.mxu0 %v3274_v11  ;;  %3115 = vmatpush.msrb.mxu3 %v3114_v45 }
 0x62a   : > { %3117 = vmatmul.f32.vlgmr.msrb.gmra.mxu3 %v3081_v13  ;;  %3143 = vmatmul.f32.vlgmr.msra.gmra.mxu2 %v4380_v25  ;;  %v1801_v25 = vadd.f32 %v1800_v12, %v1799_v38 }
 0x62b   : > { %3162 = vmatpush.msra.mxu3 %v3077_v34  ;;  %3352 = vmatpush.msra.mxu2 %v3269_v42 }
 0x62c   : > { %3331 = vmatmul.f32.vlgmr.msrb.gmra.mxu1 %v3246_v28  ;;  %v1802_v54 = vrot.slane %v1801_v25, 1 }
 0x62d   : > { %3164 = vmatpush.msra.mxu3 %v3079_v20  ;;  %3356 = vmatpush.msra.mxu2 %v3275_v41 }
 0x62e   : > { %v1803_v20 = vadd.f32 %v1802_v54, %v1801_v25 }
 0x62f   : > { %3272 = vmatpush.msrb.mxu3 %v3271_v52 }
 0x630   : > { %3306 = vmatmul.f32.vlgmr.msrb.gmra.mxu0 %v3245_v10 }
 0x631   : > { %3278 = vmatpush.msrb.mxu3 %v3277_v57 }
 0x632   : > { %3168 = vmatmul.f32.vlgmr.msra.gmra.mxu3 %v3083_v56  ;;  %3249 = vmatmul.f32.vlgmr.msrb.gmra.mxu2 %v3248_v63 }
 0x633   : > { %3377 = vmatpush.msra.mxu3 %v3240_v32 }
 0x635   : > { %3379 = vmatpush.msra.mxu3 %v3242_v36 }
 0x63a   : > { %3280 = vmatmul.f32.vlgmr.msrb.gmra.mxu3 %v3244_v26  ;;  %3358 = vmatmul.f32.vlgmr.msra.gmra.mxu2 %v3244_v26 }
 0x642   : > { %3381 = vmatmul.f32.vlgmr.msra.gmra.mxu3 %v3244_v26 }
 0x69e   : > { %v3219_v16 = vpop.f32.mrf.mxu1 }
 0x6a4   : > { %v3087_v3 = vpop.f32.mrf.mxu2 }
 0x6a5   : > { %v3196_v23 = vpop.f32.mrf.mxu0 }
 0x6a9   : > { %v3332_v59 = vpop.f32.mrf.mxu1 }
 0x6ad   : > { %v3118_v4 = vpop.f32.mrf.mxu3  ;;  %v3144_v33 = vpop.f32.mrf.mxu2 }
 0x6ae   : > { %v3119_v5 = vadd.f32 %v3118_v4, %v3087_v3  ;;  %v3307_v19 = vpop.f32.mrf.mxu0 }
 0x6b0   : > { %v3145_v7 = vadd.f32 %v3144_v33, %v3119_v5 }
 0x6b5   : > { %v3169_v17 = vpop.f32.mrf.mxu3  ;;  %v3250_v49 = vpop.f32.mrf.mxu2 }
 0x6b6   : > { %v3170_v30 = vadd.f32 %v3169_v17, %v3145_v7 }
 0x6b8   : > { %v3197_v35 = vadd.f32 %v3196_v23, %v3170_v30 }
 0x6ba   : > { %v3220_v53 = vadd.f32 %v3219_v16, %v3197_v35 }
 0x6bc   : > { %v3222_v13 = vmul.f32 %v3585_v60, %v3220_v53 }
 0x6bd   : > { %v3281_v8 = vpop.f32.mrf.mxu3  ;;  %v3359_v55 = vpop.f32.mrf.mxu2 }
 0x6be   : > { %v3251_v18 = vadd.f32 %v3250_v49, %v3222_v13 }
 0x6c0   : > { %v3282_v24 = vadd.f32 %v3281_v8, %v3251_v18 }
 0x6c2   : > { %v3308_v47 = vadd.f32 %v3307_v19, %v3282_v24 }
 0x6c4   : > { %v3333_v1 = vadd.f32 %v3332_v59, %v3308_v47 }
 0x6c5   : > { %v3382_v56 = vpop.f32.mrf.mxu3 }
 0x6c6   : > { %v3360_v44 = vadd.f32 %v3359_v55, %v3333_v1 }
 0x6c8   : > { %v3383_v21 = vadd.f32 %v3382_v56, %v3360_v44 }
 0x6ca   : > { %v3385_v9 = vmul.f32 %v3383_v21, %v1803_v20 }
 0x6cc   : > { %3386 = vst [vmem:[%s3827_s11] sm:$0xff] %v3385_v9 }
 0x6cd PF: > { %s27_s0 = sadd.s32 1, %s3640_s0   ;;  %s4466_s27 = sld [smem:[#allocation4_spill]] }
 0x6ce   : > { %p24_p0 = scmp.ge.s32.totalorder %s27_s0, 6   ;;  %s4467_s19 = sld [smem:[#allocation5_spill]] }
 0x6cf   : > { %s4468_s29 = sld [smem:[#allocation6_spill]]  ;;  %s4469_s24 = smov %s3620_s25 }
 0x6d0   : > { %s4470_s25 = smov %s3785_s22  ;;  %s4471_s26 = smov %s3632_s28 }
 0x6d1   :  { %26 = sbr.rel (!%p24_p0) target bundleno = 12 (0xc), region = 178 }
 0x6d4   : > { %s4472_s28 = smov %s4467_s19 }

// kernel: mygcn3_forward.9
= control target key start
LH: loop header
LB: loop body
LE: loop exit
PB: predicated region body
PF: predicated region fallthrough
CT: control target
= control target key end

     0   :  { %s4491_s0 = inlined_call_operand.vmem [shape: f32[8,256], index: 0, kind: input, shape index: {}]   ;;  %s4492_s1 = inlined_call_operand.vmem [shape: f32[256,256], index: 1, kind: input, shape index: {}]   ;;  %s4493_s2 = inlined_call_operand.vmem [shape: f32[8,256], index: 2, kind: input, shape index: {}]   ;;  %s4494_s3 = inlined_call_operand.vmem [shape: f32[16,8], index: 3, kind: input, shape index: {}]   ;;  %s4495_s4 = inlined_call_operand.vmem [shape: f32[16,1], index: 4, kind: input, shape index: {}]   ;;  %s4496_s5 = inlined_call_operand.vmem [shape: f32[2,16,16], index: 5, kind: input, shape index: {}]   ;;  %s4497_s6 = inlined_call_operand.vmem [shape: f32[2,16,1], index: 6, kind: input, shape index: {}]   ;;  %s4498_s7 = inlined_call_operand.vmem [shape: f32[16,1], index: 7, kind: input, shape index: {}]   ;;  %s4499_s8 = inlined_call_operand.vmem [shape: f32[16,8], index: 8, kind: input, shape index: {}]   ;;  %s4500_s9 = inlined_call_operand.vmem [shape: f32[16,1], index: 9, kind: input, shape index: {}]   ;;  %s4501_s10 = inlined_call_operand.vmem [shape: f32[2,16,16], index: 10, kind: input, shape index: {}]   ;;  %s4502_s11 = inlined_call_operand.vmem [shape: f32[2,16,1], index: 11, kind: input, shape index: {}]   ;;  %s4503_s12 = inlined_call_operand.vmem [shape: f32[8,16], index: 12, kind: input, shape index: {}]   ;;  %s4504_s13 = inlined_call_operand.vmem [shape: f32[16,8], index: 13, kind: input, shape index: {}]   ;;  %s4505_s14 = inlined_call_operand.vmem [shape: f32[16,1], index: 14, kind: input, shape index: {}]   ;;  %s4506_s15 = inlined_call_operand.vmem [shape: f32[2,16,16], index: 15, kind: input, shape index: {}]   ;;  %s4507_s16 = inlined_call_operand.vmem [shape: f32[2,16,1], index: 16, kind: input, shape index: {}]   ;;  %s4508_s17 = inlined_call_operand.vmem [shape: f32[8,16], index: 17, kind: input, shape index: {}]   ;;  %s4509_s18 = inlined_call_operand.vmem [shape: f32[8,256], index: 18, kind: output, shape index: {}]  }
   0x1   :  { %4517 = sst [smem:[#allocation9_spill]] %s4491_s0 }
   0x2   :  { %4518 = sst [smem:[#allocation10_spill]] %s4492_s1 }
   0x3   :  { %4519 = sst [smem:[#allocation11_spill]] %s4493_s2 }
   0x4   :  { %4520 = sst [smem:[#allocation12_spill]] %s4501_s10 }
   0x5   :  { %4521 = sst [smem:[#allocation13_spill]] %s4503_s12 }
   0x6   :  { %4522 = sst [smem:[#allocation14_spill]] %s4504_s13 }
   0x7   :  { %4523 = sst [smem:[#allocation15_spill]] %s4506_s15 }
   0x8   :  { %4524 = sst [smem:[#allocation16_spill]] %s4508_s17 }
   0x9   :  { %s3798_s27 = smov 0   ;;  %s3800_s28 = smov 0  }
   0xa   :  { %s3802_s29 = smov 0   ;;  %s3804_s30 = smov 0  }
   0xb   :  { %s3806_s0 = smov 0   ;;  %s3808_s19 = smov 0  }
   0xc   :  { %s3810_s1 = smov 0  }
   0xd LB: > { %4525 = sst [smem:[#allocation4_spill]] %s3691_s0  ;;  %s37_s20 = sadd.s32 1, %s3691_s0  ;;  %s3699_s1 = sphi %s3810_s1, %s28_s1   ;;  %s3695_s19 = sphi %s3808_s19, %s4546_s19   ;;  %s3691_s0 = sphi %s3806_s0, %s4545_s0   ;;  %s3687_s30 = sphi %s3804_s30, %s4544_s30   ;;  %s3683_s29 = sphi %s3802_s29, %s4543_s29   ;;  %s3679_s28 = sphi %s3800_s28, %s4548_s28   ;;  %s3675_s27 = sphi %s3798_s27, %s4547_s27  }
   0xe   : > { %4526 = sst [smem:[#allocation5_spill]] %s3695_s19  ;;  %p38_p0 = scmp.ge.s32.totalorder %s37_s20, 2 }
   0xf   : > { %s40_s21 = sadd.s32 1, %s3695_s19  ;;  %p82_p1 = scmp.ne.s32.totalorder %s3679_s28, %s3675_s27 }
  0x10   : > { %p83_p2 = scmp.eq.s32.totalorder %s3699_s1, 0  ;;  %s4550_s20 = smov (%p38_p0, %s37_s20), 0 }
  0x11   : > { %4527 = sst [smem:[#allocation6_spill]] %s4550_s20  ;;  %s4552_s21 = smov (!%p38_p0, %s40_s21), %s3695_s19 }
  0x12   : > { %p84_p3 = por %p83_p2, %p82_p1  ;;  %p42_p4 = scmp.ge.s32.totalorder %s4552_s21, 2 }
  0x13   : > { %s70_s22 = ssub.s32 %s3691_s0, %s4550_s20  ;;  %s75_s24 = sadd.s32 1, %s3679_s28 }
  0x14   : > { %s4554_s21 = smov (%p42_p4, %s4552_s21), 0  ;;  %p3532_p6 = scmp.ge.s32.totalorder %s3699_s1, 4 }
  0x15   : > { %4528 = sst [smem:[#allocation7_spill]] %s4554_s21  ;;  %s71_s2 = ssub.s32 %s3695_s19, %s4554_s21 }
  0x16   : > { %s72_s23 = sor.u32 %s71_s2, %s70_s22 }
  0x17   : > { %p73_p5 = scmp.eq.s32.totalorder %s72_s23, 0  ;;  %520 = sbr.rel (%p3532_p6) target bundleno = 54 (0x36), region = 76 }
  0x19   : > { %s3849_s25 = scalar_select %p73_p5, %s3679_s28, %s75_s24  }
  0x1b   : > { %4529 = sst [smem:[#allocation8_spill]] %s3849_s25 }
  0x1c   : > { %530 = sbr.rel (!%p84_p3) target bundleno = 54 (0x36), region = 84  ;;  %s532_s26 = sand.u32 (%p84_p3), 1, %s3679_s28  }
  0x1d   : > { %s3558_s12 = sshll.u32 (%p84_p3), %s3691_s0, 5  ;;  %s3533_s17 = sshll.u32 (%p84_p3), %s532_s26, 7 }
  0x1e   : > { %s537_s20 = sadd.s32 (%p84_p3), %s3695_s19, %s3558_s12  ;;  %s4530_s21 = sld [smem:[#allocation10_spill]] (%p84_p3) }
  0x1f   : > { %s3536_s15 = sshll.u32 (%p84_p3), %s537_s20, 3  ;;  %s534_s12 = scalar_lea.vmem (%p84_p3), [#allocation3], %s3533_s17 }
  0x24   : > { %s3858_s22 = scalar_lea.vmem %s4530_s21, %s3536_s15 }
  0x25   : > { %v598_v0 = vld [vmem:[%s3858_s22] sm:$0xff]  ;;  %v600_v1 = vld [vmem:[%s3858_s22 + $0x10] sm:$0xff] }
  0x26   : > { %v602_v2 = vld [vmem:[%s3858_s22 + $0x20] sm:$0xff]  ;;  %599 = vst [vmem:[%s534_s12] sm:$0xff] %v598_v0  ;;  %v604_v3 = vld [vmem:[%s3858_s22 + $0x30] sm:$0xff] }
  0x27   : > { %601 = vst [vmem:[%s534_s12 + $0x8] sm:$0xff] %v600_v1  ;;  %v606_v4 = vld [vmem:[%s3858_s22 + $0x40] sm:$0xff]  ;;  %v608_v5 = vld [vmem:[%s3858_s22 + $0x50] sm:$0xff] }
  0x28   : > { %603 = vst [vmem:[%s534_s12 + $0x10] sm:$0xff] %v602_v2  ;;  %v610_v6 = vld [vmem:[%s3858_s22 + $0x60] sm:$0xff]  ;;  %v612_v7 = vld [vmem:[%s3858_s22 + $0x70] sm:$0xff] }
  0x29   : > { %605 = vst [vmem:[%s534_s12 + $0x18] sm:$0xff] %v604_v3  ;;  %v614_v8 = vld [vmem:[%s3858_s22 + $0x80] sm:$0xff]  ;;  %v616_v9 = vld [vmem:[%s3858_s22 + $0x90] sm:$0xff] }
  0x2a   : > { %607 = vst [vmem:[%s534_s12 + $0x20] sm:$0xff] %v606_v4  ;;  %v618_v10 = vld [vmem:[%s3858_s22 + $0xa0] sm:$0xff]  ;;  %v620_v11 = vld [vmem:[%s3858_s22 + $0xb0] sm:$0xff] }
  0x2b   : > { %609 = vst [vmem:[%s534_s12 + $0x28] sm:$0xff] %v608_v5  ;;  %v622_v12 = vld [vmem:[%s3858_s22 + $0xc0] sm:$0xff]  ;;  %v624_v13 = vld [vmem:[%s3858_s22 + $0xd0] sm:$0xff] }
  0x2c   : > { %611 = vst [vmem:[%s534_s12 + $0x30] sm:$0xff] %v610_v6  ;;  %v626_v14 = vld [vmem:[%s3858_s22 + $0xe0] sm:$0xff]  ;;  %v628_v15 = vld [vmem:[%s3858_s22 + $0xf0] sm:$0xff] }
  0x2d   : > { %613 = vst [vmem:[%s534_s12 + $0x38] sm:$0xff] %v612_v7 }
  0x2e   : > { %615 = vst [vmem:[%s534_s12 + $0x40] sm:$0xff] %v614_v8 }
  0x2f   : > { %617 = vst [vmem:[%s534_s12 + $0x48] sm:$0xff] %v616_v9 }
  0x30   : > { %619 = vst [vmem:[%s534_s12 + $0x50] sm:$0xff] %v618_v10 }
  0x31   : > { %621 = vst [vmem:[%s534_s12 + $0x58] sm:$0xff] %v620_v11 }
  0x32   : > { %623 = vst [vmem:[%s534_s12 + $0x60] sm:$0xff] %v622_v12 }
  0x33   : > { %625 = vst [vmem:[%s534_s12 + $0x68] sm:$0xff] %v624_v13 }
  0x34   : > { %627 = vst [vmem:[%s534_s12 + $0x70] sm:$0xff] %v626_v14 }
  0x35   : > { %629 = vst [vmem:[%s534_s12 + $0x78] sm:$0xff] %v628_v15 }
  0x36 PF: > { %p3537_p7 = scmp.ge.s32.totalorder %s3699_s1, 1  ;;  %p641_p8 = scmp.lt.s32.totalorder %s3699_s1, 5 }
  0x38   : > { %p642_p9 = pnand %p3537_p7, %p641_p8 }
  0x39   : > { %s648_s10 = sand.u32 (!%p642_p9), 1, %s3675_s27   ;;  %p708_p10 = scmp.lt.s32.totalorder (!%p642_p9), %s3683_s29, 1 }
  0x3a   : > { %645 = sbr.rel (%p642_p9) target bundleno = 1745 (0x6d1), region = 126  ;;  %s3538_s13 = sshll.u32 (!%p642_p9), %s648_s10, 7 }
  0x3b   : > { %p713_p11 = scmp.lt.s32.totalorder (!%p642_p9), %s3687_s30, 1  ;;  %s4531_s2 = sld [smem:[#allocation9_spill]] (!%p642_p9) }
  0x3c   : > { %s4532_s12 = sld [smem:[#allocation11_spill]] (!%p642_p9)  ;;  %s3898_s10 = scalar_lea.vmem (!%p642_p9), [#allocation3], %s3538_s13 }
  0x3d   : > { %p3542_p12 = scmp.ne.s32.totalorder (!%p642_p9), %s3683_s29, 0 }
  0x3f   : > { %s709_s15 = scalar_select %p708_p10, %s3683_s29, 1 }
  0x40   : > { %s4556_s30 = smov (!%p713_p11, %s3687_s30), 1  ;;  %724 = sbr.rel (%p3542_p12) target bundleno = 71 (0x47), region = 134 }
  0x41   : > { %s3539_s17 = sshll.u32 %s709_s15, 3  ;;  %s3540_s24 = sshll.u32 %s4556_s30, 3 }
  0x42   : > { %s3886_s23 = scalar_lea.vmem %s4531_s2, %s3539_s17  ;;  %s3891_s19 = scalar_lea.vmem %s4532_s12, %s3540_s24 }
  0x43   : > { %s3896_s27 = scalar_lea.vmem %s4509_s18, %s3540_s24 }
  0x45   : > { %v3701_v16 = vmov 0.0  }
  0x46   : > { %725 = vst [vmem:[#allocation2] sm:$0xff] %v3701_v16 }
  0x47 PF: > { %v743_v17 = vld [vmem:[%s3898_s10 + $0x78] sm:$0xff]  ;;  %v742_v18 = vld [vmem:[%s3898_s10 + $0x70] sm:$0xff]  ;;  %v741_v19 = vld [vmem:[%s3898_s10 + $0x68] sm:$0xff]  ;;  %p3543_p13 = scmp.ne.s32.totalorder %s3683_s29, 1 }
  0x48   : > { %v3904_v20 = vand.u32 4294901760, %v743_v17  ;;  %v3906_v21 = vand.u32 4294901760, %v742_v18  ;;  %v3908_v22 = vand.u32 4294901760, %v741_v19  ;;  %v740_v23 = vld [vmem:[%s3898_s10 + $0x60] sm:$0xff]  ;;  %v739_v24 = vld [vmem:[%s3898_s10 + $0x58] sm:$0xff]  ;;  %v738_v25 = vld [vmem:[%s3898_s10 + $0x50] sm:$0xff] }
  0x49   : > { %v3913_v26 = vand.u32 4294901760, %v740_v23  ;;  %v3915_v27 = vand.u32 4294901760, %v739_v24  ;;  %v3917_v28 = vand.u32 4294901760, %v738_v25  ;;  %v737_v29 = vld [vmem:[%s3898_s10 + $0x48] sm:$0xff]  ;;  %v736_v30 = vld [vmem:[%s3898_s10 + $0x40] sm:$0xff]  ;;  %v735_v35 = vld [vmem:[%s3898_s10 + $0x38] sm:$0xff] }
  0x4a   : > { %745 = vmatpush.msra.mxu0 %v3904_v20  ;;  %v3923_v31 = vsub.f32 %v743_v17, %v3904_v20  ;;  %v3926_v32 = vsub.f32 %v742_v18, %v3906_v21  ;;  %v3929_v33 = vsub.f32 %v741_v19, %v3908_v22  ;;  %v3931_v34 = vand.u32 4294901760, %v737_v29  ;;  %941 = vmatpush.msra.mxu3 %v3904_v20  ;;  %v734_v43 = vld [vmem:[%s3898_s10 + $0x30] sm:$0xff]  ;;  %v733_v53 = vld [vmem:[%s3898_s10 + $0x28] sm:$0xff]  ;;  %v732_v59 = vld [vmem:[%s3898_s10 + $0x20] sm:$0xff]  ;;  %s4538_s13 = sld [smem:[#allocation14_spill]] (!%p3543_p13) }
  0x4b   : > { %v3936_v36 = vsub.f32 %v740_v23, %v3913_v26  ;;  %v3939_v37 = vsub.f32 %v739_v24, %v3915_v27  ;;  %v3942_v38 = vsub.f32 %v738_v25, %v3917_v28  ;;  %v3948_v42 = vand.u32 4294901760, %v736_v30  ;;  %v731_v0 = vld [vmem:[%s3898_s10 + $0x18] sm:$0xff]  ;;  %v730_v8 = vld [vmem:[%s3898_s10 + $0x10] sm:$0xff]  ;;  %v729_v13 = vld [vmem:[%s3898_s10 + $0x8] sm:$0xff]  ;;  %s4539_s21 = sld [smem:[#allocation15_spill]] (!%p3543_p13) }
  0x4c   : > { %747 = vmatpush.msra.mxu0 %v3906_v21  ;;  %v787_v39 = vand.u32 4294901760, %v3923_v31  ;;  %v793_v40 = vand.u32 4294901760, %v3926_v32  ;;  %v799_v41 = vand.u32 4294901760, %v3929_v33  ;;  %888 = vmatpush.msra.mxu2 %v3923_v31  ;;  %v3953_v45 = vand.u32 4294901760, %v735_v35  ;;  %v728_v18 = vld [vmem:[%s3898_s10] sm:$0xff]  ;;  %v727_v24 = vld [vmem:[%s3886_s23] sm:$0xff] }
  0x4d   : > { %v805_v44 = vand.u32 4294901760, %v3936_v36  ;;  %v3956_v46 = vsub.f32 %v737_v29, %v3931_v34  ;;  %943 = vmatpush.msra.mxu3 %v3906_v21  ;;  %v811_v50 = vand.u32 4294901760, %v3939_v37  ;;  %v817_v51 = vand.u32 4294901760, %v3942_v38  ;;  %s4533_s23 = sld [smem:[#allocation12_spill]] (!%p3543_p13) }
  0x4e   : > { %749 = vmatpush.msra.mxu0 %v3908_v22  ;;  %v788_v47 = vsub.f32 %v3923_v31, %v787_v39  ;;  %v794_v48 = vsub.f32 %v3926_v32, %v793_v40  ;;  %v800_v49 = vsub.f32 %v3929_v33, %v799_v41  ;;  %891 = vmatpush.msra.mxu2 %v3926_v32  ;;  %v3972_v52 = vand.u32 4294901760, %v734_v43  ;;  %s4540_s25 = sld [smem:[#allocation16_spill]] (!%p3543_p13) }
  0x4f   : > { %945 = vmatpush.msra.mxu3 %v3908_v22  ;;  %v806_v56 = vsub.f32 %v3936_v36, %v805_v44  ;;  %v3981_v57 = vsub.f32 %v736_v30, %v3948_v42  ;;  %v823_v58 = vand.u32 4294901760, %v3956_v46  ;;  %v812_v61 = vsub.f32 %v3939_v37, %v811_v50  ;;  %s4541_s29 = sld [smem:[#allocation13_spill]] (!%p3543_p13) }
  0x50   : > { %v789_v54 = vand.u32 4294901760, %v788_v47  ;;  %751 = vmatpush.msra.mxu0 %v3913_v26  ;;  %v795_v55 = vand.u32 4294901760, %v794_v48  ;;  %894 = vmatpush.msra.mxu2 %v3929_v33  ;;  %v801_v60 = vand.u32 4294901760, %v800_v49  ;;  %v3991_v62 = vand.u32 4294901760, %v733_v53 }
  0x51   : > { %947 = vmatpush.msra.mxu3 %v3913_v26  ;;  %v3994_v63 = vsub.f32 %v735_v35, %v3953_v45  ;;  %v818_v1 = vsub.f32 %v3942_v38, %v817_v51  ;;  %v807_v2 = vand.u32 4294901760, %v806_v56  ;;  %v829_v3 = vand.u32 4294901760, %v3981_v57 }
  0x52   : > { %790 = vmatpush.msra.mxu1 %v789_v54  ;;  %753 = vmatpush.msra.mxu0 %v3915_v27  ;;  %v4004_v4 = vand.u32 4294901760, %v732_v59  ;;  %v4007_v5 = vsub.f32 %v734_v43, %v3972_v52  ;;  %v824_v6 = vsub.f32 %v3956_v46, %v823_v58  ;;  %v4012_v7 = vand.u32 4294901760, %v731_v0 }
  0x53   : > { %897 = vmatpush.msra.mxu2 %v3936_v36  ;;  %949 = vmatpush.msra.mxu3 %v3915_v27  ;;  %v813_v9 = vand.u32 4294901760, %v812_v61  ;;  %v835_v10 = vand.u32 4294901760, %v3994_v63  ;;  %v4020_v11 = vsub.f32 %v733_v53, %v3991_v62  ;;  %v819_v12 = vand.u32 4294901760, %v818_v1 }
  0x54   : > { %796 = vmatpush.msra.mxu1 %v795_v55  ;;  %755 = vmatpush.msra.mxu0 %v3917_v28  ;;  %v830_v14 = vsub.f32 %v3981_v57, %v829_v3  ;;  %v841_v15 = vand.u32 4294901760, %v4007_v5  ;;  %v4030_v16 = vand.u32 4294901760, %v730_v8  ;;  %v4033_v17 = vsub.f32 %v732_v59, %v4004_v4 }
  0x55   : > { %900 = vmatpush.msra.mxu2 %v3939_v37  ;;  %951 = vmatpush.msra.mxu3 %v3917_v28  ;;  %v825_v19 = vand.u32 4294901760, %v824_v6  ;;  %v4037_v23 = vsub.f32 %v731_v0, %v4012_v7  ;;  %v836_v25 = vsub.f32 %v3994_v63, %v835_v10  ;;  %v847_v29 = vand.u32 4294901760, %v4020_v11 }
  0x56   : > { %802 = vmatpush.msra.mxu1 %v801_v60  ;;  %757 = vmatpush.msra.mxu0 %v3931_v34  ;;  %v4047_v30 = vand.u32 4294901760, %v729_v13  ;;  %v4049_v35 = vand.u32 4294901760, %v727_v24  ;;  %v4051_v43 = vand.u32 4294901760, %v728_v18  ;;  %v831_v47 = vand.u32 4294901760, %v830_v14 }
  0x57   : > { %903 = vmatpush.msra.mxu2 %v3942_v38  ;;  %953 = vmatpush.msra.mxu3 %v3931_v34  ;;  %v842_v48 = vsub.f32 %v4007_v5, %v841_v15  ;;  %v853_v49 = vand.u32 4294901760, %v4033_v17  ;;  %v4061_v53 = vsub.f32 %v730_v8, %v4030_v16  ;;  %v859_v54 = vand.u32 4294901760, %v4037_v23 }
  0x58   : > { %808 = vmatpush.msra.mxu1 %v807_v2  ;;  %759 = vmatpush.msra.mxu0 %v3948_v42  ;;  %v837_v55 = vand.u32 4294901760, %v836_v25  ;;  %v848_v56 = vsub.f32 %v4020_v11, %v847_v29  ;;  %v4071_v59 = vsub.f32 %v729_v13, %v4047_v30  ;;  %v777_v60 = vsub.f32 %v727_v24, %v4049_v35 }
  0x59   : > { %906 = vmatpush.msra.mxu2 %v3956_v46  ;;  %955 = vmatpush.msra.mxu3 %v3948_v42  ;;  %v843_v61 = vand.u32 4294901760, %v842_v48  ;;  %v854_v0 = vsub.f32 %v4033_v17, %v853_v49  ;;  %v865_v1 = vand.u32 4294901760, %v4061_v53  ;;  %v4082_v2 = vsub.f32 %v728_v18, %v4051_v43 }
  0x5a   : > { %814 = vmatpush.msra.mxu1 %v813_v9  ;;  %761 = vmatpush.msra.mxu0 %v3953_v45  ;;  %v849_v6 = vand.u32 4294901760, %v848_v56  ;;  %v860_v8 = vsub.f32 %v4037_v23, %v859_v54  ;;  %v871_v9 = vand.u32 4294901760, %v4071_v59 }
  0x5b   : > { %909 = vmatpush.msra.mxu2 %v3981_v57  ;;  %957 = vmatpush.msra.mxu3 %v3953_v45  ;;  %v855_v13 = vand.u32 4294901760, %v854_v0  ;;  %v866_v14 = vsub.f32 %v4061_v53, %v865_v1  ;;  %v877_v18 = vand.u32 4294901760, %v4082_v2 }
  0x5c   : > { %820 = vmatpush.msra.mxu1 %v819_v12  ;;  %763 = vmatpush.msra.mxu0 %v3972_v52  ;;  %v778_v12 = vand.u32 4294901760, %v777_v60  ;;  %v872_v24 = vsub.f32 %v4071_v59, %v871_v9 }
  0x5d   : > { %912 = vmatpush.msra.mxu2 %v3994_v63  ;;  %959 = vmatpush.msra.mxu3 %v3972_v52  ;;  %v878_v48 = vsub.f32 %v4082_v2, %v877_v18 }
  0x5e   : > { %826 = vmatpush.msra.mxu1 %v825_v19  ;;  %765 = vmatpush.msra.mxu0 %v3991_v62  ;;  %v861_v19 = vand.u32 4294901760, %v860_v8  ;;  %v779_v25 = vsub.f32 %v777_v60, %v778_v12 }
  0x5f   : > { %915 = vmatpush.msra.mxu2 %v4007_v5  ;;  %961 = vmatpush.msra.mxu3 %v3991_v62 }
  0x60   : > { %832 = vmatpush.msra.mxu1 %v831_v47  ;;  %767 = vmatpush.msra.mxu0 %v4004_v4  ;;  %v867_v47 = vand.u32 4294901760, %v866_v14  ;;  %v780_v56 = vand.u32 4294901760, %v779_v25 }
  0x61   : > { %918 = vmatpush.msra.mxu2 %v4020_v11  ;;  %963 = vmatpush.msra.mxu3 %v4004_v4 }
  0x62   : > { %838 = vmatpush.msra.mxu1 %v837_v55  ;;  %769 = vmatpush.msra.mxu0 %v4012_v7  ;;  %v873_v55 = vand.u32 4294901760, %v872_v24 }
  0x63   : > { %921 = vmatpush.msra.mxu2 %v4033_v17  ;;  %965 = vmatpush.msra.mxu3 %v4012_v7 }
  0x64   : > { %844 = vmatpush.msra.mxu1 %v843_v61  ;;  %771 = vmatpush.msra.mxu0 %v4030_v16  ;;  %v879_v61 = vand.u32 4294901760, %v878_v48 }
  0x65   : > { %924 = vmatpush.msra.mxu2 %v4037_v23  ;;  %967 = vmatpush.msra.mxu3 %v4030_v16 }
  0x66   : > { %850 = vmatpush.msra.mxu1 %v849_v6  ;;  %773 = vmatpush.msra.mxu0 %v4047_v30 }
  0x67   : > { %927 = vmatpush.msra.mxu2 %v4061_v53  ;;  %969 = vmatpush.msra.mxu3 %v4047_v30 }
  0x68   : > { %856 = vmatpush.msra.mxu1 %v855_v13  ;;  %775 = vmatpush.msra.mxu0 %v4051_v43 }
  0x69   : > { %930 = vmatpush.msra.mxu2 %v4071_v59  ;;  %971 = vmatpush.msra.mxu3 %v4051_v43 }
  0x6a   : > { %982 = vmatpush.msrb.mxu0 %v787_v39  ;;  %862 = vmatpush.msra.mxu1 %v861_v19 }
  0x6b   : > { %933 = vmatpush.msra.mxu2 %v4082_v2  ;;  %975 = vmatmul.f32.vlgmr.msra.gmra.mxu3 %v778_v12 }
  0x6c   : > { %986 = vmatpush.msrb.mxu0 %v793_v40  ;;  %868 = vmatpush.msra.mxu1 %v867_v47 }
  0x6d   : > { %936 = vmatmul.f32.vlgmr.msra.gmra.mxu2 %v777_v60  ;;  %781 = vmatmul.f32.vlgmr.msra.gmra.mxu0 %v780_v56 }
  0x6e   : > { %990 = vmatpush.msrb.mxu0 %v799_v41  ;;  %874 = vmatpush.msra.mxu1 %v873_v55 }
  0x70   : > { %994 = vmatpush.msrb.mxu0 %v805_v44  ;;  %880 = vmatpush.msra.mxu1 %v879_v61 }
  0x71   : > { %882 = vmatmul.f32.vlgmr.msra.gmra.mxu1 %v4049_v35 }
  0x72   : > { %1049 = vmatpush.msrb.mxu1 %v3904_v20  ;;  %998 = vmatpush.msrb.mxu0 %v811_v50 }
  0x74   : > { %1051 = vmatpush.msrb.mxu1 %v3906_v21  ;;  %1002 = vmatpush.msrb.mxu0 %v817_v51 }
  0x76   : > { %1053 = vmatpush.msrb.mxu1 %v3908_v22  ;;  %1006 = vmatpush.msrb.mxu0 %v823_v58 }
  0x78   : > { %1055 = vmatpush.msrb.mxu1 %v3913_v26  ;;  %1010 = vmatpush.msrb.mxu0 %v829_v3 }
  0x7a   : > { %1057 = vmatpush.msrb.mxu1 %v3915_v27  ;;  %1014 = vmatpush.msrb.mxu0 %v835_v10 }
  0x7c   : > { %1059 = vmatpush.msrb.mxu1 %v3917_v28  ;;  %1018 = vmatpush.msrb.mxu0 %v841_v15 }
  0x7e   : > { %1061 = vmatpush.msrb.mxu1 %v3931_v34  ;;  %1022 = vmatpush.msrb.mxu0 %v847_v29  ;;  %v726_v34 = vld [vmem:[#allocation2] sm:$0xff] }
  0x80   : > { %1063 = vmatpush.msrb.mxu1 %v3948_v42  ;;  %1026 = vmatpush.msrb.mxu0 %v853_v49 }
  0x82   : > { %1065 = vmatpush.msrb.mxu1 %v3953_v45  ;;  %1030 = vmatpush.msrb.mxu0 %v859_v54 }
  0x84   : > { %1067 = vmatpush.msrb.mxu1 %v3972_v52  ;;  %1034 = vmatpush.msrb.mxu0 %v865_v1 }
  0x86   : > { %1069 = vmatpush.msrb.mxu1 %v3991_v62  ;;  %1038 = vmatpush.msrb.mxu0 %v871_v9 }
  0x88   : > { %1071 = vmatpush.msrb.mxu1 %v4004_v4  ;;  %1042 = vmatpush.msrb.mxu0 %v877_v18 }
  0x89   : > { %1044 = vmatmul.f32.vlgmr.msrb.gmra.mxu0 %v4049_v35 }
  0x8a   : > { %1073 = vmatpush.msrb.mxu1 %v4012_v7 }
  0x8c   : > { %1075 = vmatpush.msrb.mxu1 %v4030_v16 }
  0x8e   : > { %1077 = vmatpush.msrb.mxu1 %v4047_v30 }
  0x90   : > { %1079 = vmatpush.msrb.mxu1 %v4051_v43 }
  0x91   : > { %1081 = vmatmul.f32.vlgmr.msrb.gmra.mxu1 %v4049_v35 }
  0xea   : > { %v782_v21 = vpop.f32.mrf.mxu0 }
  0xee   : > { %v883_v20 = vpop.f32.mrf.mxu1  ;;  %v976_v28 = vpop.f32.mrf.mxu3 }
  0xef   : > { %v884_v22 = vadd.f32 %v883_v20, %v782_v21 }
  0xf0   : > { %v937_v26 = vpop.f32.mrf.mxu2 }
  0xf1   : > { %v938_v27 = vadd.f32 %v937_v26, %v884_v22 }
  0xf3   : > { %v977_v31 = vadd.f32 %v976_v28, %v938_v27 }
 0x106   : > { %v1045_v32 = vpop.f32.mrf.mxu0 }
 0x107   : > { %v1046_v33 = vadd.f32 %v1045_v32, %v977_v31 }
 0x10e   : > { %v1082_v36 = vpop.f32.mrf.mxu1 }
 0x10f   : > { %v1083_v37 = vadd.f32 %v1082_v36, %v1046_v33  ;;  %1090 = sbr.rel (%p3543_p13) target bundleno = 1745 (0x6d1), region = 138 }
 0x111   : > { %v1085_v38 = vadd.f32 %v1083_v37, %v726_v34 }
 0x113   : > { %1086 = vst [vmem:[#allocation2] sm:$0xff] %v1085_v38 }
 0x114   : > { %v1095_v39 = vld [vmem:[%s4495_s4 + $0x8] sm:$0xff]  ;;  %vm1106_vm0 = vcmask 64512   ;;  %v3702_v41 = vmov 0   ;;  %v1092_v44 = vld [vmem:[%s4494_s3] sm:$0xff]  ;;  %v3555_v30 = vld [vmem:[%s4507_s16 + $0x18] sm:$0xff]  ;;  %vm1342_vm1 = vcmask 130048  }
 0x115   : > { %3617 = vset.pattern.permute.xlu0 %v3702_v41  ;;  %v1093_v45 = vld [vmem:[%s4494_s3 + $0x8] sm:$0xff]  ;;  %3618 = vset.pattern.permute.xlu1 %v3702_v41  ;;  %v1108_v46 = vsel %vm1106_vm0, %v1092_v44, 0  ;;  %v1094_v3 = vld [vmem:[%s4495_s4] sm:$0xff]  ;;  %v3550_v35 = vld [vmem:[%s4502_s11 + $0x10] sm:$0xff] }
 0x116   : > { %1103 = vperm.xlu0 %3617, %v1095_v39   ;;  %v1111_v50 = vsel %vm1106_vm0, %v1093_v45, 0  ;;  %3619 = vset.pattern.permute.xlu2 %v3702_v41  ;;  %v1130_v52 = vand.u32 4294901760, %v1108_v46  ;;  %v2050_v17 = vld [vmem:[%s4502_s11 + $0x8] sm:$0xff]  ;;  %v2480_v29 = vld [vmem:[%s4505_s14] sm:$0xff] }
 0x117   : > { %v1138_v57 = vand.u32 4294901760, %v1111_v50  ;;  %v1827_v43 = vld [vmem:[%s4498_s7] sm:$0xff]  ;;  %v1331_v25 = vld [vmem:[%s4497_s6 + $0x8] sm:$0xff] }
 0x118   : > { %v1131_v58 = vsub.f32 %v1108_v46, %v1130_v52  ;;  %1339 = vperm.xlu1 %3618, %v1331_v25   ;;  %v1330_v20 = vld [vmem:[%s4497_s6] sm:$0xff]  ;;  %v2680_v46 = vld [vmem:[%s4507_s16 + $0x8] sm:$0xff] }
 0x119   : > { %v1139_v63 = vsub.f32 %v1111_v50, %v1138_v57  ;;  %v2049_v37 = vld [vmem:[%s4502_s11] sm:$0xff] }
 0x11a   : > { %v1091_v40 = vld [vmem:[#allocation2] sm:$0xff]  ;;  %v1132_v4 = vand.u32 4294901760, %v1131_v58 }
 0x11b   : > { %v4160_v42 = vand.u32 4294901760, %v1091_v40  ;;  %v1140_v11 = vand.u32 4294901760, %v1139_v63  ;;  %v1328_v38 = vld [vmem:[%s4496_s5] sm:$0xff] }
 0x11c   : > { %v1133_v7 = vsub.f32 %v1131_v58, %v1132_v4  ;;  %v1344_v45 = vsel %vm1342_vm1, %v1328_v38, 0 }
 0x11d   : > { %v4171_v51 = vsub.f32 %v1091_v40, %v4160_v42  ;;  %1129 = vmatpush.msra.mxu0 %v4160_v42  ;;  %1222 = vmatpush.msra.mxu3 %v4160_v42  ;;  %v1141_v16 = vsub.f32 %v1139_v63, %v1140_v11 }
 0x11e   : > { %1226 = vmatmul.f32.vlgmr.msra.gmra.mxu3 %v1132_v4  ;;  %1098 = vperm.xlu0 %3617, %v1094_v3   ;;  %v1134_v15 = vand.u32 4294901760, %v1133_v7  ;;  %v1329_v3 = vld [vmem:[%s4496_s5 + $0x8] sm:$0xff] }
 0x11f   : > { %1194 = vmatpush.msra.mxu2 %v4171_v51  ;;  %v4177_v62 = vand.u32 4294901760, %v4171_v51  ;;  %v1142_v23 = vand.u32 4294901760, %v1141_v16 }
 0x120   : > { %1197 = vmatmul.f32.vlgmr.msra.gmra.mxu2 %v1131_v58  ;;  %1135 = vmatmul.f32.vlgmr.msra.gmra.mxu0 %v1134_v15  ;;  %v3554_v15 = vld [vmem:[%s4507_s16 + $0x10] sm:$0xff] }
 0x121   : > { %v1165_v5 = vsub.f32 %v4171_v51, %v4177_v62  ;;  %1254 = vmatpush.msrb.mxu0 %v4177_v62  ;;  %1334 = vperm.xlu1 %3618, %v1330_v20  }
 0x123   : > { %v4185_v10 = vand.u32 4294901760, %v1165_v5 }
 0x125   : > { %1167 = vmatpush.msra.mxu1 %v4185_v10 }
 0x126   : > { %1169 = vmatmul.f32.vlgmr.msra.gmra.mxu1 %v1130_v52  ;;  %1232 = vmatmul.f32.gmra.mxu3 %v1140_v11 }
 0x127   : > { %1280 = vmatpush.msrb.mxu1 %v4160_v42  ;;  %2058 = vperm.xlu0 %3617, %v2050_v17  }
 0x128   : > { %1202 = vmatmul.f32.gmra.mxu2 %v1139_v63  ;;  %1143 = vmatmul.f32.gmra.mxu0 %v1142_v23  ;;  %v1347_v23 = vsel %vm1342_vm1, %v1329_v3, 0 }
 0x129   : > { %2053 = vperm.xlu1 %3618, %v2049_v37  }
 0x12e   : > { %1173 = vmatmul.f32.gmra.mxu1 %v1138_v57 }
 0x12f   : > { %2484 = vperm.xlu0 %3617, %v2480_v29  }
 0x130   : > { %1256 = vmatmul.f32.vlgmr.msrb.gmra.mxu0 %v1130_v52 }
 0x131   : > { %2688 = vperm.xlu1 %3618, %v2680_v46  }
 0x136   : > { %1282 = vmatmul.f32.vlgmr.msrb.gmra.mxu1 %v1130_v52 }
 0x137   : > { %2902 = vperm.xlu0 %3617, %v3555_v30  }
 0x138   : > { %1260 = vmatmul.f32.gmra.mxu0 %v1138_v57 }
 0x139   : > { %2897 = vperm.xlu1 %3618, %v3554_v15  }
 0x13e   : > { %1286 = vmatmul.f32.gmra.mxu1 %v1138_v57  ;;  %v4220_v57 = vand.u32 4294901760, %v1344_v45 }
 0x13f   : > { %2269 = vperm.xlu0 %3617, %v3550_v35  }
 0x140   : > { %v1368_v11 = vsub.f32 %v1344_v45, %v4220_v57 }
 0x147   : > { %1831 = vperm.xlu0 %3617, %v1827_v43   ;;  %v1369_v43 = vand.u32 4294901760, %v1368_v11 }
 0x188   : > { %v1104_v49 = vpop.permute.xlu0 %1103 }
 0x190   : > { %v1099_v59 = vpop.permute.xlu0 %1098 }
 0x19d   : > { %v1136_v54 = vpop.f32.mrf.mxu0 }
 0x19e   : > { %v1137_v60 = vadd.f32 %v1136_v54, %v1099_v59 }
 0x1a1   : > { %v1227_v8 = vpop.f32.mrf.mxu3 }
 0x1a3   : > { %v1170_v53 = vpop.f32.mrf.mxu1  ;;  %v1198_v0 = vpop.f32.mrf.mxu2 }
 0x1a4   : > { %v1171_v1 = vadd.f32 %v1170_v53, %v1137_v60 }
 0x1a5   : > { %v1144_v6 = vpop.f32.mrf.mxu0 }
 0x1a6   : > { %v1199_v9 = vadd.f32 %v1198_v0, %v1171_v1  ;;  %v1145_v12 = vadd.f32 %v1144_v6, %v1104_v49  ;;  %v1375_v49 = vand.u32 4294901760, %v1347_v23  ;;  %v1370_v1 = vsub.f32 %v1368_v11, %v1369_v43  ;;  %v3546_v6 = vld [vmem:[%s4497_s6 + $0x10] sm:$0xff] }
 0x1a7   : > { %1585 = vperm.xlu1 %3618, %v3546_v6  }
 0x1a8   : > { %v1228_v13 = vadd.f32 %v1227_v8, %v1199_v9 }
 0x1a9   : > { %v1233_v56 = vpop.f32.mrf.mxu3 }
 0x1ab   : > { %v1174_v2 = vpop.f32.mrf.mxu1  ;;  %v1203_v19 = vpop.f32.mrf.mxu2 }
 0x1ac   : > { %v1175_v14 = vadd.f32 %v1174_v2, %v1145_v12  ;;  %v1376_v2 = vsub.f32 %v1347_v23, %v1375_v49 }
 0x1ad   : > { %v1257_v24 = vpop.f32.mrf.mxu0 }
 0x1ae   : > { %v1258_v47 = vadd.f32 %v1257_v24, %v1228_v13  ;;  %v1204_v48 = vadd.f32 %v1203_v19, %v1175_v14  ;;  %v1371_v14 = vand.u32 4294901760, %v1370_v1 }
 0x1b0   : > { %v1234_v21 = vadd.f32 %v1233_v56, %v1204_v48  ;;  %v1828_v48 = vld [vmem:[%s4498_s7 + $0x8] sm:$0xff] }
 0x1b1   : > { %1836 = vperm.xlu1 %3618, %v1828_v48  }
 0x1b3   : > { %v1283_v18 = vpop.f32.mrf.mxu1 }
 0x1b4   : > { %v1284_v55 = vadd.f32 %v1283_v18, %v1258_v47  ;;  %v1377_v18 = vand.u32 4294901760, %v1376_v2 }
 0x1b5   : > { %v1261_v26 = vpop.f32.mrf.mxu0 }
 0x1b6   : > { %v1290_v61 = vsub.f32 0.0, %v1284_v55  ;;  %v1262_v28 = vadd.f32 %v1261_v26, %v1234_v21  ;;  %v1378_v47 = vsub.f32 %v1376_v2, %v1377_v18 }
 0x1b8   : > { %v1292_v22 = vmul.f32 1.442695, %v1290_v61  ;;  %v1379_v20 = vand.u32 4294901760, %v1378_v47 }
 0x1ba   : > { %3620 = vpow2.f32 %v1292_v22  ;;  %v1340_v22 = vpop.permute.xlu1 %1339 }
 0x1bb   : > { %v1287_v27 = vpop.f32.mrf.mxu1 }
 0x1bc   : > { %v1288_v31 = vadd.f32 %v1287_v27, %v1262_v28 }
 0x1be   : > { %v1291_v32 = vsub.f32 0.0, %v1288_v31 }
 0x1c0   : > { %v3621_v33 = vpop.eup %3620  ;;  %v1294_v34 = vmul.f32 1.442695, %v1291_v32 }
 0x1c1   : > { %v1296_v36 = vadd.f32 1.0, %v3621_v33 }
 0x1c2   : > { %3622 = vpow2.f32 %v1294_v34  ;;  %v1335_v27 = vpop.permute.xlu1 %1334 }
 0x1c3   : > { %3624 = vrcp.f32 %v1296_v36  ;;  %v1309_v52 = vand.u32 2147483648, %v1296_v36  ;;  %v1307_v63 = vand.u32 2147483647, %v1296_v36  ;;  %vm1303_vm3 = vweird.f32 %v1296_v36 }
 0x1c5   : > { %v1310_v7 = vor.u32 1.1754944e-38, %v1309_v52  ;;  %vm1308_vm5 = vcmp.eq.f32.partialorder %v1307_v63, 8.507059e+37 }
 0x1c8   : > { %v3623_v39 = vpop.eup %3622 }
 0x1c9   : > { %v3625_v40 = vpop.eup %3624  ;;  %v1297_v41 = vadd.f32 1.0, %v3623_v39 }
 0x1ca   : > { %v1299_v44 = vmul.f32 %v3625_v40, %v1296_v36  ;;  %vm1304_vm2 = vweird.f32 %v3625_v40 }
 0x1cb   : > { %3626 = vrcp.f32 %v1297_v41  ;;  %vm1305_vm4 = vmor %vm1303_vm3, %vm1304_vm2  ;;  %v1324_v35 = vand.u32 2147483648, %v1297_v41  ;;  %v1322_v54 = vand.u32 2147483647, %v1297_v41  ;;  %vm1318_vm7 = vweird.f32 %v1297_v41 }
 0x1cc   : > { %v1300_v50 = vsub.f32 1.0, %v1299_v44 }
 0x1cd   : > { %v1325_v0 = vor.u32 1.1754944e-38, %v1324_v35  ;;  %vm1323_vm9 = vcmp.eq.f32.partialorder %v1322_v54, 8.507059e+37 }
 0x1ce   : > { %v1301_v58 = vmul.f32 %v3625_v40, %v1300_v50 }
 0x1d0   : > { %v1302_v4 = vadd.f32 %v3625_v40, %v1301_v58 }
 0x1d1   : > { %v3627_v5 = vpop.eup %3626 }
 0x1d2   : > { %v1314_v16 = vmul.f32 %v3627_v5, %v1297_v41  ;;  %v1306_v17 = vsel %vm1305_vm4, %v3625_v40, %v1302_v4  ;;  %vm1319_vm6 = vweird.f32 %v3627_v5 }
 0x1d3   : > { %v1311_v29 = vsel %vm1308_vm5, %v1310_v7, %v1306_v17  ;;  %vm1320_vm8 = vmor %vm1318_vm7, %vm1319_vm6 }
 0x1d4   : > { %v1315_v30 = vsub.f32 1.0, %v1314_v16  ;;  %v1365_v59 = vand.u32 4294901760, %v1311_v29 }
 0x1d6   : > { %v1316_v53 = vmul.f32 %v3627_v5, %v1315_v30  ;;  %v1405_v9 = vsub.f32 %v1311_v29, %v1365_v59  ;;  %v3544_v30 = vld [vmem:[%s4496_s5 + $0x10] sm:$0xff] }
 0x1d7   : > { %v1594_v54 = vsel %vm1342_vm1, %v3544_v30, 0  ;;  %v3551_v30 = vld [vmem:[%s4502_s11 + $0x18] sm:$0xff] }
 0x1d8   : > { %v1317_v60 = vadd.f32 %v3627_v5, %v1316_v53  ;;  %v1406_v24 = vand.u32 4294901760, %v1405_v9  ;;  %v4246_v1 = vand.u32 4294901760, %v1594_v54 }
 0x1da   : > { %v1321_v8 = vsel %vm1320_vm8, %v3627_v5, %v1317_v60  ;;  %v1407_v56 = vsub.f32 %v1405_v9, %v1406_v24 }
 0x1db   : > { %v1326_v12 = vsel %vm1323_vm9, %v1325_v0, %v1321_v8  ;;  %v3545_v8 = vld [vmem:[%s4496_s5 + $0x18] sm:$0xff] }
 0x1dc   : > { %v1363_v13 = vand.u32 4294901760, %v1326_v12  ;;  %v1408_v21 = vand.u32 4294901760, %v1407_v56 }
 0x1de   : > { %1364 = vmatpush.msrb.mxu2 %v1363_v13  ;;  %1465 = vmatpush.msra.mxu1 %v1363_v13  ;;  %v1399_v19 = vsub.f32 %v1326_v12, %v1363_v13 }
 0x1e0   : > { %1366 = vmatpush.msrb.mxu2 %v1365_v59  ;;  %1435 = vmatpush.msra.mxu0 %v1399_v19  ;;  %v1400_v25 = vand.u32 4294901760, %v1399_v19 }
 0x1e1   : > { %1467 = vmatpush.msra.mxu1 %v1365_v59  ;;  %1372 = vmatmul.f32.vlgmr.msrb.gmra.mxu2 %v1371_v14  ;;  %v1618_v14 = vsub.f32 %v1594_v54, %v4246_v1 }
 0x1e2   : > { %1438 = vmatpush.msra.mxu0 %v1405_v9  ;;  %1498 = vmatpush.msra.mxu2 %v1400_v25  ;;  %v1401_v55 = vsub.f32 %v1399_v19, %v1400_v25  ;;  %v1597_v25 = vsel %vm1342_vm1, %v3545_v8, 0 }
 0x1e3   : > { %1441 = vmatmul.f32.vlgmr.msra.gmra.mxu0 %v1368_v11  ;;  %1471 = vmatmul.f32.vlgmr.msra.gmra.mxu1 %v1369_v43  ;;  %v1619_v56 = vand.u32 4294901760, %v1618_v14 }
 0x1e4   : > { %1502 = vmatpush.msra.mxu2 %v1406_v24  ;;  %v1402_v61 = vand.u32 4294901760, %v1401_v55 }
 0x1e6   : > { %1403 = vmatpush.msrb.mxu3 %v1402_v61  ;;  %v4256_v61 = vand.u32 4294901760, %v1597_v25 }
 0x1e8   : > { %1409 = vmatpush.msrb.mxu3 %v1408_v21 }
 0x1e9   : > { %1380 = vmatmul.f32.gmra.mxu2 %v1379_v20  ;;  %1411 = vmatmul.f32.vlgmr.msrb.gmra.mxu3 %v4220_v57 }
 0x1ea   : > { %1527 = vmatpush.msra.mxu3 %v1363_v13 }
 0x1eb   : > { %1446 = vmatmul.f32.gmra.mxu0 %v1376_v2  ;;  %1477 = vmatmul.f32.gmra.mxu1 %v1377_v18  ;;  %v1850_v18 = vld [vmem:[%s4500_s9] sm:$0xff] }
 0x1ec   : > { %1529 = vmatpush.msra.mxu3 %v1365_v59  ;;  %v1851_v59 = vld [vmem:[%s4500_s9 + $0x8] sm:$0xff] }
 0x1ed   : > { %1859 = vperm.xlu2 %3619, %v1851_v59  }
 0x1f1   : > { %1415 = vmatmul.f32.gmra.mxu3 %v1375_v49  ;;  %1504 = vmatmul.f32.vlgmr.msra.gmra.mxu2 %v4220_v57 }
 0x1f5   : > { %1854 = vperm.xlu2 %3619, %v1850_v18  }
 0x1f9   : > { %1508 = vmatmul.f32.gmra.mxu2 %v1375_v49  ;;  %1531 = vmatmul.f32.vlgmr.msra.gmra.mxu3 %v4220_v57 }
 0x201   : > { %1535 = vmatmul.f32.gmra.mxu3 %v1375_v49 }
 0x247   : > { %v1860_v59 = vpop.permute.xlu2 %1859 }
 0x260   : > { %v1442_v33 = vpop.f32.mrf.mxu0  ;;  %v1472_v36 = vpop.f32.mrf.mxu1 }
 0x264   : > { %v1373_v26 = vpop.f32.mrf.mxu2 }
 0x265   : > { %v1374_v32 = vadd.f32 %v1373_v26, %v1335_v27 }
 0x268   : > { %v1447_v45 = vpop.f32.mrf.mxu0  ;;  %v1478_v58 = vpop.f32.mrf.mxu1 }
 0x26c   : > { %v1381_v28 = vpop.f32.mrf.mxu2  ;;  %v1412_v31 = vpop.f32.mrf.mxu3 }
 0x26d   : > { %v1413_v34 = vadd.f32 %v1412_v31, %v1374_v32  ;;  %v1382_v38 = vadd.f32 %v1381_v28, %v1340_v22  ;;  %v1620_v28 = vsub.f32 %v1618_v14, %v1619_v56  ;;  %v1626_v31 = vsub.f32 %v1597_v25, %v4256_v61  ;;  %v1848_v32 = vld [vmem:[%s4499_s8] sm:$0xff] }
 0x26f   : > { %v1443_v39 = vadd.f32 %v1442_v33, %v1413_v34  ;;  %v2481_v33 = vld [vmem:[%s4505_s14 + $0x8] sm:$0xff] }
 0x270   : > { %2489 = vperm.xlu2 %3619, %v2481_v33   ;;  %v4303_v33 = vpop.permute.xlu0 %2058 }
 0x271   : > { %v1473_v41 = vadd.f32 %v1472_v36, %v1443_v39  ;;  %v1863_v39 = vsel %vm1106_vm0, %v1848_v32, 0 }
 0x274   : > { %v1416_v37 = vpop.f32.mrf.mxu3  ;;  %v1505_v40 = vpop.f32.mrf.mxu2 }
 0x275   : > { %v1417_v44 = vadd.f32 %v1416_v37, %v1382_v38  ;;  %v1506_v46 = vadd.f32 %v1505_v40, %v1473_v41  ;;  %v1621_v40 = vand.u32 4294901760, %v1620_v28  ;;  %v1627_v41 = vand.u32 4294901760, %v1626_v31 }
 0x277   : > { %v1448_v52 = vadd.f32 %v1447_v45, %v1417_v44 }
 0x279   : > { %v1479_v4 = vadd.f32 %v1478_v58, %v1448_v52  ;;  %v1628_v52 = vsub.f32 %v1626_v31, %v1627_v41 }
 0x27c   : > { %v1532_v50 = vpop.f32.mrf.mxu3  ;;  %v1509_v3 = vpop.f32.mrf.mxu2 }
 0x27d   : > { %v1533_v57 = vadd.f32 %v1532_v50, %v1506_v46  ;;  %v1510_v7 = vadd.f32 %v1509_v3, %v1479_v4  ;;  %v1885_v46 = vand.u32 4294901760, %v1863_v39  ;;  %v2679_v4 = vld [vmem:[%s4507_s16] sm:$0xff] }
 0x27e   : > { %2683 = vperm.xlu2 %3619, %v2679_v4  }
 0x27f   : > { %v1539_v63 = vsub.f32 0.0, %v1533_v57  ;;  %v1849_v57 = vld [vmem:[%s4499_s8 + $0x8] sm:$0xff]  ;;  %v1886_v3 = vsub.f32 %v1863_v39, %v1885_v46 }
 0x281   : > { %v1541_v5 = vmul.f32 1.442695, %v1539_v63 }
 0x283   : > { %3628 = vpow2.f32 %v1541_v5 }
 0x284   : > { %v1536_v11 = vpop.f32.mrf.mxu3 }
 0x285   : > { %v1537_v15 = vadd.f32 %v1536_v11, %v1510_v7  ;;  %v1866_v7 = vsel %vm1106_vm0, %v1849_v57, 0  ;;  %v1629_v11 = vand.u32 4294901760, %v1628_v52 }
 0x286   : > { %2274 = vperm.xlu2 %3619, %v3551_v30  }
 0x287   : > { %v1540_v16 = vsub.f32 0.0, %v1537_v15 }
 0x289   : > { %v3629_v17 = vpop.eup %3628  ;;  %v1543_v23 = vmul.f32 1.442695, %v1540_v16  ;;  %v1887_v16 = vand.u32 4294901760, %v1886_v3 }
 0x28a   : > { %v1545_v29 = vadd.f32 1.0, %v3629_v17  ;;  %v1893_v17 = vand.u32 4294901760, %v1866_v7 }
 0x28b   : > { %3630 = vpow2.f32 %v1543_v23  ;;  %v1888_v23 = vsub.f32 %v1886_v3, %v1887_v16 }
 0x28c   : > { %3632 = vrcp.f32 %v1545_v29  ;;  %v1558_v0 = vand.u32 2147483648, %v1545_v29  ;;  %v1556_v6 = vand.u32 2147483647, %v1545_v29  ;;  %vm1552_vm11 = vweird.f32 %v1545_v29 }
 0x28e   : > { %v1559_v13 = vor.u32 1.1754944e-38, %v1558_v0  ;;  %vm1557_vm13 = vcmp.eq.f32.partialorder %v1556_v6, 8.507059e+37  ;;  %v4291_v0 = vpop.permute.xlu1 %2053 }
 0x291   : > { %v3631_v35 = vpop.eup %3630 }
 0x292   : > { %v3633_v43 = vpop.eup %3632  ;;  %v1546_v49 = vadd.f32 1.0, %v3631_v35  ;;  %v1889_v35 = vand.u32 4294901760, %v1888_v23 }
 0x293   : > { %v1548_v53 = vmul.f32 %v3633_v43, %v1545_v29  ;;  %vm1553_vm10 = vweird.f32 %v3633_v43  ;;  %v1894_v29 = vsub.f32 %v1866_v7, %v1893_v17 }
 0x294   : > { %3634 = vrcp.f32 %v1546_v49  ;;  %vm1554_vm12 = vmor %vm1552_vm11, %vm1553_vm10  ;;  %v1573_v55 = vand.u32 2147483648, %v1546_v49  ;;  %v1571_v21 = vand.u32 2147483647, %v1546_v49  ;;  %vm1567_vm15 = vweird.f32 %v1546_v49 }
 0x295   : > { %v1549_v60 = vsub.f32 1.0, %v1548_v53  ;;  %v3547_v53 = vld [vmem:[%s4497_s6 + $0x18] sm:$0xff] }
 0x296   : > { %v1574_v27 = vor.u32 1.1754944e-38, %v1573_v55  ;;  %vm1572_vm3 = vcmp.eq.f32.partialorder %v1571_v21, 8.507059e+37  ;;  %1590 = vperm.xlu2 %3619, %v3547_v53   ;;  %v4295_v6 = vpop.permute.xlu1 %2688 }
 0x297   : > { %v1550_v2 = vmul.f32 %v3633_v43, %v1549_v60  ;;  %v1855_v60 = vpop.permute.xlu2 %1854 }
 0x299   : > { %v1551_v9 = vadd.f32 %v3633_v43, %v1550_v2 }
 0x29a   : > { %v3635_v12 = vpop.eup %3634 }
 0x29b   : > { %v1563_v19 = vmul.f32 %v3635_v12, %v1546_v49  ;;  %v1555_v24 = vsel %vm1554_vm12, %v3633_v43, %v1551_v9  ;;  %vm1568_vm14 = vweird.f32 %v3635_v12  ;;  %v1895_v43 = vand.u32 4294901760, %v1894_v29 }
 0x29c   : > { %v1560_v47 = vsel %vm1557_vm13, %v1559_v13, %v1555_v24  ;;  %vm1569_vm2 = vmor %vm1567_vm15, %vm1568_vm14 }
 0x29d   : > { %v1564_v48 = vsub.f32 1.0, %v1563_v19  ;;  %v1615_v22 = vand.u32 4294901760, %v1560_v47  ;;  %v1896_v49 = vsub.f32 %v1894_v29, %v1895_v43 }
 0x29e   : > { %v4299_v8 = vpop.permute.xlu1 %2897 }
 0x29f   : > { %v1565_v20 = vmul.f32 %v3635_v12, %v1564_v48  ;;  %v1655_v36 = vsub.f32 %v1560_v47, %v1615_v22  ;;  %v1897_v54 = vand.u32 4294901760, %v1896_v49 }
 0x2a1   : > { %v1566_v26 = vadd.f32 %v3635_v12, %v1565_v20  ;;  %v1656_v45 = vand.u32 4294901760, %v1655_v36 }
 0x2a3   : > { %v1570_v34 = vsel %vm1569_vm2, %v3635_v12, %v1566_v26  ;;  %v1657_v63 = vsub.f32 %v1655_v36, %v1656_v45 }
 0x2a4   : > { %v1575_v37 = vsel %vm1572_vm3, %v1574_v27, %v1570_v34 }
 0x2a5   : > { %v1613_v38 = vand.u32 4294901760, %v1575_v37  ;;  %v1658_v15 = vand.u32 4294901760, %v1657_v63 }
 0x2a6   : > { %v1586_v13 = vpop.permute.xlu1 %1585 }
 0x2a7   : > { %1614 = vmatpush.msrb.mxu0 %v1613_v38  ;;  %1715 = vmatpush.msrb.mxu3 %v1613_v38  ;;  %v1649_v44 = vsub.f32 %v1575_v37, %v1613_v38 }
 0x2a9   : > { %1616 = vmatpush.msrb.mxu0 %v1615_v22  ;;  %1685 = vmatpush.msrb.mxu2 %v1649_v44  ;;  %v1650_v50 = vand.u32 4294901760, %v1649_v44 }
 0x2aa   : > { %1717 = vmatpush.msrb.mxu3 %v1615_v22  ;;  %1622 = vmatmul.f32.vlgmr.msrb.gmra.mxu0 %v1621_v40 }
 0x2ab   : > { %1688 = vmatpush.msrb.mxu2 %v1655_v36  ;;  %1748 = vmatpush.msra.mxu0 %v1650_v50  ;;  %v1651_v58 = vsub.f32 %v1649_v44, %v1650_v50 }
 0x2ac   : > { %1691 = vmatmul.f32.vlgmr.msrb.gmra.mxu2 %v1618_v14  ;;  %1721 = vmatmul.f32.vlgmr.msrb.gmra.mxu3 %v1619_v56 }
 0x2ad   : > { %1752 = vmatpush.msra.mxu0 %v1656_v45  ;;  %v1652_v5 = vand.u32 4294901760, %v1651_v58  ;;  %1884 = vmatpush.msra.mxu2 %v4160_v42  ;;  %v4305_v58 = vpop.permute.xlu0 %2484 }
 0x2ae   : > { %1922 = vmatpush.msra.mxu3 %v4185_v10 }
 0x2af   : > { %1949 = vmatpush.msrb.mxu0 %v4171_v51  ;;  %1653 = vmatpush.msrb.mxu1 %v1652_v5 }
 0x2b0   : > { %2009 = vmatpush.msrb.mxu2 %v4177_v62  ;;  %2035 = vmatpush.msrb.mxu3 %v4160_v42 }
 0x2b1   : > { %1659 = vmatpush.msrb.mxu1 %v1658_v15 }
 0x2b2   : > { %1630 = vmatmul.f32.gmra.mxu0 %v1629_v11  ;;  %1661 = vmatmul.f32.vlgmr.msrb.gmra.mxu1 %v4246_v1 }
 0x2b3   : > { %1777 = vmatpush.msra.mxu1 %v1613_v38 }
 0x2b4   : > { %1696 = vmatmul.f32.gmra.mxu2 %v1626_v31  ;;  %1727 = vmatmul.f32.gmra.mxu3 %v1627_v41 }
 0x2b5   : > { %1779 = vmatpush.msra.mxu1 %v1615_v22 }
 0x2b7   : > { %1977 = vmatpush.msrb.mxu1 %v4160_v42 }
 0x2ba   : > { %1665 = vmatmul.f32.gmra.mxu1 %v4256_v61  ;;  %1754 = vmatmul.f32.vlgmr.msra.gmra.mxu0 %v4246_v1 }
 0x2bc   : > { %1890 = vmatmul.f32.vlgmr.msra.gmra.mxu2 %v1889_v35  ;;  %1924 = vmatmul.f32.vlgmr.msra.gmra.mxu3 %v1885_v46 }
 0x2c2   : > { %1758 = vmatmul.f32.gmra.mxu0 %v4256_v61  ;;  %1781 = vmatmul.f32.vlgmr.msra.gmra.mxu1 %v4246_v1 }
 0x2c4   : > { %1898 = vmatmul.f32.gmra.mxu2 %v1897_v54  ;;  %1928 = vmatmul.f32.gmra.mxu3 %v1893_v17  ;;  %v4316_v54 = vpop.permute.xlu0 %2902 }
 0x2ca   : > { %1785 = vmatmul.f32.gmra.mxu1 %v4256_v61  ;;  %1952 = vmatmul.f32.vlgmr.msrb.gmra.mxu0 %v1886_v3  ;;  %v4293_v2 = vpop.permute.xlu2 %2489  ;;  %v2047_v3 = vld [vmem:[%s4533_s23] sm:$0xff] }
 0x2cb   : > { %v2062_v15 = vsel %vm1342_vm1, %v2047_v3, 0  ;;  %v3549_v3 = vld [vmem:[%s4533_s23 + $0x18] sm:$0xff] }
 0x2cc   : > { %2011 = vmatmul.f32.vlgmr.msrb.gmra.mxu2 %v1885_v46  ;;  %2037 = vmatmul.f32.vlgmr.msrb.gmra.mxu3 %v1885_v46 }
 0x2d2   : > { %1957 = vmatmul.f32.gmra.mxu0 %v1894_v29  ;;  %1981 = vmatmul.f32.vlgmr.msrb.gmra.mxu1 %v1887_v16  ;;  %v4314_v29 = vand.u32 4294901760, %v2062_v15 }
 0x2d4   : > { %2015 = vmatmul.f32.gmra.mxu2 %v1893_v17  ;;  %2041 = vmatmul.f32.gmra.mxu3 %v1893_v17 }
 0x2d8   : > { %v4297_v1 = vpop.permute.xlu2 %2683 }
 0x2da   : > { %1987 = vmatmul.f32.gmra.mxu1 %v1895_v43 }
 0x2e0   : > { %v4301_v12 = vpop.permute.xlu2 %2274 }
 0x2f0   : > { %v1591_v48 = vpop.permute.xlu2 %1590 }
 0x327   : > { %v1623_v9 = vpop.f32.mrf.mxu0 }
 0x328   : > { %v1624_v14 = vadd.f32 %v1623_v9, %v1586_v13  ;;  %v4319_v9 = vsub.f32 %v2062_v15, %v4314_v29  ;;  %v2048_v13 = vld [vmem:[%s4533_s23 + $0x8] sm:$0xff] }
 0x32f   : > { %v1631_v18 = vpop.f32.mrf.mxu0  ;;  %v1662_v19 = vpop.f32.mrf.mxu1 }
 0x330   : > { %v1663_v24 = vadd.f32 %v1662_v19, %v1624_v14  ;;  %v1692_v25 = vpop.f32.mrf.mxu2  ;;  %v1722_v47 = vpop.f32.mrf.mxu3  ;;  %v1632_v61 = vadd.f32 %v1631_v18, %v1591_v48 }
 0x332   : > { %v1693_v55 = vadd.f32 %v1692_v25, %v1663_v24 }
 0x334   : > { %v1723_v56 = vadd.f32 %v1722_v47, %v1693_v55  ;;  %v2065_v55 = vsel %vm1342_vm1, %v2048_v13, 0 }
 0x337   : > { %v1666_v20 = vpop.f32.mrf.mxu1  ;;  %v1755_v21 = vpop.f32.mrf.mxu0 }
 0x338   : > { %v1667_v22 = vadd.f32 %v1666_v20, %v1632_v61  ;;  %v1756_v26 = vadd.f32 %v1755_v21, %v1723_v56  ;;  %v1697_v27 = vpop.f32.mrf.mxu2  ;;  %v1728_v28 = vpop.f32.mrf.mxu3  ;;  %v2087_v61 = vand.u32 4294901760, %v4319_v9 }
 0x33a   : > { %v1698_v31 = vadd.f32 %v1697_v27, %v1667_v22 }
 0x33c   : > { %v1729_v32 = vadd.f32 %v1728_v28, %v1698_v31  ;;  %v4332_v28 = vand.u32 4294901760, %v2065_v55 }
 0x33f   : > { %v1759_v34 = vpop.f32.mrf.mxu0  ;;  %v1782_v36 = vpop.f32.mrf.mxu1 }
 0x340   : > { %v1760_v37 = vadd.f32 %v1759_v34, %v1729_v32  ;;  %v1783_v38 = vadd.f32 %v1782_v36, %v1756_v26  ;;  %v1891_v39 = vpop.f32.mrf.mxu2  ;;  %v1925_v40 = vpop.f32.mrf.mxu3  ;;  %v2088_v34 = vsub.f32 %v4319_v9, %v2087_v61 }
 0x341   : > { %v1892_v46 = vadd.f32 %v1891_v39, %v1855_v60 }
 0x342   : > { %v1789_v41 = vsub.f32 0.0, %v1783_v38  ;;  %v4335_v38 = vpop.permute.xlu0 %2269 }
 0x343   : > { %v1926_v7 = vadd.f32 %v1925_v40, %v1892_v46  ;;  %v2094_v40 = vsub.f32 %v2065_v55, %v4332_v28 }
 0x344   : > { %v1791_v44 = vmul.f32 1.442695, %v1789_v41 }
 0x346   : > { %3636 = vpow2.f32 %v1791_v44 }
 0x347   : > { %v1786_v45 = vpop.f32.mrf.mxu1  ;;  %v1953_v63 = vpop.f32.mrf.mxu0 }
 0x348   : > { %v1787_v50 = vadd.f32 %v1786_v45, %v1760_v37  ;;  %v1899_v52 = vpop.f32.mrf.mxu2  ;;  %v1929_v57 = vpop.f32.mrf.mxu3  ;;  %v1954_v17 = vadd.f32 %v1953_v63, %v1926_v7  ;;  %v2095_v7 = vand.u32 4294901760, %v2094_v40 }
 0x349   : > { %v1900_v30 = vadd.f32 %v1899_v52, %v1860_v59 }
 0x34a   : > { %v1790_v4 = vsub.f32 0.0, %v1787_v50  ;;  %v2089_v50 = vand.u32 4294901760, %v2088_v34 }
 0x34b   : > { %v1930_v18 = vadd.f32 %v1929_v57, %v1900_v30 }
 0x34c   : > { %v3637_v5 = vpop.eup %3636  ;;  %v1793_v11 = vmul.f32 1.442695, %v1790_v4 }
 0x34d   : > { %v4311_v16 = vadd.f32 1.0, %v3637_v5 }
 0x34e   : > { %3638 = vpow2.f32 %v1793_v11 }
 0x34f   : > { %3640 = vrcp.f32 %v4311_v16  ;;  %v1982_v23 = vpop.f32.mrf.mxu1  ;;  %v1958_v60 = vpop.f32.mrf.mxu0  ;;  %v1808_v46 = vand.u32 2147483648, %v4311_v16  ;;  %vm1802_vm5 = vweird.f32 %v4311_v16  ;;  %v1806_v63 = vand.u32 2147483647, %v4311_v16 }
 0x350   : > { %v1983_v35 = vadd.f32 %v1982_v23, %v1954_v17  ;;  %v2012_v43 = vpop.f32.mrf.mxu2  ;;  %v2038_v49 = vpop.f32.mrf.mxu3  ;;  %v1959_v47 = vadd.f32 %v1958_v60, %v1930_v18 }
 0x351   : > { %v1809_v30 = vor.u32 1.1754944e-38, %v1808_v46  ;;  %vm1807_vm9 = vcmp.eq.f32.partialorder %v1806_v63, 8.507059e+37 }
 0x352   : > { %v2013_v53 = vadd.f32 %v2012_v43, %v1983_v35 }
 0x354   : > { %v3639_v14 = vpop.eup %3638  ;;  %v2039_v19 = vadd.f32 %v2038_v49, %v2013_v53  ;;  %v2096_v53 = vsub.f32 %v2094_v40, %v2095_v7 }
 0x355   : > { %v3641_v24 = vpop.eup %3640  ;;  %v1796_v25 = vadd.f32 1.0, %v3639_v14 }
 0x356   : > { %v1798_v59 = vmul.f32 %v3641_v24, %v4311_v16  ;;  %v4325_v48 = vmax.f32 %v2039_v19, 0.0  ;;  %vm1803_vm4 = vweird.f32 %v3641_v24  ;;  %v1832_v19 = vpop.permute.xlu0 %1831 }
 0x357   : > { %3642 = vrcp.f32 %v1796_v25  ;;  %v1988_v56 = vpop.f32.mrf.mxu1  ;;  %vm4346_vm6 = vmor %vm1802_vm5, %vm1803_vm4  ;;  %v1823_v4 = vand.u32 2147483648, %v1796_v25  ;;  %v1821_v11 = vand.u32 2147483647, %v1796_v25  ;;  %vm1817_vm8 = vweird.f32 %v1796_v25 }
 0x358   : > { %v1799_v20 = vsub.f32 1.0, %v1798_v59  ;;  %v1989_v21 = vadd.f32 %v1988_v56, %v1959_v47  ;;  %v2016_v22 = vpop.f32.mrf.mxu2  ;;  %v4330_v26 = vand.u32 4294901760, %v4325_v48  ;;  %v2042_v27 = vpop.f32.mrf.mxu3  ;;  %v2097_v56 = vand.u32 4294901760, %v2096_v53 }
 0x359   : > { %v1824_v49 = vor.u32 1.1754944e-38, %v1823_v4  ;;  %vm1822_vm11 = vcmp.eq.f32.partialorder %v1821_v11, 8.507059e+37 }
 0x35a   : > { %v1800_v31 = vmul.f32 %v3641_v24, %v1799_v20  ;;  %v2017_v32 = vadd.f32 %v2016_v22, %v1989_v21  ;;  %v2123_v39 = vsub.f32 %v4325_v48, %v4330_v26 }
 0x35c   : > { %v2043_v36 = vadd.f32 %v2042_v27, %v2017_v32  ;;  %v1801_v45 = vadd.f32 %v3641_v24, %v1800_v31  ;;  %v2124_v5 = vand.u32 4294901760, %v2123_v39 }
 0x35d   : > { %v3643_v37 = vpop.eup %3642 }
 0x35e   : > { %v1813_v41 = vmul.f32 %v3643_v37, %v1796_v25  ;;  %v4340_v44 = vmax.f32 %v2043_v36, 0.0  ;;  %vm1818_vm7 = vweird.f32 %v3643_v37  ;;  %v1805_v23 = vsel %vm4346_vm6, %v3641_v24, %v1801_v45  ;;  %v1837_v24 = vpop.permute.xlu1 %1836 }
 0x35f   : > { %vm4354_vm10 = vmor %vm1817_vm8, %vm1818_vm7  ;;  %v1810_v60 = vsel %vm1807_vm9, %v1809_v30, %v1805_v23  ;;  %v2125_v14 = vsub.f32 %v2123_v39, %v2124_v5 }
 0x360   : > { %v1814_v52 = vsub.f32 1.0, %v1813_v41  ;;  %v2081_v57 = vand.u32 4294901760, %v4340_v44  ;;  %v1839_v47 = vmul.f32 %v1832_v19, %v1810_v60 }
 0x361   : > { %v2126_v20 = vand.u32 4294901760, %v2125_v14 }
 0x362   : > { %v1815_v15 = vmul.f32 %v3643_v37, %v1814_v52  ;;  %v2117_v17 = vsub.f32 %v4340_v44, %v2081_v57  ;;  %2082 = vmatpush.msra.mxu0 %v2081_v57  ;;  %2183 = vmatpush.msra.mxu3 %v2081_v57 }
 0x364   : > { %2084 = vmatpush.msra.mxu0 %v4330_v26  ;;  %2153 = vmatpush.msra.mxu2 %v2117_v17  ;;  %v2118_v16 = vand.u32 4294901760, %v2117_v17  ;;  %v1816_v35 = vadd.f32 %v3643_v37, %v1815_v15  ;;  %v2281_v15 = vsel %vm1342_vm1, %v3549_v3, 0 }
 0x365   : > { %2185 = vmatpush.msra.mxu3 %v4330_v26  ;;  %2090 = vmatmul.f32.vlgmr.msra.gmra.mxu0 %v2089_v50 }
 0x366   : > { %2156 = vmatpush.msra.mxu2 %v2123_v39  ;;  %2216 = vmatpush.msrb.mxu0 %v2118_v16  ;;  %v2119_v13 = vsub.f32 %v2117_v17, %v2118_v16  ;;  %v1820_v18 = vsel %vm4354_vm10, %v3643_v37, %v1816_v35  ;;  %v3548_v39 = vld [vmem:[%s4533_s23 + $0x10] sm:$0xff]  ;;  %v4387_v16 = vand.u32 4294901760, %v2281_v15 }
 0x367   : > { %2159 = vmatmul.f32.vlgmr.msra.gmra.mxu2 %v4319_v9  ;;  %2189 = vmatmul.f32.vlgmr.msra.gmra.mxu3 %v2087_v61  ;;  %v1825_v25 = vsel %vm1822_vm11, %v1824_v49, %v1820_v18 }
 0x368   : > { %2220 = vmatpush.msrb.mxu0 %v2124_v5  ;;  %v2120_v59 = vand.u32 4294901760, %v2119_v13  ;;  %v1840_v55 = vmul.f32 %v1837_v24, %v1825_v25  ;;  %v2310_v60 = vsub.f32 %v2281_v15, %v4387_v16  ;;  %v2478_v13 = vld [vmem:[%s4538_s13] sm:$0xff] }
 0x369   : > { %v2493_v19 = vsel %vm1106_vm0, %v2478_v13, 0 }
 0x36a   : > { %2121 = vmatpush.msra.mxu1 %v2120_v59  ;;  %v4362_v21 = vadd.f32 %v1840_v55, %v1839_v47  ;;  %v2311_v25 = vand.u32 4294901760, %v2310_v60  ;;  %v2515_v55 = vand.u32 4294901760, %v2493_v19 }
 0x36c   : > { %2127 = vmatpush.msra.mxu1 %v2126_v20  ;;  %v2479_v20 = vld [vmem:[%s4538_s13 + $0x8] sm:$0xff] }
 0x36d   : > { %2098 = vmatmul.f32.gmra.mxu0 %v2097_v56  ;;  %2129 = vmatmul.f32.vlgmr.msra.gmra.mxu1 %v4314_v29 }
 0x36e   : > { %2245 = vmatpush.msrb.mxu1 %v2081_v57 }
 0x36f   : > { %2164 = vmatmul.f32.gmra.mxu2 %v2094_v40  ;;  %2195 = vmatmul.f32.gmra.mxu3 %v2095_v7 }
 0x370   : > { %2247 = vmatpush.msrb.mxu1 %v4330_v26 }
 0x375   : > { %2133 = vmatmul.f32.gmra.mxu1 %v4332_v28  ;;  %2222 = vmatmul.f32.vlgmr.msrb.gmra.mxu0 %v4314_v29 }
 0x37d   : > { %2226 = vmatmul.f32.gmra.mxu0 %v4332_v28  ;;  %2249 = vmatmul.f32.vlgmr.msrb.gmra.mxu1 %v4314_v29 }
 0x385   : > { %2253 = vmatmul.f32.gmra.mxu1 %v4332_v28  ;;  %v2278_v28 = vsel %vm1342_vm1, %v3548_v39, 0 }
 0x3e2   : > { %v2091_v9 = vpop.f32.mrf.mxu0 }
 0x3e3   : > { %v2092_v27 = vadd.f32 %v2091_v9, %v4291_v0  ;;  %v4377_v0 = vand.u32 4294901760, %v2278_v28 }
 0x3ea   : > { %v2099_v61 = vpop.f32.mrf.mxu0  ;;  %v2130_v22 = vpop.f32.mrf.mxu1 }
 0x3eb   : > { %v2160_v31 = vpop.f32.mrf.mxu2  ;;  %v2131_v32 = vadd.f32 %v2130_v22, %v2092_v27  ;;  %v2190_v34 = vpop.f32.mrf.mxu3  ;;  %v2100_v40 = vadd.f32 %v2099_v61, %v4303_v33  ;;  %v2302_v33 = vsub.f32 %v2278_v28, %v4377_v0  ;;  %v2516_v22 = vsub.f32 %v2493_v19, %v2515_v55 }
 0x3ed   : > { %v2161_v26 = vadd.f32 %v2160_v31, %v2131_v32  ;;  %v2303_v30 = vand.u32 4294901760, %v2302_v33  ;;  %v2496_v31 = vsel %vm1106_vm0, %v2479_v20, 0 }
 0x3ef   : > { %v2191_v29 = vadd.f32 %v2190_v34, %v2161_v26  ;;  %v2304_v53 = vsub.f32 %v2302_v33, %v2303_v30  ;;  %v2523_v26 = vand.u32 4294901760, %v2496_v31 }
 0x3f1   : > { %v2305_v24 = vand.u32 4294901760, %v2304_v53  ;;  %v2524_v39 = vsub.f32 %v2496_v31, %v2523_v26 }
 0x3f2   : > { %v2134_v36 = vpop.f32.mrf.mxu1  ;;  %v2223_v37 = vpop.f32.mrf.mxu0 }
 0x3f3   : > { %v2135_v41 = vadd.f32 %v2134_v36, %v2100_v40  ;;  %v2165_v45 = vpop.f32.mrf.mxu2  ;;  %v2224_v46 = vadd.f32 %v2223_v37, %v2191_v29  ;;  %v2196_v63 = vpop.f32.mrf.mxu3  ;;  %v2517_v36 = vand.u32 4294901760, %v2516_v22 }
 0x3f5   : > { %v2166_v52 = vadd.f32 %v2165_v45, %v2135_v41  ;;  %v2518_v37 = vsub.f32 %v2516_v22, %v2517_v36 }
 0x3f7   : > { %v2197_v7 = vadd.f32 %v2196_v63, %v2166_v52 }
 0x3fa   : > { %v2250_v50 = vpop.f32.mrf.mxu1  ;;  %v2227_v5 = vpop.f32.mrf.mxu0 }
 0x3fb   : > { %v2251_v57 = vadd.f32 %v2250_v50, %v2224_v46  ;;  %v2228_v17 = vadd.f32 %v2227_v5, %v2197_v7 }
 0x3fd   : > { %v2257_v4 = vmax.f32 %v2251_v57, 0.0 }
 0x3ff   : > { %v4384_v11 = vadd.f32 %v2257_v4, %v4325_v48 }
 0x401   : > { %v2299_v43 = vand.u32 4294901760, %v4384_v11 }
 0x402   : > { %v2254_v23 = vpop.f32.mrf.mxu1 }
 0x403   : > { %v2255_v35 = vadd.f32 %v2254_v23, %v2228_v17  ;;  %v2339_v14 = vsub.f32 %v4384_v11, %v2299_v43 }
 0x405   : > { %v2258_v49 = vmax.f32 %v2255_v35, 0.0  ;;  %v2340_v47 = vand.u32 4294901760, %v2339_v14 }
 0x407   : > { %v4395_v48 = vadd.f32 %v2258_v49, %v4340_v44  ;;  %v2312_v44 = vsub.f32 %v2310_v60, %v2311_v25  ;;  %v2341_v61 = vsub.f32 %v2339_v14, %v2340_v47 }
 0x409   : > { %v2297_v18 = vand.u32 4294901760, %v4395_v48  ;;  %v2313_v32 = vand.u32 4294901760, %v2312_v44  ;;  %v2342_v34 = vand.u32 4294901760, %v2341_v61  ;;  %v2678_v61 = vld [vmem:[%s4539_s21 + $0x8] sm:$0xff] }
 0x40b   : > { %2298 = vmatpush.msrb.mxu2 %v2297_v18  ;;  %2399 = vmatpush.msra.mxu1 %v2297_v18  ;;  %v2333_v59 = vsub.f32 %v4395_v48, %v2297_v18 }
 0x40d   : > { %2300 = vmatpush.msrb.mxu2 %v2299_v43  ;;  %2369 = vmatpush.msra.mxu0 %v2333_v59  ;;  %v2334_v56 = vand.u32 4294901760, %v2333_v59 }
 0x40e   : > { %2401 = vmatpush.msra.mxu1 %v2299_v43  ;;  %2306 = vmatmul.f32.vlgmr.msrb.gmra.mxu2 %v2305_v24 }
 0x40f   : > { %2372 = vmatpush.msra.mxu0 %v2339_v14  ;;  %2432 = vmatpush.msra.mxu2 %v2334_v56  ;;  %v2335_v9 = vsub.f32 %v2333_v59, %v2334_v56 }
 0x410   : > { %2375 = vmatmul.f32.vlgmr.msra.gmra.mxu0 %v2302_v33  ;;  %2405 = vmatmul.f32.vlgmr.msra.gmra.mxu1 %v2303_v30 }
 0x411   : > { %2436 = vmatpush.msra.mxu2 %v2340_v47  ;;  %v2336_v27 = vand.u32 4294901760, %v2335_v9  ;;  %2514 = vmatpush.msrb.mxu0 %v4160_v42 }
 0x412   : > { %2552 = vmatpush.msrb.mxu1 %v4185_v10  ;;  %v2525_v10 = vand.u32 4294901760, %v2524_v39 }
 0x413   : > { %2579 = vmatpush.msrb.mxu2 %v4171_v51  ;;  %2337 = vmatpush.msrb.mxu3 %v2336_v27  ;;  %v2519_v51 = vand.u32 4294901760, %v2518_v37 }
 0x414   : > { %2639 = vmatpush.msra.mxu0 %v4177_v62  ;;  %2665 = vmatpush.msra.mxu1 %v4160_v42  ;;  %v2526_v62 = vsub.f32 %v2524_v39, %v2525_v10 }
 0x415   : > { %2343 = vmatpush.msrb.mxu3 %v2342_v34 }
 0x416   : > { %2314 = vmatmul.f32.gmra.mxu2 %v2313_v32  ;;  %2345 = vmatmul.f32.vlgmr.msrb.gmra.mxu3 %v4377_v0  ;;  %v2527_v40 = vand.u32 4294901760, %v2526_v62 }
 0x417   : > { %2461 = vmatpush.msra.mxu3 %v2297_v18  ;;  %v2677_v18 = vld [vmem:[%s4539_s21] sm:$0xff] }
 0x418   : > { %2380 = vmatmul.f32.gmra.mxu0 %v2310_v60  ;;  %2411 = vmatmul.f32.gmra.mxu1 %v2311_v25  ;;  %v2692_v59 = vsel %vm1342_vm1, %v2677_v18, 0 }
 0x419   : > { %2463 = vmatpush.msra.mxu3 %v2299_v43  ;;  %v2715_v20 = vand.u32 4294901760, %v2692_v59 }
 0x41b   : > { %2607 = vmatpush.msrb.mxu3 %v4160_v42  ;;  %v2716_v31 = vsub.f32 %v2692_v59, %v2715_v20 }
 0x41e   : > { %2349 = vmatmul.f32.gmra.mxu3 %v4387_v16  ;;  %2438 = vmatmul.f32.vlgmr.msra.gmra.mxu2 %v4377_v0 }
 0x420   : > { %2520 = vmatmul.f32.vlgmr.msrb.gmra.mxu0 %v2519_v51  ;;  %2554 = vmatmul.f32.vlgmr.msrb.gmra.mxu1 %v2515_v55 }
 0x426   : > { %2442 = vmatmul.f32.gmra.mxu2 %v4387_v16  ;;  %2465 = vmatmul.f32.vlgmr.msra.gmra.mxu3 %v4377_v0 }
 0x428   : > { %2528 = vmatmul.f32.gmra.mxu0 %v2527_v40  ;;  %2558 = vmatmul.f32.gmra.mxu1 %v2523_v26 }
 0x42e   : > { %2469 = vmatmul.f32.gmra.mxu3 %v4387_v16  ;;  %2582 = vmatmul.f32.vlgmr.msrb.gmra.mxu2 %v2516_v22 }
 0x430   : > { %2641 = vmatmul.f32.vlgmr.msra.gmra.mxu0 %v2515_v55  ;;  %2667 = vmatmul.f32.vlgmr.msra.gmra.mxu1 %v2515_v55 }
 0x436   : > { %2587 = vmatmul.f32.gmra.mxu2 %v2524_v39  ;;  %2611 = vmatmul.f32.vlgmr.msrb.gmra.mxu3 %v2517_v36  ;;  %v2695_v36 = vsel %vm1342_vm1, %v2678_v61, 0 }
 0x438   : > { %2645 = vmatmul.f32.gmra.mxu0 %v2523_v26  ;;  %2671 = vmatmul.f32.gmra.mxu1 %v2523_v26 }
 0x43e   : > { %2617 = vmatmul.f32.gmra.mxu3 %v2525_v10  ;;  %v2723_v10 = vand.u32 4294901760, %v2695_v36 }
 0x48d   : > { %v2376_v42 = vpop.f32.mrf.mxu0  ;;  %v2406_v41 = vpop.f32.mrf.mxu1 }
 0x491   : > { %v2307_v29 = vpop.f32.mrf.mxu2 }
 0x492   : > { %v2308_v28 = vadd.f32 %v2307_v29, %v4335_v38 }
 0x495   : > { %v2381_v0 = vpop.f32.mrf.mxu0  ;;  %v2412_v57 = vpop.f32.mrf.mxu1 }
 0x499   : > { %v2315_v45 = vpop.f32.mrf.mxu2  ;;  %v2346_v46 = vpop.f32.mrf.mxu3 }
 0x49a   : > { %v2347_v50 = vadd.f32 %v2346_v46, %v2308_v28  ;;  %v2316_v3 = vadd.f32 %v2315_v45, %v4301_v12 }
 0x49c   : > { %v2377_v52 = vadd.f32 %v2376_v42, %v2347_v50 }
 0x49d   : > { %v2521_v17 = vpop.f32.mrf.mxu0  ;;  %v2555_v30 = vpop.f32.mrf.mxu1 }
 0x49e   : > { %v2407_v63 = vadd.f32 %v2406_v41, %v2377_v52  ;;  %v2522_v13 = vadd.f32 %v2521_v17, %v4305_v58  ;;  %v2724_v41 = vsub.f32 %v2695_v36, %v2723_v10 }
 0x4a0   : > { %v2556_v19 = vadd.f32 %v2555_v30, %v2522_v13 }
 0x4a1   : > { %v2350_v4 = vpop.f32.mrf.mxu3  ;;  %v2439_v5 = vpop.f32.mrf.mxu2 }
 0x4a2   : > { %v2351_v33 = vadd.f32 %v2350_v4, %v2316_v3  ;;  %v2440_v7 = vadd.f32 %v2439_v5, %v2407_v63 }
 0x4a4   : > { %v2382_v15 = vadd.f32 %v2381_v0, %v2351_v33  ;;  %v2725_v0 = vand.u32 4294901760, %v2724_v41 }
 0x4a5   : > { %v2529_v49 = vpop.f32.mrf.mxu0  ;;  %v2559_v53 = vpop.f32.mrf.mxu1 }
 0x4a6   : > { %v2413_v23 = vadd.f32 %v2412_v57, %v2382_v15  ;;  %v2530_v56 = vadd.f32 %v2529_v49, %v4293_v2  ;;  %v2717_v2 = vand.u32 4294901760, %v2716_v31  ;;  %v2726_v3 = vsub.f32 %v2724_v41, %v2725_v0 }
 0x4a8   : > { %v2560_v22 = vadd.f32 %v2559_v53, %v2530_v56  ;;  %v2718_v29 = vsub.f32 %v2716_v31, %v2717_v2  ;;  %v3553_v56 = vld [vmem:[%s4539_s21 + $0x18] sm:$0xff] }
 0x4a9   : > { %v2443_v16 = vpop.f32.mrf.mxu2  ;;  %v2466_v35 = vpop.f32.mrf.mxu3 }
 0x4aa   : > { %v2444_v38 = vadd.f32 %v2443_v16, %v2413_v23  ;;  %v4419_v43 = vadd.f32 %v2466_v35, %v2440_v7  ;;  %v2719_v50 = vand.u32 4294901760, %v2718_v29  ;;  %v2727_v7 = vand.u32 4294901760, %v2726_v3 }
 0x4ad   : > { %v2642_v24 = vpop.f32.mrf.mxu0  ;;  %v2668_v55 = vpop.f32.mrf.mxu1 }
 0x4b1   : > { %v2470_v60 = vpop.f32.mrf.mxu3  ;;  %v2583_v12 = vpop.f32.mrf.mxu2 }
 0x4b2   : > { %v4422_v14 = vadd.f32 %v2470_v60, %v2444_v38  ;;  %v2584_v25 = vadd.f32 %v2583_v12, %v2556_v19  ;;  %v3552_v60 = vld [vmem:[%s4539_s21 + $0x10] sm:$0xff] }
 0x4b3   : > { %v2906_v19 = vsel %vm1342_vm1, %v3552_v60, 0 }
 0x4b5   : > { %v2646_v37 = vpop.f32.mrf.mxu0  ;;  %v2672_v51 = vpop.f32.mrf.mxu1 }
 0x4b9   : > { %v2612_v47 = vpop.f32.mrf.mxu3  ;;  %v2588_v58 = vpop.f32.mrf.mxu2 }
 0x4ba   : > { %v2613_v44 = vadd.f32 %v2612_v47, %v2584_v25  ;;  %v2589_v32 = vadd.f32 %v2588_v58, %v2560_v22  ;;  %v2929_v47 = vand.u32 4294901760, %v2906_v19  ;;  %v2909_v22 = vsel %vm1342_vm1, %v3553_v56, 0 }
 0x4bc   : > { %v2643_v9 = vadd.f32 %v2642_v24, %v2613_v44  ;;  %v2930_v58 = vsub.f32 %v2906_v19, %v2929_v47 }
 0x4be   : > { %v2669_v27 = vadd.f32 %v2668_v55, %v2643_v9 }
 0x4c0   : > { %v2675_v34 = vmax.f32 %v2669_v27, 0.0 }
 0x4c1   : > { %v2618_v26 = vpop.f32.mrf.mxu3 }
 0x4c2   : > { %v2619_v39 = vadd.f32 %v2618_v26, %v2589_v32  ;;  %v2713_v62 = vand.u32 4294901760, %v2675_v34  ;;  %v2937_v32 = vand.u32 4294901760, %v2909_v22 }
 0x4c4   : > { %v2647_v40 = vadd.f32 %v2646_v37, %v2619_v39  ;;  %v2753_v28 = vsub.f32 %v2675_v34, %v2713_v62 }
 0x4c6   : > { %v2673_v42 = vadd.f32 %v2672_v51, %v2647_v40  ;;  %v2754_v57 = vand.u32 4294901760, %v2753_v28  ;;  %v2938_v51 = vsub.f32 %v2909_v22, %v2937_v32 }
 0x4c8   : > { %v2676_v45 = vmax.f32 %v2673_v42, 0.0  ;;  %v2755_v5 = vsub.f32 %v2753_v28, %v2754_v57  ;;  %v2939_v42 = vand.u32 4294901760, %v2938_v51 }
 0x4ca   : > { %v2711_v46 = vand.u32 4294901760, %v2676_v45  ;;  %v2756_v15 = vand.u32 4294901760, %v2755_v5 }
 0x4cc   : > { %v2747_v52 = vsub.f32 %v2676_v45, %v2711_v46  ;;  %2712 = vmatpush.msra.mxu2 %v2711_v46  ;;  %2813 = vmatpush.msrb.mxu1 %v2711_v46  ;;  %v2940_v45 = vsub.f32 %v2938_v51, %v2939_v42 }
 0x4ce   : > { %v2748_v63 = vand.u32 4294901760, %v2747_v52  ;;  %2714 = vmatpush.msra.mxu2 %v2713_v62  ;;  %2783 = vmatpush.msrb.mxu0 %v2747_v52 }
 0x4cf   : > { %2815 = vmatpush.msrb.mxu1 %v2713_v62  ;;  %2720 = vmatmul.f32.vlgmr.msra.gmra.mxu2 %v2719_v50 }
 0x4d0   : > { %v2749_v4 = vsub.f32 %v2747_v52, %v2748_v63  ;;  %2786 = vmatpush.msrb.mxu0 %v2753_v28  ;;  %2846 = vmatpush.msrb.mxu2 %v2748_v63  ;;  %v2941_v52 = vand.u32 4294901760, %v2940_v45 }
 0x4d1   : > { %2789 = vmatmul.f32.vlgmr.msrb.gmra.mxu0 %v2716_v31  ;;  %2819 = vmatmul.f32.vlgmr.msrb.gmra.mxu1 %v2717_v2  ;;  %v2931_v31 = vand.u32 4294901760, %v2930_v58 }
 0x4d2   : > { %2850 = vmatpush.msrb.mxu2 %v2754_v57  ;;  %v2750_v33 = vand.u32 4294901760, %v2749_v4 }
 0x4d3   : > { %v2932_v39 = vsub.f32 %v2930_v58, %v2931_v31 }
 0x4d4   : > { %2751 = vmatpush.msra.mxu3 %v2750_v33 }
 0x4d5   : > { %v2933_v40 = vand.u32 4294901760, %v2932_v39 }
 0x4d6   : > { %2757 = vmatpush.msra.mxu3 %v2756_v15 }
 0x4d7   : > { %2728 = vmatmul.f32.gmra.mxu2 %v2727_v7  ;;  %2759 = vmatmul.f32.vlgmr.msra.gmra.mxu3 %v2715_v20 }
 0x4d8   : > { %2875 = vmatpush.msrb.mxu3 %v2711_v46 }
 0x4d9   : > { %2794 = vmatmul.f32.gmra.mxu0 %v2724_v41  ;;  %2825 = vmatmul.f32.gmra.mxu1 %v2725_v0 }
 0x4da   : > { %2877 = vmatpush.msrb.mxu3 %v2713_v62 }
 0x4df   : > { %2763 = vmatmul.f32.gmra.mxu3 %v2723_v10  ;;  %2852 = vmatmul.f32.vlgmr.msrb.gmra.mxu2 %v2715_v20 }
 0x4e7   : > { %2856 = vmatmul.f32.gmra.mxu2 %v2723_v10  ;;  %2879 = vmatmul.f32.vlgmr.msrb.gmra.mxu3 %v2715_v20 }
 0x4ef   : > { %2883 = vmatmul.f32.gmra.mxu3 %v2723_v10 }
 0x54e   : > { %v2790_v35 = vpop.f32.mrf.mxu0  ;;  %v2820_v49 = vpop.f32.mrf.mxu1 }
 0x552   : > { %v2721_v17 = vpop.f32.mrf.mxu2 }
 0x553   : > { %v2722_v16 = vadd.f32 %v2721_v17, %v4297_v1 }
 0x556   : > { %v2795_v59 = vpop.f32.mrf.mxu0  ;;  %v2826_v9 = vpop.f32.mrf.mxu1 }
 0x55a   : > { %v2729_v23 = vpop.f32.mrf.mxu2  ;;  %v2760_v30 = vpop.f32.mrf.mxu3 }
 0x55b   : > { %v2761_v38 = vadd.f32 %v2760_v30, %v2722_v16  ;;  %v2730_v18 = vadd.f32 %v2729_v23, %v4295_v6  ;;  %v3103_v23 = vld [vmem:[%s4540_s25] sm:$0xff] }
 0x55d   : > { %v2791_v13 = vadd.f32 %v2790_v35, %v2761_v38  ;;  %v3105_v38 = vsel %vm1342_vm1, %v3103_v23, 0 }
 0x55f   : > { %v2821_v24 = vadd.f32 %v2820_v49, %v2791_v13  ;;  %v3125_v13 = vand.u32 4294901760, %v3105_v38 }
 0x562   : > { %v2764_v53 = vpop.f32.mrf.mxu3  ;;  %v2853_v12 = vpop.f32.mrf.mxu2 }
 0x563   : > { %v2765_v25 = vadd.f32 %v2764_v53, %v2730_v18  ;;  %v2854_v55 = vadd.f32 %v2853_v12, %v2821_v24 }
 0x565   : > { %v2796_v44 = vadd.f32 %v2795_v59, %v2765_v25  ;;  %v4449_v25 = vsub.f32 %v3105_v38, %v3125_v13 }
 0x567   : > { %v2827_v27 = vadd.f32 %v2826_v9, %v2796_v44  ;;  %v3127_v56 = vand.u32 4294901760, %v4449_v25 }
 0x56a   : > { %v2880_v1 = vpop.f32.mrf.mxu3  ;;  %v2857_v6 = vpop.f32.mrf.mxu2 }
 0x56b   : > { %v2881_v20 = vadd.f32 %v2880_v1, %v2854_v55  ;;  %v2858_v34 = vadd.f32 %v2857_v6, %v2827_v27 }
 0x56d   : > { %v2887_v61 = vmax.f32 %v2881_v20, 0.0 }
 0x56f   : > { %v2927_v36 = vand.u32 4294901760, %v2887_v61 }
 0x571   : > { %v2967_v2 = vsub.f32 %v2887_v61, %v2927_v36  ;;  %v2477_v61 = vld [vmem:[%s4541_s29] sm:$0xff] }
 0x572   : > { %v2884_v26 = vpop.f32.mrf.mxu3 }
 0x573   : > { %v2885_v37 = vadd.f32 %v2884_v26, %v2858_v34  ;;  %v2968_v41 = vand.u32 4294901760, %v2967_v2 }
 0x575   : > { %v2888_v10 = vmax.f32 %v2885_v37, 0.0  ;;  %v2969_v50 = vsub.f32 %v2967_v2, %v2968_v41 }
 0x577   : > { %v2925_v62 = vand.u32 4294901760, %v2888_v10  ;;  %v2970_v57 = vand.u32 4294901760, %v2969_v50 }
 0x579   : > { %v2961_v29 = vsub.f32 %v2888_v10, %v2925_v62  ;;  %2926 = vmatpush.msra.mxu0 %v2925_v62  ;;  %3027 = vmatpush.msra.mxu3 %v2925_v62 }
 0x57b   : > { %v2962_v28 = vand.u32 4294901760, %v2961_v29  ;;  %2928 = vmatpush.msra.mxu0 %v2927_v36  ;;  %2997 = vmatpush.msra.mxu2 %v2961_v29 }
 0x57c   : > { %3029 = vmatpush.msra.mxu3 %v2927_v36  ;;  %2934 = vmatmul.f32.vlgmr.msra.gmra.mxu0 %v2933_v40 }
 0x57d   : > { %v2963_v46 = vsub.f32 %v2961_v29, %v2962_v28  ;;  %3000 = vmatpush.msra.mxu2 %v2967_v2  ;;  %3060 = vmatpush.msrb.mxu0 %v2962_v28 }
 0x57e   : > { %3003 = vmatmul.f32.vlgmr.msra.gmra.mxu2 %v2930_v58  ;;  %3033 = vmatmul.f32.vlgmr.msra.gmra.mxu3 %v2931_v31  ;;  %v3268_v31 = vsel %vm1342_vm1, %v2477_v61, 0 }
 0x57f   : > { %3064 = vmatpush.msrb.mxu0 %v2968_v41  ;;  %v2964_v0 = vand.u32 4294901760, %v2963_v46  ;;  %v3288_v26 = vand.u32 4294901760, %v3268_v31 }
 0x581   : > { %2965 = vmatpush.msra.mxu1 %v2964_v0  ;;  %v3289_v10 = vsub.f32 %v3268_v31, %v3288_v26 }
 0x583   : > { %2971 = vmatpush.msra.mxu1 %v2970_v57  ;;  %v3290_v28 = vand.u32 4294901760, %v3289_v10 }
 0x584   : > { %2942 = vmatmul.f32.gmra.mxu0 %v2941_v52  ;;  %2973 = vmatmul.f32.vlgmr.msra.gmra.mxu1 %v2929_v47 }
 0x585   : > { %3089 = vmatpush.msrb.mxu1 %v2925_v62  ;;  %v3291_v0 = vsub.f32 %v3289_v10, %v3290_v28 }
 0x586   : > { %3008 = vmatmul.f32.gmra.mxu2 %v2938_v51  ;;  %3039 = vmatmul.f32.gmra.mxu3 %v2939_v42 }
 0x587   : > { %3091 = vmatpush.msrb.mxu1 %v2927_v36 }
 0x58c   : > { %2977 = vmatmul.f32.gmra.mxu1 %v2937_v32  ;;  %3066 = vmatmul.f32.vlgmr.msrb.gmra.mxu0 %v2929_v47 }
 0x594   : > { %3070 = vmatmul.f32.gmra.mxu0 %v2937_v32  ;;  %3093 = vmatmul.f32.vlgmr.msrb.gmra.mxu1 %v2929_v47  ;;  %v2474_v47 = vmax.f32 %v4422_v14, 0.0  ;;  %v3128_v14 = vsub.f32 %v4449_v25, %v3127_v56 }
 0x596   : > { %v2476_v9 = vadd.f32 %v2474_v47, %v4395_v48  ;;  %v3129_v48 = vand.u32 4294901760, %v3128_v14 }
 0x59c   : > { %3097 = vmatmul.f32.gmra.mxu1 %v2937_v32  ;;  %v3284_v32 = vand.u32 4294901760, %v2476_v9 }
 0x59e   : > { %v3312_v51 = vsub.f32 %v2476_v9, %v3284_v32  ;;  %v3430_v9 = vld [vmem:[%s3891_s19] sm:$0xff] }
 0x5a0   : > { %v3313_v42 = vand.u32 4294901760, %v3312_v51 }
 0x5a2   : > { %v3314_v46 = vsub.f32 %v3312_v51, %v3313_v42 }
 0x5a4   : > { %v3315_v52 = vand.u32 4294901760, %v3314_v46 }
 0x5f9   : > { %v2935_v63 = vpop.f32.mrf.mxu0 }
 0x5fa   : > { %v2936_v5 = vadd.f32 %v2935_v63, %v4299_v8  ;;  %v3292_v63 = vand.u32 4294901760, %v3291_v0 }
 0x601   : > { %v2943_v3 = vpop.f32.mrf.mxu0  ;;  %v2974_v4 = vpop.f32.mrf.mxu1 }
 0x602   : > { %v3004_v33 = vpop.f32.mrf.mxu2  ;;  %v2975_v7 = vadd.f32 %v2974_v4, %v2936_v5  ;;  %v3034_v15 = vpop.f32.mrf.mxu3  ;;  %v2944_v35 = vadd.f32 %v2943_v3, %v4316_v54  ;;  %v2473_v54 = vmax.f32 %v4419_v43, 0.0 }
 0x604   : > { %v3005_v30 = vadd.f32 %v3004_v33, %v2975_v7  ;;  %v2475_v6 = vadd.f32 %v2473_v54, %v4384_v11 }
 0x606   : > { %v3035_v49 = vadd.f32 %v3034_v15, %v3005_v30  ;;  %v3286_v36 = vand.u32 4294901760, %v2475_v6  ;;  %v1842_v15 = vrot.slane %v4362_v21, 4 }
 0x608   : > { %v3318_v11 = vsub.f32 %v2475_v6, %v3286_v36  ;;  %v1843_v38 = vadd.f32 %v1842_v15, %v4362_v21 }
 0x609   : > { %v2978_v17 = vpop.f32.mrf.mxu1  ;;  %v3067_v16 = vpop.f32.mrf.mxu0 }
 0x60a   : > { %v2979_v53 = vadd.f32 %v2978_v17, %v2944_v35  ;;  %v3009_v60 = vpop.f32.mrf.mxu2  ;;  %v3068_v12 = vadd.f32 %v3067_v16, %v3035_v49  ;;  %v3040_v24 = vpop.f32.mrf.mxu3  ;;  %v3319_v41 = vand.u32 4294901760, %v3318_v11 }
 0x60c   : > { %v3010_v18 = vadd.f32 %v3009_v60, %v2979_v53  ;;  %v3320_v50 = vsub.f32 %v3318_v11, %v3319_v41  ;;  %v3644_v60 = vld [vmem:[#allocation2] sm:$0xff] }
 0x60e   : > { %v3041_v1 = vadd.f32 %v3040_v24, %v3010_v18  ;;  %v3321_v57 = vand.u32 4294901760, %v3320_v50 }
 0x611   : > { %v3094_v8 = vpop.f32.mrf.mxu1  ;;  %v3071_v55 = vpop.f32.mrf.mxu0 }
 0x612   : > { %v3095_v19 = vadd.f32 %v3094_v8, %v3068_v12  ;;  %v3072_v44 = vadd.f32 %v3071_v55, %v3041_v1  ;;  %v1844_v12 = vrot.slane %v1843_v38, 2 }
 0x614   : > { %v3101_v59 = vmax.f32 %v3095_v19, 0.0 }
 0x616   : > { %v3123_v20 = vand.u32 4294901760, %v3101_v59 }
 0x618   : > { %v3155_v27 = vsub.f32 %v3101_v59, %v3123_v20 }
 0x619   : > { %v3098_v58 = vpop.f32.mrf.mxu1 }
 0x61a   : > { %v3099_v22 = vadd.f32 %v3098_v58, %v3072_v44  ;;  %v3156_v39 = vand.u32 4294901760, %v3155_v27 }
 0x61c   : > { %v3102_v43 = vmax.f32 %v3099_v22, 0.0  ;;  %v3157_v40 = vsub.f32 %v3155_v27, %v3156_v39 }
 0x61e   : > { %v3121_v34 = vand.u32 4294901760, %v3102_v43  ;;  %v3158_v45 = vand.u32 4294901760, %v3157_v40 }
 0x620   : > { %v3149_v37 = vsub.f32 %v3102_v43, %v3121_v34  ;;  %3122 = vmatpush.msrb.mxu2 %v3121_v34  ;;  %3258 = vmatpush.msra.mxu1 %v3121_v34 }
 0x622   : > { %v3150_v2 = vand.u32 4294901760, %v3149_v37  ;;  %3124 = vmatpush.msrb.mxu2 %v3123_v20  ;;  %3260 = vmatpush.msra.mxu1 %v3123_v20 }
 0x623   : > { %3130 = vmatmul.f32.vlgmr.msrb.gmra.mxu2 %v3129_v48  ;;  %3262 = vmatmul.f32.vlgmr.msra.gmra.mxu1 %v3125_v13 }
 0x624   : > { %3369 = vmatpush.msrb.mxu1 %v3284_v32  ;;  %v3151_v62 = vsub.f32 %v3149_v37, %v3150_v2  ;;  %3181 = vmatpush.msra.mxu2 %v3149_v37 }
 0x625   : > { %3233 = vmatpush.msra.mxu0 %v3150_v2 }
 0x626   : > { %3371 = vmatpush.msrb.mxu1 %v3286_v36  ;;  %3184 = vmatpush.msra.mxu2 %v3155_v27  ;;  %v3152_v29 = vand.u32 4294901760, %v3151_v62 }
 0x627   : > { %3237 = vmatpush.msra.mxu0 %v3156_v39 }
 0x628   : > { %3285 = vmatpush.msrb.mxu2 %v3284_v32  ;;  %3153 = vmatpush.msrb.mxu3 %v3152_v29 }
 0x629   : > { %3344 = vmatpush.msrb.mxu0 %v3312_v51 }
 0x62a   : > { %3239 = vmatmul.f32.vlgmr.msra.gmra.mxu0 %v3125_v13  ;;  %3287 = vmatpush.msrb.mxu2 %v3286_v36 }
 0x62b   : > { %3347 = vmatpush.msrb.mxu0 %v3318_v11  ;;  %3159 = vmatpush.msrb.mxu3 %v3158_v45 }
 0x62c   : > { %3161 = vmatmul.f32.vlgmr.msrb.gmra.mxu3 %v3125_v13  ;;  %3187 = vmatmul.f32.vlgmr.msra.gmra.mxu2 %v4449_v25  ;;  %v1845_v25 = vadd.f32 %v1844_v12, %v1843_v38 }
 0x62d   : > { %3206 = vmatpush.msra.mxu3 %v3121_v34  ;;  %3396 = vmatpush.msra.mxu2 %v3313_v42 }
 0x62e   : > { %3375 = vmatmul.f32.vlgmr.msrb.gmra.mxu1 %v3290_v28  ;;  %v1846_v54 = vrot.slane %v1845_v25, 1 }
 0x62f   : > { %3208 = vmatpush.msra.mxu3 %v3123_v20  ;;  %3400 = vmatpush.msra.mxu2 %v3319_v41 }
 0x630   : > { %v1847_v21 = vadd.f32 %v1846_v54, %v1845_v25 }
 0x631   : > { %3316 = vmatpush.msrb.mxu3 %v3315_v52 }
 0x632   : > { %3350 = vmatmul.f32.vlgmr.msrb.gmra.mxu0 %v3289_v10 }
 0x633   : > { %3322 = vmatpush.msrb.mxu3 %v3321_v57 }
 0x634   : > { %3212 = vmatmul.f32.vlgmr.msra.gmra.mxu3 %v3127_v56  ;;  %3293 = vmatmul.f32.vlgmr.msrb.gmra.mxu2 %v3292_v63 }
 0x635   : > { %3421 = vmatpush.msra.mxu3 %v3284_v32 }
 0x637   : > { %3423 = vmatpush.msra.mxu3 %v3286_v36 }
 0x63c   : > { %3324 = vmatmul.f32.vlgmr.msrb.gmra.mxu3 %v3288_v26  ;;  %3402 = vmatmul.f32.vlgmr.msra.gmra.mxu2 %v3288_v26 }
 0x644   : > { %3425 = vmatmul.f32.vlgmr.msra.gmra.mxu3 %v3288_v26 }
 0x6a0   : > { %v3263_v16 = vpop.f32.mrf.mxu1 }
 0x6a6   : > { %v3131_v3 = vpop.f32.mrf.mxu2 }
 0x6a7   : > { %v3240_v23 = vpop.f32.mrf.mxu0 }
 0x6ab   : > { %v3376_v59 = vpop.f32.mrf.mxu1 }
 0x6af   : > { %v3162_v4 = vpop.f32.mrf.mxu3  ;;  %v3188_v33 = vpop.f32.mrf.mxu2 }
 0x6b0   : > { %v3163_v5 = vadd.f32 %v3162_v4, %v3131_v3  ;;  %v3351_v19 = vpop.f32.mrf.mxu0 }
 0x6b2   : > { %v3189_v7 = vadd.f32 %v3188_v33, %v3163_v5 }
 0x6b7   : > { %v3213_v17 = vpop.f32.mrf.mxu3  ;;  %v3294_v49 = vpop.f32.mrf.mxu2 }
 0x6b8   : > { %v3214_v30 = vadd.f32 %v3213_v17, %v3189_v7 }
 0x6ba   : > { %v3241_v35 = vadd.f32 %v3240_v23, %v3214_v30 }
 0x6bc   : > { %v3264_v53 = vadd.f32 %v3263_v16, %v3241_v35 }
 0x6be   : > { %v3266_v13 = vmul.f32 %v3644_v60, %v3264_v53 }
 0x6bf   : > { %v3325_v8 = vpop.f32.mrf.mxu3  ;;  %v3403_v55 = vpop.f32.mrf.mxu2 }
 0x6c0   : > { %v3295_v18 = vadd.f32 %v3294_v49, %v3266_v13 }
 0x6c2   : > { %v3326_v24 = vadd.f32 %v3325_v8, %v3295_v18 }
 0x6c4   : > { %v3352_v47 = vadd.f32 %v3351_v19, %v3326_v24 }
 0x6c6   : > { %v3377_v1 = vadd.f32 %v3376_v59, %v3352_v47 }
 0x6c7   : > { %v3426_v56 = vpop.f32.mrf.mxu3 }
 0x6c8   : > { %v3404_v44 = vadd.f32 %v3403_v55, %v3377_v1 }
 0x6ca   : > { %v3427_v20 = vadd.f32 %v3426_v56, %v3404_v44 }
 0x6cc   : > { %v3429_v58 = vmul.f32 %v3427_v20, %v1847_v21 }
 0x6ce   : > { %v3431_v61 = vadd.f32 %v3430_v9, %v3429_v58 }
 0x6d0   : > { %3432 = vst [vmem:[%s3896_s27] sm:$0xff] %v3431_v61 }
 0x6d1 PF: > { %s28_s1 = sadd.s32 1, %s3699_s1   ;;  %s4542_s20 = sld [smem:[#allocation8_spill]] }
 0x6d2   : > { %p25_p0 = scmp.ge.s32.totalorder %s28_s1, 6   ;;  %s4543_s29 = sld [smem:[#allocation4_spill]] }
 0x6d3   : > { %s4544_s30 = sld [smem:[#allocation5_spill]]  ;;  %s4547_s27 = smov %s3679_s28 }
 0x6d4   : > { %s4545_s0 = sld [smem:[#allocation6_spill]]  ;;  %27 = sbr.rel (!%p25_p0) target bundleno = 13 (0xd), region = 185 }
 0x6d5   : > { %s4546_s19 = sld [smem:[#allocation7_spill]] }
 0x6d7   : > { %s4548_s28 = smov %s4542_s20 }

// kernel: mygcn3_forward.10
= control target key start
LH: loop header
LB: loop body
LE: loop exit
PB: predicated region body
PF: predicated region fallthrough
CT: control target
= control target key end

     0   :  { %vm39_vm0 = vcmask 64512   ;;  %v1564_v3 = vmov 0   ;;  %vm418_vm1 = vcmask 130048   ;;  %vm1548_vm2 = vcmask 1043456   ;;  %s1811_s0 = inlined_call_operand.vmem [shape: f32[8,256], index: 0, kind: input, shape index: {}]   ;;  %s1812_s1 = inlined_call_operand.vmem [shape: f32[16,8], index: 1, kind: input, shape index: {}]   ;;  %s1813_s2 = inlined_call_operand.vmem [shape: f32[16,1], index: 2, kind: input, shape index: {}]   ;;  %s1814_s3 = inlined_call_operand.vmem [shape: f32[2,16,16], index: 3, kind: input, shape index: {}]   ;;  %s1815_s4 = inlined_call_operand.vmem [shape: f32[2,16,1], index: 4, kind: input, shape index: {}]   ;;  %s1816_s5 = inlined_call_operand.vmem [shape: f32[4,16], index: 5, kind: input, shape index: {}]   ;;  %s1817_s6 = inlined_call_operand.vmem [shape: f32[4,256], index: 6, kind: output, shape index: {}]  }
   0x1   :  { %v23_v0 = vld [vmem:[%s1811_s0] sm:$0xff]  ;;  %v24_v1 = vld [vmem:[%s1811_s0 + $0x8] sm:$0xff]  ;;  %1561 = vset.pattern.permute.xlu0 %v1564_v3  ;;  %1562 = vset.pattern.permute.xlu1 %v1564_v3 }
   0x2   :  { %v25_v2 = vld [vmem:[%s1812_s1] sm:$0xff]  ;;  %v61_v4 = vand.u32 4294901760, %v23_v0  ;;  %v26_v6 = vld [vmem:[%s1812_s1 + $0x8] sm:$0xff]  ;;  %v238_v8 = vand.u32 4294901760, %v24_v1  ;;  %1563 = vset.pattern.permute.xlu2 %v1564_v3 }
   0x3   :  { %v41_v5 = vsel %vm39_vm0, %v25_v2, 0  ;;  %v28_v7 = vld [vmem:[%s1813_s2 + $0x8] sm:$0xff]  ;;  %v44_v10 = vsel %vm39_vm0, %v26_v6, 0  ;;  %v27_v20 = vld [vmem:[%s1813_s2] sm:$0xff] }
   0x4   :  { %v63_v9 = vand.u32 4294901760, %v41_v5  ;;  %36 = vperm.xlu0 %1561, %v28_v7   ;;  %v96_v11 = vsub.f32 %v23_v0, %v61_v4  ;;  %155 = vmatpush.msra.mxu3 %v61_v4  ;;  %v71_v12 = vand.u32 4294901760, %v44_v10  ;;  %v273_v13 = vsub.f32 %v24_v1, %v238_v8  ;;  %v404_v41 = vld [vmem:[%s1814_s3] sm:$0xff]  ;;  %v405_v53 = vld [vmem:[%s1814_s3 + $0x8] sm:$0xff] }
   0x5   :  { %62 = vmatpush.msra.mxu0 %v61_v4  ;;  %v420_v44 = vsel %vm418_vm1, %v404_v41, 0  ;;  %v407_v56 = vld [vmem:[%s1815_s4 + $0x8] sm:$0xff]  ;;  %v423_v59 = vsel %vm418_vm1, %v405_v53, 0 }
   0x6   :  { %v64_v14 = vsub.f32 %v41_v5, %v63_v9  ;;  %127 = vmatpush.msra.mxu2 %v96_v11  ;;  %v97_v15 = vand.u32 4294901760, %v96_v11  ;;  %v72_v16 = vsub.f32 %v44_v10, %v71_v12  ;;  %v274_v17 = vand.u32 4294901760, %v273_v13  ;;  %415 = vperm.xlu1 %1562, %v407_v56  }
   0x7   :  { %v1625_v49 = vand.u32 4294901760, %v420_v44  ;;  %v1642_v0 = vand.u32 4294901760, %v423_v59 }
   0x8   :  { %130 = vmatmul.f32.vlgmr.msra.gmra.mxu2 %v64_v14  ;;  %v65_v18 = vand.u32 4294901760, %v64_v14  ;;  %v98_v19 = vsub.f32 %v96_v11, %v97_v15  ;;  %v275_v21 = vsub.f32 %v273_v13, %v274_v17  ;;  %187 = vmatpush.msrb.mxu0 %v97_v15  ;;  %v73_v23 = vand.u32 4294901760, %v72_v16 }
   0x9   :  { %239 = vmatpush.msrb.mxu2 %v238_v8  ;;  %v1634_v57 = vsub.f32 %v420_v44, %v1625_v49 }
   0xa   :  { %159 = vmatmul.f32.vlgmr.msra.gmra.mxu3 %v65_v18  ;;  %v66_v22 = vsub.f32 %v64_v14, %v65_v18  ;;  %v99_v24 = vand.u32 4294901760, %v98_v19  ;;  %v276_v25 = vand.u32 4294901760, %v275_v21  ;;  %v74_v27 = vsub.f32 %v72_v16, %v73_v23 }
   0xb   :  { %364 = vmatpush.msra.mxu2 %v274_v17  ;;  %v1640_v63 = vand.u32 4294901760, %v1634_v57 }
   0xc   :  { %v67_v26 = vand.u32 4294901760, %v66_v22  ;;  %31 = vperm.xlu0 %1561, %v27_v20   ;;  %100 = vmatpush.msra.mxu1 %v99_v24  ;;  %v75_v28 = vand.u32 4294901760, %v74_v27 }
   0xd   :  { %277 = vmatpush.msrb.mxu3 %v276_v25  ;;  %102 = vmatmul.f32.vlgmr.msra.gmra.mxu1 %v63_v9 }
   0xe   :  { %68 = vmatmul.f32.vlgmr.msra.gmra.mxu0 %v67_v26  ;;  %213 = vmatpush.msrb.mxu1 %v61_v4  ;;  %v406_v4 = vld [vmem:[%s1815_s4] sm:$0xff] }
   0xf   :  { %304 = vmatpush.msra.mxu0 %v273_v13  ;;  %390 = vmatpush.msra.mxu3 %v238_v8 }
  0x10   :  { %135 = vmatmul.f32.gmra.mxu2 %v72_v16  ;;  %332 = vmatpush.msra.mxu1 %v238_v8  ;;  %v446_v8 = vsub.f32 %v1634_v57, %v1640_v63 }
  0x11   :  { %410 = vperm.xlu1 %1562, %v406_v4  }
  0x12   :  { %165 = vmatmul.f32.gmra.mxu3 %v73_v23 }
  0x15   :  { %106 = vmatmul.f32.gmra.mxu1 %v71_v12 }
  0x16   :  { %76 = vmatmul.f32.gmra.mxu0 %v75_v28 }
  0x18   :  { %245 = vmatmul.f32.vlgmr.msrb.gmra.mxu2 %v67_v26 }
  0x1a   :  { %279 = vmatmul.f32.vlgmr.msrb.gmra.mxu3 %v63_v9 }
  0x1d   :  { %215 = vmatmul.f32.vlgmr.msrb.gmra.mxu1 %v63_v9 }
  0x1e   :  { %189 = vmatmul.f32.vlgmr.msrb.gmra.mxu0 %v63_v9 }
  0x20   :  { %253 = vmatmul.f32.gmra.mxu2 %v75_v28 }
  0x22   :  { %283 = vmatmul.f32.gmra.mxu3 %v71_v12 }
  0x25   :  { %219 = vmatmul.f32.gmra.mxu1 %v71_v12 }
  0x26   :  { %193 = vmatmul.f32.gmra.mxu0 %v71_v12 }
  0x28   :  { %366 = vmatmul.f32.vlgmr.msra.gmra.mxu2 %v63_v9 }
  0x2a   :  { %392 = vmatmul.f32.vlgmr.msra.gmra.mxu3 %v63_v9  ;;  %v1653_v9 = vsub.f32 %v423_v59, %v1642_v0 }
  0x2c   :  { %v1661_v17 = vand.u32 4294901760, %v1653_v9 }
  0x2d   :  { %336 = vmatmul.f32.vlgmr.msra.gmra.mxu1 %v65_v18 }
  0x2e   :  { %307 = vmatmul.f32.vlgmr.msra.gmra.mxu0 %v64_v14  ;;  %v454_v26 = vsub.f32 %v1653_v9, %v1661_v17 }
  0x30   :  { %370 = vmatmul.f32.gmra.mxu2 %v71_v12 }
  0x32   :  { %396 = vmatmul.f32.gmra.mxu3 %v71_v12 }
  0x35   :  { %342 = vmatmul.f32.gmra.mxu1 %v73_v23 }
  0x36   :  { %312 = vmatmul.f32.gmra.mxu0 %v72_v16  ;;  %v447_v16 = vand.u32 4294901760, %v446_v8 }
  0x76   :  { %v1618_v29 = vpop.permute.xlu0 %36 }
  0x78   :  { %v416_v56 = vpop.permute.xlu1 %415 }
  0x7e   :  { %v32_v30 = vpop.permute.xlu0 %31 }
  0x8a   :  { %v103_v33 = vpop.f32.mrf.mxu1 }
  0x8b   :  { %v69_v31 = vpop.f32.mrf.mxu0  ;;  %v131_v32 = vpop.f32.mrf.mxu2 }
  0x8c   :  { %v70_v35 = vadd.f32 %v69_v31, %v32_v30 }
  0x8d   :  { %v160_v34 = vpop.f32.mrf.mxu3 }
  0x8e   :  { %v104_v36 = vadd.f32 %v103_v33, %v70_v35 }
  0x90   :  { %v132_v42 = vadd.f32 %v131_v32, %v104_v36 }
  0x92   :  { %v107_v39 = vpop.f32.mrf.mxu1  ;;  %v161_v45 = vadd.f32 %v160_v34, %v132_v42  ;;  %v455_v34 = vand.u32 4294901760, %v454_v26 }
  0x93   :  { %v77_v37 = vpop.f32.mrf.mxu0  ;;  %v136_v38 = vpop.f32.mrf.mxu2 }
  0x94   :  { %v78_v43 = vadd.f32 %v77_v37, %v1618_v29 }
  0x95   :  { %v166_v40 = vpop.f32.mrf.mxu3 }
  0x96   :  { %v108_v46 = vadd.f32 %v107_v39, %v78_v43 }
  0x98   :  { %v137_v54 = vadd.f32 %v136_v38, %v108_v46 }
  0x9a   :  { %v216_v51 = vpop.f32.mrf.mxu1  ;;  %v167_v60 = vadd.f32 %v166_v40, %v137_v54 }
  0x9b   :  { %v190_v47 = vpop.f32.mrf.mxu0  ;;  %v246_v48 = vpop.f32.mrf.mxu2 }
  0x9c   :  { %v191_v50 = vadd.f32 %v190_v47, %v161_v45  ;;  %v247_v6 = vadd.f32 %v246_v48, %v32_v30 }
  0x9d   :  { %v280_v52 = vpop.f32.mrf.mxu3 }
  0x9e   :  { %v217_v55 = vadd.f32 %v216_v51, %v191_v50  ;;  %v281_v12 = vadd.f32 %v280_v52, %v247_v6 }
  0xa0   :  { %v1636_v58 = vmax.f32 %v217_v55, 0.0 }
  0xa2   :  { %v1645_v1 = vand.u32 4294901760, %v1636_v58  ;;  %v220_v3 = vpop.f32.mrf.mxu1 }
  0xa3   :  { %v194_v61 = vpop.f32.mrf.mxu0  ;;  %v254_v62 = vpop.f32.mrf.mxu2 }
  0xa4   :  { %v195_v2 = vadd.f32 %v194_v61, %v167_v60  ;;  %v481_v11 = vsub.f32 %v1636_v58, %v1645_v1  ;;  %v255_v23 = vadd.f32 %v254_v62, %v1618_v29  ;;  %v411_v60 = vpop.permute.xlu1 %410 }
  0xa5   :  { %v284_v5 = vpop.f32.mrf.mxu3 }
  0xa6   :  { %v221_v7 = vadd.f32 %v220_v3, %v195_v2  ;;  %v482_v21 = vand.u32 4294901760, %v481_v11  ;;  %v285_v29 = vadd.f32 %v284_v5, %v255_v23 }
  0xa8   :  { %v1655_v10 = vmax.f32 %v221_v7, 0.0  ;;  %v483_v30 = vsub.f32 %v481_v11, %v482_v21 }
  0xaa   :  { %v439_v13 = vand.u32 4294901760, %v1655_v10  ;;  %v337_v20 = vpop.f32.mrf.mxu1  ;;  %v484_v38 = vand.u32 4294901760, %v483_v30 }
  0xab   :  { %v308_v14 = vpop.f32.mrf.mxu0  ;;  %v367_v15 = vpop.f32.mrf.mxu2 }
  0xac   :  { %v475_v18 = vsub.f32 %v1655_v10, %v439_v13  ;;  %v309_v19 = vadd.f32 %v308_v14, %v281_v12  ;;  %440 = vmatpush.msrb.mxu0 %v439_v13  ;;  %541 = vmatpush.msrb.mxu3 %v439_v13 }
  0xad   :  { %v393_v22 = vpop.f32.mrf.mxu3 }
  0xae   :  { %v338_v24 = vadd.f32 %v337_v20, %v309_v19  ;;  %442 = vmatpush.msrb.mxu0 %v1645_v1  ;;  %511 = vmatpush.msrb.mxu2 %v475_v18  ;;  %v476_v25 = vand.u32 4294901760, %v475_v18 }
  0xaf   :  { %543 = vmatpush.msrb.mxu3 %v1645_v1  ;;  %448 = vmatmul.f32.vlgmr.msrb.gmra.mxu0 %v447_v16 }
  0xb0   :  { %v368_v27 = vadd.f32 %v367_v15, %v338_v24  ;;  %514 = vmatpush.msrb.mxu2 %v481_v11  ;;  %574 = vmatpush.msra.mxu0 %v476_v25  ;;  %v477_v28 = vsub.f32 %v475_v18, %v476_v25  ;;  %v1557_v18 = vld [vmem:[%s1814_s3 + $0x18] sm:$0xff] }
  0xb1   :  { %517 = vmatmul.f32.vlgmr.msrb.gmra.mxu2 %v1634_v57  ;;  %547 = vmatmul.f32.vlgmr.msrb.gmra.mxu3 %v1640_v63  ;;  %v833_v24 = vsel %vm418_vm1, %v1557_v18, 0 }
  0xb2   :  { %v394_v31 = vadd.f32 %v393_v22, %v368_v27  ;;  %578 = vmatpush.msra.mxu0 %v482_v21  ;;  %v478_v32 = vand.u32 4294901760, %v477_v28  ;;  %v343_v37 = vpop.f32.mrf.mxu1  ;;  %v1717_v28 = vand.u32 4294901760, %v833_v24 }
  0xb3   :  { %v313_v33 = vpop.f32.mrf.mxu0  ;;  %v371_v39 = vpop.f32.mrf.mxu2 }
  0xb4   :  { %v1671_v35 = vmax.f32 %v394_v31, 0.0  ;;  %v314_v36 = vadd.f32 %v313_v33, %v285_v29  ;;  %479 = vmatpush.msrb.mxu1 %v478_v32 }
  0xb5   :  { %v397_v41 = vpop.f32.mrf.mxu3 }
  0xb6   :  { %v344_v40 = vadd.f32 %v343_v37, %v314_v36  ;;  %485 = vmatpush.msrb.mxu1 %v484_v38  ;;  %v631_v42 = vand.u32 4294901760, %v1671_v35 }
  0xb7   :  { %487 = vmatmul.f32.vlgmr.msrb.gmra.mxu1 %v1625_v49  ;;  %456 = vmatmul.f32.gmra.mxu0 %v455_v34 }
  0xb8   :  { %v372_v43 = vadd.f32 %v371_v39, %v344_v40  ;;  %603 = vmatpush.msra.mxu1 %v439_v13  ;;  %v671_v46 = vsub.f32 %v1671_v35, %v631_v42 }
  0xb9   :  { %522 = vmatmul.f32.gmra.mxu2 %v1653_v9  ;;  %553 = vmatmul.f32.gmra.mxu3 %v1661_v17 }
  0xba   :  { %v398_v44 = vadd.f32 %v397_v41, %v372_v43  ;;  %605 = vmatpush.msra.mxu1 %v1645_v1  ;;  %v672_v50 = vand.u32 4294901760, %v671_v46 }
  0xbc   :  { %v1678_v45 = vmax.f32 %v398_v44, 0.0  ;;  %v673_v53 = vsub.f32 %v671_v46, %v672_v50 }
  0xbe   :  { %v629_v47 = vand.u32 4294901760, %v1678_v45  ;;  %v674_v55 = vand.u32 4294901760, %v673_v53 }
  0xbf   :  { %491 = vmatmul.f32.gmra.mxu1 %v1642_v0  ;;  %580 = vmatmul.f32.vlgmr.msra.gmra.mxu0 %v1625_v49 }
  0xc0   :  { %v665_v48 = vsub.f32 %v1678_v45, %v629_v47  ;;  %630 = vmatpush.msra.mxu2 %v629_v47  ;;  %731 = vmatpush.msrb.mxu1 %v629_v47 }
  0xc2   :  { %632 = vmatpush.msra.mxu2 %v631_v42  ;;  %701 = vmatpush.msrb.mxu0 %v665_v48  ;;  %v666_v51 = vand.u32 4294901760, %v665_v48 }
  0xc3   :  { %733 = vmatpush.msrb.mxu1 %v631_v42  ;;  %638 = vmatmul.f32.vlgmr.msra.gmra.mxu2 %v447_v16 }
  0xc4   :  { %704 = vmatpush.msrb.mxu0 %v671_v46  ;;  %764 = vmatpush.msrb.mxu2 %v666_v51  ;;  %v667_v52 = vsub.f32 %v665_v48, %v666_v51 }
  0xc6   :  { %768 = vmatpush.msrb.mxu2 %v672_v50  ;;  %v668_v54 = vand.u32 4294901760, %v667_v52 }
  0xc7   :  { %607 = vmatmul.f32.vlgmr.msra.gmra.mxu1 %v1625_v49  ;;  %584 = vmatmul.f32.gmra.mxu0 %v1642_v0 }
  0xc8   :  { %669 = vmatpush.msra.mxu3 %v668_v54 }
  0xca   :  { %675 = vmatpush.msra.mxu3 %v674_v55 }
  0xcb   :  { %646 = vmatmul.f32.gmra.mxu2 %v455_v34  ;;  %677 = vmatmul.f32.vlgmr.msra.gmra.mxu3 %v1625_v49 }
  0xcc   :  { %793 = vmatpush.msrb.mxu3 %v629_v47 }
  0xce   :  { %795 = vmatpush.msrb.mxu3 %v631_v42 }
  0xcf   :  { %611 = vmatmul.f32.gmra.mxu1 %v1642_v0  ;;  %707 = vmatmul.f32.vlgmr.msrb.gmra.mxu0 %v1634_v57 }
  0xd3   :  { %681 = vmatmul.f32.gmra.mxu3 %v1642_v0  ;;  %770 = vmatmul.f32.vlgmr.msrb.gmra.mxu2 %v1625_v49 }
  0xd7   :  { %737 = vmatmul.f32.vlgmr.msrb.gmra.mxu1 %v1640_v63  ;;  %712 = vmatmul.f32.gmra.mxu0 %v1653_v9 }
  0xdb   :  { %774 = vmatmul.f32.gmra.mxu2 %v1642_v0  ;;  %797 = vmatmul.f32.vlgmr.msrb.gmra.mxu3 %v1625_v49  ;;  %v1556_v49 = vld [vmem:[%s1814_s3 + $0x10] sm:$0xff] }
  0xdc   :  { %v830_v9 = vsel %vm418_vm1, %v1556_v49, 0 }
  0xdd   :  { %v1702_v15 = vand.u32 4294901760, %v830_v9 }
  0xdf   :  { %743 = vmatmul.f32.gmra.mxu1 %v1661_v17  ;;  %v1708_v22 = vsub.f32 %v830_v9, %v1702_v15 }
  0xe1   :  { %v1715_v27 = vand.u32 4294901760, %v1708_v22 }
  0xe3   :  { %801 = vmatmul.f32.gmra.mxu3 %v1642_v0  ;;  %v856_v34 = vsub.f32 %v1708_v22, %v1715_v27 }
  0xe5   :  { %v1730_v43 = vand.u32 4294901760, %v856_v34 }
 0x12c   :  { %v449_v59 = vpop.f32.mrf.mxu0 }
 0x12d   :  { %v450_v57 = vadd.f32 %v449_v59, %v411_v60 }
 0x134   :  { %v488_v61 = vpop.f32.mrf.mxu1  ;;  %v518_v62 = vpop.f32.mrf.mxu2 }
 0x135   :  { %v457_v1 = vpop.f32.mrf.mxu0  ;;  %v489_v2 = vadd.f32 %v488_v61, %v450_v57  ;;  %v548_v3 = vpop.f32.mrf.mxu3 }
 0x136   :  { %v458_v63 = vadd.f32 %v457_v1, %v416_v56 }
 0x137   :  { %v519_v4 = vadd.f32 %v518_v62, %v489_v2  ;;  %v1559_v2 = vld [vmem:[%s1815_s4 + $0x18] sm:$0xff] }
 0x138   :  { %826 = vperm.xlu2 %1563, %v1559_v2  }
 0x139   :  { %v549_v0 = vadd.f32 %v548_v3, %v519_v4 }
 0x13c   :  { %v492_v5 = vpop.f32.mrf.mxu1  ;;  %v523_v6 = vpop.f32.mrf.mxu2 }
 0x13d   :  { %v581_v7 = vpop.f32.mrf.mxu0  ;;  %v493_v8 = vadd.f32 %v492_v5, %v458_v63  ;;  %v554_v14 = vpop.f32.mrf.mxu3 }
 0x13e   :  { %v582_v12 = vadd.f32 %v581_v7, %v549_v0  ;;  %v1558_v0 = vld [vmem:[%s1815_s4 + $0x10] sm:$0xff] }
 0x13f   :  { %v524_v11 = vadd.f32 %v523_v6, %v493_v8 }
 0x140   :  { %821 = vperm.xlu2 %1563, %v1558_v0  }
 0x141   :  { %v555_v20 = vadd.f32 %v554_v14, %v524_v11 }
 0x144   :  { %v608_v13 = vpop.f32.mrf.mxu1 }
 0x145   :  { %v609_v16 = vadd.f32 %v608_v13, %v582_v12  ;;  %v585_v21 = vpop.f32.mrf.mxu0 }
 0x146   :  { %v639_v17 = vpop.f32.mrf.mxu2  ;;  %v586_v25 = vadd.f32 %v585_v21, %v555_v20 }
 0x147   :  { %v805_v19 = vmax.f32 %v609_v16, 0.0  ;;  %v640_v36 = vadd.f32 %v639_v17, %v411_v60 }
 0x149   :  { %v1711_v23 = vadd.f32 %v805_v19, %v1636_v58  ;;  %v1723_v58 = vsub.f32 %v833_v24, %v1717_v28 }
 0x14b   :  { %v851_v29 = vand.u32 4294901760, %v1711_v23  ;;  %v1733_v44 = vand.u32 4294901760, %v1723_v58 }
 0x14c   :  { %v612_v26 = vpop.f32.mrf.mxu1 }
 0x14d   :  { %v613_v30 = vadd.f32 %v612_v26, %v586_v25  ;;  %v891_v38 = vsub.f32 %v1711_v23, %v851_v29  ;;  %v708_v39 = vpop.f32.mrf.mxu0  ;;  %v864_v53 = vsub.f32 %v1723_v58, %v1733_v44 }
 0x14e   :  { %v647_v31 = vpop.f32.mrf.mxu2  ;;  %v678_v32 = vpop.f32.mrf.mxu3 }
 0x14f   :  { %v807_v33 = vmax.f32 %v613_v30, 0.0  ;;  %v679_v40 = vadd.f32 %v678_v32, %v640_v36  ;;  %v892_v47 = vand.u32 4294901760, %v891_v38  ;;  %v648_v51 = vadd.f32 %v647_v31, %v416_v56 }
 0x150   :  { %v865_v61 = vand.u32 4294901760, %v864_v53 }
 0x151   :  { %v1726_v37 = vadd.f32 %v807_v33, %v1655_v10  ;;  %v709_v10 = vadd.f32 %v708_v39, %v679_v40  ;;  %v893_v59 = vsub.f32 %v891_v38, %v892_v47 }
 0x153   :  { %v849_v41 = vand.u32 4294901760, %v1726_v37  ;;  %v894_v1 = vand.u32 4294901760, %v893_v59 }
 0x154   :  { %v738_v42 = vpop.f32.mrf.mxu1 }
 0x155   :  { %850 = vmatpush.msra.mxu0 %v849_v41  ;;  %951 = vmatpush.msra.mxu3 %v849_v41  ;;  %v885_v46 = vsub.f32 %v1726_v37, %v849_v41  ;;  %v739_v54 = vadd.f32 %v738_v42, %v709_v10  ;;  %v713_v56 = vpop.f32.mrf.mxu0 }
 0x156   :  { %v682_v48 = vpop.f32.mrf.mxu3  ;;  %v771_v52 = vpop.f32.mrf.mxu2 }
 0x157   :  { %852 = vmatpush.msra.mxu0 %v851_v29  ;;  %921 = vmatpush.msra.mxu2 %v885_v46  ;;  %v886_v50 = vand.u32 4294901760, %v885_v46  ;;  %v683_v60 = vadd.f32 %v682_v48, %v648_v51  ;;  %v772_v62 = vadd.f32 %v771_v52, %v739_v54  ;;  %v1223_v52 = vld [vmem:[%s1816_s5] sm:$0xf] }
 0x158   :  { %953 = vmatpush.msra.mxu3 %v851_v29  ;;  %858 = vmatmul.f32.vlgmr.msra.gmra.mxu0 %v1730_v43 }
 0x159   :  { %924 = vmatpush.msra.mxu2 %v891_v38  ;;  %984 = vmatpush.msrb.mxu0 %v886_v50  ;;  %v887_v55 = vsub.f32 %v885_v46, %v886_v50  ;;  %v714_v4 = vadd.f32 %v713_v56, %v683_v60 }
 0x15a   :  { %927 = vmatmul.f32.vlgmr.msra.gmra.mxu2 %v1708_v22  ;;  %957 = vmatmul.f32.vlgmr.msra.gmra.mxu3 %v1715_v27 }
 0x15b   :  { %988 = vmatpush.msrb.mxu0 %v892_v47  ;;  %v888_v57 = vand.u32 4294901760, %v887_v55  ;;  %v1225_v55 = vsel %vm418_vm1, %v1223_v52, 0 }
 0x15c   :  { %v744_v3 = vpop.f32.mrf.mxu1 }
 0x15d   :  { %889 = vmatpush.msra.mxu1 %v888_v57  ;;  %v745_v6 = vadd.f32 %v744_v3, %v714_v4  ;;  %v1784_v57 = vand.u32 4294901760, %v1225_v55 }
 0x15e   :  { %v798_v63 = vpop.f32.mrf.mxu3  ;;  %v775_v49 = vpop.f32.mrf.mxu2 }
 0x15f   :  { %v799_v5 = vadd.f32 %v798_v63, %v772_v62  ;;  %895 = vmatpush.msra.mxu1 %v894_v1  ;;  %v776_v9 = vadd.f32 %v775_v49, %v745_v6 }
 0x160   :  { %897 = vmatmul.f32.vlgmr.msra.gmra.mxu1 %v1702_v15  ;;  %866 = vmatmul.f32.gmra.mxu0 %v865_v61 }
 0x161   :  { %v806_v7 = vmax.f32 %v799_v5, 0.0  ;;  %1013 = vmatpush.msrb.mxu1 %v849_v41 }
 0x162   :  { %932 = vmatmul.f32.gmra.mxu2 %v1723_v58  ;;  %963 = vmatmul.f32.gmra.mxu3 %v1733_v44 }
 0x163   :  { %v1748_v8 = vadd.f32 %v806_v7, %v1671_v35  ;;  %1015 = vmatpush.msrb.mxu1 %v851_v29 }
 0x165   :  { %v1041_v13 = vand.u32 4294901760, %v1748_v8 }
 0x166   :  { %v802_v11 = vpop.f32.mrf.mxu3 }
 0x167   :  { %v803_v12 = vadd.f32 %v802_v11, %v776_v9  ;;  %v1081_v35 = vsub.f32 %v1748_v8, %v1041_v13 }
 0x168   :  { %901 = vmatmul.f32.gmra.mxu1 %v1717_v28  ;;  %990 = vmatmul.f32.vlgmr.msrb.gmra.mxu0 %v1702_v15 }
 0x169   :  { %v808_v14 = vmax.f32 %v803_v12, 0.0  ;;  %v1082_v19 = vand.u32 4294901760, %v1081_v35 }
 0x16b   :  { %v1757_v16 = vadd.f32 %v808_v14, %v1678_v45  ;;  %v1083_v21 = vsub.f32 %v1081_v35, %v1082_v19 }
 0x16d   :  { %v1039_v17 = vand.u32 4294901760, %v1757_v16  ;;  %v1084_v25 = vand.u32 4294901760, %v1083_v21 }
 0x16f   :  { %1040 = vmatpush.msrb.mxu2 %v1039_v17  ;;  %1141 = vmatpush.msra.mxu1 %v1039_v17  ;;  %v1075_v18 = vsub.f32 %v1757_v16, %v1039_v17 }
 0x170   :  { %1017 = vmatmul.f32.vlgmr.msrb.gmra.mxu1 %v1702_v15  ;;  %994 = vmatmul.f32.gmra.mxu0 %v1717_v28 }
 0x171   :  { %1042 = vmatpush.msrb.mxu2 %v1041_v13  ;;  %1111 = vmatpush.msra.mxu0 %v1075_v18  ;;  %v1076_v20 = vand.u32 4294901760, %v1075_v18 }
 0x172   :  { %1143 = vmatpush.msra.mxu1 %v1041_v13  ;;  %1048 = vmatmul.f32.vlgmr.msrb.gmra.mxu2 %v1730_v43 }
 0x173   :  { %1114 = vmatpush.msra.mxu0 %v1081_v35  ;;  %1174 = vmatpush.msra.mxu2 %v1076_v20  ;;  %v1077_v45 = vsub.f32 %v1075_v18, %v1076_v20 }
 0x175   :  { %1178 = vmatpush.msra.mxu2 %v1082_v19  ;;  %v1078_v24 = vand.u32 4294901760, %v1077_v45 }
 0x177   :  { %1079 = vmatpush.msrb.mxu3 %v1078_v24 }
 0x178   :  { %1021 = vmatmul.f32.gmra.mxu1 %v1717_v28  ;;  %1117 = vmatmul.f32.vlgmr.msra.gmra.mxu0 %v1708_v22 }
 0x179   :  { %1085 = vmatpush.msrb.mxu3 %v1084_v25 }
 0x17a   :  { %1056 = vmatmul.f32.gmra.mxu2 %v865_v61  ;;  %1087 = vmatmul.f32.vlgmr.msrb.gmra.mxu3 %v1702_v15  ;;  %v1787_v61 = vsub.f32 %v1225_v55, %v1784_v57 }
 0x17b   :  { %1203 = vmatpush.msra.mxu3 %v1039_v17 }
 0x17c   :  { %v1791_v1 = vand.u32 4294901760, %v1787_v61 }
 0x17d   :  { %1205 = vmatpush.msra.mxu3 %v1041_v13 }
 0x17e   :  { %v1248_v3 = vsub.f32 %v1787_v61, %v1791_v1 }
 0x180   :  { %1147 = vmatmul.f32.vlgmr.msra.gmra.mxu1 %v1715_v27  ;;  %1122 = vmatmul.f32.gmra.mxu0 %v1723_v58  ;;  %v1249_v49 = vand.u32 4294901760, %v1248_v3 }
 0x182   :  { %1091 = vmatmul.f32.gmra.mxu3 %v1717_v28  ;;  %1180 = vmatmul.f32.vlgmr.msra.gmra.mxu2 %v1702_v15 }
 0x188   :  { %1153 = vmatmul.f32.gmra.mxu1 %v1733_v44 }
 0x18a   :  { %1184 = vmatmul.f32.gmra.mxu2 %v1717_v28  ;;  %1207 = vmatmul.f32.vlgmr.msra.gmra.mxu3 %v1702_v15 }
 0x192   :  { %1211 = vmatmul.f32.gmra.mxu3 %v1717_v28  ;;  %v1776_v22 = vpop.permute.xlu2 %826 }
 0x19a   :  { %v822_v30 = vpop.permute.xlu2 %821 }
 0x1d5   :  { %v859_v26 = vpop.f32.mrf.mxu0 }
 0x1d6   :  { %v860_v29 = vadd.f32 %v859_v26, %v822_v30 }
 0x1dd   :  { %v898_v27 = vpop.f32.mrf.mxu1  ;;  %v867_v31 = vpop.f32.mrf.mxu0 }
 0x1de   :  { %v899_v32 = vadd.f32 %v898_v27, %v860_v29  ;;  %v928_v33 = vpop.f32.mrf.mxu2  ;;  %v958_v34 = vpop.f32.mrf.mxu3  ;;  %v868_v58 = vadd.f32 %v867_v31, %v1776_v22 }
 0x1e0   :  { %v929_v36 = vadd.f32 %v928_v33, %v899_v32 }
 0x1e2   :  { %v959_v41 = vadd.f32 %v958_v34, %v929_v36 }
 0x1e5   :  { %v902_v38 = vpop.f32.mrf.mxu1  ;;  %v991_v39 = vpop.f32.mrf.mxu0 }
 0x1e6   :  { %v903_v40 = vadd.f32 %v902_v38, %v868_v58  ;;  %v933_v15 = vpop.f32.mrf.mxu2  ;;  %v992_v42 = vadd.f32 %v991_v39, %v959_v41  ;;  %v964_v43 = vpop.f32.mrf.mxu3 }
 0x1e8   :  { %v934_v28 = vadd.f32 %v933_v15, %v903_v40 }
 0x1ea   :  { %v965_v47 = vadd.f32 %v964_v43, %v934_v28 }
 0x1ed   :  { %v1018_v44 = vpop.f32.mrf.mxu1  ;;  %v995_v48 = vpop.f32.mrf.mxu0 }
 0x1ee   :  { %v1019_v46 = vadd.f32 %v1018_v44, %v992_v42  ;;  %v996_v51 = vadd.f32 %v995_v48, %v965_v47 }
 0x1f0   :  { %v1215_v10 = vmax.f32 %v1019_v46, 0.0 }
 0x1f2   :  { %v1219_v50 = vadd.f32 %v1215_v10, %v1711_v23 }
 0x1f4   :  { %v1243_v59 = vand.u32 4294901760, %v1219_v50 }
 0x1f5   :  { %v1022_v53 = vpop.f32.mrf.mxu1  ;;  %v1049_v54 = vpop.f32.mrf.mxu2 }
 0x1f6   :  { %v1023_v60 = vadd.f32 %v1022_v53, %v996_v51  ;;  %v1275_v23 = vsub.f32 %v1219_v50, %v1243_v59  ;;  %v1050_v6 = vadd.f32 %v1049_v54, %v822_v30 }
 0x1f8   :  { %v1217_v56 = vmax.f32 %v1023_v60, 0.0  ;;  %v1276_v7 = vand.u32 4294901760, %v1275_v23 }
 0x1fa   :  { %v1221_v62 = vadd.f32 %v1217_v56, %v1726_v37  ;;  %v1118_v37 = vpop.f32.mrf.mxu0  ;;  %v1277_v12 = vsub.f32 %v1275_v23, %v1276_v7 }
 0x1fc   :  { %v1241_v2 = vand.u32 4294901760, %v1221_v62  ;;  %v1278_v18 = vand.u32 4294901760, %v1277_v12 }
 0x1fd   :  { %v1057_v63 = vpop.f32.mrf.mxu2  ;;  %v1088_v4 = vpop.f32.mrf.mxu3 }
 0x1fe   :  { %v1269_v5 = vsub.f32 %v1221_v62, %v1241_v2  ;;  %1242 = vmatpush.msrb.mxu0 %v1241_v2  ;;  %1326 = vmatpush.msrb.mxu3 %v1241_v2  ;;  %v1089_v9 = vadd.f32 %v1088_v4, %v1050_v6  ;;  %v1148_v14 = vpop.f32.mrf.mxu1  ;;  %v1058_v20 = vadd.f32 %v1057_v63, %v1776_v22 }
 0x200   :  { %1244 = vmatpush.msrb.mxu0 %v1243_v59  ;;  %1301 = vmatpush.msrb.mxu2 %v1269_v5  ;;  %v1270_v0 = vand.u32 4294901760, %v1269_v5  ;;  %v1119_v17 = vadd.f32 %v1118_v37, %v1089_v9 }
 0x201   :  { %1328 = vmatpush.msrb.mxu3 %v1243_v59  ;;  %1250 = vmatmul.f32.vlgmr.msrb.gmra.mxu0 %v1249_v49 }
 0x202   :  { %1304 = vmatpush.msrb.mxu2 %v1275_v23  ;;  %1353 = vmatpush.msra.mxu0 %v1270_v0  ;;  %v1271_v11 = vsub.f32 %v1269_v5, %v1270_v0  ;;  %v1149_v45 = vadd.f32 %v1148_v14, %v1119_v17  ;;  %v1123_v24 = vpop.f32.mrf.mxu0 }
 0x203   :  { %1307 = vmatmul.f32.vlgmr.msrb.gmra.mxu2 %v1787_v61  ;;  %1332 = vmatmul.f32.vlgmr.msrb.gmra.mxu3 %v1791_v1 }
 0x204   :  { %1357 = vmatpush.msra.mxu0 %v1276_v7  ;;  %v1272_v13 = vand.u32 4294901760, %v1271_v11 }
 0x205   :  { %v1092_v35 = vpop.f32.mrf.mxu3  ;;  %v1181_v19 = vpop.f32.mrf.mxu2 }
 0x206   :  { %1273 = vmatpush.msrb.mxu1 %v1272_v13  ;;  %v1093_v21 = vadd.f32 %v1092_v35, %v1058_v20  ;;  %v1182_v25 = vadd.f32 %v1181_v19, %v1149_v45  ;;  %v1154_v27 = vpop.f32.mrf.mxu1 }
 0x208   :  { %1279 = vmatpush.msrb.mxu1 %v1278_v18  ;;  %v1124_v30 = vadd.f32 %v1123_v24, %v1093_v21 }
 0x209   :  { %1359 = vmatmul.f32.vlgmr.msra.gmra.mxu0 %v1784_v57  ;;  %1281 = vmatmul.f32.vlgmr.msrb.gmra.mxu1 %v1784_v57 }
 0x20a   :  { %1378 = vmatpush.msra.mxu1 %v1241_v2  ;;  %v1155_v33 = vadd.f32 %v1154_v27, %v1124_v30 }
 0x20c   :  { %1380 = vmatpush.msra.mxu1 %v1243_v59 }
 0x20d   :  { %v1208_v26 = vpop.f32.mrf.mxu3  ;;  %v1185_v32 = vpop.f32.mrf.mxu2 }
 0x20e   :  { %v1209_v29 = vadd.f32 %v1208_v26, %v1182_v25  ;;  %v1186_v34 = vadd.f32 %v1185_v32, %v1155_v33 }
 0x210   :  { %v1216_v31 = vmax.f32 %v1209_v29, 0.0 }
 0x211   :  { %1382 = vmatmul.f32.vlgmr.msra.gmra.mxu1 %v1784_v57 }
 0x212   :  { %v1220_v22 = vadd.f32 %v1216_v31, %v1748_v8 }
 0x214   :  { %v1402_v36 = vand.u32 4294901760, %v1220_v22 }
 0x215   :  { %v1212_v58 = vpop.f32.mrf.mxu3 }
 0x216   :  { %v1213_v38 = vadd.f32 %v1212_v58, %v1186_v34  ;;  %v1434_v41 = vsub.f32 %v1220_v22, %v1402_v36 }
 0x218   :  { %v1218_v39 = vmax.f32 %v1213_v38, 0.0  ;;  %v1435_v28 = vand.u32 4294901760, %v1434_v41 }
 0x21a   :  { %v1222_v40 = vadd.f32 %v1218_v39, %v1757_v16  ;;  %v1436_v44 = vsub.f32 %v1434_v41, %v1435_v28 }
 0x21c   :  { %v1400_v15 = vand.u32 4294901760, %v1222_v40  ;;  %v1437_v46 = vand.u32 4294901760, %v1436_v44 }
 0x21e   :  { %v1428_v42 = vsub.f32 %v1222_v40, %v1400_v15  ;;  %1401 = vmatpush.msra.mxu2 %v1400_v15  ;;  %1485 = vmatpush.msrb.mxu1 %v1400_v15 }
 0x220   :  { %1403 = vmatpush.msra.mxu2 %v1402_v36  ;;  %1460 = vmatpush.msrb.mxu0 %v1428_v42  ;;  %v1429_v43 = vand.u32 4294901760, %v1428_v42 }
 0x221   :  { %1487 = vmatpush.msrb.mxu1 %v1402_v36  ;;  %1409 = vmatmul.f32.vlgmr.msra.gmra.mxu2 %v1249_v49 }
 0x222   :  { %1463 = vmatpush.msrb.mxu0 %v1434_v41  ;;  %1512 = vmatpush.msrb.mxu2 %v1429_v43  ;;  %v1430_v8 = vsub.f32 %v1428_v42, %v1429_v43 }
 0x223   :  { %1466 = vmatmul.f32.vlgmr.msrb.gmra.mxu0 %v1787_v61  ;;  %1491 = vmatmul.f32.vlgmr.msrb.gmra.mxu1 %v1791_v1 }
 0x224   :  { %1516 = vmatpush.msrb.mxu2 %v1435_v28  ;;  %v1431_v16 = vand.u32 4294901760, %v1430_v8 }
 0x226   :  { %1432 = vmatpush.msra.mxu3 %v1431_v16 }
 0x228   :  { %1438 = vmatpush.msra.mxu3 %v1437_v46 }
 0x229   :  { %1440 = vmatmul.f32.vlgmr.msra.gmra.mxu3 %v1784_v57  ;;  %1518 = vmatmul.f32.vlgmr.msrb.gmra.mxu2 %v1784_v57 }
 0x22a   :  { %1537 = vmatpush.msrb.mxu3 %v1400_v15 }
 0x22c   :  { %1539 = vmatpush.msrb.mxu3 %v1402_v36 }
 0x231   :  { %1541 = vmatmul.f32.vlgmr.msrb.gmra.mxu3 %v1784_v57 }
 0x27e   :  { %v1251_v47 = vpop.f32.mrf.mxu0 }
 0x286   :  { %v1282_v48 = vpop.f32.mrf.mxu1  ;;  %v1308_v10 = vpop.f32.mrf.mxu2 }
 0x287   :  { %v1333_v50 = vpop.f32.mrf.mxu3  ;;  %v1360_v51 = vpop.f32.mrf.mxu0  ;;  %v1283_v54 = vadd.f32 %v1282_v48, %v1251_v47 }
 0x289   :  { %v1309_v55 = vadd.f32 %v1308_v10, %v1283_v54 }
 0x28b   :  { %v1334_v62 = vadd.f32 %v1333_v50, %v1309_v55 }
 0x28d   :  { %v1361_v3 = vadd.f32 %v1360_v51, %v1334_v62 }
 0x28e   :  { %v1383_v52 = vpop.f32.mrf.mxu1 }
 0x28f   :  { %v1384_v5 = vadd.f32 %v1383_v52, %v1361_v3 }
 0x2a0   :  { %v1467_v60 = vpop.f32.mrf.mxu0  ;;  %v1492_v61 = vpop.f32.mrf.mxu1 }
 0x2a4   :  { %v1410_v53 = vpop.f32.mrf.mxu2 }
 0x2ac   :  { %v1441_v59 = vpop.f32.mrf.mxu3  ;;  %v1519_v1 = vpop.f32.mrf.mxu2 }
 0x2ad   :  { %v1442_v56 = vadd.f32 %v1441_v59, %v1410_v53 }
 0x2af   :  { %v1468_v23 = vadd.f32 %v1467_v60, %v1442_v56 }
 0x2b1   :  { %v1493_v2 = vadd.f32 %v1492_v61, %v1468_v23 }
 0x2b3   :  { %v1520_v63 = vadd.f32 %v1519_v1, %v1493_v2 }
 0x2b4   :  { %v1542_v57 = vpop.f32.mrf.mxu3 }
 0x2b5   :  { %v1543_v4 = vadd.f32 %v1542_v57, %v1520_v63 }
 0x2b7   :  { %v1547_v6 = vrot.slane %v1543_v4, 4 }
 0x2b9   :  { %v1549_v7 = vsel %vm1548_vm2, %v1384_v5, %v1547_v6 }
 0x2ba   :  { %1551 = vst [vmem:[%s1817_s6] sm:$0xff] %v1549_v7 }

// kernel: mygcn3_forward.11
= control target key start
LH: loop header
LB: loop body
LE: loop exit
PB: predicated region body
PF: predicated region fallthrough
CT: control target
= control target key end

     0   :  { %s4495_s0 = inlined_call_operand.vmem [shape: f32[4,256], index: 0, kind: input, shape index: {}]   ;;  %s4496_s1 = inlined_call_operand.vmem [shape: f32[256,256], index: 1, kind: input, shape index: {}]   ;;  %s4497_s2 = inlined_call_operand.vmem [shape: f32[4,256], index: 2, kind: input, shape index: {}]   ;;  %s4498_s3 = inlined_call_operand.vmem [shape: f32[16,4], index: 3, kind: input, shape index: {}]   ;;  %s4499_s4 = inlined_call_operand.vmem [shape: f32[16,1], index: 4, kind: input, shape index: {}]   ;;  %s4500_s5 = inlined_call_operand.vmem [shape: f32[2,16,16], index: 5, kind: input, shape index: {}]   ;;  %s4501_s6 = inlined_call_operand.vmem [shape: f32[2,16,1], index: 6, kind: input, shape index: {}]   ;;  %s4502_s7 = inlined_call_operand.vmem [shape: f32[16,1], index: 7, kind: input, shape index: {}]   ;;  %s4503_s8 = inlined_call_operand.vmem [shape: f32[16,4], index: 8, kind: input, shape index: {}]   ;;  %s4504_s9 = inlined_call_operand.vmem [shape: f32[16,1], index: 9, kind: input, shape index: {}]   ;;  %s4505_s10 = inlined_call_operand.vmem [shape: f32[2,16,16], index: 10, kind: input, shape index: {}]   ;;  %s4506_s11 = inlined_call_operand.vmem [shape: f32[2,16,1], index: 11, kind: input, shape index: {}]   ;;  %s4507_s12 = inlined_call_operand.vmem [shape: f32[4,16], index: 12, kind: input, shape index: {}]   ;;  %s4508_s13 = inlined_call_operand.vmem [shape: f32[16,4], index: 13, kind: input, shape index: {}]   ;;  %s4509_s14 = inlined_call_operand.vmem [shape: f32[16,1], index: 14, kind: input, shape index: {}]   ;;  %s4510_s15 = inlined_call_operand.vmem [shape: f32[2,16,16], index: 15, kind: input, shape index: {}]   ;;  %s4511_s16 = inlined_call_operand.vmem [shape: f32[2,16,1], index: 16, kind: input, shape index: {}]   ;;  %s4512_s17 = inlined_call_operand.vmem [shape: f32[4,16], index: 17, kind: input, shape index: {}]   ;;  %s4513_s18 = inlined_call_operand.vmem [shape: f32[4,256], index: 18, kind: output, shape index: {}]  }
   0x1   :  { %4521 = sst [smem:[#allocation9_spill]] %s4495_s0 }
   0x2   :  { %4522 = sst [smem:[#allocation10_spill]] %s4496_s1 }
   0x3   :  { %4523 = sst [smem:[#allocation11_spill]] %s4497_s2 }
   0x4   :  { %4524 = sst [smem:[#allocation12_spill]] %s4505_s10 }
   0x5   :  { %4525 = sst [smem:[#allocation13_spill]] %s4507_s12 }
   0x6   :  { %4526 = sst [smem:[#allocation14_spill]] %s4508_s13 }
   0x7   :  { %4527 = sst [smem:[#allocation15_spill]] %s4510_s15 }
   0x8   :  { %4528 = sst [smem:[#allocation16_spill]] %s4512_s17 }
   0x9   :  { %s3802_s27 = smov 0   ;;  %s3804_s28 = smov 0  }
   0xa   :  { %s3806_s29 = smov 0   ;;  %s3808_s30 = smov 0  }
   0xb   :  { %s3810_s0 = smov 0   ;;  %s3812_s19 = smov 0  }
   0xc   :  { %s3814_s1 = smov 0  }
   0xd LB: > { %4529 = sst [smem:[#allocation4_spill]] %s3695_s0  ;;  %s37_s20 = sadd.s32 1, %s3695_s0  ;;  %s3703_s1 = sphi %s3814_s1, %s28_s1   ;;  %s3699_s19 = sphi %s3812_s19, %s4550_s19   ;;  %s3695_s0 = sphi %s3810_s0, %s4549_s0   ;;  %s3691_s30 = sphi %s3808_s30, %s4548_s30   ;;  %s3687_s29 = sphi %s3806_s29, %s4547_s29   ;;  %s3683_s28 = sphi %s3804_s28, %s4552_s28   ;;  %s3679_s27 = sphi %s3802_s27, %s4551_s27  }
   0xe   : > { %4530 = sst [smem:[#allocation5_spill]] %s3699_s19  ;;  %p38_p0 = scmp.ge.s32.totalorder %s37_s20, 2 }
   0xf   : > { %s40_s21 = sadd.s32 1, %s3699_s19  ;;  %p82_p1 = scmp.ne.s32.totalorder %s3683_s28, %s3679_s27 }
  0x10   : > { %p83_p2 = scmp.eq.s32.totalorder %s3703_s1, 0  ;;  %s4554_s20 = smov (%p38_p0, %s37_s20), 0 }
  0x11   : > { %4531 = sst [smem:[#allocation6_spill]] %s4554_s20  ;;  %s4556_s21 = smov (!%p38_p0, %s40_s21), %s3699_s19 }
  0x12   : > { %p84_p3 = por %p83_p2, %p82_p1  ;;  %p42_p4 = scmp.ge.s32.totalorder %s4556_s21, 2 }
  0x13   : > { %s70_s22 = ssub.s32 %s3695_s0, %s4554_s20  ;;  %s75_s24 = sadd.s32 1, %s3683_s28 }
  0x14   : > { %s4558_s21 = smov (%p42_p4, %s4556_s21), 0  ;;  %p3536_p6 = scmp.ge.s32.totalorder %s3703_s1, 4 }
  0x15   : > { %4532 = sst [smem:[#allocation7_spill]] %s4558_s21  ;;  %s71_s2 = ssub.s32 %s3699_s19, %s4558_s21 }
  0x16   : > { %s72_s23 = sor.u32 %s71_s2, %s70_s22 }
  0x17   : > { %p73_p5 = scmp.eq.s32.totalorder %s72_s23, 0  ;;  %520 = sbr.rel (%p3536_p6) target bundleno = 54 (0x36), region = 76 }
  0x19   : > { %s3853_s25 = scalar_select %p73_p5, %s3683_s28, %s75_s24  }
  0x1b   : > { %4533 = sst [smem:[#allocation8_spill]] %s3853_s25 }
  0x1c   : > { %530 = sbr.rel (!%p84_p3) target bundleno = 54 (0x36), region = 84  ;;  %s532_s26 = sand.u32 (%p84_p3), 1, %s3683_s28  }
  0x1d   : > { %s3562_s12 = sshll.u32 (%p84_p3), %s3695_s0, 5  ;;  %s3537_s17 = sshll.u32 (%p84_p3), %s532_s26, 7 }
  0x1e   : > { %s537_s20 = sadd.s32 (%p84_p3), %s3699_s19, %s3562_s12  ;;  %s4534_s21 = sld [smem:[#allocation10_spill]] (%p84_p3) }
  0x1f   : > { %s3540_s15 = sshll.u32 (%p84_p3), %s537_s20, 3  ;;  %s534_s12 = scalar_lea.vmem (%p84_p3), [#allocation3], %s3537_s17 }
  0x24   : > { %s3862_s22 = scalar_lea.vmem %s4534_s21, %s3540_s15 }
  0x25   : > { %v598_v0 = vld [vmem:[%s3862_s22] sm:$0xff]  ;;  %v600_v1 = vld [vmem:[%s3862_s22 + $0x10] sm:$0xff] }
  0x26   : > { %v602_v2 = vld [vmem:[%s3862_s22 + $0x20] sm:$0xff]  ;;  %599 = vst [vmem:[%s534_s12] sm:$0xff] %v598_v0  ;;  %v604_v3 = vld [vmem:[%s3862_s22 + $0x30] sm:$0xff] }
  0x27   : > { %601 = vst [vmem:[%s534_s12 + $0x8] sm:$0xff] %v600_v1  ;;  %v606_v4 = vld [vmem:[%s3862_s22 + $0x40] sm:$0xff]  ;;  %v608_v5 = vld [vmem:[%s3862_s22 + $0x50] sm:$0xff] }
  0x28   : > { %603 = vst [vmem:[%s534_s12 + $0x10] sm:$0xff] %v602_v2  ;;  %v610_v6 = vld [vmem:[%s3862_s22 + $0x60] sm:$0xff]  ;;  %v612_v7 = vld [vmem:[%s3862_s22 + $0x70] sm:$0xff] }
  0x29   : > { %605 = vst [vmem:[%s534_s12 + $0x18] sm:$0xff] %v604_v3  ;;  %v614_v8 = vld [vmem:[%s3862_s22 + $0x80] sm:$0xff]  ;;  %v616_v9 = vld [vmem:[%s3862_s22 + $0x90] sm:$0xff] }
  0x2a   : > { %607 = vst [vmem:[%s534_s12 + $0x20] sm:$0xff] %v606_v4  ;;  %v618_v10 = vld [vmem:[%s3862_s22 + $0xa0] sm:$0xff]  ;;  %v620_v11 = vld [vmem:[%s3862_s22 + $0xb0] sm:$0xff] }
  0x2b   : > { %609 = vst [vmem:[%s534_s12 + $0x28] sm:$0xff] %v608_v5  ;;  %v622_v12 = vld [vmem:[%s3862_s22 + $0xc0] sm:$0xff]  ;;  %v624_v13 = vld [vmem:[%s3862_s22 + $0xd0] sm:$0xff] }
  0x2c   : > { %611 = vst [vmem:[%s534_s12 + $0x30] sm:$0xff] %v610_v6  ;;  %v626_v14 = vld [vmem:[%s3862_s22 + $0xe0] sm:$0xff]  ;;  %v628_v15 = vld [vmem:[%s3862_s22 + $0xf0] sm:$0xff] }
  0x2d   : > { %613 = vst [vmem:[%s534_s12 + $0x38] sm:$0xff] %v612_v7 }
  0x2e   : > { %615 = vst [vmem:[%s534_s12 + $0x40] sm:$0xff] %v614_v8 }
  0x2f   : > { %617 = vst [vmem:[%s534_s12 + $0x48] sm:$0xff] %v616_v9 }
  0x30   : > { %619 = vst [vmem:[%s534_s12 + $0x50] sm:$0xff] %v618_v10 }
  0x31   : > { %621 = vst [vmem:[%s534_s12 + $0x58] sm:$0xff] %v620_v11 }
  0x32   : > { %623 = vst [vmem:[%s534_s12 + $0x60] sm:$0xff] %v622_v12 }
  0x33   : > { %625 = vst [vmem:[%s534_s12 + $0x68] sm:$0xff] %v624_v13 }
  0x34   : > { %627 = vst [vmem:[%s534_s12 + $0x70] sm:$0xff] %v626_v14 }
  0x35   : > { %629 = vst [vmem:[%s534_s12 + $0x78] sm:$0xff] %v628_v15 }
  0x36 PF: > { %p3541_p7 = scmp.ge.s32.totalorder %s3703_s1, 1  ;;  %p641_p8 = scmp.lt.s32.totalorder %s3703_s1, 5 }
  0x38   : > { %p642_p9 = pnand %p3541_p7, %p641_p8 }
  0x39   : > { %s648_s10 = sand.u32 (!%p642_p9), 1, %s3679_s27   ;;  %p708_p10 = scmp.lt.s32.totalorder (!%p642_p9), %s3687_s29, 1 }
  0x3a   : > { %645 = sbr.rel (%p642_p9) target bundleno = 1746 (0x6d2), region = 126  ;;  %s3542_s13 = sshll.u32 (!%p642_p9), %s648_s10, 7 }
  0x3b   : > { %p713_p11 = scmp.lt.s32.totalorder (!%p642_p9), %s3691_s30, 1  ;;  %s4535_s2 = sld [smem:[#allocation9_spill]] (!%p642_p9) }
  0x3c   : > { %s4536_s12 = sld [smem:[#allocation11_spill]] (!%p642_p9)  ;;  %s3902_s10 = scalar_lea.vmem (!%p642_p9), [#allocation3], %s3542_s13 }
  0x3d   : > { %p3546_p12 = scmp.ne.s32.totalorder (!%p642_p9), %s3687_s29, 0 }
  0x3f   : > { %s709_s15 = scalar_select %p708_p10, %s3687_s29, 1 }
  0x40   : > { %s4560_s30 = smov (!%p713_p11, %s3691_s30), 1  ;;  %724 = sbr.rel (%p3546_p12) target bundleno = 71 (0x47), region = 134 }
  0x41   : > { %s3543_s17 = sshll.u32 %s709_s15, 2  ;;  %s3544_s24 = sshll.u32 %s4560_s30, 2 }
  0x42   : > { %s3890_s23 = scalar_lea.vmem %s4535_s2, %s3543_s17  ;;  %s3895_s19 = scalar_lea.vmem %s4536_s12, %s3544_s24 }
  0x43   : > { %s3900_s27 = scalar_lea.vmem %s4513_s18, %s3544_s24 }
  0x45   : > { %v3705_v16 = vmov 0.0  }
  0x46   : > { %725 = vst [vmem:[#allocation2] sm:$0xf] %v3705_v16 }
  0x47 PF: > { %v743_v17 = vld [vmem:[%s3902_s10 + $0x78] sm:$0xff]  ;;  %v742_v18 = vld [vmem:[%s3902_s10 + $0x70] sm:$0xff]  ;;  %v741_v19 = vld [vmem:[%s3902_s10 + $0x68] sm:$0xff]  ;;  %p3547_p13 = scmp.ne.s32.totalorder %s3687_s29, 1 }
  0x48   : > { %v3908_v20 = vand.u32 4294901760, %v743_v17  ;;  %v3910_v21 = vand.u32 4294901760, %v742_v18  ;;  %v3912_v22 = vand.u32 4294901760, %v741_v19  ;;  %v740_v23 = vld [vmem:[%s3902_s10 + $0x60] sm:$0xff]  ;;  %v739_v24 = vld [vmem:[%s3902_s10 + $0x58] sm:$0xff]  ;;  %v738_v25 = vld [vmem:[%s3902_s10 + $0x50] sm:$0xff] }
  0x49   : > { %v3917_v26 = vand.u32 4294901760, %v740_v23  ;;  %v3919_v27 = vand.u32 4294901760, %v739_v24  ;;  %v3921_v28 = vand.u32 4294901760, %v738_v25  ;;  %v737_v29 = vld [vmem:[%s3902_s10 + $0x48] sm:$0xff]  ;;  %v736_v30 = vld [vmem:[%s3902_s10 + $0x40] sm:$0xff]  ;;  %v735_v35 = vld [vmem:[%s3902_s10 + $0x38] sm:$0xff] }
  0x4a   : > { %745 = vmatpush.msra.mxu0 %v3908_v20  ;;  %v3927_v31 = vsub.f32 %v743_v17, %v3908_v20  ;;  %v3930_v32 = vsub.f32 %v742_v18, %v3910_v21  ;;  %v3933_v33 = vsub.f32 %v741_v19, %v3912_v22  ;;  %v3935_v34 = vand.u32 4294901760, %v737_v29  ;;  %941 = vmatpush.msra.mxu3 %v3908_v20  ;;  %v734_v43 = vld [vmem:[%s3902_s10 + $0x30] sm:$0xff]  ;;  %v733_v53 = vld [vmem:[%s3902_s10 + $0x28] sm:$0xff]  ;;  %v732_v59 = vld [vmem:[%s3902_s10 + $0x20] sm:$0xff]  ;;  %s4542_s13 = sld [smem:[#allocation14_spill]] (!%p3547_p13) }
  0x4b   : > { %v3940_v36 = vsub.f32 %v740_v23, %v3917_v26  ;;  %v3943_v37 = vsub.f32 %v739_v24, %v3919_v27  ;;  %v3946_v38 = vsub.f32 %v738_v25, %v3921_v28  ;;  %v3952_v42 = vand.u32 4294901760, %v736_v30  ;;  %v731_v0 = vld [vmem:[%s3902_s10 + $0x18] sm:$0xff]  ;;  %v730_v8 = vld [vmem:[%s3902_s10 + $0x10] sm:$0xff]  ;;  %v729_v13 = vld [vmem:[%s3902_s10 + $0x8] sm:$0xff]  ;;  %s4543_s21 = sld [smem:[#allocation15_spill]] (!%p3547_p13) }
  0x4c   : > { %747 = vmatpush.msra.mxu0 %v3910_v21  ;;  %v787_v39 = vand.u32 4294901760, %v3927_v31  ;;  %v793_v40 = vand.u32 4294901760, %v3930_v32  ;;  %v799_v41 = vand.u32 4294901760, %v3933_v33  ;;  %888 = vmatpush.msra.mxu2 %v3927_v31  ;;  %v3957_v45 = vand.u32 4294901760, %v735_v35  ;;  %v728_v18 = vld [vmem:[%s3902_s10] sm:$0xff]  ;;  %s4544_s25 = sld [smem:[#allocation16_spill]] (!%p3547_p13) }
  0x4d   : > { %v805_v44 = vand.u32 4294901760, %v3940_v36  ;;  %v3960_v46 = vsub.f32 %v737_v29, %v3935_v34  ;;  %943 = vmatpush.msra.mxu3 %v3910_v21  ;;  %v811_v50 = vand.u32 4294901760, %v3943_v37  ;;  %v817_v51 = vand.u32 4294901760, %v3946_v38  ;;  %v727_v24 = vld [vmem:[%s3890_s23] sm:$0xf]  ;;  %s4537_s23 = sld [smem:[#allocation12_spill]] (!%p3547_p13) }
  0x4e   : > { %749 = vmatpush.msra.mxu0 %v3912_v22  ;;  %v788_v47 = vsub.f32 %v3927_v31, %v787_v39  ;;  %v794_v48 = vsub.f32 %v3930_v32, %v793_v40  ;;  %v800_v49 = vsub.f32 %v3933_v33, %v799_v41  ;;  %891 = vmatpush.msra.mxu2 %v3930_v32  ;;  %v3976_v52 = vand.u32 4294901760, %v734_v43  ;;  %s4545_s29 = sld [smem:[#allocation13_spill]] (!%p3547_p13) }
  0x4f   : > { %945 = vmatpush.msra.mxu3 %v3912_v22  ;;  %v806_v56 = vsub.f32 %v3940_v36, %v805_v44  ;;  %v3985_v57 = vsub.f32 %v736_v30, %v3952_v42  ;;  %v823_v58 = vand.u32 4294901760, %v3960_v46  ;;  %v812_v61 = vsub.f32 %v3943_v37, %v811_v50 }
  0x50   : > { %v789_v54 = vand.u32 4294901760, %v788_v47  ;;  %751 = vmatpush.msra.mxu0 %v3917_v26  ;;  %v795_v55 = vand.u32 4294901760, %v794_v48  ;;  %894 = vmatpush.msra.mxu2 %v3933_v33  ;;  %v801_v60 = vand.u32 4294901760, %v800_v49  ;;  %v3995_v62 = vand.u32 4294901760, %v733_v53 }
  0x51   : > { %947 = vmatpush.msra.mxu3 %v3917_v26  ;;  %v3998_v63 = vsub.f32 %v735_v35, %v3957_v45  ;;  %v818_v1 = vsub.f32 %v3946_v38, %v817_v51  ;;  %v807_v2 = vand.u32 4294901760, %v806_v56  ;;  %v829_v3 = vand.u32 4294901760, %v3985_v57 }
  0x52   : > { %790 = vmatpush.msra.mxu1 %v789_v54  ;;  %753 = vmatpush.msra.mxu0 %v3919_v27  ;;  %v4008_v4 = vand.u32 4294901760, %v732_v59  ;;  %v4011_v5 = vsub.f32 %v734_v43, %v3976_v52  ;;  %v824_v6 = vsub.f32 %v3960_v46, %v823_v58  ;;  %v4016_v7 = vand.u32 4294901760, %v731_v0 }
  0x53   : > { %897 = vmatpush.msra.mxu2 %v3940_v36  ;;  %949 = vmatpush.msra.mxu3 %v3919_v27  ;;  %v813_v9 = vand.u32 4294901760, %v812_v61  ;;  %v835_v10 = vand.u32 4294901760, %v3998_v63  ;;  %v4024_v11 = vsub.f32 %v733_v53, %v3995_v62  ;;  %v819_v12 = vand.u32 4294901760, %v818_v1 }
  0x54   : > { %796 = vmatpush.msra.mxu1 %v795_v55  ;;  %755 = vmatpush.msra.mxu0 %v3921_v28  ;;  %v830_v14 = vsub.f32 %v3985_v57, %v829_v3  ;;  %v841_v15 = vand.u32 4294901760, %v4011_v5  ;;  %v4034_v16 = vand.u32 4294901760, %v730_v8  ;;  %v4037_v17 = vsub.f32 %v732_v59, %v4008_v4 }
  0x55   : > { %900 = vmatpush.msra.mxu2 %v3943_v37  ;;  %951 = vmatpush.msra.mxu3 %v3921_v28  ;;  %v825_v19 = vand.u32 4294901760, %v824_v6  ;;  %v4041_v23 = vsub.f32 %v731_v0, %v4016_v7  ;;  %v836_v25 = vsub.f32 %v3998_v63, %v835_v10  ;;  %v847_v29 = vand.u32 4294901760, %v4024_v11 }
  0x56   : > { %802 = vmatpush.msra.mxu1 %v801_v60  ;;  %757 = vmatpush.msra.mxu0 %v3935_v34  ;;  %v4051_v30 = vand.u32 4294901760, %v729_v13  ;;  %v4053_v35 = vand.u32 4294901760, %v727_v24  ;;  %v4055_v43 = vand.u32 4294901760, %v728_v18  ;;  %v831_v47 = vand.u32 4294901760, %v830_v14 }
  0x57   : > { %903 = vmatpush.msra.mxu2 %v3946_v38  ;;  %953 = vmatpush.msra.mxu3 %v3935_v34  ;;  %v842_v48 = vsub.f32 %v4011_v5, %v841_v15  ;;  %v853_v49 = vand.u32 4294901760, %v4037_v17  ;;  %v4065_v53 = vsub.f32 %v730_v8, %v4034_v16  ;;  %v859_v54 = vand.u32 4294901760, %v4041_v23 }
  0x58   : > { %808 = vmatpush.msra.mxu1 %v807_v2  ;;  %759 = vmatpush.msra.mxu0 %v3952_v42  ;;  %v837_v55 = vand.u32 4294901760, %v836_v25  ;;  %v848_v56 = vsub.f32 %v4024_v11, %v847_v29  ;;  %v4075_v59 = vsub.f32 %v729_v13, %v4051_v30  ;;  %v777_v60 = vsub.f32 %v727_v24, %v4053_v35 }
  0x59   : > { %906 = vmatpush.msra.mxu2 %v3960_v46  ;;  %955 = vmatpush.msra.mxu3 %v3952_v42  ;;  %v843_v61 = vand.u32 4294901760, %v842_v48  ;;  %v854_v0 = vsub.f32 %v4037_v17, %v853_v49  ;;  %v865_v1 = vand.u32 4294901760, %v4065_v53  ;;  %v4086_v2 = vsub.f32 %v728_v18, %v4055_v43 }
  0x5a   : > { %814 = vmatpush.msra.mxu1 %v813_v9  ;;  %761 = vmatpush.msra.mxu0 %v3957_v45  ;;  %v849_v6 = vand.u32 4294901760, %v848_v56  ;;  %v860_v8 = vsub.f32 %v4041_v23, %v859_v54  ;;  %v871_v9 = vand.u32 4294901760, %v4075_v59 }
  0x5b   : > { %909 = vmatpush.msra.mxu2 %v3985_v57  ;;  %957 = vmatpush.msra.mxu3 %v3957_v45  ;;  %v855_v13 = vand.u32 4294901760, %v854_v0  ;;  %v866_v14 = vsub.f32 %v4065_v53, %v865_v1  ;;  %v877_v18 = vand.u32 4294901760, %v4086_v2 }
  0x5c   : > { %820 = vmatpush.msra.mxu1 %v819_v12  ;;  %763 = vmatpush.msra.mxu0 %v3976_v52  ;;  %v778_v12 = vand.u32 4294901760, %v777_v60  ;;  %v872_v24 = vsub.f32 %v4075_v59, %v871_v9 }
  0x5d   : > { %912 = vmatpush.msra.mxu2 %v3998_v63  ;;  %959 = vmatpush.msra.mxu3 %v3976_v52  ;;  %v878_v48 = vsub.f32 %v4086_v2, %v877_v18 }
  0x5e   : > { %826 = vmatpush.msra.mxu1 %v825_v19  ;;  %765 = vmatpush.msra.mxu0 %v3995_v62  ;;  %v861_v19 = vand.u32 4294901760, %v860_v8  ;;  %v779_v25 = vsub.f32 %v777_v60, %v778_v12 }
  0x5f   : > { %915 = vmatpush.msra.mxu2 %v4011_v5  ;;  %961 = vmatpush.msra.mxu3 %v3995_v62 }
  0x60   : > { %832 = vmatpush.msra.mxu1 %v831_v47  ;;  %767 = vmatpush.msra.mxu0 %v4008_v4  ;;  %v867_v47 = vand.u32 4294901760, %v866_v14  ;;  %v780_v56 = vand.u32 4294901760, %v779_v25 }
  0x61   : > { %918 = vmatpush.msra.mxu2 %v4024_v11  ;;  %963 = vmatpush.msra.mxu3 %v4008_v4 }
  0x62   : > { %838 = vmatpush.msra.mxu1 %v837_v55  ;;  %769 = vmatpush.msra.mxu0 %v4016_v7  ;;  %v873_v55 = vand.u32 4294901760, %v872_v24 }
  0x63   : > { %921 = vmatpush.msra.mxu2 %v4037_v17  ;;  %965 = vmatpush.msra.mxu3 %v4016_v7 }
  0x64   : > { %844 = vmatpush.msra.mxu1 %v843_v61  ;;  %771 = vmatpush.msra.mxu0 %v4034_v16  ;;  %v879_v61 = vand.u32 4294901760, %v878_v48 }
  0x65   : > { %924 = vmatpush.msra.mxu2 %v4041_v23  ;;  %967 = vmatpush.msra.mxu3 %v4034_v16 }
  0x66   : > { %850 = vmatpush.msra.mxu1 %v849_v6  ;;  %773 = vmatpush.msra.mxu0 %v4051_v30 }
  0x67   : > { %927 = vmatpush.msra.mxu2 %v4065_v53  ;;  %969 = vmatpush.msra.mxu3 %v4051_v30 }
  0x68   : > { %856 = vmatpush.msra.mxu1 %v855_v13  ;;  %775 = vmatpush.msra.mxu0 %v4055_v43 }
  0x69   : > { %930 = vmatpush.msra.mxu2 %v4075_v59  ;;  %971 = vmatpush.msra.mxu3 %v4055_v43 }
  0x6a   : > { %982 = vmatpush.msrb.mxu0 %v787_v39  ;;  %862 = vmatpush.msra.mxu1 %v861_v19 }
  0x6b   : > { %933 = vmatpush.msra.mxu2 %v4086_v2  ;;  %975 = vmatmul.f32.vlgmr.msra.gmra.mxu3 %v778_v12 }
  0x6c   : > { %986 = vmatpush.msrb.mxu0 %v793_v40  ;;  %868 = vmatpush.msra.mxu1 %v867_v47 }
  0x6d   : > { %936 = vmatmul.f32.vlgmr.msra.gmra.mxu2 %v777_v60  ;;  %781 = vmatmul.f32.vlgmr.msra.gmra.mxu0 %v780_v56 }
  0x6e   : > { %990 = vmatpush.msrb.mxu0 %v799_v41  ;;  %874 = vmatpush.msra.mxu1 %v873_v55 }
  0x70   : > { %994 = vmatpush.msrb.mxu0 %v805_v44  ;;  %880 = vmatpush.msra.mxu1 %v879_v61 }
  0x71   : > { %882 = vmatmul.f32.vlgmr.msra.gmra.mxu1 %v4053_v35 }
  0x72   : > { %1049 = vmatpush.msrb.mxu1 %v3908_v20  ;;  %998 = vmatpush.msrb.mxu0 %v811_v50 }
  0x74   : > { %1051 = vmatpush.msrb.mxu1 %v3910_v21  ;;  %1002 = vmatpush.msrb.mxu0 %v817_v51 }
  0x76   : > { %1053 = vmatpush.msrb.mxu1 %v3912_v22  ;;  %1006 = vmatpush.msrb.mxu0 %v823_v58 }
  0x78   : > { %1055 = vmatpush.msrb.mxu1 %v3917_v26  ;;  %1010 = vmatpush.msrb.mxu0 %v829_v3 }
  0x7a   : > { %1057 = vmatpush.msrb.mxu1 %v3919_v27  ;;  %1014 = vmatpush.msrb.mxu0 %v835_v10 }
  0x7c   : > { %1059 = vmatpush.msrb.mxu1 %v3921_v28  ;;  %1018 = vmatpush.msrb.mxu0 %v841_v15 }
  0x7e   : > { %1061 = vmatpush.msrb.mxu1 %v3935_v34  ;;  %1022 = vmatpush.msrb.mxu0 %v847_v29  ;;  %v726_v34 = vld [vmem:[#allocation2] sm:$0xf] }
  0x80   : > { %1063 = vmatpush.msrb.mxu1 %v3952_v42  ;;  %1026 = vmatpush.msrb.mxu0 %v853_v49 }
  0x82   : > { %1065 = vmatpush.msrb.mxu1 %v3957_v45  ;;  %1030 = vmatpush.msrb.mxu0 %v859_v54 }
  0x84   : > { %1067 = vmatpush.msrb.mxu1 %v3976_v52  ;;  %1034 = vmatpush.msrb.mxu0 %v865_v1 }
  0x86   : > { %1069 = vmatpush.msrb.mxu1 %v3995_v62  ;;  %1038 = vmatpush.msrb.mxu0 %v871_v9 }
  0x88   : > { %1071 = vmatpush.msrb.mxu1 %v4008_v4  ;;  %1042 = vmatpush.msrb.mxu0 %v877_v18 }
  0x89   : > { %1044 = vmatmul.f32.vlgmr.msrb.gmra.mxu0 %v4053_v35 }
  0x8a   : > { %1073 = vmatpush.msrb.mxu1 %v4016_v7 }
  0x8c   : > { %1075 = vmatpush.msrb.mxu1 %v4034_v16 }
  0x8e   : > { %1077 = vmatpush.msrb.mxu1 %v4051_v30 }
  0x90   : > { %1079 = vmatpush.msrb.mxu1 %v4055_v43 }
  0x91   : > { %1081 = vmatmul.f32.vlgmr.msrb.gmra.mxu1 %v4053_v35 }
  0xea   : > { %v782_v21 = vpop.f32.mrf.mxu0 }
  0xee   : > { %v883_v20 = vpop.f32.mrf.mxu1  ;;  %v976_v28 = vpop.f32.mrf.mxu3 }
  0xef   : > { %v884_v22 = vadd.f32 %v883_v20, %v782_v21 }
  0xf0   : > { %v937_v26 = vpop.f32.mrf.mxu2 }
  0xf1   : > { %v938_v27 = vadd.f32 %v937_v26, %v884_v22 }
  0xf3   : > { %v977_v31 = vadd.f32 %v976_v28, %v938_v27 }
 0x106   : > { %v1045_v32 = vpop.f32.mrf.mxu0 }
 0x107   : > { %v1046_v33 = vadd.f32 %v1045_v32, %v977_v31 }
 0x10e   : > { %v1082_v36 = vpop.f32.mrf.mxu1 }
 0x10f   : > { %v1083_v37 = vadd.f32 %v1082_v36, %v1046_v33  ;;  %1090 = sbr.rel (%p3547_p13) target bundleno = 1746 (0x6d2), region = 138 }
 0x111   : > { %v1085_v38 = vadd.f32 %v1083_v37, %v726_v34 }
 0x113   : > { %1086 = vst [vmem:[#allocation2] sm:$0xf] %v1085_v38 }
 0x114   : > { %v1095_v39 = vld [vmem:[%s4499_s4 + $0x8] sm:$0xff]  ;;  %vm1113_vm0 = vcmask 1043456   ;;  %v3706_v41 = vmov 0   ;;  %v1092_v44 = vld [vmem:[%s4498_s3] sm:$0xff]  ;;  %vm1106_vm1 = vcmask 31744   ;;  %v3559_v35 = vld [vmem:[%s4511_s16 + $0x18] sm:$0xff] }
 0x115   : > { %3621 = vset.pattern.permute.xlu0 %v3706_v41  ;;  %v1093_v45 = vld [vmem:[%s4498_s3 + $0x8] sm:$0xff]  ;;  %3622 = vset.pattern.permute.xlu1 %v3706_v41  ;;  %v1108_v50 = vsel %vm1106_vm1, %v1092_v44, 0  ;;  %v1094_v4 = vld [vmem:[%s4499_s4] sm:$0xff]  ;;  %v3554_v43 = vld [vmem:[%s4506_s11 + $0x10] sm:$0xff]  ;;  %vm1346_vm2 = vcmask 130048  }
 0x116   : > { %1103 = vperm.xlu0 %3621, %v1095_v39   ;;  %v1111_v51 = vsel %vm1106_vm1, %v1093_v45, 0  ;;  %3623 = vset.pattern.permute.xlu2 %v3706_v41  ;;  %v1134_v52 = vand.u32 4294901760, %v1108_v50  ;;  %v2054_v23 = vld [vmem:[%s4506_s11 + $0x8] sm:$0xff]  ;;  %v2484_v30 = vld [vmem:[%s4509_s14] sm:$0xff] }
 0x117   : > { %v1142_v57 = vand.u32 4294901760, %v1111_v51  ;;  %v1831_v49 = vld [vmem:[%s4502_s7] sm:$0xff]  ;;  %v1335_v47 = vld [vmem:[%s4501_s6 + $0x8] sm:$0xff] }
 0x118   : > { %v1135_v62 = vsub.f32 %v1108_v50, %v1134_v52  ;;  %1343 = vperm.xlu1 %3622, %v1335_v47   ;;  %v1334_v21 = vld [vmem:[%s4501_s6] sm:$0xff]  ;;  %v2684_v50 = vld [vmem:[%s4511_s16 + $0x8] sm:$0xff] }
 0x119   : > { %v1143_v63 = vsub.f32 %v1111_v51, %v1142_v57  ;;  %v2053_v38 = vld [vmem:[%s4506_s11] sm:$0xff] }
 0x11a   : > { %v1091_v40 = vld [vmem:[#allocation2] sm:$0xf]  ;;  %v1136_v5 = vand.u32 4294901760, %v1135_v62 }
 0x11b   : > { %v1115_v42 = vsel %vm1113_vm0, %v1091_v40, 0  ;;  %v1144_v11 = vand.u32 4294901760, %v1143_v63  ;;  %v1332_v39 = vld [vmem:[%s4500_s5] sm:$0xff] }
 0x11c   : > { %v4170_v46 = vand.u32 4294901760, %v1115_v42  ;;  %v1137_v10 = vsub.f32 %v1135_v62, %v1136_v5  ;;  %v1348_v45 = vsel %vm1346_vm2, %v1332_v39, 0 }
 0x11d   : > { %v1145_v17 = vsub.f32 %v1143_v63, %v1144_v11 }
 0x11e   : > { %v4175_v58 = vsub.f32 %v1115_v42, %v4170_v46  ;;  %1133 = vmatpush.msra.mxu0 %v4170_v46  ;;  %1226 = vmatpush.msra.mxu3 %v4170_v46  ;;  %v1138_v16 = vand.u32 4294901760, %v1137_v10 }
 0x11f   : > { %1230 = vmatmul.f32.vlgmr.msra.gmra.mxu3 %v1136_v5  ;;  %1098 = vperm.xlu0 %3621, %v1094_v4   ;;  %v1146_v29 = vand.u32 4294901760, %v1145_v17  ;;  %v1333_v4 = vld [vmem:[%s4500_s5 + $0x8] sm:$0xff] }
 0x120   : > { %1198 = vmatpush.msra.mxu2 %v4175_v58  ;;  %v4181_v3 = vand.u32 4294901760, %v4175_v58  ;;  %1139 = vmatmul.f32.vlgmr.msra.gmra.mxu0 %v1138_v16  ;;  %v3558_v16 = vld [vmem:[%s4511_s16 + $0x10] sm:$0xff] }
 0x121   : > { %1201 = vmatmul.f32.vlgmr.msra.gmra.mxu2 %v1135_v62  ;;  %1338 = vperm.xlu1 %3622, %v1334_v21  }
 0x122   : > { %v1169_v7 = vsub.f32 %v4175_v58, %v4181_v3  ;;  %1258 = vmatpush.msrb.mxu0 %v4181_v3 }
 0x124   : > { %v4189_v15 = vand.u32 4294901760, %v1169_v7 }
 0x126   : > { %1171 = vmatpush.msra.mxu1 %v4189_v15 }
 0x127   : > { %1173 = vmatmul.f32.vlgmr.msra.gmra.mxu1 %v1134_v52  ;;  %1236 = vmatmul.f32.gmra.mxu3 %v1144_v11 }
 0x128   : > { %1284 = vmatpush.msrb.mxu1 %v4170_v46  ;;  %2062 = vperm.xlu0 %3621, %v2054_v23  }
 0x129   : > { %1206 = vmatmul.f32.gmra.mxu2 %v1143_v63  ;;  %1147 = vmatmul.f32.gmra.mxu0 %v1146_v29  ;;  %v1351_v29 = vsel %vm1346_vm2, %v1333_v4, 0 }
 0x12a   : > { %2057 = vperm.xlu1 %3622, %v2053_v38  }
 0x12f   : > { %1177 = vmatmul.f32.gmra.mxu1 %v1142_v57 }
 0x130   : > { %2488 = vperm.xlu0 %3621, %v2484_v30  }
 0x131   : > { %1260 = vmatmul.f32.vlgmr.msrb.gmra.mxu0 %v1134_v52 }
 0x132   : > { %2692 = vperm.xlu1 %3622, %v2684_v50  }
 0x137   : > { %1286 = vmatmul.f32.vlgmr.msrb.gmra.mxu1 %v1134_v52 }
 0x138   : > { %2906 = vperm.xlu0 %3621, %v3559_v35  }
 0x139   : > { %1264 = vmatmul.f32.gmra.mxu0 %v1142_v57 }
 0x13a   : > { %2901 = vperm.xlu1 %3622, %v3558_v16  }
 0x13f   : > { %1290 = vmatmul.f32.gmra.mxu1 %v1142_v57  ;;  %v4224_v57 = vand.u32 4294901760, %v1348_v45 }
 0x140   : > { %2273 = vperm.xlu0 %3621, %v3554_v43  }
 0x141   : > { %v1372_v11 = vsub.f32 %v1348_v45, %v4224_v57 }
 0x148   : > { %1835 = vperm.xlu0 %3621, %v1831_v49   ;;  %v1373_v49 = vand.u32 4294901760, %v1372_v11 }
 0x188   : > { %v1104_v53 = vpop.permute.xlu0 %1103 }
 0x191   : > { %v1099_v60 = vpop.permute.xlu0 %1098 }
 0x19d   : > { %v1140_v54 = vpop.f32.mrf.mxu0 }
 0x19e   : > { %v1141_v0 = vadd.f32 %v1140_v54, %v1099_v60 }
 0x1a2   : > { %v1231_v9 = vpop.f32.mrf.mxu3 }
 0x1a4   : > { %v1174_v59 = vpop.f32.mrf.mxu1  ;;  %v1202_v1 = vpop.f32.mrf.mxu2 }
 0x1a5   : > { %v1175_v2 = vadd.f32 %v1174_v59, %v1141_v0 }
 0x1a6   : > { %v1148_v6 = vpop.f32.mrf.mxu0 }
 0x1a7   : > { %v1203_v12 = vadd.f32 %v1202_v1, %v1175_v2  ;;  %v1149_v13 = vadd.f32 %v1148_v6, %v1104_v53  ;;  %v1379_v53 = vand.u32 4294901760, %v1351_v29  ;;  %v1374_v2 = vsub.f32 %v1372_v11, %v1373_v49 }
 0x1a9   : > { %v1232_v14 = vadd.f32 %v1231_v9, %v1203_v12  ;;  %v1380_v6 = vsub.f32 %v1351_v29, %v1379_v53 }
 0x1aa   : > { %v1237_v61 = vpop.f32.mrf.mxu3 }
 0x1ac   : > { %v1178_v8 = vpop.f32.mrf.mxu1  ;;  %v1207_v19 = vpop.f32.mrf.mxu2 }
 0x1ad   : > { %v1179_v18 = vadd.f32 %v1178_v8, %v1149_v13  ;;  %v3550_v8 = vld [vmem:[%s4501_s6 + $0x10] sm:$0xff] }
 0x1ae   : > { %v1261_v24 = vpop.f32.mrf.mxu0  ;;  %1589 = vperm.xlu1 %3622, %v3550_v8  }
 0x1af   : > { %v1262_v48 = vadd.f32 %v1261_v24, %v1232_v14  ;;  %v1208_v55 = vadd.f32 %v1207_v19, %v1179_v18  ;;  %v1375_v18 = vand.u32 4294901760, %v1374_v2  ;;  %v1381_v19 = vand.u32 4294901760, %v1380_v6 }
 0x1b1   : > { %v1238_v22 = vadd.f32 %v1237_v61, %v1208_v55  ;;  %v1832_v55 = vld [vmem:[%s4502_s7 + $0x8] sm:$0xff] }
 0x1b4   : > { %v1287_v25 = vpop.f32.mrf.mxu1 }
 0x1b5   : > { %v1288_v56 = vadd.f32 %v1287_v25, %v1262_v48  ;;  %v1382_v48 = vsub.f32 %v1380_v6, %v1381_v19 }
 0x1b6   : > { %v1265_v27 = vpop.f32.mrf.mxu0  ;;  %1840 = vperm.xlu1 %3622, %v1832_v55  }
 0x1b7   : > { %v1294_v20 = vsub.f32 0.0, %v1288_v56  ;;  %v1266_v31 = vadd.f32 %v1265_v27, %v1238_v22  ;;  %v1383_v21 = vand.u32 4294901760, %v1382_v48 }
 0x1b9   : > { %v1296_v26 = vmul.f32 1.442695, %v1294_v20 }
 0x1bb   : > { %3624 = vpow2.f32 %v1296_v26  ;;  %v1344_v26 = vpop.permute.xlu1 %1343 }
 0x1bc   : > { %v1291_v28 = vpop.f32.mrf.mxu1 }
 0x1bd   : > { %v1292_v32 = vadd.f32 %v1291_v28, %v1266_v31 }
 0x1bf   : > { %v1295_v33 = vsub.f32 0.0, %v1292_v32 }
 0x1c1   : > { %v3625_v34 = vpop.eup %3624  ;;  %v1298_v36 = vmul.f32 1.442695, %v1295_v33 }
 0x1c2   : > { %v1300_v37 = vadd.f32 1.0, %v3625_v34 }
 0x1c3   : > { %3626 = vpow2.f32 %v1298_v36  ;;  %v1339_v28 = vpop.permute.xlu1 %1338 }
 0x1c4   : > { %3628 = vrcp.f32 %v1300_v37  ;;  %v1313_v52 = vand.u32 2147483648, %v1300_v37  ;;  %v1311_v63 = vand.u32 2147483647, %v1300_v37  ;;  %vm1307_vm4 = vweird.f32 %v1300_v37 }
 0x1c6   : > { %v1314_v10 = vor.u32 1.1754944e-38, %v1313_v52  ;;  %vm1312_vm6 = vcmp.eq.f32.partialorder %v1311_v63, 8.507059e+37 }
 0x1c9   : > { %v3627_v40 = vpop.eup %3626 }
 0x1ca   : > { %v3629_v41 = vpop.eup %3628  ;;  %v1301_v42 = vadd.f32 1.0, %v3627_v40 }
 0x1cb   : > { %v1303_v44 = vmul.f32 %v3629_v41, %v1300_v37  ;;  %vm1308_vm3 = vweird.f32 %v3629_v41 }
 0x1cc   : > { %3630 = vrcp.f32 %v1301_v42  ;;  %vm1309_vm5 = vmor %vm1307_vm4, %vm1308_vm3  ;;  %v1328_v43 = vand.u32 2147483648, %v1301_v42  ;;  %v1326_v59 = vand.u32 2147483647, %v1301_v42  ;;  %vm1322_vm8 = vweird.f32 %v1301_v42 }
 0x1cd   : > { %v1304_v51 = vsub.f32 1.0, %v1303_v44 }
 0x1ce   : > { %v1329_v1 = vor.u32 1.1754944e-38, %v1328_v43  ;;  %vm1327_vm10 = vcmp.eq.f32.partialorder %v1326_v59, 8.507059e+37 }
 0x1cf   : > { %v1305_v62 = vmul.f32 %v3629_v41, %v1304_v51 }
 0x1d1   : > { %v1306_v5 = vadd.f32 %v3629_v41, %v1305_v62 }
 0x1d2   : > { %v3631_v7 = vpop.eup %3630 }
 0x1d3   : > { %v1318_v17 = vmul.f32 %v3631_v7, %v1301_v42  ;;  %v1310_v23 = vsel %vm1309_vm5, %v3629_v41, %v1306_v5  ;;  %vm1323_vm7 = vweird.f32 %v3631_v7 }
 0x1d4   : > { %v1315_v30 = vsel %vm1312_vm6, %v1314_v10, %v1310_v23  ;;  %vm1324_vm9 = vmor %vm1322_vm8, %vm1323_vm7 }
 0x1d5   : > { %v1319_v35 = vsub.f32 1.0, %v1318_v17  ;;  %v1369_v60 = vand.u32 4294901760, %v1315_v30 }
 0x1d7   : > { %v1320_v54 = vmul.f32 %v3631_v7, %v1319_v35  ;;  %v1409_v12 = vsub.f32 %v1315_v30, %v1369_v60  ;;  %v3548_v35 = vld [vmem:[%s4500_s5 + $0x10] sm:$0xff] }
 0x1d8   : > { %v1598_v59 = vsel %vm1346_vm2, %v3548_v35, 0  ;;  %v3555_v35 = vld [vmem:[%s4506_s11 + $0x18] sm:$0xff] }
 0x1d9   : > { %v1321_v0 = vadd.f32 %v3631_v7, %v1320_v54  ;;  %v1410_v25 = vand.u32 4294901760, %v1409_v12  ;;  %v4250_v2 = vand.u32 4294901760, %v1598_v59 }
 0x1db   : > { %v1325_v9 = vsel %vm1324_vm9, %v3631_v7, %v1321_v0  ;;  %v1411_v61 = vsub.f32 %v1409_v12, %v1410_v25 }
 0x1dc   : > { %v1330_v13 = vsel %vm1327_vm10, %v1329_v1, %v1325_v9  ;;  %v3549_v9 = vld [vmem:[%s4500_s5 + $0x18] sm:$0xff] }
 0x1dd   : > { %v1367_v14 = vand.u32 4294901760, %v1330_v13  ;;  %v1412_v22 = vand.u32 4294901760, %v1411_v61 }
 0x1df   : > { %1368 = vmatpush.msrb.mxu2 %v1367_v14  ;;  %1469 = vmatpush.msra.mxu1 %v1367_v14  ;;  %v1403_v24 = vsub.f32 %v1330_v13, %v1367_v14 }
 0x1e1   : > { %1370 = vmatpush.msrb.mxu2 %v1369_v60  ;;  %1439 = vmatpush.msra.mxu0 %v1403_v24  ;;  %v1404_v47 = vand.u32 4294901760, %v1403_v24 }
 0x1e2   : > { %1471 = vmatpush.msra.mxu1 %v1369_v60  ;;  %1376 = vmatmul.f32.vlgmr.msrb.gmra.mxu2 %v1375_v18  ;;  %v1622_v18 = vsub.f32 %v1598_v59, %v4250_v2 }
 0x1e3   : > { %1442 = vmatpush.msra.mxu0 %v1409_v12  ;;  %1502 = vmatpush.msra.mxu2 %v1404_v47  ;;  %v1405_v56 = vsub.f32 %v1403_v24, %v1404_v47  ;;  %v1601_v47 = vsel %vm1346_vm2, %v3549_v9, 0 }
 0x1e4   : > { %1445 = vmatmul.f32.vlgmr.msra.gmra.mxu0 %v1372_v11  ;;  %1475 = vmatmul.f32.vlgmr.msra.gmra.mxu1 %v1373_v49  ;;  %v1623_v61 = vand.u32 4294901760, %v1622_v18 }
 0x1e5   : > { %1506 = vmatpush.msra.mxu2 %v1410_v25  ;;  %v1406_v20 = vand.u32 4294901760, %v1405_v56 }
 0x1e7   : > { %1407 = vmatpush.msrb.mxu3 %v1406_v20  ;;  %v4260_v20 = vand.u32 4294901760, %v1601_v47 }
 0x1e9   : > { %1413 = vmatpush.msrb.mxu3 %v1412_v22 }
 0x1ea   : > { %1384 = vmatmul.f32.gmra.mxu2 %v1383_v21  ;;  %1415 = vmatmul.f32.vlgmr.msrb.gmra.mxu3 %v4224_v57 }
 0x1eb   : > { %1531 = vmatpush.msra.mxu3 %v1367_v14 }
 0x1ec   : > { %1450 = vmatmul.f32.gmra.mxu0 %v1380_v6  ;;  %1481 = vmatmul.f32.gmra.mxu1 %v1381_v19  ;;  %v1854_v19 = vld [vmem:[%s4504_s9] sm:$0xff] }
 0x1ed   : > { %1533 = vmatpush.msra.mxu3 %v1369_v60  ;;  %v1855_v60 = vld [vmem:[%s4504_s9 + $0x8] sm:$0xff] }
 0x1ee   : > { %1863 = vperm.xlu2 %3623, %v1855_v60  }
 0x1f2   : > { %1419 = vmatmul.f32.gmra.mxu3 %v1379_v53  ;;  %1508 = vmatmul.f32.vlgmr.msra.gmra.mxu2 %v4224_v57 }
 0x1f6   : > { %1858 = vperm.xlu2 %3623, %v1854_v19  }
 0x1fa   : > { %1512 = vmatmul.f32.gmra.mxu2 %v1379_v53  ;;  %1535 = vmatmul.f32.vlgmr.msra.gmra.mxu3 %v4224_v57 }
 0x202   : > { %1539 = vmatmul.f32.gmra.mxu3 %v1379_v53 }
 0x248   : > { %v1864_v60 = vpop.permute.xlu2 %1863 }
 0x261   : > { %v1446_v34 = vpop.f32.mrf.mxu0  ;;  %v1476_v37 = vpop.f32.mrf.mxu1 }
 0x265   : > { %v1377_v27 = vpop.f32.mrf.mxu2 }
 0x266   : > { %v1378_v33 = vadd.f32 %v1377_v27, %v1339_v28 }
 0x269   : > { %v1451_v45 = vpop.f32.mrf.mxu0  ;;  %v1482_v62 = vpop.f32.mrf.mxu1 }
 0x26d   : > { %v1385_v31 = vpop.f32.mrf.mxu2  ;;  %v1416_v32 = vpop.f32.mrf.mxu3 }
 0x26e   : > { %v1417_v36 = vadd.f32 %v1416_v32, %v1378_v33  ;;  %v1386_v39 = vadd.f32 %v1385_v31, %v1344_v26  ;;  %v1624_v31 = vsub.f32 %v1622_v18, %v1623_v61  ;;  %v1630_v32 = vsub.f32 %v1601_v47, %v4260_v20  ;;  %v1852_v33 = vld [vmem:[%s4503_s8] sm:$0xff] }
 0x270   : > { %v1447_v40 = vadd.f32 %v1446_v34, %v1417_v36  ;;  %v2485_v34 = vld [vmem:[%s4509_s14 + $0x8] sm:$0xff] }
 0x271   : > { %2493 = vperm.xlu2 %3623, %v2485_v34   ;;  %v4307_v34 = vpop.permute.xlu0 %2062 }
 0x272   : > { %v1477_v42 = vadd.f32 %v1476_v37, %v1447_v40  ;;  %v1867_v40 = vsel %vm1106_vm1, %v1852_v33, 0 }
 0x275   : > { %v1420_v38 = vpop.f32.mrf.mxu3  ;;  %v1509_v41 = vpop.f32.mrf.mxu2 }
 0x276   : > { %v1421_v44 = vadd.f32 %v1420_v38, %v1386_v39  ;;  %v1510_v50 = vadd.f32 %v1509_v41, %v1477_v42  ;;  %v1625_v41 = vand.u32 4294901760, %v1624_v31  ;;  %v1631_v42 = vand.u32 4294901760, %v1630_v32 }
 0x278   : > { %v1452_v52 = vadd.f32 %v1451_v45, %v1421_v44 }
 0x27a   : > { %v1483_v5 = vadd.f32 %v1482_v62, %v1452_v52  ;;  %v1632_v52 = vsub.f32 %v1630_v32, %v1631_v42 }
 0x27d   : > { %v1536_v51 = vpop.f32.mrf.mxu3  ;;  %v1513_v4 = vpop.f32.mrf.mxu2 }
 0x27e   : > { %v1537_v57 = vadd.f32 %v1536_v51, %v1510_v50  ;;  %v1514_v10 = vadd.f32 %v1513_v4, %v1483_v5  ;;  %v1889_v50 = vand.u32 4294901760, %v1867_v40  ;;  %v2683_v5 = vld [vmem:[%s4511_s16] sm:$0xff] }
 0x27f   : > { %2687 = vperm.xlu2 %3623, %v2683_v5  }
 0x280   : > { %v1543_v63 = vsub.f32 0.0, %v1537_v57  ;;  %v1853_v57 = vld [vmem:[%s4503_s8 + $0x8] sm:$0xff]  ;;  %v1890_v4 = vsub.f32 %v1867_v40, %v1889_v50 }
 0x282   : > { %v1545_v7 = vmul.f32 1.442695, %v1543_v63 }
 0x284   : > { %3632 = vpow2.f32 %v1545_v7 }
 0x285   : > { %v1540_v11 = vpop.f32.mrf.mxu3 }
 0x286   : > { %v1541_v16 = vadd.f32 %v1540_v11, %v1514_v10  ;;  %v1870_v10 = vsel %vm1106_vm1, %v1853_v57, 0  ;;  %v1633_v11 = vand.u32 4294901760, %v1632_v52 }
 0x287   : > { %2278 = vperm.xlu2 %3623, %v3555_v35  }
 0x288   : > { %v1544_v17 = vsub.f32 0.0, %v1541_v16 }
 0x28a   : > { %v3633_v23 = vpop.eup %3632  ;;  %v1547_v29 = vmul.f32 1.442695, %v1544_v17  ;;  %v1891_v17 = vand.u32 4294901760, %v1890_v4 }
 0x28b   : > { %v1549_v30 = vadd.f32 1.0, %v3633_v23  ;;  %v1897_v23 = vand.u32 4294901760, %v1870_v10 }
 0x28c   : > { %3634 = vpow2.f32 %v1547_v29  ;;  %v1892_v29 = vsub.f32 %v1890_v4, %v1891_v17 }
 0x28d   : > { %3636 = vrcp.f32 %v1549_v30  ;;  %v1562_v1 = vand.u32 2147483648, %v1549_v30  ;;  %v1560_v8 = vand.u32 2147483647, %v1549_v30  ;;  %vm1556_vm12 = vweird.f32 %v1549_v30 }
 0x28f   : > { %v1563_v14 = vor.u32 1.1754944e-38, %v1562_v1  ;;  %vm1561_vm14 = vcmp.eq.f32.partialorder %v1560_v8, 8.507059e+37  ;;  %v4295_v1 = vpop.permute.xlu1 %2057 }
 0x292   : > { %v3635_v43 = vpop.eup %3634 }
 0x293   : > { %v3637_v49 = vpop.eup %3636  ;;  %v1550_v53 = vadd.f32 1.0, %v3635_v43  ;;  %v1893_v43 = vand.u32 4294901760, %v1892_v29 }
 0x294   : > { %v1552_v54 = vmul.f32 %v3637_v49, %v1549_v30  ;;  %vm1557_vm11 = vweird.f32 %v3637_v49  ;;  %v1898_v30 = vsub.f32 %v1870_v10, %v1897_v23 }
 0x295   : > { %3638 = vrcp.f32 %v1550_v53  ;;  %vm1558_vm13 = vmor %vm1556_vm12, %vm1557_vm11  ;;  %v1577_v56 = vand.u32 2147483648, %v1550_v53  ;;  %v1575_v22 = vand.u32 2147483647, %v1550_v53  ;;  %vm1571_vm0 = vweird.f32 %v1550_v53 }
 0x296   : > { %v1553_v0 = vsub.f32 1.0, %v1552_v54  ;;  %v3551_v54 = vld [vmem:[%s4501_s6 + $0x18] sm:$0xff] }
 0x297   : > { %v1578_v28 = vor.u32 1.1754944e-38, %v1577_v56  ;;  %vm1576_vm4 = vcmp.eq.f32.partialorder %v1575_v22, 8.507059e+37  ;;  %1594 = vperm.xlu2 %3623, %v3551_v54   ;;  %v4299_v8 = vpop.permute.xlu1 %2692 }
 0x298   : > { %v1554_v6 = vmul.f32 %v3637_v49, %v1553_v0  ;;  %v1859_v0 = vpop.permute.xlu2 %1858 }
 0x29a   : > { %v1555_v12 = vadd.f32 %v3637_v49, %v1554_v6 }
 0x29b   : > { %v3639_v13 = vpop.eup %3638 }
 0x29c   : > { %v1567_v24 = vmul.f32 %v3639_v13, %v1550_v53  ;;  %v1559_v25 = vsel %vm1558_vm13, %v3637_v49, %v1555_v12  ;;  %vm1572_vm15 = vweird.f32 %v3639_v13  ;;  %v1899_v49 = vand.u32 4294901760, %v1898_v30 }
 0x29d   : > { %v1564_v48 = vsel %vm1561_vm14, %v1563_v14, %v1559_v25  ;;  %vm1573_vm3 = vmor %vm1571_vm0, %vm1572_vm15 }
 0x29e   : > { %v1568_v55 = vsub.f32 1.0, %v1567_v24  ;;  %v1619_v26 = vand.u32 4294901760, %v1564_v48  ;;  %v1900_v53 = vsub.f32 %v1898_v30, %v1899_v49 }
 0x29f   : > { %v4303_v9 = vpop.permute.xlu1 %2901 }
 0x2a0   : > { %v1569_v21 = vmul.f32 %v3639_v13, %v1568_v55  ;;  %v1659_v37 = vsub.f32 %v1564_v48, %v1619_v26  ;;  %v1901_v59 = vand.u32 4294901760, %v1900_v53 }
 0x2a2   : > { %v1570_v27 = vadd.f32 %v3639_v13, %v1569_v21  ;;  %v1660_v45 = vand.u32 4294901760, %v1659_v37 }
 0x2a4   : > { %v1574_v36 = vsel %vm1573_vm3, %v3639_v13, %v1570_v27  ;;  %v1661_v63 = vsub.f32 %v1659_v37, %v1660_v45 }
 0x2a5   : > { %v1579_v38 = vsel %vm1576_vm4, %v1578_v28, %v1574_v36 }
 0x2a6   : > { %v1617_v39 = vand.u32 4294901760, %v1579_v38  ;;  %v1662_v16 = vand.u32 4294901760, %v1661_v63 }
 0x2a7   : > { %v1590_v14 = vpop.permute.xlu1 %1589 }
 0x2a8   : > { %1618 = vmatpush.msrb.mxu0 %v1617_v39  ;;  %1719 = vmatpush.msrb.mxu3 %v1617_v39  ;;  %v1653_v44 = vsub.f32 %v1579_v38, %v1617_v39 }
 0x2aa   : > { %1620 = vmatpush.msrb.mxu0 %v1619_v26  ;;  %1689 = vmatpush.msrb.mxu2 %v1653_v44  ;;  %v1654_v51 = vand.u32 4294901760, %v1653_v44 }
 0x2ab   : > { %1721 = vmatpush.msrb.mxu3 %v1619_v26  ;;  %1626 = vmatmul.f32.vlgmr.msrb.gmra.mxu0 %v1625_v41 }
 0x2ac   : > { %1692 = vmatpush.msrb.mxu2 %v1659_v37  ;;  %1752 = vmatpush.msra.mxu0 %v1654_v51  ;;  %v1655_v62 = vsub.f32 %v1653_v44, %v1654_v51 }
 0x2ad   : > { %1695 = vmatmul.f32.vlgmr.msrb.gmra.mxu2 %v1622_v18  ;;  %1725 = vmatmul.f32.vlgmr.msrb.gmra.mxu3 %v1623_v61 }
 0x2ae   : > { %1756 = vmatpush.msra.mxu0 %v1660_v45  ;;  %v1656_v7 = vand.u32 4294901760, %v1655_v62  ;;  %1888 = vmatpush.msra.mxu2 %v4170_v46  ;;  %v4309_v62 = vpop.permute.xlu0 %2488 }
 0x2af   : > { %1926 = vmatpush.msra.mxu3 %v4189_v15 }
 0x2b0   : > { %1953 = vmatpush.msrb.mxu0 %v4175_v58  ;;  %1657 = vmatpush.msrb.mxu1 %v1656_v7 }
 0x2b1   : > { %2013 = vmatpush.msrb.mxu2 %v4181_v3  ;;  %2039 = vmatpush.msrb.mxu3 %v4170_v46 }
 0x2b2   : > { %1663 = vmatpush.msrb.mxu1 %v1662_v16 }
 0x2b3   : > { %1634 = vmatmul.f32.gmra.mxu0 %v1633_v11  ;;  %1665 = vmatmul.f32.vlgmr.msrb.gmra.mxu1 %v4250_v2 }
 0x2b4   : > { %1781 = vmatpush.msra.mxu1 %v1617_v39 }
 0x2b5   : > { %1700 = vmatmul.f32.gmra.mxu2 %v1630_v32  ;;  %1731 = vmatmul.f32.gmra.mxu3 %v1631_v42 }
 0x2b6   : > { %1783 = vmatpush.msra.mxu1 %v1619_v26 }
 0x2b8   : > { %1981 = vmatpush.msrb.mxu1 %v4170_v46 }
 0x2bb   : > { %1669 = vmatmul.f32.gmra.mxu1 %v4260_v20  ;;  %1758 = vmatmul.f32.vlgmr.msra.gmra.mxu0 %v4250_v2 }
 0x2bd   : > { %1894 = vmatmul.f32.vlgmr.msra.gmra.mxu2 %v1893_v43  ;;  %1928 = vmatmul.f32.vlgmr.msra.gmra.mxu3 %v1889_v50 }
 0x2c3   : > { %1762 = vmatmul.f32.gmra.mxu0 %v4260_v20  ;;  %1785 = vmatmul.f32.vlgmr.msra.gmra.mxu1 %v4250_v2 }
 0x2c5   : > { %1902 = vmatmul.f32.gmra.mxu2 %v1901_v59  ;;  %1932 = vmatmul.f32.gmra.mxu3 %v1897_v23  ;;  %v4320_v59 = vpop.permute.xlu0 %2906 }
 0x2cb   : > { %1789 = vmatmul.f32.gmra.mxu1 %v4260_v20  ;;  %1956 = vmatmul.f32.vlgmr.msrb.gmra.mxu0 %v1890_v4  ;;  %v4297_v6 = vpop.permute.xlu2 %2493  ;;  %v2051_v4 = vld [vmem:[%s4537_s23] sm:$0xff] }
 0x2cc   : > { %v2066_v16 = vsel %vm1346_vm2, %v2051_v4, 0  ;;  %v3553_v4 = vld [vmem:[%s4537_s23 + $0x18] sm:$0xff] }
 0x2cd   : > { %2015 = vmatmul.f32.vlgmr.msrb.gmra.mxu2 %v1889_v50  ;;  %2041 = vmatmul.f32.vlgmr.msrb.gmra.mxu3 %v1889_v50 }
 0x2d3   : > { %1961 = vmatmul.f32.gmra.mxu0 %v1898_v30  ;;  %1985 = vmatmul.f32.vlgmr.msrb.gmra.mxu1 %v1891_v17  ;;  %v4318_v30 = vand.u32 4294901760, %v2066_v16 }
 0x2d5   : > { %2019 = vmatmul.f32.gmra.mxu2 %v1897_v23  ;;  %2045 = vmatmul.f32.gmra.mxu3 %v1897_v23 }
 0x2d9   : > { %v4301_v2 = vpop.permute.xlu2 %2687 }
 0x2db   : > { %1991 = vmatmul.f32.gmra.mxu1 %v1899_v49 }
 0x2e1   : > { %v4305_v13 = vpop.permute.xlu2 %2278 }
 0x2f1   : > { %v1595_v55 = vpop.permute.xlu2 %1594 }
 0x328   : > { %v1627_v12 = vpop.f32.mrf.mxu0 }
 0x329   : > { %v1628_v18 = vadd.f32 %v1627_v12, %v1590_v14  ;;  %v4323_v12 = vsub.f32 %v2066_v16, %v4318_v30  ;;  %v2052_v14 = vld [vmem:[%s4537_s23 + $0x8] sm:$0xff] }
 0x330   : > { %v1635_v19 = vpop.f32.mrf.mxu0  ;;  %v1666_v24 = vpop.f32.mrf.mxu1 }
 0x331   : > { %v1667_v25 = vadd.f32 %v1666_v24, %v1628_v18  ;;  %v1696_v47 = vpop.f32.mrf.mxu2  ;;  %v1726_v48 = vpop.f32.mrf.mxu3  ;;  %v1636_v20 = vadd.f32 %v1635_v19, %v1595_v55 }
 0x333   : > { %v1697_v56 = vadd.f32 %v1696_v47, %v1667_v25 }
 0x335   : > { %v1727_v61 = vadd.f32 %v1726_v48, %v1697_v56  ;;  %v2069_v56 = vsel %vm1346_vm2, %v2052_v14, 0 }
 0x338   : > { %v1670_v21 = vpop.f32.mrf.mxu1  ;;  %v1759_v22 = vpop.f32.mrf.mxu0 }
 0x339   : > { %v1671_v26 = vadd.f32 %v1670_v21, %v1636_v20  ;;  %v1760_v27 = vadd.f32 %v1759_v22, %v1727_v61  ;;  %v1701_v28 = vpop.f32.mrf.mxu2  ;;  %v1732_v31 = vpop.f32.mrf.mxu3  ;;  %v2091_v20 = vand.u32 4294901760, %v4323_v12 }
 0x33b   : > { %v1702_v32 = vadd.f32 %v1701_v28, %v1671_v26 }
 0x33d   : > { %v1733_v33 = vadd.f32 %v1732_v31, %v1702_v32  ;;  %v4336_v31 = vand.u32 4294901760, %v2069_v56 }
 0x340   : > { %v1763_v36 = vpop.f32.mrf.mxu0  ;;  %v1786_v37 = vpop.f32.mrf.mxu1 }
 0x341   : > { %v1764_v38 = vadd.f32 %v1763_v36, %v1733_v33  ;;  %v1787_v39 = vadd.f32 %v1786_v37, %v1760_v27  ;;  %v1895_v40 = vpop.f32.mrf.mxu2  ;;  %v1929_v41 = vpop.f32.mrf.mxu3  ;;  %v2092_v36 = vsub.f32 %v4323_v12, %v2091_v20 }
 0x342   : > { %v1896_v50 = vadd.f32 %v1895_v40, %v1859_v0 }
 0x343   : > { %v1793_v42 = vsub.f32 0.0, %v1787_v39  ;;  %v4339_v39 = vpop.permute.xlu0 %2273 }
 0x344   : > { %v1930_v10 = vadd.f32 %v1929_v41, %v1896_v50  ;;  %v2098_v41 = vsub.f32 %v2069_v56, %v4336_v31 }
 0x345   : > { %v1795_v44 = vmul.f32 1.442695, %v1793_v42 }
 0x347   : > { %3640 = vpow2.f32 %v1795_v44 }
 0x348   : > { %v1790_v45 = vpop.f32.mrf.mxu1  ;;  %v1957_v63 = vpop.f32.mrf.mxu0 }
 0x349   : > { %v1791_v51 = vadd.f32 %v1790_v45, %v1764_v38  ;;  %v1903_v52 = vpop.f32.mrf.mxu2  ;;  %v1933_v57 = vpop.f32.mrf.mxu3  ;;  %v1958_v23 = vadd.f32 %v1957_v63, %v1930_v10  ;;  %v2099_v10 = vand.u32 4294901760, %v2098_v41 }
 0x34a   : > { %v1904_v35 = vadd.f32 %v1903_v52, %v1864_v60 }
 0x34b   : > { %v1794_v5 = vsub.f32 0.0, %v1791_v51  ;;  %v2093_v51 = vand.u32 4294901760, %v2092_v36 }
 0x34c   : > { %v1934_v19 = vadd.f32 %v1933_v57, %v1904_v35 }
 0x34d   : > { %v3641_v7 = vpop.eup %3640  ;;  %v1797_v11 = vmul.f32 1.442695, %v1794_v5 }
 0x34e   : > { %v4315_v17 = vadd.f32 1.0, %v3641_v7 }
 0x34f   : > { %3642 = vpow2.f32 %v1797_v11 }
 0x350   : > { %3644 = vrcp.f32 %v4315_v17  ;;  %v1986_v29 = vpop.f32.mrf.mxu1  ;;  %v1962_v0 = vpop.f32.mrf.mxu0  ;;  %v1812_v50 = vand.u32 2147483648, %v4315_v17  ;;  %vm1806_vm6 = vweird.f32 %v4315_v17  ;;  %v1810_v63 = vand.u32 2147483647, %v4315_v17 }
 0x351   : > { %v1987_v43 = vadd.f32 %v1986_v29, %v1958_v23  ;;  %v2016_v49 = vpop.f32.mrf.mxu2  ;;  %v2042_v53 = vpop.f32.mrf.mxu3  ;;  %v1963_v48 = vadd.f32 %v1962_v0, %v1934_v19 }
 0x352   : > { %v1813_v35 = vor.u32 1.1754944e-38, %v1812_v50  ;;  %vm1811_vm10 = vcmp.eq.f32.partialorder %v1810_v63, 8.507059e+37 }
 0x353   : > { %v2017_v54 = vadd.f32 %v2016_v49, %v1987_v43 }
 0x355   : > { %v3643_v18 = vpop.eup %3642  ;;  %v2043_v24 = vadd.f32 %v2042_v53, %v2017_v54  ;;  %v2100_v54 = vsub.f32 %v2098_v41, %v2099_v10 }
 0x356   : > { %v3645_v25 = vpop.eup %3644  ;;  %v1800_v47 = vadd.f32 1.0, %v3643_v18 }
 0x357   : > { %v1802_v60 = vmul.f32 %v3645_v25, %v4315_v17  ;;  %v4329_v55 = vmax.f32 %v2043_v24, 0.0  ;;  %vm1807_vm5 = vweird.f32 %v3645_v25  ;;  %v1836_v24 = vpop.permute.xlu0 %1835 }
 0x358   : > { %3646 = vrcp.f32 %v1800_v47  ;;  %v1992_v61 = vpop.f32.mrf.mxu1  ;;  %vm4350_vm7 = vmor %vm1806_vm6, %vm1807_vm5  ;;  %v1827_v5 = vand.u32 2147483648, %v1800_v47  ;;  %v1825_v11 = vand.u32 2147483647, %v1800_v47  ;;  %vm1821_vm9 = vweird.f32 %v1800_v47 }
 0x359   : > { %v1803_v21 = vsub.f32 1.0, %v1802_v60  ;;  %v1993_v22 = vadd.f32 %v1992_v61, %v1963_v48  ;;  %v2020_v26 = vpop.f32.mrf.mxu2  ;;  %v4334_v27 = vand.u32 4294901760, %v4329_v55  ;;  %v2046_v28 = vpop.f32.mrf.mxu3  ;;  %v2101_v61 = vand.u32 4294901760, %v2100_v54 }
 0x35a   : > { %v1828_v53 = vor.u32 1.1754944e-38, %v1827_v5  ;;  %vm1826_vm12 = vcmp.eq.f32.partialorder %v1825_v11, 8.507059e+37 }
 0x35b   : > { %v1804_v32 = vmul.f32 %v3645_v25, %v1803_v21  ;;  %v2021_v33 = vadd.f32 %v2020_v26, %v1993_v22  ;;  %v2127_v40 = vsub.f32 %v4329_v55, %v4334_v27 }
 0x35d   : > { %v2047_v37 = vadd.f32 %v2046_v28, %v2021_v33  ;;  %v1805_v45 = vadd.f32 %v3645_v25, %v1804_v32  ;;  %v2128_v7 = vand.u32 4294901760, %v2127_v40 }
 0x35e   : > { %v3647_v38 = vpop.eup %3646 }
 0x35f   : > { %v1817_v42 = vmul.f32 %v3647_v38, %v1800_v47  ;;  %v4344_v44 = vmax.f32 %v2047_v37, 0.0  ;;  %vm1822_vm8 = vweird.f32 %v3647_v38  ;;  %v1809_v29 = vsel %vm4350_vm7, %v3645_v25, %v1805_v45  ;;  %v1841_v25 = vpop.permute.xlu1 %1840 }
 0x360   : > { %vm4358_vm11 = vmor %vm1821_vm9, %vm1822_vm8  ;;  %v1814_v0 = vsel %vm1811_vm10, %v1813_v35, %v1809_v29  ;;  %v2129_v18 = vsub.f32 %v2127_v40, %v2128_v7 }
 0x361   : > { %v1818_v52 = vsub.f32 1.0, %v1817_v42  ;;  %v2085_v57 = vand.u32 4294901760, %v4344_v44  ;;  %v1843_v48 = vmul.f32 %v1836_v24, %v1814_v0 }
 0x362   : > { %v2130_v21 = vand.u32 4294901760, %v2129_v18 }
 0x363   : > { %v1819_v16 = vmul.f32 %v3647_v38, %v1818_v52  ;;  %v2121_v23 = vsub.f32 %v4344_v44, %v2085_v57  ;;  %2086 = vmatpush.msra.mxu0 %v2085_v57  ;;  %2187 = vmatpush.msra.mxu3 %v2085_v57 }
 0x365   : > { %2088 = vmatpush.msra.mxu0 %v4334_v27  ;;  %2157 = vmatpush.msra.mxu2 %v2121_v23  ;;  %v2122_v17 = vand.u32 4294901760, %v2121_v23  ;;  %v1820_v43 = vadd.f32 %v3647_v38, %v1819_v16  ;;  %v2285_v16 = vsel %vm1346_vm2, %v3553_v4, 0 }
 0x366   : > { %2189 = vmatpush.msra.mxu3 %v4334_v27  ;;  %2094 = vmatmul.f32.vlgmr.msra.gmra.mxu0 %v2093_v51 }
 0x367   : > { %2160 = vmatpush.msra.mxu2 %v2127_v40  ;;  %2220 = vmatpush.msrb.mxu0 %v2122_v17  ;;  %v2123_v14 = vsub.f32 %v2121_v23, %v2122_v17  ;;  %v1824_v19 = vsel %vm4358_vm11, %v3647_v38, %v1820_v43  ;;  %v3552_v40 = vld [vmem:[%s4537_s23 + $0x10] sm:$0xff]  ;;  %v4391_v17 = vand.u32 4294901760, %v2285_v16 }
 0x368   : > { %2163 = vmatmul.f32.vlgmr.msra.gmra.mxu2 %v4323_v12  ;;  %2193 = vmatmul.f32.vlgmr.msra.gmra.mxu3 %v2091_v20  ;;  %v1829_v47 = vsel %vm1826_vm12, %v1828_v53, %v1824_v19 }
 0x369   : > { %2224 = vmatpush.msrb.mxu0 %v2128_v7  ;;  %v2124_v60 = vand.u32 4294901760, %v2123_v14  ;;  %v1844_v56 = vmul.f32 %v1841_v25, %v1829_v47  ;;  %v2314_v0 = vsub.f32 %v2285_v16, %v4391_v17  ;;  %v2482_v14 = vld [vmem:[%s4542_s13] sm:$0xff] }
 0x36a   : > { %v2497_v24 = vsel %vm1106_vm1, %v2482_v14, 0 }
 0x36b   : > { %2125 = vmatpush.msra.mxu1 %v2124_v60  ;;  %v4366_v22 = vadd.f32 %v1844_v56, %v1843_v48  ;;  %v2315_v47 = vand.u32 4294901760, %v2314_v0  ;;  %v2519_v56 = vand.u32 4294901760, %v2497_v24 }
 0x36d   : > { %2131 = vmatpush.msra.mxu1 %v2130_v21  ;;  %v2483_v21 = vld [vmem:[%s4542_s13 + $0x8] sm:$0xff] }
 0x36e   : > { %2102 = vmatmul.f32.gmra.mxu0 %v2101_v61  ;;  %2133 = vmatmul.f32.vlgmr.msra.gmra.mxu1 %v4318_v30 }
 0x36f   : > { %2249 = vmatpush.msrb.mxu1 %v2085_v57 }
 0x370   : > { %2168 = vmatmul.f32.gmra.mxu2 %v2098_v41  ;;  %2199 = vmatmul.f32.gmra.mxu3 %v2099_v10 }
 0x371   : > { %2251 = vmatpush.msrb.mxu1 %v4334_v27 }
 0x376   : > { %2137 = vmatmul.f32.gmra.mxu1 %v4336_v31  ;;  %2226 = vmatmul.f32.vlgmr.msrb.gmra.mxu0 %v4318_v30 }
 0x37e   : > { %2230 = vmatmul.f32.gmra.mxu0 %v4336_v31  ;;  %2253 = vmatmul.f32.vlgmr.msrb.gmra.mxu1 %v4318_v30 }
 0x386   : > { %2257 = vmatmul.f32.gmra.mxu1 %v4336_v31  ;;  %v2282_v31 = vsel %vm1346_vm2, %v3552_v40, 0 }
 0x3e3   : > { %v2095_v12 = vpop.f32.mrf.mxu0 }
 0x3e4   : > { %v2096_v28 = vadd.f32 %v2095_v12, %v4295_v1  ;;  %v4381_v1 = vand.u32 4294901760, %v2282_v31 }
 0x3eb   : > { %v2103_v20 = vpop.f32.mrf.mxu0  ;;  %v2134_v26 = vpop.f32.mrf.mxu1 }
 0x3ec   : > { %v2164_v32 = vpop.f32.mrf.mxu2  ;;  %v2135_v33 = vadd.f32 %v2134_v26, %v2096_v28  ;;  %v2194_v36 = vpop.f32.mrf.mxu3  ;;  %v2104_v41 = vadd.f32 %v2103_v20, %v4307_v34  ;;  %v2306_v34 = vsub.f32 %v2282_v31, %v4381_v1  ;;  %v2520_v26 = vsub.f32 %v2497_v24, %v2519_v56 }
 0x3ee   : > { %v2165_v27 = vadd.f32 %v2164_v32, %v2135_v33  ;;  %v2307_v35 = vand.u32 4294901760, %v2306_v34  ;;  %v2500_v32 = vsel %vm1106_vm1, %v2483_v21, 0 }
 0x3f0   : > { %v2195_v30 = vadd.f32 %v2194_v36, %v2165_v27  ;;  %v2308_v54 = vsub.f32 %v2306_v34, %v2307_v35  ;;  %v2527_v27 = vand.u32 4294901760, %v2500_v32 }
 0x3f2   : > { %v2309_v25 = vand.u32 4294901760, %v2308_v54  ;;  %v2528_v40 = vsub.f32 %v2500_v32, %v2527_v27 }
 0x3f3   : > { %v2138_v37 = vpop.f32.mrf.mxu1  ;;  %v2227_v38 = vpop.f32.mrf.mxu0 }
 0x3f4   : > { %v2139_v42 = vadd.f32 %v2138_v37, %v2104_v41  ;;  %v2169_v45 = vpop.f32.mrf.mxu2  ;;  %v2228_v50 = vadd.f32 %v2227_v38, %v2195_v30  ;;  %v2200_v63 = vpop.f32.mrf.mxu3  ;;  %v2521_v37 = vand.u32 4294901760, %v2520_v26 }
 0x3f6   : > { %v2170_v52 = vadd.f32 %v2169_v45, %v2139_v42  ;;  %v2522_v38 = vsub.f32 %v2520_v26, %v2521_v37 }
 0x3f8   : > { %v2201_v10 = vadd.f32 %v2200_v63, %v2170_v52 }
 0x3fb   : > { %v2254_v51 = vpop.f32.mrf.mxu1  ;;  %v2231_v7 = vpop.f32.mrf.mxu0 }
 0x3fc   : > { %v2255_v57 = vadd.f32 %v2254_v51, %v2228_v50  ;;  %v2232_v23 = vadd.f32 %v2231_v7, %v2201_v10 }
 0x3fe   : > { %v2261_v5 = vmax.f32 %v2255_v57, 0.0 }
 0x400   : > { %v4388_v11 = vadd.f32 %v2261_v5, %v4329_v55 }
 0x402   : > { %v2303_v49 = vand.u32 4294901760, %v4388_v11 }
 0x403   : > { %v2258_v29 = vpop.f32.mrf.mxu1 }
 0x404   : > { %v2259_v43 = vadd.f32 %v2258_v29, %v2232_v23  ;;  %v2343_v18 = vsub.f32 %v4388_v11, %v2303_v49 }
 0x406   : > { %v2262_v53 = vmax.f32 %v2259_v43, 0.0  ;;  %v2344_v48 = vand.u32 4294901760, %v2343_v18 }
 0x408   : > { %v4399_v55 = vadd.f32 %v2262_v53, %v4344_v44  ;;  %v2316_v44 = vsub.f32 %v2314_v0, %v2315_v47  ;;  %v2345_v20 = vsub.f32 %v2343_v18, %v2344_v48 }
 0x40a   : > { %v2301_v19 = vand.u32 4294901760, %v4399_v55  ;;  %v2317_v33 = vand.u32 4294901760, %v2316_v44  ;;  %v2346_v36 = vand.u32 4294901760, %v2345_v20  ;;  %v2682_v20 = vld [vmem:[%s4543_s21 + $0x8] sm:$0xff] }
 0x40c   : > { %2302 = vmatpush.msrb.mxu2 %v2301_v19  ;;  %2403 = vmatpush.msra.mxu1 %v2301_v19  ;;  %v2337_v60 = vsub.f32 %v4399_v55, %v2301_v19 }
 0x40e   : > { %2304 = vmatpush.msrb.mxu2 %v2303_v49  ;;  %2373 = vmatpush.msra.mxu0 %v2337_v60  ;;  %v2338_v61 = vand.u32 4294901760, %v2337_v60 }
 0x40f   : > { %2405 = vmatpush.msra.mxu1 %v2303_v49  ;;  %2310 = vmatmul.f32.vlgmr.msrb.gmra.mxu2 %v2309_v25 }
 0x410   : > { %2376 = vmatpush.msra.mxu0 %v2343_v18  ;;  %2436 = vmatpush.msra.mxu2 %v2338_v61  ;;  %v2339_v12 = vsub.f32 %v2337_v60, %v2338_v61 }
 0x411   : > { %2379 = vmatmul.f32.vlgmr.msra.gmra.mxu0 %v2306_v34  ;;  %2409 = vmatmul.f32.vlgmr.msra.gmra.mxu1 %v2307_v35 }
 0x412   : > { %2440 = vmatpush.msra.mxu2 %v2344_v48  ;;  %v2340_v28 = vand.u32 4294901760, %v2339_v12  ;;  %2518 = vmatpush.msrb.mxu0 %v4170_v46 }
 0x413   : > { %2556 = vmatpush.msrb.mxu1 %v4189_v15  ;;  %v2529_v15 = vand.u32 4294901760, %v2528_v40 }
 0x414   : > { %2583 = vmatpush.msrb.mxu2 %v4175_v58  ;;  %2341 = vmatpush.msrb.mxu3 %v2340_v28  ;;  %v2523_v58 = vand.u32 4294901760, %v2522_v38 }
 0x415   : > { %2643 = vmatpush.msra.mxu0 %v4181_v3  ;;  %2669 = vmatpush.msra.mxu1 %v4170_v46  ;;  %v2530_v3 = vsub.f32 %v2528_v40, %v2529_v15 }
 0x416   : > { %2347 = vmatpush.msrb.mxu3 %v2346_v36 }
 0x417   : > { %2318 = vmatmul.f32.gmra.mxu2 %v2317_v33  ;;  %2349 = vmatmul.f32.vlgmr.msrb.gmra.mxu3 %v4381_v1  ;;  %v2531_v41 = vand.u32 4294901760, %v2530_v3 }
 0x418   : > { %2465 = vmatpush.msra.mxu3 %v2301_v19  ;;  %v2681_v19 = vld [vmem:[%s4543_s21] sm:$0xff] }
 0x419   : > { %2384 = vmatmul.f32.gmra.mxu0 %v2314_v0  ;;  %2415 = vmatmul.f32.gmra.mxu1 %v2315_v47  ;;  %v2696_v60 = vsel %vm1346_vm2, %v2681_v19, 0 }
 0x41a   : > { %2467 = vmatpush.msra.mxu3 %v2303_v49  ;;  %v2719_v21 = vand.u32 4294901760, %v2696_v60 }
 0x41c   : > { %2611 = vmatpush.msrb.mxu3 %v4170_v46  ;;  %v2720_v32 = vsub.f32 %v2696_v60, %v2719_v21 }
 0x41f   : > { %2353 = vmatmul.f32.gmra.mxu3 %v4391_v17  ;;  %2442 = vmatmul.f32.vlgmr.msra.gmra.mxu2 %v4381_v1 }
 0x421   : > { %2524 = vmatmul.f32.vlgmr.msrb.gmra.mxu0 %v2523_v58  ;;  %2558 = vmatmul.f32.vlgmr.msrb.gmra.mxu1 %v2519_v56 }
 0x427   : > { %2446 = vmatmul.f32.gmra.mxu2 %v4391_v17  ;;  %2469 = vmatmul.f32.vlgmr.msra.gmra.mxu3 %v4381_v1 }
 0x429   : > { %2532 = vmatmul.f32.gmra.mxu0 %v2531_v41  ;;  %2562 = vmatmul.f32.gmra.mxu1 %v2527_v27 }
 0x42f   : > { %2473 = vmatmul.f32.gmra.mxu3 %v4391_v17  ;;  %2586 = vmatmul.f32.vlgmr.msrb.gmra.mxu2 %v2520_v26 }
 0x431   : > { %2645 = vmatmul.f32.vlgmr.msra.gmra.mxu0 %v2519_v56  ;;  %2671 = vmatmul.f32.vlgmr.msra.gmra.mxu1 %v2519_v56 }
 0x437   : > { %2591 = vmatmul.f32.gmra.mxu2 %v2528_v40  ;;  %2615 = vmatmul.f32.vlgmr.msrb.gmra.mxu3 %v2521_v37  ;;  %v2699_v37 = vsel %vm1346_vm2, %v2682_v20, 0 }
 0x439   : > { %2649 = vmatmul.f32.gmra.mxu0 %v2527_v27  ;;  %2675 = vmatmul.f32.gmra.mxu1 %v2527_v27 }
 0x43f   : > { %2621 = vmatmul.f32.gmra.mxu3 %v2529_v15  ;;  %v2727_v15 = vand.u32 4294901760, %v2699_v37 }
 0x48e   : > { %v2380_v46 = vpop.f32.mrf.mxu0  ;;  %v2410_v42 = vpop.f32.mrf.mxu1 }
 0x492   : > { %v2311_v30 = vpop.f32.mrf.mxu2 }
 0x493   : > { %v2312_v31 = vadd.f32 %v2311_v30, %v4339_v39 }
 0x496   : > { %v2385_v1 = vpop.f32.mrf.mxu0  ;;  %v2416_v57 = vpop.f32.mrf.mxu1 }
 0x49a   : > { %v2319_v45 = vpop.f32.mrf.mxu2  ;;  %v2350_v50 = vpop.f32.mrf.mxu3 }
 0x49b   : > { %v2351_v51 = vadd.f32 %v2350_v50, %v2312_v31  ;;  %v2320_v4 = vadd.f32 %v2319_v45, %v4305_v13 }
 0x49d   : > { %v2381_v52 = vadd.f32 %v2380_v46, %v2351_v51 }
 0x49e   : > { %v2525_v23 = vpop.f32.mrf.mxu0  ;;  %v2559_v35 = vpop.f32.mrf.mxu1 }
 0x49f   : > { %v2411_v63 = vadd.f32 %v2410_v42, %v2381_v52  ;;  %v2526_v14 = vadd.f32 %v2525_v23, %v4309_v62  ;;  %v2728_v42 = vsub.f32 %v2699_v37, %v2727_v15 }
 0x4a1   : > { %v2560_v24 = vadd.f32 %v2559_v35, %v2526_v14 }
 0x4a2   : > { %v2354_v5 = vpop.f32.mrf.mxu3  ;;  %v2443_v7 = vpop.f32.mrf.mxu2 }
 0x4a3   : > { %v2355_v34 = vadd.f32 %v2354_v5, %v2320_v4  ;;  %v2444_v10 = vadd.f32 %v2443_v7, %v2411_v63 }
 0x4a5   : > { %v2386_v16 = vadd.f32 %v2385_v1, %v2355_v34  ;;  %v2729_v1 = vand.u32 4294901760, %v2728_v42 }
 0x4a6   : > { %v2533_v53 = vpop.f32.mrf.mxu0  ;;  %v2563_v54 = vpop.f32.mrf.mxu1 }
 0x4a7   : > { %v2417_v29 = vadd.f32 %v2416_v57, %v2386_v16  ;;  %v2534_v61 = vadd.f32 %v2533_v53, %v4297_v6  ;;  %v2721_v6 = vand.u32 4294901760, %v2720_v32  ;;  %v2730_v4 = vsub.f32 %v2728_v42, %v2729_v1 }
 0x4a9   : > { %v2564_v26 = vadd.f32 %v2563_v54, %v2534_v61  ;;  %v2722_v30 = vsub.f32 %v2720_v32, %v2721_v6  ;;  %v3557_v61 = vld [vmem:[%s4543_s21 + $0x18] sm:$0xff] }
 0x4aa   : > { %v2447_v17 = vpop.f32.mrf.mxu2  ;;  %v2470_v43 = vpop.f32.mrf.mxu3 }
 0x4ab   : > { %v2448_v39 = vadd.f32 %v2447_v17, %v2417_v29  ;;  %v4423_v49 = vadd.f32 %v2470_v43, %v2444_v10  ;;  %v2723_v51 = vand.u32 4294901760, %v2722_v30  ;;  %v2731_v10 = vand.u32 4294901760, %v2730_v4 }
 0x4ae   : > { %v2646_v25 = vpop.f32.mrf.mxu0  ;;  %v2672_v56 = vpop.f32.mrf.mxu1 }
 0x4b2   : > { %v2474_v0 = vpop.f32.mrf.mxu3  ;;  %v2587_v13 = vpop.f32.mrf.mxu2 }
 0x4b3   : > { %v4426_v18 = vadd.f32 %v2474_v0, %v2448_v39  ;;  %v2588_v47 = vadd.f32 %v2587_v13, %v2560_v24  ;;  %v3556_v0 = vld [vmem:[%s4543_s21 + $0x10] sm:$0xff] }
 0x4b4   : > { %v2910_v24 = vsel %vm1346_vm2, %v3556_v0, 0 }
 0x4b6   : > { %v2650_v38 = vpop.f32.mrf.mxu0  ;;  %v2676_v58 = vpop.f32.mrf.mxu1 }
 0x4ba   : > { %v2616_v48 = vpop.f32.mrf.mxu3  ;;  %v2592_v62 = vpop.f32.mrf.mxu2 }
 0x4bb   : > { %v2617_v44 = vadd.f32 %v2616_v48, %v2588_v47  ;;  %v2593_v33 = vadd.f32 %v2592_v62, %v2564_v26  ;;  %v2933_v48 = vand.u32 4294901760, %v2910_v24  ;;  %v2913_v26 = vsel %vm1346_vm2, %v3557_v61, 0 }
 0x4bd   : > { %v2647_v12 = vadd.f32 %v2646_v25, %v2617_v44  ;;  %v2934_v62 = vsub.f32 %v2910_v24, %v2933_v48 }
 0x4bf   : > { %v2673_v28 = vadd.f32 %v2672_v56, %v2647_v12 }
 0x4c1   : > { %v2679_v36 = vmax.f32 %v2673_v28, 0.0 }
 0x4c2   : > { %v2622_v27 = vpop.f32.mrf.mxu3 }
 0x4c3   : > { %v2623_v40 = vadd.f32 %v2622_v27, %v2593_v33  ;;  %v2717_v3 = vand.u32 4294901760, %v2679_v36  ;;  %v2941_v33 = vand.u32 4294901760, %v2913_v26 }
 0x4c5   : > { %v2651_v41 = vadd.f32 %v2650_v38, %v2623_v40  ;;  %v2757_v31 = vsub.f32 %v2679_v36, %v2717_v3 }
 0x4c7   : > { %v2677_v46 = vadd.f32 %v2676_v58, %v2651_v41  ;;  %v2758_v57 = vand.u32 4294901760, %v2757_v31  ;;  %v2942_v58 = vsub.f32 %v2913_v26, %v2941_v33 }
 0x4c9   : > { %v2680_v45 = vmax.f32 %v2677_v46, 0.0  ;;  %v2759_v7 = vsub.f32 %v2757_v31, %v2758_v57  ;;  %v2943_v46 = vand.u32 4294901760, %v2942_v58 }
 0x4cb   : > { %v2715_v50 = vand.u32 4294901760, %v2680_v45  ;;  %v2760_v16 = vand.u32 4294901760, %v2759_v7 }
 0x4cd   : > { %v2751_v52 = vsub.f32 %v2680_v45, %v2715_v50  ;;  %2716 = vmatpush.msra.mxu2 %v2715_v50  ;;  %2817 = vmatpush.msrb.mxu1 %v2715_v50  ;;  %v2944_v45 = vsub.f32 %v2942_v58, %v2943_v46 }
 0x4cf   : > { %v2752_v63 = vand.u32 4294901760, %v2751_v52  ;;  %2718 = vmatpush.msra.mxu2 %v2717_v3  ;;  %2787 = vmatpush.msrb.mxu0 %v2751_v52 }
 0x4d0   : > { %2819 = vmatpush.msrb.mxu1 %v2717_v3  ;;  %2724 = vmatmul.f32.vlgmr.msra.gmra.mxu2 %v2723_v51 }
 0x4d1   : > { %v2753_v5 = vsub.f32 %v2751_v52, %v2752_v63  ;;  %2790 = vmatpush.msrb.mxu0 %v2757_v31  ;;  %2850 = vmatpush.msrb.mxu2 %v2752_v63  ;;  %v2945_v52 = vand.u32 4294901760, %v2944_v45 }
 0x4d2   : > { %2793 = vmatmul.f32.vlgmr.msrb.gmra.mxu0 %v2720_v32  ;;  %2823 = vmatmul.f32.vlgmr.msrb.gmra.mxu1 %v2721_v6  ;;  %v2935_v32 = vand.u32 4294901760, %v2934_v62 }
 0x4d3   : > { %2854 = vmatpush.msrb.mxu2 %v2758_v57  ;;  %v2754_v34 = vand.u32 4294901760, %v2753_v5 }
 0x4d4   : > { %v2936_v40 = vsub.f32 %v2934_v62, %v2935_v32 }
 0x4d5   : > { %2755 = vmatpush.msra.mxu3 %v2754_v34 }
 0x4d6   : > { %v2937_v41 = vand.u32 4294901760, %v2936_v40 }
 0x4d7   : > { %2761 = vmatpush.msra.mxu3 %v2760_v16 }
 0x4d8   : > { %2732 = vmatmul.f32.gmra.mxu2 %v2731_v10  ;;  %2763 = vmatmul.f32.vlgmr.msra.gmra.mxu3 %v2719_v21 }
 0x4d9   : > { %2879 = vmatpush.msrb.mxu3 %v2715_v50 }
 0x4da   : > { %2798 = vmatmul.f32.gmra.mxu0 %v2728_v42  ;;  %2829 = vmatmul.f32.gmra.mxu1 %v2729_v1 }
 0x4db   : > { %2881 = vmatpush.msrb.mxu3 %v2717_v3 }
 0x4e0   : > { %2767 = vmatmul.f32.gmra.mxu3 %v2727_v15  ;;  %2856 = vmatmul.f32.vlgmr.msrb.gmra.mxu2 %v2719_v21 }
 0x4e8   : > { %2860 = vmatmul.f32.gmra.mxu2 %v2727_v15  ;;  %2883 = vmatmul.f32.vlgmr.msrb.gmra.mxu3 %v2719_v21 }
 0x4f0   : > { %2887 = vmatmul.f32.gmra.mxu3 %v2727_v15 }
 0x54f   : > { %v2794_v43 = vpop.f32.mrf.mxu0  ;;  %v2824_v53 = vpop.f32.mrf.mxu1 }
 0x553   : > { %v2725_v23 = vpop.f32.mrf.mxu2 }
 0x554   : > { %v2726_v17 = vadd.f32 %v2725_v23, %v4301_v2 }
 0x557   : > { %v2799_v60 = vpop.f32.mrf.mxu0  ;;  %v2830_v12 = vpop.f32.mrf.mxu1 }
 0x55b   : > { %v2733_v29 = vpop.f32.mrf.mxu2  ;;  %v2764_v35 = vpop.f32.mrf.mxu3 }
 0x55c   : > { %v2765_v39 = vadd.f32 %v2764_v35, %v2726_v17  ;;  %v2734_v19 = vadd.f32 %v2733_v29, %v4299_v8  ;;  %v3107_v29 = vld [vmem:[%s4544_s25] sm:$0xf] }
 0x55e   : > { %v2795_v14 = vadd.f32 %v2794_v43, %v2765_v39  ;;  %v3109_v39 = vsel %vm1346_vm2, %v3107_v29, 0 }
 0x560   : > { %v2825_v25 = vadd.f32 %v2824_v53, %v2795_v14  ;;  %v3129_v14 = vand.u32 4294901760, %v3109_v39 }
 0x563   : > { %v2768_v54 = vpop.f32.mrf.mxu3  ;;  %v2857_v13 = vpop.f32.mrf.mxu2 }
 0x564   : > { %v2769_v47 = vadd.f32 %v2768_v54, %v2734_v19  ;;  %v2858_v56 = vadd.f32 %v2857_v13, %v2825_v25 }
 0x566   : > { %v2800_v44 = vadd.f32 %v2799_v60, %v2769_v47  ;;  %v4453_v47 = vsub.f32 %v3109_v39, %v3129_v14 }
 0x568   : > { %v2831_v28 = vadd.f32 %v2830_v12, %v2800_v44  ;;  %v3131_v61 = vand.u32 4294901760, %v4453_v47 }
 0x56b   : > { %v2884_v2 = vpop.f32.mrf.mxu3  ;;  %v2861_v8 = vpop.f32.mrf.mxu2 }
 0x56c   : > { %v2885_v21 = vadd.f32 %v2884_v2, %v2858_v56  ;;  %v2862_v36 = vadd.f32 %v2861_v8, %v2831_v28 }
 0x56e   : > { %v2891_v20 = vmax.f32 %v2885_v21, 0.0 }
 0x570   : > { %v2931_v37 = vand.u32 4294901760, %v2891_v20 }
 0x572   : > { %v2971_v6 = vsub.f32 %v2891_v20, %v2931_v37  ;;  %v2481_v20 = vld [vmem:[%s4545_s29] sm:$0xf] }
 0x573   : > { %v2888_v27 = vpop.f32.mrf.mxu3 }
 0x574   : > { %v2889_v38 = vadd.f32 %v2888_v27, %v2862_v36  ;;  %v2972_v42 = vand.u32 4294901760, %v2971_v6 }
 0x576   : > { %v2892_v15 = vmax.f32 %v2889_v38, 0.0  ;;  %v2973_v51 = vsub.f32 %v2971_v6, %v2972_v42 }
 0x578   : > { %v2929_v3 = vand.u32 4294901760, %v2892_v15  ;;  %v2974_v57 = vand.u32 4294901760, %v2973_v51 }
 0x57a   : > { %v2965_v30 = vsub.f32 %v2892_v15, %v2929_v3  ;;  %2930 = vmatpush.msra.mxu0 %v2929_v3  ;;  %3031 = vmatpush.msra.mxu3 %v2929_v3 }
 0x57c   : > { %v2966_v31 = vand.u32 4294901760, %v2965_v30  ;;  %2932 = vmatpush.msra.mxu0 %v2931_v37  ;;  %3001 = vmatpush.msra.mxu2 %v2965_v30 }
 0x57d   : > { %3033 = vmatpush.msra.mxu3 %v2931_v37  ;;  %2938 = vmatmul.f32.vlgmr.msra.gmra.mxu0 %v2937_v41 }
 0x57e   : > { %v2967_v50 = vsub.f32 %v2965_v30, %v2966_v31  ;;  %3004 = vmatpush.msra.mxu2 %v2971_v6  ;;  %3064 = vmatpush.msrb.mxu0 %v2966_v31 }
 0x57f   : > { %3007 = vmatmul.f32.vlgmr.msra.gmra.mxu2 %v2934_v62  ;;  %3037 = vmatmul.f32.vlgmr.msra.gmra.mxu3 %v2935_v32  ;;  %v3272_v32 = vsel %vm1346_vm2, %v2481_v20, 0 }
 0x580   : > { %3068 = vmatpush.msrb.mxu0 %v2972_v42  ;;  %v2968_v1 = vand.u32 4294901760, %v2967_v50  ;;  %v3292_v27 = vand.u32 4294901760, %v3272_v32 }
 0x582   : > { %2969 = vmatpush.msra.mxu1 %v2968_v1  ;;  %v3293_v15 = vsub.f32 %v3272_v32, %v3292_v27 }
 0x584   : > { %2975 = vmatpush.msra.mxu1 %v2974_v57  ;;  %v3294_v31 = vand.u32 4294901760, %v3293_v15 }
 0x585   : > { %2946 = vmatmul.f32.gmra.mxu0 %v2945_v52  ;;  %2977 = vmatmul.f32.vlgmr.msra.gmra.mxu1 %v2933_v48 }
 0x586   : > { %3093 = vmatpush.msrb.mxu1 %v2929_v3  ;;  %v3295_v1 = vsub.f32 %v3293_v15, %v3294_v31 }
 0x587   : > { %3012 = vmatmul.f32.gmra.mxu2 %v2942_v58  ;;  %3043 = vmatmul.f32.gmra.mxu3 %v2943_v46 }
 0x588   : > { %3095 = vmatpush.msrb.mxu1 %v2931_v37 }
 0x58d   : > { %2981 = vmatmul.f32.gmra.mxu1 %v2941_v33  ;;  %3070 = vmatmul.f32.vlgmr.msrb.gmra.mxu0 %v2933_v48 }
 0x595   : > { %3074 = vmatmul.f32.gmra.mxu0 %v2941_v33  ;;  %3097 = vmatmul.f32.vlgmr.msrb.gmra.mxu1 %v2933_v48  ;;  %v2478_v48 = vmax.f32 %v4426_v18, 0.0  ;;  %v3132_v18 = vsub.f32 %v4453_v47, %v3131_v61 }
 0x597   : > { %v2480_v12 = vadd.f32 %v2478_v48, %v4399_v55  ;;  %v3133_v55 = vand.u32 4294901760, %v3132_v18 }
 0x59d   : > { %3101 = vmatmul.f32.gmra.mxu1 %v2941_v33  ;;  %v3288_v33 = vand.u32 4294901760, %v2480_v12 }
 0x59f   : > { %v3316_v58 = vsub.f32 %v2480_v12, %v3288_v33  ;;  %v3434_v12 = vld [vmem:[%s3895_s19] sm:$0xf] }
 0x5a1   : > { %v3317_v46 = vand.u32 4294901760, %v3316_v58 }
 0x5a3   : > { %v3318_v50 = vsub.f32 %v3316_v58, %v3317_v46 }
 0x5a5   : > { %v3319_v52 = vand.u32 4294901760, %v3318_v50 }
 0x5fa   : > { %v2939_v63 = vpop.f32.mrf.mxu0 }
 0x5fb   : > { %v2940_v7 = vadd.f32 %v2939_v63, %v4303_v9  ;;  %v3296_v63 = vand.u32 4294901760, %v3295_v1 }
 0x602   : > { %v2947_v4 = vpop.f32.mrf.mxu0  ;;  %v2978_v5 = vpop.f32.mrf.mxu1 }
 0x603   : > { %v3008_v34 = vpop.f32.mrf.mxu2  ;;  %v2979_v10 = vadd.f32 %v2978_v5, %v2940_v7  ;;  %v3038_v16 = vpop.f32.mrf.mxu3  ;;  %v2948_v43 = vadd.f32 %v2947_v4, %v4320_v59  ;;  %v2477_v59 = vmax.f32 %v4423_v49, 0.0 }
 0x605   : > { %v3009_v35 = vadd.f32 %v3008_v34, %v2979_v10  ;;  %v2479_v8 = vadd.f32 %v2477_v59, %v4388_v11 }
 0x607   : > { %v3039_v53 = vadd.f32 %v3038_v16, %v3009_v35  ;;  %v3290_v37 = vand.u32 4294901760, %v2479_v8  ;;  %v1846_v16 = vrot.slane %v4366_v22, 4 }
 0x609   : > { %v3322_v11 = vsub.f32 %v2479_v8, %v3290_v37  ;;  %v1847_v39 = vadd.f32 %v1846_v16, %v4366_v22 }
 0x60a   : > { %v2982_v23 = vpop.f32.mrf.mxu1  ;;  %v3071_v17 = vpop.f32.mrf.mxu0 }
 0x60b   : > { %v2983_v54 = vadd.f32 %v2982_v23, %v2948_v43  ;;  %v3013_v0 = vpop.f32.mrf.mxu2  ;;  %v3072_v13 = vadd.f32 %v3071_v17, %v3039_v53  ;;  %v3044_v25 = vpop.f32.mrf.mxu3  ;;  %v3323_v42 = vand.u32 4294901760, %v3322_v11 }
 0x60d   : > { %v3014_v19 = vadd.f32 %v3013_v0, %v2983_v54  ;;  %v3324_v51 = vsub.f32 %v3322_v11, %v3323_v42  ;;  %v3648_v0 = vld [vmem:[#allocation2] sm:$0xf] }
 0x60f   : > { %v3045_v2 = vadd.f32 %v3044_v25, %v3014_v19  ;;  %v3325_v57 = vand.u32 4294901760, %v3324_v51 }
 0x612   : > { %v3098_v9 = vpop.f32.mrf.mxu1  ;;  %v3075_v56 = vpop.f32.mrf.mxu0 }
 0x613   : > { %v3099_v24 = vadd.f32 %v3098_v9, %v3072_v13  ;;  %v3076_v44 = vadd.f32 %v3075_v56, %v3045_v2  ;;  %v1848_v13 = vrot.slane %v1847_v39, 2 }
 0x615   : > { %v3105_v60 = vmax.f32 %v3099_v24, 0.0 }
 0x617   : > { %v3127_v21 = vand.u32 4294901760, %v3105_v60 }
 0x619   : > { %v3159_v28 = vsub.f32 %v3105_v60, %v3127_v21 }
 0x61a   : > { %v3102_v62 = vpop.f32.mrf.mxu1 }
 0x61b   : > { %v3103_v26 = vadd.f32 %v3102_v62, %v3076_v44  ;;  %v3160_v40 = vand.u32 4294901760, %v3159_v28 }
 0x61d   : > { %v3106_v49 = vmax.f32 %v3103_v26, 0.0  ;;  %v3161_v41 = vsub.f32 %v3159_v28, %v3160_v40 }
 0x61f   : > { %v3125_v36 = vand.u32 4294901760, %v3106_v49  ;;  %v3162_v45 = vand.u32 4294901760, %v3161_v41 }
 0x621   : > { %v3153_v38 = vsub.f32 %v3106_v49, %v3125_v36  ;;  %3126 = vmatpush.msrb.mxu2 %v3125_v36  ;;  %3262 = vmatpush.msra.mxu1 %v3125_v36 }
 0x623   : > { %v3154_v6 = vand.u32 4294901760, %v3153_v38  ;;  %3128 = vmatpush.msrb.mxu2 %v3127_v21  ;;  %3264 = vmatpush.msra.mxu1 %v3127_v21 }
 0x624   : > { %3134 = vmatmul.f32.vlgmr.msrb.gmra.mxu2 %v3133_v55  ;;  %3266 = vmatmul.f32.vlgmr.msra.gmra.mxu1 %v3129_v14 }
 0x625   : > { %3373 = vmatpush.msrb.mxu1 %v3288_v33  ;;  %v3155_v3 = vsub.f32 %v3153_v38, %v3154_v6  ;;  %3185 = vmatpush.msra.mxu2 %v3153_v38 }
 0x626   : > { %3237 = vmatpush.msra.mxu0 %v3154_v6 }
 0x627   : > { %3375 = vmatpush.msrb.mxu1 %v3290_v37  ;;  %3188 = vmatpush.msra.mxu2 %v3159_v28  ;;  %v3156_v30 = vand.u32 4294901760, %v3155_v3 }
 0x628   : > { %3241 = vmatpush.msra.mxu0 %v3160_v40 }
 0x629   : > { %3289 = vmatpush.msrb.mxu2 %v3288_v33  ;;  %3157 = vmatpush.msrb.mxu3 %v3156_v30 }
 0x62a   : > { %3348 = vmatpush.msrb.mxu0 %v3316_v58 }
 0x62b   : > { %3243 = vmatmul.f32.vlgmr.msra.gmra.mxu0 %v3129_v14  ;;  %3291 = vmatpush.msrb.mxu2 %v3290_v37 }
 0x62c   : > { %3351 = vmatpush.msrb.mxu0 %v3322_v11  ;;  %3163 = vmatpush.msrb.mxu3 %v3162_v45 }
 0x62d   : > { %3165 = vmatmul.f32.vlgmr.msrb.gmra.mxu3 %v3129_v14  ;;  %3191 = vmatmul.f32.vlgmr.msra.gmra.mxu2 %v4453_v47  ;;  %v1849_v47 = vadd.f32 %v1848_v13, %v1847_v39 }
 0x62e   : > { %3210 = vmatpush.msra.mxu3 %v3125_v36  ;;  %3400 = vmatpush.msra.mxu2 %v3317_v46 }
 0x62f   : > { %3379 = vmatmul.f32.vlgmr.msrb.gmra.mxu1 %v3294_v31  ;;  %v1850_v59 = vrot.slane %v1849_v47, 1 }
 0x630   : > { %3212 = vmatpush.msra.mxu3 %v3127_v21  ;;  %3404 = vmatpush.msra.mxu2 %v3323_v42 }
 0x631   : > { %v1851_v22 = vadd.f32 %v1850_v59, %v1849_v47 }
 0x632   : > { %3320 = vmatpush.msrb.mxu3 %v3319_v52 }
 0x633   : > { %3354 = vmatmul.f32.vlgmr.msrb.gmra.mxu0 %v3293_v15 }
 0x634   : > { %3326 = vmatpush.msrb.mxu3 %v3325_v57 }
 0x635   : > { %3216 = vmatmul.f32.vlgmr.msra.gmra.mxu3 %v3131_v61  ;;  %3297 = vmatmul.f32.vlgmr.msrb.gmra.mxu2 %v3296_v63 }
 0x636   : > { %3425 = vmatpush.msra.mxu3 %v3288_v33 }
 0x638   : > { %3427 = vmatpush.msra.mxu3 %v3290_v37 }
 0x63d   : > { %3328 = vmatmul.f32.vlgmr.msrb.gmra.mxu3 %v3292_v27  ;;  %3406 = vmatmul.f32.vlgmr.msra.gmra.mxu2 %v3292_v27 }
 0x645   : > { %3429 = vmatmul.f32.vlgmr.msra.gmra.mxu3 %v3292_v27 }
 0x6a1   : > { %v3267_v17 = vpop.f32.mrf.mxu1 }
 0x6a7   : > { %v3135_v4 = vpop.f32.mrf.mxu2 }
 0x6a8   : > { %v3244_v29 = vpop.f32.mrf.mxu0 }
 0x6ac   : > { %v3380_v60 = vpop.f32.mrf.mxu1 }
 0x6b0   : > { %v3166_v5 = vpop.f32.mrf.mxu3  ;;  %v3192_v34 = vpop.f32.mrf.mxu2 }
 0x6b1   : > { %v3167_v7 = vadd.f32 %v3166_v5, %v3135_v4  ;;  %v3355_v24 = vpop.f32.mrf.mxu0 }
 0x6b3   : > { %v3193_v10 = vadd.f32 %v3192_v34, %v3167_v7 }
 0x6b8   : > { %v3217_v23 = vpop.f32.mrf.mxu3  ;;  %v3298_v53 = vpop.f32.mrf.mxu2 }
 0x6b9   : > { %v3218_v35 = vadd.f32 %v3217_v23, %v3193_v10 }
 0x6bb   : > { %v3245_v43 = vadd.f32 %v3244_v29, %v3218_v35 }
 0x6bd   : > { %v3268_v54 = vadd.f32 %v3267_v17, %v3245_v43 }
 0x6bf   : > { %v3270_v14 = vmul.f32 %v3648_v0, %v3268_v54 }
 0x6c0   : > { %v3329_v9 = vpop.f32.mrf.mxu3  ;;  %v3407_v56 = vpop.f32.mrf.mxu2 }
 0x6c1   : > { %v3299_v19 = vadd.f32 %v3298_v53, %v3270_v14 }
 0x6c3   : > { %v3330_v25 = vadd.f32 %v3329_v9, %v3299_v19 }
 0x6c5   : > { %v3356_v48 = vadd.f32 %v3355_v24, %v3330_v25 }
 0x6c7   : > { %v3381_v2 = vadd.f32 %v3380_v60, %v3356_v48 }
 0x6c8   : > { %v3430_v61 = vpop.f32.mrf.mxu3 }
 0x6c9   : > { %v3408_v44 = vadd.f32 %v3407_v56, %v3381_v2 }
 0x6cb   : > { %v3431_v21 = vadd.f32 %v3430_v61, %v3408_v44 }
 0x6cd   : > { %v3433_v62 = vmul.f32 %v3431_v21, %v1851_v22 }
 0x6cf   : > { %v3435_v20 = vadd.f32 %v3434_v12, %v3433_v62 }
 0x6d1   : > { %3436 = vst [vmem:[%s3900_s27] sm:$0xf] %v3435_v20 }
 0x6d2 PF: > { %s28_s1 = sadd.s32 1, %s3703_s1   ;;  %s4546_s20 = sld [smem:[#allocation8_spill]] }
 0x6d3   : > { %p25_p0 = scmp.ge.s32.totalorder %s28_s1, 6   ;;  %s4547_s29 = sld [smem:[#allocation4_spill]] }
 0x6d4   : > { %s4548_s30 = sld [smem:[#allocation5_spill]]  ;;  %s4551_s27 = smov %s3683_s28 }
 0x6d5   : > { %s4549_s0 = sld [smem:[#allocation6_spill]]  ;;  %27 = sbr.rel (!%p25_p0) target bundleno = 13 (0xd), region = 185 }
 0x6d6   : > { %s4550_s19 = sld [smem:[#allocation7_spill]] }
 0x6d8   : > { %s4552_s28 = smov %s4546_s20 }

</bundles_post_ra>
